<compile_context>
chip_gen: v6e
topology: v6e:2x2x1
jax: 0.10.0
libtpu: 0.0.40
codegen_flags: <defaults>
</compile_context>

<pallas_src>
import math

import jax
import jax.numpy as jnp
from jax.experimental import pallas as pl
from jax.experimental.pallas import tpu as pltpu

_BN_EPS = 1e-5
_LANE = 128


def _round_up(x, m):
    return ((x + m - 1) // m) * m


def _pick_tile(padded_dim, candidates):
    for c in candidates:
        if padded_dim % c == 0:
            return c
    return _LANE


# ----------------------------------------------------------------------------
# Pallas kernels
# ----------------------------------------------------------------------------
_KERNEL_CACHE = {}


def _get_mm_kernel(relu: bool, has_residual: bool):
    """Tiled, fused  out = [relu]( (x @ w) + bias [+ residual] )."""
    key = (relu, has_residual)
    if key in _KERNEL_CACHE:
        return _KERNEL_CACHE[key]

    if has_residual:
        def kernel(x_ref, w_ref, b_ref, r_ref, o_ref, acc_ref):
            @pl.when(pl.program_id(2) == 0)
            def _():
                acc_ref[...] = jnp.zeros_like(acc_ref)

            acc_ref[...] += jnp.dot(x_ref[...], w_ref[...],
                                    preferred_element_type=jnp.float32)

            @pl.when(pl.program_id(2) == pl.num_programs(2) - 1)
            def _():
                out = acc_ref[...] + b_ref[...]
                out = out + r_ref[...]
                if relu:
                    out = jnp.maximum(out, 0.0)
                o_ref[...] = out.astype(o_ref.dtype)
    else:
        def kernel(x_ref, w_ref, b_ref, o_ref, acc_ref):
            @pl.when(pl.program_id(2) == 0)
            def _():
                acc_ref[...] = jnp.zeros_like(acc_ref)

            acc_ref[...] += jnp.dot(x_ref[...], w_ref[...],
                                    preferred_element_type=jnp.float32)

            @pl.when(pl.program_id(2) == pl.num_programs(2) - 1)
            def _():
                out = acc_ref[...] + b_ref[...]
                if relu:
                    out = jnp.maximum(out, 0.0)
                o_ref[...] = out.astype(o_ref.dtype)

    _KERNEL_CACHE[key] = kernel
    return kernel


def _avgpool_kernel(x_ref, o_ref):
    # x_ref: (N, H*W, C) -> global spatial mean (small, runs once per forward).
    hw = x_ref.shape[1]
    o_ref[...] = jnp.sum(x_ref[...], axis=1) * (1.0 / float(hw))


# ----------------------------------------------------------------------------
# Pallas wrappers
# ----------------------------------------------------------------------------
def matmul_bias_act(x, w_pad, bias_pad, n_out, residual=None, relu=False):
    """out[:M, :n_out] = act( x @ w_pad + bias_pad [+ residual] ).

    x: (M, K) float32; w_pad: (Kp, Np) bf16 with K, N already zero-padded to
    multiples of 128; bias_pad: (1, Np) f32; residual: (M, n_out) f32.
    """
    M, K = x.shape
    Kp, Np = w_pad.shape

    tm = min(256, _round_up(M, 8))
    tn = _pick_tile(Np, (256, _LANE))
    tk = _pick_tile(Kp, (512, 384, 256, _LANE))
    Mp = _round_up(M, tm)

    x_p = jnp.pad(x.astype(jnp.bfloat16), ((0, Mp - M), (0, Kp - K)))

    inputs = [x_p, w_pad, bias_pad]
    in_specs = [
        pl.BlockSpec((tm, tk), lambda i, j, k: (i, k)),
        pl.BlockSpec((tk, tn), lambda i, j, k: (k, j)),
        pl.BlockSpec((1, tn), lambda i, j, k: (0, j)),
    ]
    bytes_accessed = Mp * Kp * 2 + Kp * Np * 2 + Mp * Np * 4 + Np * 4

    if residual is not None:
        r_p = jnp.pad(residual.astype(jnp.float32),
                      ((0, Mp - M), (0, Np - n_out)))
        inputs.append(r_p)
        in_specs.append(pl.BlockSpec((tm, tn), lambda i, j, k: (i, j)))
        bytes_accessed += Mp * Np * 4

    kernel = _get_mm_kernel(relu, residual is not None)

    out = pl.pallas_call(
        kernel,
        out_shape=jax.ShapeDtypeStruct((Mp, Np), jnp.float32),
        grid_spec=pltpu.PrefetchScalarGridSpec(
            num_scalar_prefetch=0,
            grid=(Mp // tm, Np // tn, Kp // tk),
            in_specs=in_specs,
            out_specs=pl.BlockSpec((tm, tn), lambda i, j, k: (i, j)),
            scratch_shapes=[pltpu.VMEM((tm, tn), jnp.float32)],
        ),
        compiler_params=pltpu.CompilerParams(
            dimension_semantics=("parallel", "parallel", "arbitrary")),
        cost_estimate=pl.CostEstimate(
            flops=2 * Mp * Np * Kp,
            transcendentals=0,
            bytes_accessed=int(bytes_accessed)),
    )(*inputs)
    return out[:M, :n_out]


def _im2col(x, kh, kw, stride, pad):
    """x: NHWC -> (N*Ho*Wo, kh*kw*C) patches (wrapper glue: slicing/reshape)."""
    # TODO(synk): fold the kh*kw window walk into the Pallas K grid axis to
    # avoid the HBM-materialized im2col for 3x3 convs (remaining ~9x traffic).
    n, h, w, c = x.shape
    ho = (h + 2 * pad - kh) // stride + 1
    wo = (w + 2 * pad - kw) // stride + 1
    if pad > 0:
        x = jnp.pad(x, ((0, 0), (pad, pad), (pad, pad), (0, 0)))
    cols = []
    for i in range(kh):
        for j in range(kw):
            cols.append(
                x[:, i:i + stride * ho:stride, j:j + stride * wo:stride, :])
    patches = jnp.concatenate(cols, axis=-1)  # (N, Ho, Wo, kh*kw*C)
    return patches.reshape(n * ho * wo, kh * kw * c), (n, ho, wo)


def conv_bn(x, p, stride, pad, relu, residual=None):
    """conv (no bias) + folded BN (+ residual) (+ relu); hot path in Pallas."""
    patches, (n, ho, wo) = _im2col(x, p["kh"], p["kw"], stride, pad)
    res_flat = None
    if residual is not None:
        res_flat = residual.reshape(n * ho * wo, p["cout"])
    out = matmul_bias_act(patches, p["w"], p["bias"], p["cout"],
                          residual=res_flat, relu=relu)
    return out.reshape(n, ho, wo, p["cout"])


def maxpool_3x3_s2_p1(x):
    """3x3/s2/p1 max pool as an XLA-fused maximum tree over shifted views
    (no materialized (9, M, C) stack — per perf review)."""
    n, h, w, c = x.shape
    k, s, pad = 3, 2, 1
    ho = (h + 2 * pad - k) // s + 1
    wo = (w + 2 * pad - k) // s + 1
    xp = jnp.pad(x, ((0, 0), (pad, pad), (pad, pad), (0, 0)),
                 constant_values=-jnp.inf)
    out = None
    for i in range(k):
        for j in range(k):
            v = xp[:, i:i + s * ho:s, j:j + s * wo:s, :]
            out = v if out is None else jnp.maximum(out, v)
    return out


def global_avgpool(x):
    n, h, w, c = x.shape
    xr = x.reshape(n, h * w, c)
    return pl.pallas_call(
        _avgpool_kernel,
        out_shape=jax.ShapeDtypeStruct((n, c), jnp.float32),
        grid=(1,),
        in_specs=[pl.BlockSpec((n, h * w, c), lambda i: (0, 0, 0))],
        out_specs=pl.BlockSpec((n, c), lambda i: (0, 0)),
    )(xr)


# ----------------------------------------------------------------------------
# Parameter construction (deterministic, synthetic init; BN folded, padded)
# ----------------------------------------------------------------------------
def _make_conv_params(key, cin, cout, kh, kw):
    # Kaiming-normal (fan_out, relu), matching the PyTorch module's init.
    fan_out = kh * kw * cout
    std = math.sqrt(2.0 / fan_out)
    w = std * jax.random.normal(key, (kh, kw, cin, cout), jnp.float32)
    w = w.reshape(kh * kw * cin, cout)       # matches im2col patch ordering
    # BatchNorm fold: gamma=1, beta=0, running_mean=0, running_var=1.
    gamma = jnp.ones((cout,), jnp.float32)
    beta = jnp.zeros((cout,), jnp.float32)
    mean = jnp.zeros((cout,), jnp.float32)
    var = jnp.ones((cout,), jnp.float32)
    scale = gamma / jnp.sqrt(var + _BN_EPS)
    bias = beta - mean * scale
    w = w * scale[None, :]                   # fold scale into the weights
    K = kh * kw * cin
    Kp = _round_up(K, _LANE)
    Np = _round_up(cout, _LANE)
    w_pad = jnp.pad(w, ((0, Kp - K), (0, Np - cout))).astype(jnp.bfloat16)
    b_pad = jnp.pad(bias, (0, Np - cout)).reshape(1, Np).astype(jnp.float32)
    return dict(w=w_pad, bias=b_pad, kh=kh, kw=kw, cout=cout)


def build_resnet18_params(key, num_classes=10):
    keys = jax.random.split(key, 64)
    ki = iter(keys)
    params = {"stem": _make_conv_params(next(ki), 3, 64, 7, 7)}

    layers_cfg = [(64, 2, 1), (128, 2, 2), (256, 2, 2), (512, 2, 2)]
    inplanes = 64
    layers = []
    for planes, blocks, stride in layers_cfg:
        blk_list = []
        for b in range(blocks):
            s = stride if b == 0 else 1
            blk = {"stride": s,
                   "conv1": _make_conv_params(next(ki), inplanes, planes, 3, 3),
                   "conv2": _make_conv_params(next(ki), planes, planes, 3, 3)}
            if s != 1 or inplanes != planes:
                blk["down"] = _make_conv_params(next(ki), inplanes, planes, 1, 1)
            blk_list.append(blk)
            inplanes = planes
        layers.append(blk_list)
    params["layers"] = layers

    # Linear(512 -> num_classes), PyTorch default uniform init; N padded to 128.
    kw_, kb_ = jax.random.split(next(ki))
    bound = 1.0 / math.sqrt(512)
    fc_w = jax.random.uniform(kw_, (512, num_classes), jnp.float32, -bound, bound)
    fc_b = jax.random.uniform(kb_, (num_classes,), jnp.float32, -bound, bound)
    Np = _round_up(num_classes, _LANE)
    params["fc"] = dict(
        w=jnp.pad(fc_w, ((0, 0), (0, Np - num_classes))).astype(jnp.bfloat16),
        bias=jnp.pad(fc_b, (0, Np - num_classes)).reshape(1, Np).astype(jnp.float32),
        cout=num_classes)
    return params


# ----------------------------------------------------------------------------
# Forward pass (mirrors ResNet.forward with BasicBlock)
# ----------------------------------------------------------------------------
def basic_block(x, blk):
    if "down" in blk:
        residual = conv_bn(x, blk["down"], stride=blk["stride"], pad=0,
                           relu=False)
    else:
        residual = x
    out = conv_bn(x, blk["conv1"], stride=blk["stride"], pad=1, relu=True)
    # conv2 + bn2 + residual add + relu fused into one tiled Pallas kernel.
    out = conv_bn(out, blk["conv2"], stride=1, pad=1, relu=True,
                  residual=residual)
    return out


def resnet_forward(params, x_nchw, return_feature=False,
                   return_feature_only=False):
    x = jnp.transpose(x_nchw.astype(jnp.float32), (0, 2, 3, 1))  # NCHW -> NHWC
    x = conv_bn(x, params["stem"], stride=2, pad=3, relu=True)   # conv1+bn1+relu
    x = maxpool_3x3_s2_p1(x)
    for layer in params["layers"]:
        for blk in layer:
            x = basic_block(x, blk)
    feature = global_avgpool(x)                                   # (N, 512)
    logits = matmul_bias_act(feature, params["fc"]["w"], params["fc"]["bias"],
                             params["fc"]["cout"], relu=False)
    if return_feature:
        if return_feature_only:
            return feature
        return logits, feature
    return logits


# ----------------------------------------------------------------------------
if __name__ == "__main__":
    key = jax.random.PRNGKey(0)
    k_params, k_x = jax.random.split(key)

    params = build_resnet18_params(k_params, num_classes=10)
    # Small input consistent with the module's NCHW conv stem (3 input channels).
    x = jax.random.normal(k_x, (2, 3, 32, 32), jnp.float32)

    fwd = jax.jit(lambda xx: resnet_forward(params, xx))
    logits = jax.block_until_ready(fwd(x))
    assert logits.shape == (2, 10), logits.shape
    assert bool(jnp.all(jnp.isfinite(logits)))
    print("KERNEL_OK")
</pallas_src>

<mosaic_0001>
module attributes {stable_mosaic.version = 11 : i64} {
  func.func @kernel(%arg0: i32, %arg1: i32, %arg2: i32, %arg3: memref<256x256xbf16, #tpu.memory_space<vmem>>, %arg4: memref<256x128xbf16, #tpu.memory_space<vmem>>, %arg5: memref<1x128xf32, #tpu.memory_space<vmem>>, %arg6: memref<256x128xf32, #tpu.memory_space<vmem>>, %arg7: memref<256x128xf32, #tpu.memory_space<vmem>>) attributes {dimension_semantics = [#tpu.dimension_semantics<parallel>, #tpu.dimension_semantics<parallel>, #tpu.dimension_semantics<arbitrary>], iteration_bounds = array<i64: 2, 1, 1>, scalar_prefetch = 0 : i64, scratch_operands = 1 : i64, tpu.core_type = #tpu.core_type<tc>, window_params = [{transform_indices = @transform_0, window_bounds = array<i64: 256, 256>}, {transform_indices = @transform_1, window_bounds = array<i64: 256, 128>}, {transform_indices = @transform_2, window_bounds = array<i64: 1, 128>}, {transform_indices = @transform_3, window_bounds = array<i64: 256, 128>}]} {
    %c0_i32 = arith.constant 0 : i32
    %0 = arith.cmpi eq, %arg2, %c0_i32 : i32
    %1 = arith.extui %0 : i1 to i32
    %c0_i32_0 = arith.constant 0 : i32
    %2 = arith.cmpi ne, %1, %c0_i32_0 : i32
    scf.if %2 {
      %cst_10 = arith.constant 0.000000e+00 : f32
      %12 = vector.broadcast %cst_10 : f32 to vector<256x128xf32>
      %c0_11 = arith.constant 0 : index
      %c0_12 = arith.constant 0 : index
      %13 = vector.load %arg7[%c0_11, %c0_12] : memref<256x128xf32, #tpu.memory_space<vmem>>, vector<256x128xf32>
      tpu.vector_store %arg7[%c0_11, %c0_12], %12 {strides = array<i32>} : memref<256x128xf32, #tpu.memory_space<vmem>>, vector<256x128xf32>,
    } else {
    }
    %c0 = arith.constant 0 : index
    %c0_1 = arith.constant 0 : index
    %3 = vector.load %arg7[%c0, %c0_1] : memref<256x128xf32, #tpu.memory_space<vmem>>, vector<256x128xf32>
    %c0_2 = arith.constant 0 : index
    %c0_3 = arith.constant 0 : index
    %4 = vector.load %arg3[%c0_2, %c0_3] : memref<256x256xbf16, #tpu.memory_space<vmem>>, vector<256x256xbf16>
    %c0_4 = arith.constant 0 : index
    %c0_5 = arith.constant 0 : index
    %5 = vector.load %arg4[%c0_4, %c0_5] : memref<256x128xbf16, #tpu.memory_space<vmem>>, vector<256x128xbf16>
    %cst = arith.constant dense<0.000000e+00> : vector<256x128xf32>
    %6 = tpu.matmul %4, %5, %cst {dimension_numbers = #tpu.dot_dimension_numbers<[1], [0], [0], [1], [0, 0, 1, 1], [], []>} : vector<256x256xbf16>, vector<256x128xbf16>, vector<256x128xf32> -> vector<256x128xf32>
    %7 = arith.addf %3, %6 : vector<256x128xf32>
    %c0_6 = arith.constant 0 : index
    %c0_7 = arith.constant 0 : index
    %8 = vector.load %arg7[%c0_6, %c0_7] : memref<256x128xf32, #tpu.memory_space<vmem>>, vector<256x128xf32>
    tpu.vector_store %arg7[%c0_6, %c0_7], %7 {strides = array<i32>} : memref<256x128xf32, #tpu.memory_space<vmem>>, vector<256x128xf32>,
    %c0_i32_8 = arith.constant 0 : i32
    %9 = arith.cmpi eq, %arg2, %c0_i32_8 : i32
    %10 = arith.extui %9 : i1 to i32
    %c0_i32_9 = arith.constant 0 : i32
    %11 = arith.cmpi ne, %10, %c0_i32_9 : i32
    scf.if %11 {
      %c0_10 = arith.constant 0 : index
      %c0_11 = arith.constant 0 : index
      %12 = vector.load %arg7[%c0_10, %c0_11] : memref<256x128xf32, #tpu.memory_space<vmem>>, vector<256x128xf32>
      %c0_12 = arith.constant 0 : index
      %c0_13 = arith.constant 0 : index
      %13 = vector.load %arg5[%c0_12, %c0_13] : memref<1x128xf32, #tpu.memory_space<vmem>>, vector<1x128xf32>
      %14 = vector.broadcast %13 : vector<1x128xf32> to vector<256x128xf32>
      %15 = arith.addf %12, %14 : vector<256x128xf32>
      %cst_14 = arith.constant 0.000000e+00 : f32
      %16 = vector.broadcast %cst_14 : f32 to vector<256x128xf32>
      %17 = arith.maximumf %15, %16 : vector<256x128xf32>
      %c0_15 = arith.constant 0 : index
      %c0_16 = arith.constant 0 : index
      %18 = vector.load %arg6[%c0_15, %c0_16] : memref<256x128xf32, #tpu.memory_space<vmem>>, vector<256x128xf32>
      tpu.vector_store %arg6[%c0_15, %c0_16], %17 {strides = array<i32>} : memref<256x128xf32, #tpu.memory_space<vmem>>, vector<256x128xf32>,
    } else {
    }
    return
  }
  func.func @transform_0(%arg0: i32, %arg1: i32, %arg2: i32) -> (i32, i32) {
    %c0_i32 = arith.constant 0 : i32
    return %arg0, %arg2 : i32, i32
  }
  func.func @transform_1(%arg0: i32, %arg1: i32, %arg2: i32) -> (i32, i32) {
    %c0_i32 = arith.constant 0 : i32
    return %arg2, %arg1 : i32, i32
  }
  func.func @transform_2(%arg0: i32, %arg1: i32, %arg2: i32) -> (i32, i32) {
    %c0_i32 = arith.constant 0 : i32
    %c0_i32_0 = arith.constant 0 : i32
    return %c0_i32, %arg1 : i32, i32
  }
  func.func @transform_3(%arg0: i32, %arg1: i32, %arg2: i32) -> (i32, i32) {
    %c0_i32 = arith.constant 0 : i32
    return %arg0, %arg1 : i32, i32
  }
}

module attributes {stable_mosaic.version = 11 : i64} {
  func.func @kernel(%arg0: i32, %arg1: i32, %arg2: i32, %arg3: memref<128x128xbf16, #tpu.memory_space<vmem>>, %arg4: memref<128x128xbf16, #tpu.memory_space<vmem>>, %arg5: memref<1x128xf32, #tpu.memory_space<vmem>>, %arg6: memref<128x128xf32, #tpu.memory_space<vmem>>, %arg7: memref<128x128xf32, #tpu.memory_space<vmem>>) attributes {dimension_semantics = [#tpu.dimension_semantics<parallel>, #tpu.dimension_semantics<parallel>, #tpu.dimension_semantics<arbitrary>], iteration_bounds = array<i64: 1, 1, 5>, scalar_prefetch = 0 : i64, scratch_operands = 1 : i64, tpu.core_type = #tpu.core_type<tc>, window_params = [{transform_indices = @transform_0, window_bounds = array<i64: 128, 128>}, {transform_indices = @transform_1, window_bounds = array<i64: 128, 128>}, {transform_indices = @transform_2, window_bounds = array<i64: 1, 128>}, {transform_indices = @transform_3, window_bounds = array<i64: 128, 128>}]} {
    %c0_i32 = arith.constant 0 : i32
    %0 = arith.cmpi eq, %arg2, %c0_i32 : i32
    %1 = arith.extui %0 : i1 to i32
    %c0_i32_0 = arith.constant 0 : i32
    %2 = arith.cmpi ne, %1, %c0_i32_0 : i32
    scf.if %2 {
      %cst_9 = arith.constant 0.000000e+00 : f32
      %12 = vector.broadcast %cst_9 : f32 to vector<128x128xf32>
      %c0_10 = arith.constant 0 : index
      %c0_11 = arith.constant 0 : index
      %13 = vector.load %arg7[%c0_10, %c0_11] : memref<128x128xf32, #tpu.memory_space<vmem>>, vector<128x128xf32>
      tpu.vector_store %arg7[%c0_10, %c0_11], %12 {strides = array<i32>} : memref<128x128xf32, #tpu.memory_space<vmem>>, vector<128x128xf32>,
    } else {
    }
    %c0 = arith.constant 0 : index
    %c0_1 = arith.constant 0 : index
    %3 = vector.load %arg7[%c0, %c0_1] : memref<128x128xf32, #tpu.memory_space<vmem>>, vector<128x128xf32>
    %c0_2 = arith.constant 0 : index
    %c0_3 = arith.constant 0 : index
    %4 = vector.load %arg3[%c0_2, %c0_3] : memref<128x128xbf16, #tpu.memory_space<vmem>>, vector<128x128xbf16>
    %c0_4 = arith.constant 0 : index
    %c0_5 = arith.constant 0 : index
    %5 = vector.load %arg4[%c0_4, %c0_5] : memref<128x128xbf16, #tpu.memory_space<vmem>>, vector<128x128xbf16>
    %cst = arith.constant dense<0.000000e+00> : vector<128x128xf32>
    %6 = tpu.matmul %4, %5, %cst {dimension_numbers = #tpu.dot_dimension_numbers<[1], [0], [0], [1], [0, 0, 1, 1], [], []>} : vector<128x128xbf16>, vector<128x128xbf16>, vector<128x128xf32> -> vector<128x128xf32>
    %7 = arith.addf %3, %6 : vector<128x128xf32>
    %c0_6 = arith.constant 0 : index
    %c0_7 = arith.constant 0 : index
    %8 = vector.load %arg7[%c0_6, %c0_7] : memref<128x128xf32, #tpu.memory_space<vmem>>, vector<128x128xf32>
    tpu.vector_store %arg7[%c0_6, %c0_7], %7 {strides = array<i32>} : memref<128x128xf32, #tpu.memory_space<vmem>>, vector<128x128xf32>,
    %c4_i32 = arith.constant 4 : i32
    %9 = arith.cmpi eq, %arg2, %c4_i32 : i32
    %10 = arith.extui %9 : i1 to i32
    %c0_i32_8 = arith.constant 0 : i32
    %11 = arith.cmpi ne, %10, %c0_i32_8 : i32
    scf.if %11 {
      %c0_9 = arith.constant 0 : index
      %c0_10 = arith.constant 0 : index
      %12 = vector.load %arg7[%c0_9, %c0_10] : memref<128x128xf32, #tpu.memory_space<vmem>>, vector<128x128xf32>
      %c0_11 = arith.constant 0 : index
      %c0_12 = arith.constant 0 : index
      %13 = vector.load %arg5[%c0_11, %c0_12] : memref<1x128xf32, #tpu.memory_space<vmem>>, vector<1x128xf32>
      %14 = vector.broadcast %13 : vector<1x128xf32> to vector<128x128xf32>
      %15 = arith.addf %12, %14 : vector<128x128xf32>
      %cst_13 = arith.constant 0.000000e+00 : f32
      %16 = vector.broadcast %cst_13 : f32 to vector<128x128xf32>
      %17 = arith.maximumf %15, %16 : vector<128x128xf32>
      %c0_14 = arith.constant 0 : index
      %c0_15 = arith.constant 0 : index
      %18 = vector.load %arg6[%c0_14, %c0_15] : memref<128x128xf32, #tpu.memory_space<vmem>>, vector<128x128xf32>
      tpu.vector_store %arg6[%c0_14, %c0_15], %17 {strides = array<i32>} : memref<128x128xf32, #tpu.memory_space<vmem>>, vector<128x128xf32>,
    } else {
    }
    return
  }
  func.func @transform_0(%arg0: i32, %arg1: i32, %arg2: i32) -> (i32, i32) {
    %c0_i32 = arith.constant 0 : i32
    return %arg0, %arg2 : i32, i32
  }
  func.func @transform_1(%arg0: i32, %arg1: i32, %arg2: i32) -> (i32, i32) {
    %c0_i32 = arith.constant 0 : i32
    return %arg2, %arg1 : i32, i32
  }
  func.func @transform_2(%arg0: i32, %arg1: i32, %arg2: i32) -> (i32, i32) {
    %c0_i32 = arith.constant 0 : i32
    %c0_i32_0 = arith.constant 0 : i32
    return %c0_i32, %arg1 : i32, i32
  }
  func.func @transform_3(%arg0: i32, %arg1: i32, %arg2: i32) -> (i32, i32) {
    %c0_i32 = arith.constant 0 : i32
    return %arg0, %arg1 : i32, i32
  }
}

module attributes {stable_mosaic.version = 11 : i64} {
  func.func @kernel(%arg0: i32, %arg1: i32, %arg2: i32, %arg3: memref<128x128xbf16, #tpu.memory_space<vmem>>, %arg4: memref<128x128xbf16, #tpu.memory_space<vmem>>, %arg5: memref<1x128xf32, #tpu.memory_space<vmem>>, %arg6: memref<128x128xf32, #tpu.memory_space<vmem>>, %arg7: memref<128x128xf32, #tpu.memory_space<vmem>>, %arg8: memref<128x128xf32, #tpu.memory_space<vmem>>) attributes {dimension_semantics = [#tpu.dimension_semantics<parallel>, #tpu.dimension_semantics<parallel>, #tpu.dimension_semantics<arbitrary>], iteration_bounds = array<i64: 1, 1, 5>, scalar_prefetch = 0 : i64, scratch_operands = 1 : i64, tpu.core_type = #tpu.core_type<tc>, window_params = [{transform_indices = @transform_0, window_bounds = array<i64: 128, 128>}, {transform_indices = @transform_1, window_bounds = array<i64: 128, 128>}, {transform_indices = @transform_2, window_bounds = array<i64: 1, 128>}, {transform_indices = @transform_3, window_bounds = array<i64: 128, 128>}, {transform_indices = @transform_4, window_bounds = array<i64: 128, 128>}]} {
    %c0_i32 = arith.constant 0 : i32
    %0 = arith.cmpi eq, %arg2, %c0_i32 : i32
    %1 = arith.extui %0 : i1 to i32
    %c0_i32_0 = arith.constant 0 : i32
    %2 = arith.cmpi ne, %1, %c0_i32_0 : i32
    scf.if %2 {
      %cst_9 = arith.constant 0.000000e+00 : f32
      %12 = vector.broadcast %cst_9 : f32 to vector<128x128xf32>
      %c0_10 = arith.constant 0 : index
      %c0_11 = arith.constant 0 : index
      %13 = vector.load %arg8[%c0_10, %c0_11] : memref<128x128xf32, #tpu.memory_space<vmem>>, vector<128x128xf32>
      tpu.vector_store %arg8[%c0_10, %c0_11], %12 {strides = array<i32>} : memref<128x128xf32, #tpu.memory_space<vmem>>, vector<128x128xf32>,
    } else {
    }
    %c0 = arith.constant 0 : index
    %c0_1 = arith.constant 0 : index
    %3 = vector.load %arg8[%c0, %c0_1] : memref<128x128xf32, #tpu.memory_space<vmem>>, vector<128x128xf32>
    %c0_2 = arith.constant 0 : index
    %c0_3 = arith.constant 0 : index
    %4 = vector.load %arg3[%c0_2, %c0_3] : memref<128x128xbf16, #tpu.memory_space<vmem>>, vector<128x128xbf16>
    %c0_4 = arith.constant 0 : index
    %c0_5 = arith.constant 0 : index
    %5 = vector.load %arg4[%c0_4, %c0_5] : memref<128x128xbf16, #tpu.memory_space<vmem>>, vector<128x128xbf16>
    %cst = arith.constant dense<0.000000e+00> : vector<128x128xf32>
    %6 = tpu.matmul %4, %5, %cst {dimension_numbers = #tpu.dot_dimension_numbers<[1], [0], [0], [1], [0, 0, 1, 1], [], []>} : vector<128x128xbf16>, vector<128x128xbf16>, vector<128x128xf32> -> vector<128x128xf32>
    %7 = arith.addf %3, %6 : vector<128x128xf32>
    %c0_6 = arith.constant 0 : index
    %c0_7 = arith.constant 0 : index
    %8 = vector.load %arg8[%c0_6, %c0_7] : memref<128x128xf32, #tpu.memory_space<vmem>>, vector<128x128xf32>
    tpu.vector_store %arg8[%c0_6, %c0_7], %7 {strides = array<i32>} : memref<128x128xf32, #tpu.memory_space<vmem>>, vector<128x128xf32>,
    %c4_i32 = arith.constant 4 : i32
    %9 = arith.cmpi eq, %arg2, %c4_i32 : i32
    %10 = arith.extui %9 : i1 to i32
    %c0_i32_8 = arith.constant 0 : i32
    %11 = arith.cmpi ne, %10, %c0_i32_8 : i32
    scf.if %11 {
      %c0_9 = arith.constant 0 : index
      %c0_10 = arith.constant 0 : index
      %12 = vector.load %arg8[%c0_9, %c0_10] : memref<128x128xf32, #tpu.memory_space<vmem>>, vector<128x128xf32>
      %c0_11 = arith.constant 0 : index
      %c0_12 = arith.constant 0 : index
      %13 = vector.load %arg5[%c0_11, %c0_12] : memref<1x128xf32, #tpu.memory_space<vmem>>, vector<1x128xf32>
      %14 = vector.broadcast %13 : vector<1x128xf32> to vector<128x128xf32>
      %15 = arith.addf %12, %14 : vector<128x128xf32>
      %c0_13 = arith.constant 0 : index
      %c0_14 = arith.constant 0 : index
      %16 = vector.load %arg6[%c0_13, %c0_14] : memref<128x128xf32, #tpu.memory_space<vmem>>, vector<128x128xf32>
      %17 = arith.addf %15, %16 : vector<128x128xf32>
      %cst_15 = arith.constant 0.000000e+00 : f32
      %18 = vector.broadcast %cst_15 : f32 to vector<128x128xf32>
      %19 = arith.maximumf %17, %18 : vector<128x128xf32>
      %c0_16 = arith.constant 0 : index
      %c0_17 = arith.constant 0 : index
      %20 = vector.load %arg7[%c0_16, %c0_17] : memref<128x128xf32, #tpu.memory_space<vmem>>, vector<128x128xf32>
      tpu.vector_store %arg7[%c0_16, %c0_17], %19 {strides = array<i32>} : memref<128x128xf32, #tpu.memory_space<vmem>>, vector<128x128xf32>,
    } else {
    }
    return
  }
  func.func @transform_0(%arg0: i32, %arg1: i32, %arg2: i32) -> (i32, i32) {
    %c0_i32 = arith.constant 0 : i32
    return %arg0, %arg2 : i32, i32
  }
  func.func @transform_1(%arg0: i32, %arg1: i32, %arg2: i32) -> (i32, i32) {
    %c0_i32 = arith.constant 0 : i32
    return %arg2, %arg1 : i32, i32
  }
  func.func @transform_2(%arg0: i32, %arg1: i32, %arg2: i32) -> (i32, i32) {
    %c0_i32 = arith.constant 0 : i32
    %c0_i32_0 = arith.constant 0 : i32
    return %c0_i32, %arg1 : i32, i32
  }
  func.func @transform_3(%arg0: i32, %arg1: i32, %arg2: i32) -> (i32, i32) {
    %c0_i32 = arith.constant 0 : i32
    return %arg0, %arg1 : i32, i32
  }
  func.func @transform_4(%arg0: i32, %arg1: i32, %arg2: i32) -> (i32, i32) {
    %c0_i32 = arith.constant 0 : i32
    return %arg0, %arg1 : i32, i32
  }
}

module attributes {stable_mosaic.version = 11 : i64} {
  func.func @kernel(%arg0: i32, %arg1: i32, %arg2: i32, %arg3: memref<32x128xbf16, #tpu.memory_space<vmem>>, %arg4: memref<128x128xbf16, #tpu.memory_space<vmem>>, %arg5: memref<1x128xf32, #tpu.memory_space<vmem>>, %arg6: memref<32x128xf32, #tpu.memory_space<vmem>>, %arg7: memref<32x128xf32, #tpu.memory_space<vmem>>) attributes {dimension_semantics = [#tpu.dimension_semantics<parallel>, #tpu.dimension_semantics<parallel>, #tpu.dimension_semantics<arbitrary>], iteration_bounds = array<i64: 1, 1, 5>, scalar_prefetch = 0 : i64, scratch_operands = 1 : i64, tpu.core_type = #tpu.core_type<tc>, window_params = [{transform_indices = @transform_0, window_bounds = array<i64: 32, 128>}, {transform_indices = @transform_1, window_bounds = array<i64: 128, 128>}, {transform_indices = @transform_2, window_bounds = array<i64: 1, 128>}, {transform_indices = @transform_3, window_bounds = array<i64: 32, 128>}]} {
    %c0_i32 = arith.constant 0 : i32
    %0 = arith.cmpi eq, %arg2, %c0_i32 : i32
    %1 = arith.extui %0 : i1 to i32
    %c0_i32_0 = arith.constant 0 : i32
    %2 = arith.cmpi ne, %1, %c0_i32_0 : i32
    scf.if %2 {
      %cst_9 = arith.constant 0.000000e+00 : f32
      %12 = vector.broadcast %cst_9 : f32 to vector<32x128xf32>
      %c0_10 = arith.constant 0 : index
      %c0_11 = arith.constant 0 : index
      %13 = vector.load %arg7[%c0_10, %c0_11] : memref<32x128xf32, #tpu.memory_space<vmem>>, vector<32x128xf32>
      tpu.vector_store %arg7[%c0_10, %c0_11], %12 {strides = array<i32>} : memref<32x128xf32, #tpu.memory_space<vmem>>, vector<32x128xf32>,
    } else {
    }
    %c0 = arith.constant 0 : index
    %c0_1 = arith.constant 0 : index
    %3 = vector.load %arg7[%c0, %c0_1] : memref<32x128xf32, #tpu.memory_space<vmem>>, vector<32x128xf32>
    %c0_2 = arith.constant 0 : index
    %c0_3 = arith.constant 0 : index
    %4 = vector.load %arg3[%c0_2, %c0_3] : memref<32x128xbf16, #tpu.memory_space<vmem>>, vector<32x128xbf16>
    %c0_4 = arith.constant 0 : index
    %c0_5 = arith.constant 0 : index
    %5 = vector.load %arg4[%c0_4, %c0_5] : memref<128x128xbf16, #tpu.memory_space<vmem>>, vector<128x128xbf16>
    %cst = arith.constant dense<0.000000e+00> : vector<32x128xf32>
    %6 = tpu.matmul %4, %5, %cst {dimension_numbers = #tpu.dot_dimension_numbers<[1], [0], [0], [1], [0, 0, 1, 1], [], []>} : vector<32x128xbf16>, vector<128x128xbf16>, vector<32x128xf32> -> vector<32x128xf32>
    %7 = arith.addf %3, %6 : vector<32x128xf32>
    %c0_6 = arith.constant 0 : index
    %c0_7 = arith.constant 0 : index
    %8 = vector.load %arg7[%c0_6, %c0_7] : memref<32x128xf32, #tpu.memory_space<vmem>>, vector<32x128xf32>
    tpu.vector_store %arg7[%c0_6, %c0_7], %7 {strides = array<i32>} : memref<32x128xf32, #tpu.memory_space<vmem>>, vector<32x128xf32>,
    %c4_i32 = arith.constant 4 : i32
    %9 = arith.cmpi eq, %arg2, %c4_i32 : i32
    %10 = arith.extui %9 : i1 to i32
    %c0_i32_8 = arith.constant 0 : i32
    %11 = arith.cmpi ne, %10, %c0_i32_8 : i32
    scf.if %11 {
      %c0_9 = arith.constant 0 : index
      %c0_10 = arith.constant 0 : index
      %12 = vector.load %arg7[%c0_9, %c0_10] : memref<32x128xf32, #tpu.memory_space<vmem>>, vector<32x128xf32>
      %c0_11 = arith.constant 0 : index
      %c0_12 = arith.constant 0 : index
      %13 = vector.load %arg5[%c0_11, %c0_12] : memref<1x128xf32, #tpu.memory_space<vmem>>, vector<1x128xf32>
      %14 = vector.broadcast %13 : vector<1x128xf32> to vector<32x128xf32>
      %15 = arith.addf %12, %14 : vector<32x128xf32>
      %cst_13 = arith.constant 0.000000e+00 : f32
      %16 = vector.broadcast %cst_13 : f32 to vector<32x128xf32>
      %17 = arith.maximumf %15, %16 : vector<32x128xf32>
      %c0_14 = arith.constant 0 : index
      %c0_15 = arith.constant 0 : index
      %18 = vector.load %arg6[%c0_14, %c0_15] : memref<32x128xf32, #tpu.memory_space<vmem>>, vector<32x128xf32>
      tpu.vector_store %arg6[%c0_14, %c0_15], %17 {strides = array<i32>} : memref<32x128xf32, #tpu.memory_space<vmem>>, vector<32x128xf32>,
    } else {
    }
    return
  }
  func.func @transform_0(%arg0: i32, %arg1: i32, %arg2: i32) -> (i32, i32) {
    %c0_i32 = arith.constant 0 : i32
    return %arg0, %arg2 : i32, i32
  }
  func.func @transform_1(%arg0: i32, %arg1: i32, %arg2: i32) -> (i32, i32) {
    %c0_i32 = arith.constant 0 : i32
    return %arg2, %arg1 : i32, i32
  }
  func.func @transform_2(%arg0: i32, %arg1: i32, %arg2: i32) -> (i32, i32) {
    %c0_i32 = arith.constant 0 : i32
    %c0_i32_0 = arith.constant 0 : i32
    return %c0_i32, %arg1 : i32, i32
  }
  func.func @transform_3(%arg0: i32, %arg1: i32, %arg2: i32) -> (i32, i32) {
    %c0_i32 = arith.constant 0 : i32
    return %arg0, %arg1 : i32, i32
  }
}

module attributes {stable_mosaic.version = 11 : i64} {
  func.func @kernel(%arg0: i32, %arg1: i32, %arg2: i32, %arg3: memref<32x128xbf16, #tpu.memory_space<vmem>>, %arg4: memref<128x128xbf16, #tpu.memory_space<vmem>>, %arg5: memref<1x128xf32, #tpu.memory_space<vmem>>, %arg6: memref<32x128xf32, #tpu.memory_space<vmem>>, %arg7: memref<32x128xf32, #tpu.memory_space<vmem>>) attributes {dimension_semantics = [#tpu.dimension_semantics<parallel>, #tpu.dimension_semantics<parallel>, #tpu.dimension_semantics<arbitrary>], iteration_bounds = array<i64: 1, 1, 1>, scalar_prefetch = 0 : i64, scratch_operands = 1 : i64, tpu.core_type = #tpu.core_type<tc>, window_params = [{transform_indices = @transform_0, window_bounds = array<i64: 32, 128>}, {transform_indices = @transform_1, window_bounds = array<i64: 128, 128>}, {transform_indices = @transform_2, window_bounds = array<i64: 1, 128>}, {transform_indices = @transform_3, window_bounds = array<i64: 32, 128>}]} {
    %c0_i32 = arith.constant 0 : i32
    %0 = arith.cmpi eq, %arg2, %c0_i32 : i32
    %1 = arith.extui %0 : i1 to i32
    %c0_i32_0 = arith.constant 0 : i32
    %2 = arith.cmpi ne, %1, %c0_i32_0 : i32
    scf.if %2 {
      %cst_10 = arith.constant 0.000000e+00 : f32
      %12 = vector.broadcast %cst_10 : f32 to vector<32x128xf32>
      %c0_11 = arith.constant 0 : index
      %c0_12 = arith.constant 0 : index
      %13 = vector.load %arg7[%c0_11, %c0_12] : memref<32x128xf32, #tpu.memory_space<vmem>>, vector<32x128xf32>
      tpu.vector_store %arg7[%c0_11, %c0_12], %12 {strides = array<i32>} : memref<32x128xf32, #tpu.memory_space<vmem>>, vector<32x128xf32>,
    } else {
    }
    %c0 = arith.constant 0 : index
    %c0_1 = arith.constant 0 : index
    %3 = vector.load %arg7[%c0, %c0_1] : memref<32x128xf32, #tpu.memory_space<vmem>>, vector<32x128xf32>
    %c0_2 = arith.constant 0 : index
    %c0_3 = arith.constant 0 : index
    %4 = vector.load %arg3[%c0_2, %c0_3] : memref<32x128xbf16, #tpu.memory_space<vmem>>, vector<32x128xbf16>
    %c0_4 = arith.constant 0 : index
    %c0_5 = arith.constant 0 : index
    %5 = vector.load %arg4[%c0_4, %c0_5] : memref<128x128xbf16, #tpu.memory_space<vmem>>, vector<128x128xbf16>
    %cst = arith.constant dense<0.000000e+00> : vector<32x128xf32>
    %6 = tpu.matmul %4, %5, %cst {dimension_numbers = #tpu.dot_dimension_numbers<[1], [0], [0], [1], [0, 0, 1, 1], [], []>} : vector<32x128xbf16>, vector<128x128xbf16>, vector<32x128xf32> -> vector<32x128xf32>
    %7 = arith.addf %3, %6 : vector<32x128xf32>
    %c0_6 = arith.constant 0 : index
    %c0_7 = arith.constant 0 : index
    %8 = vector.load %arg7[%c0_6, %c0_7] : memref<32x128xf32, #tpu.memory_space<vmem>>, vector<32x128xf32>
    tpu.vector_store %arg7[%c0_6, %c0_7], %7 {strides = array<i32>} : memref<32x128xf32, #tpu.memory_space<vmem>>, vector<32x128xf32>,
    %c0_i32_8 = arith.constant 0 : i32
    %9 = arith.cmpi eq, %arg2, %c0_i32_8 : i32
    %10 = arith.extui %9 : i1 to i32
    %c0_i32_9 = arith.constant 0 : i32
    %11 = arith.cmpi ne, %10, %c0_i32_9 : i32
    scf.if %11 {
      %c0_10 = arith.constant 0 : index
      %c0_11 = arith.constant 0 : index
      %12 = vector.load %arg7[%c0_10, %c0_11] : memref<32x128xf32, #tpu.memory_space<vmem>>, vector<32x128xf32>
      %c0_12 = arith.constant 0 : index
      %c0_13 = arith.constant 0 : index
      %13 = vector.load %arg5[%c0_12, %c0_13] : memref<1x128xf32, #tpu.memory_space<vmem>>, vector<1x128xf32>
      %14 = vector.broadcast %13 : vector<1x128xf32> to vector<32x128xf32>
      %15 = arith.addf %12, %14 : vector<32x128xf32>
      %c0_14 = arith.constant 0 : index
      %c0_15 = arith.constant 0 : index
      %16 = vector.load %arg6[%c0_14, %c0_15] : memref<32x128xf32, #tpu.memory_space<vmem>>, vector<32x128xf32>
      tpu.vector_store %arg6[%c0_14, %c0_15], %15 {strides = array<i32>} : memref<32x128xf32, #tpu.memory_space<vmem>>, vector<32x128xf32>,
    } else {
    }
    return
  }
  func.func @transform_0(%arg0: i32, %arg1: i32, %arg2: i32) -> (i32, i32) {
    %c0_i32 = arith.constant 0 : i32
    return %arg0, %arg2 : i32, i32
  }
  func.func @transform_1(%arg0: i32, %arg1: i32, %arg2: i32) -> (i32, i32) {
    %c0_i32 = arith.constant 0 : i32
    return %arg2, %arg1 : i32, i32
  }
  func.func @transform_2(%arg0: i32, %arg1: i32, %arg2: i32) -> (i32, i32) {
    %c0_i32 = arith.constant 0 : i32
    %c0_i32_0 = arith.constant 0 : i32
    return %c0_i32, %arg1 : i32, i32
  }
  func.func @transform_3(%arg0: i32, %arg1: i32, %arg2: i32) -> (i32, i32) {
    %c0_i32 = arith.constant 0 : i32
    return %arg0, %arg1 : i32, i32
  }
}

module attributes {stable_mosaic.version = 11 : i64} {
  func.func @kernel(%arg0: i32, %arg1: i32, %arg2: i32, %arg3: memref<32x384xbf16, #tpu.memory_space<vmem>>, %arg4: memref<384x128xbf16, #tpu.memory_space<vmem>>, %arg5: memref<1x128xf32, #tpu.memory_space<vmem>>, %arg6: memref<32x128xf32, #tpu.memory_space<vmem>>, %arg7: memref<32x128xf32, #tpu.memory_space<vmem>>, %arg8: memref<32x128xf32, #tpu.memory_space<vmem>>) attributes {dimension_semantics = [#tpu.dimension_semantics<parallel>, #tpu.dimension_semantics<parallel>, #tpu.dimension_semantics<arbitrary>], iteration_bounds = array<i64: 1, 1, 3>, scalar_prefetch = 0 : i64, scratch_operands = 1 : i64, tpu.core_type = #tpu.core_type<tc>, window_params = [{transform_indices = @transform_0, window_bounds = array<i64: 32, 384>}, {transform_indices = @transform_1, window_bounds = array<i64: 384, 128>}, {transform_indices = @transform_2, window_bounds = array<i64: 1, 128>}, {transform_indices = @transform_3, window_bounds = array<i64: 32, 128>}, {transform_indices = @transform_4, window_bounds = array<i64: 32, 128>}]} {
    %c0_i32 = arith.constant 0 : i32
    %0 = arith.cmpi eq, %arg2, %c0_i32 : i32
    %1 = arith.extui %0 : i1 to i32
    %c0_i32_0 = arith.constant 0 : i32
    %2 = arith.cmpi ne, %1, %c0_i32_0 : i32
    scf.if %2 {
      %cst_9 = arith.constant 0.000000e+00 : f32
      %12 = vector.broadcast %cst_9 : f32 to vector<32x128xf32>
      %c0_10 = arith.constant 0 : index
      %c0_11 = arith.constant 0 : index
      %13 = vector.load %arg8[%c0_10, %c0_11] : memref<32x128xf32, #tpu.memory_space<vmem>>, vector<32x128xf32>
      tpu.vector_store %arg8[%c0_10, %c0_11], %12 {strides = array<i32>} : memref<32x128xf32, #tpu.memory_space<vmem>>, vector<32x128xf32>,
    } else {
    }
    %c0 = arith.constant 0 : index
    %c0_1 = arith.constant 0 : index
    %3 = vector.load %arg8[%c0, %c0_1] : memref<32x128xf32, #tpu.memory_space<vmem>>, vector<32x128xf32>
    %c0_2 = arith.constant 0 : index
    %c0_3 = arith.constant 0 : index
    %4 = vector.load %arg3[%c0_2, %c0_3] : memref<32x384xbf16, #tpu.memory_space<vmem>>, vector<32x384xbf16>
    %c0_4 = arith.constant 0 : index
    %c0_5 = arith.constant 0 : index
    %5 = vector.load %arg4[%c0_4, %c0_5] : memref<384x128xbf16, #tpu.memory_space<vmem>>, vector<384x128xbf16>
    %cst = arith.constant dense<0.000000e+00> : vector<32x128xf32>
    %6 = tpu.matmul %4, %5, %cst {dimension_numbers = #tpu.dot_dimension_numbers<[1], [0], [0], [1], [0, 0, 1, 1], [], []>} : vector<32x384xbf16>, vector<384x128xbf16>, vector<32x128xf32> -> vector<32x128xf32>
    %7 = arith.addf %3, %6 : vector<32x128xf32>
    %c0_6 = arith.constant 0 : index
    %c0_7 = arith.constant 0 : index
    %8 = vector.load %arg8[%c0_6, %c0_7] : memref<32x128xf32, #tpu.memory_space<vmem>>, vector<32x128xf32>
    tpu.vector_store %arg8[%c0_6, %c0_7], %7 {strides = array<i32>} : memref<32x128xf32, #tpu.memory_space<vmem>>, vector<32x128xf32>,
    %c2_i32 = arith.constant 2 : i32
    %9 = arith.cmpi eq, %arg2, %c2_i32 : i32
    %10 = arith.extui %9 : i1 to i32
    %c0_i32_8 = arith.constant 0 : i32
    %11 = arith.cmpi ne, %10, %c0_i32_8 : i32
    scf.if %11 {
      %c0_9 = arith.constant 0 : index
      %c0_10 = arith.constant 0 : index
      %12 = vector.load %arg8[%c0_9, %c0_10] : memref<32x128xf32, #tpu.memory_space<vmem>>, vector<32x128xf32>
      %c0_11 = arith.constant 0 : index
      %c0_12 = arith.constant 0 : index
      %13 = vector.load %arg5[%c0_11, %c0_12] : memref<1x128xf32, #tpu.memory_space<vmem>>, vector<1x128xf32>
      %14 = vector.broadcast %13 : vector<1x128xf32> to vector<32x128xf32>
      %15 = arith.addf %12, %14 : vector<32x128xf32>
      %c0_13 = arith.constant 0 : index
      %c0_14 = arith.constant 0 : index
      %16 = vector.load %arg6[%c0_13, %c0_14] : memref<32x128xf32, #tpu.memory_space<vmem>>, vector<32x128xf32>
      %17 = arith.addf %15, %16 : vector<32x128xf32>
      %cst_15 = arith.constant 0.000000e+00 : f32
      %18 = vector.broadcast %cst_15 : f32 to vector<32x128xf32>
      %19 = arith.maximumf %17, %18 : vector<32x128xf32>
      %c0_16 = arith.constant 0 : index
      %c0_17 = arith.constant 0 : index
      %20 = vector.load %arg7[%c0_16, %c0_17] : memref<32x128xf32, #tpu.memory_space<vmem>>, vector<32x128xf32>
      tpu.vector_store %arg7[%c0_16, %c0_17], %19 {strides = array<i32>} : memref<32x128xf32, #tpu.memory_space<vmem>>, vector<32x128xf32>,
    } else {
    }
    return
  }
  func.func @transform_0(%arg0: i32, %arg1: i32, %arg2: i32) -> (i32, i32) {
    %c0_i32 = arith.constant 0 : i32
    return %arg0, %arg2 : i32, i32
  }
  func.func @transform_1(%arg0: i32, %arg1: i32, %arg2: i32) -> (i32, i32) {
    %c0_i32 = arith.constant 0 : i32
    return %arg2, %arg1 : i32, i32
  }
  func.func @transform_2(%arg0: i32, %arg1: i32, %arg2: i32) -> (i32, i32) {
    %c0_i32 = arith.constant 0 : i32
    %c0_i32_0 = arith.constant 0 : i32
    return %c0_i32, %arg1 : i32, i32
  }
  func.func @transform_3(%arg0: i32, %arg1: i32, %arg2: i32) -> (i32, i32) {
    %c0_i32 = arith.constant 0 : i32
    return %arg0, %arg1 : i32, i32
  }
  func.func @transform_4(%arg0: i32, %arg1: i32, %arg2: i32) -> (i32, i32) {
    %c0_i32 = arith.constant 0 : i32
    return %arg0, %arg1 : i32, i32
  }
}

module attributes {stable_mosaic.version = 11 : i64} {
  func.func @kernel(%arg0: i32, %arg1: i32, %arg2: i32, %arg3: memref<32x384xbf16, #tpu.memory_space<vmem>>, %arg4: memref<384x128xbf16, #tpu.memory_space<vmem>>, %arg5: memref<1x128xf32, #tpu.memory_space<vmem>>, %arg6: memref<32x128xf32, #tpu.memory_space<vmem>>, %arg7: memref<32x128xf32, #tpu.memory_space<vmem>>) attributes {dimension_semantics = [#tpu.dimension_semantics<parallel>, #tpu.dimension_semantics<parallel>, #tpu.dimension_semantics<arbitrary>], iteration_bounds = array<i64: 1, 1, 3>, scalar_prefetch = 0 : i64, scratch_operands = 1 : i64, tpu.core_type = #tpu.core_type<tc>, window_params = [{transform_indices = @transform_0, window_bounds = array<i64: 32, 384>}, {transform_indices = @transform_1, window_bounds = array<i64: 384, 128>}, {transform_indices = @transform_2, window_bounds = array<i64: 1, 128>}, {transform_indices = @transform_3, window_bounds = array<i64: 32, 128>}]} {
    %c0_i32 = arith.constant 0 : i32
    %0 = arith.cmpi eq, %arg2, %c0_i32 : i32
    %1 = arith.extui %0 : i1 to i32
    %c0_i32_0 = arith.constant 0 : i32
    %2 = arith.cmpi ne, %1, %c0_i32_0 : i32
    scf.if %2 {
      %cst_9 = arith.constant 0.000000e+00 : f32
      %12 = vector.broadcast %cst_9 : f32 to vector<32x128xf32>
      %c0_10 = arith.constant 0 : index
      %c0_11 = arith.constant 0 : index
      %13 = vector.load %arg7[%c0_10, %c0_11] : memref<32x128xf32, #tpu.memory_space<vmem>>, vector<32x128xf32>
      tpu.vector_store %arg7[%c0_10, %c0_11], %12 {strides = array<i32>} : memref<32x128xf32, #tpu.memory_space<vmem>>, vector<32x128xf32>,
    } else {
    }
    %c0 = arith.constant 0 : index
    %c0_1 = arith.constant 0 : index
    %3 = vector.load %arg7[%c0, %c0_1] : memref<32x128xf32, #tpu.memory_space<vmem>>, vector<32x128xf32>
    %c0_2 = arith.constant 0 : index
    %c0_3 = arith.constant 0 : index
    %4 = vector.load %arg3[%c0_2, %c0_3] : memref<32x384xbf16, #tpu.memory_space<vmem>>, vector<32x384xbf16>
    %c0_4 = arith.constant 0 : index
    %c0_5 = arith.constant 0 : index
    %5 = vector.load %arg4[%c0_4, %c0_5] : memref<384x128xbf16, #tpu.memory_space<vmem>>, vector<384x128xbf16>
    %cst = arith.constant dense<0.000000e+00> : vector<32x128xf32>
    %6 = tpu.matmul %4, %5, %cst {dimension_numbers = #tpu.dot_dimension_numbers<[1], [0], [0], [1], [0, 0, 1, 1], [], []>} : vector<32x384xbf16>, vector<384x128xbf16>, vector<32x128xf32> -> vector<32x128xf32>
    %7 = arith.addf %3, %6 : vector<32x128xf32>
    %c0_6 = arith.constant 0 : index
    %c0_7 = arith.constant 0 : index
    %8 = vector.load %arg7[%c0_6, %c0_7] : memref<32x128xf32, #tpu.memory_space<vmem>>, vector<32x128xf32>
    tpu.vector_store %arg7[%c0_6, %c0_7], %7 {strides = array<i32>} : memref<32x128xf32, #tpu.memory_space<vmem>>, vector<32x128xf32>,
    %c2_i32 = arith.constant 2 : i32
    %9 = arith.cmpi eq, %arg2, %c2_i32 : i32
    %10 = arith.extui %9 : i1 to i32
    %c0_i32_8 = arith.constant 0 : i32
    %11 = arith.cmpi ne, %10, %c0_i32_8 : i32
    scf.if %11 {
      %c0_9 = arith.constant 0 : index
      %c0_10 = arith.constant 0 : index
      %12 = vector.load %arg7[%c0_9, %c0_10] : memref<32x128xf32, #tpu.memory_space<vmem>>, vector<32x128xf32>
      %c0_11 = arith.constant 0 : index
      %c0_12 = arith.constant 0 : index
      %13 = vector.load %arg5[%c0_11, %c0_12] : memref<1x128xf32, #tpu.memory_space<vmem>>, vector<1x128xf32>
      %14 = vector.broadcast %13 : vector<1x128xf32> to vector<32x128xf32>
      %15 = arith.addf %12, %14 : vector<32x128xf32>
      %cst_13 = arith.constant 0.000000e+00 : f32
      %16 = vector.broadcast %cst_13 : f32 to vector<32x128xf32>
      %17 = arith.maximumf %15, %16 : vector<32x128xf32>
      %c0_14 = arith.constant 0 : index
      %c0_15 = arith.constant 0 : index
      %18 = vector.load %arg6[%c0_14, %c0_15] : memref<32x128xf32, #tpu.memory_space<vmem>>, vector<32x128xf32>
      tpu.vector_store %arg6[%c0_14, %c0_15], %17 {strides = array<i32>} : memref<32x128xf32, #tpu.memory_space<vmem>>, vector<32x128xf32>,
    } else {
    }
    return
  }
  func.func @transform_0(%arg0: i32, %arg1: i32, %arg2: i32) -> (i32, i32) {
    %c0_i32 = arith.constant 0 : i32
    return %arg0, %arg2 : i32, i32
  }
  func.func @transform_1(%arg0: i32, %arg1: i32, %arg2: i32) -> (i32, i32) {
    %c0_i32 = arith.constant 0 : i32
    return %arg2, %arg1 : i32, i32
  }
  func.func @transform_2(%arg0: i32, %arg1: i32, %arg2: i32) -> (i32, i32) {
    %c0_i32 = arith.constant 0 : i32
    %c0_i32_0 = arith.constant 0 : i32
    return %c0_i32, %arg1 : i32, i32
  }
  func.func @transform_3(%arg0: i32, %arg1: i32, %arg2: i32) -> (i32, i32) {
    %c0_i32 = arith.constant 0 : i32
    return %arg0, %arg1 : i32, i32
  }
}

module attributes {stable_mosaic.version = 11 : i64} {
  func.func @kernel(%arg0: i32, %arg1: i32, %arg2: i32, %arg3: memref<8x384xbf16, #tpu.memory_space<vmem>>, %arg4: memref<384x256xbf16, #tpu.memory_space<vmem>>, %arg5: memref<1x256xf32, #tpu.memory_space<vmem>>, %arg6: memref<8x256xf32, #tpu.memory_space<vmem>>, %arg7: memref<8x256xf32, #tpu.memory_space<vmem>>) attributes {dimension_semantics = [#tpu.dimension_semantics<parallel>, #tpu.dimension_semantics<parallel>, #tpu.dimension_semantics<arbitrary>], iteration_bounds = array<i64: 1, 1, 3>, scalar_prefetch = 0 : i64, scratch_operands = 1 : i64, tpu.core_type = #tpu.core_type<tc>, window_params = [{transform_indices = @transform_0, window_bounds = array<i64: 8, 384>}, {transform_indices = @transform_1, window_bounds = array<i64: 384, 256>}, {transform_indices = @transform_2, window_bounds = array<i64: 1, 256>}, {transform_indices = @transform_3, window_bounds = array<i64: 8, 256>}]} {
    %c0_i32 = arith.constant 0 : i32
    %0 = arith.cmpi eq, %arg2, %c0_i32 : i32
    %1 = arith.extui %0 : i1 to i32
    %c0_i32_0 = arith.constant 0 : i32
    %2 = arith.cmpi ne, %1, %c0_i32_0 : i32
    scf.if %2 {
      %cst_9 = arith.constant 0.000000e+00 : f32
      %12 = vector.broadcast %cst_9 : f32 to vector<8x256xf32>
      %c0_10 = arith.constant 0 : index
      %c0_11 = arith.constant 0 : index
      %13 = vector.load %arg7[%c0_10, %c0_11] : memref<8x256xf32, #tpu.memory_space<vmem>>, vector<8x256xf32>
      tpu.vector_store %arg7[%c0_10, %c0_11], %12 {strides = array<i32>} : memref<8x256xf32, #tpu.memory_space<vmem>>, vector<8x256xf32>,
    } else {
    }
    %c0 = arith.constant 0 : index
    %c0_1 = arith.constant 0 : index
    %3 = vector.load %arg7[%c0, %c0_1] : memref<8x256xf32, #tpu.memory_space<vmem>>, vector<8x256xf32>
    %c0_2 = arith.constant 0 : index
    %c0_3 = arith.constant 0 : index
    %4 = vector.load %arg3[%c0_2, %c0_3] : memref<8x384xbf16, #tpu.memory_space<vmem>>, vector<8x384xbf16>
    %c0_4 = arith.constant 0 : index
    %c0_5 = arith.constant 0 : index
    %5 = vector.load %arg4[%c0_4, %c0_5] : memref<384x256xbf16, #tpu.memory_space<vmem>>, vector<384x256xbf16>
    %cst = arith.constant dense<0.000000e+00> : vector<8x256xf32>
    %6 = tpu.matmul %4, %5, %cst {dimension_numbers = #tpu.dot_dimension_numbers<[1], [0], [0], [1], [0, 0, 1, 1], [], []>} : vector<8x384xbf16>, vector<384x256xbf16>, vector<8x256xf32> -> vector<8x256xf32>
    %7 = arith.addf %3, %6 : vector<8x256xf32>
    %c0_6 = arith.constant 0 : index
    %c0_7 = arith.constant 0 : index
    %8 = vector.load %arg7[%c0_6, %c0_7] : memref<8x256xf32, #tpu.memory_space<vmem>>, vector<8x256xf32>
    tpu.vector_store %arg7[%c0_6, %c0_7], %7 {strides = array<i32>} : memref<8x256xf32, #tpu.memory_space<vmem>>, vector<8x256xf32>,
    %c2_i32 = arith.constant 2 : i32
    %9 = arith.cmpi eq, %arg2, %c2_i32 : i32
    %10 = arith.extui %9 : i1 to i32
    %c0_i32_8 = arith.constant 0 : i32
    %11 = arith.cmpi ne, %10, %c0_i32_8 : i32
    scf.if %11 {
      %c0_9 = arith.constant 0 : index
      %c0_10 = arith.constant 0 : index
      %12 = vector.load %arg7[%c0_9, %c0_10] : memref<8x256xf32, #tpu.memory_space<vmem>>, vector<8x256xf32>
      %c0_11 = arith.constant 0 : index
      %c0_12 = arith.constant 0 : index
      %13 = vector.load %arg5[%c0_11, %c0_12] : memref<1x256xf32, #tpu.memory_space<vmem>>, vector<1x256xf32>
      %14 = vector.broadcast %13 : vector<1x256xf32> to vector<8x256xf32>
      %15 = arith.addf %12, %14 : vector<8x256xf32>
      %cst_13 = arith.constant 0.000000e+00 : f32
      %16 = vector.broadcast %cst_13 : f32 to vector<8x256xf32>
      %17 = arith.maximumf %15, %16 : vector<8x256xf32>
      %c0_14 = arith.constant 0 : index
      %c0_15 = arith.constant 0 : index
      %18 = vector.load %arg6[%c0_14, %c0_15] : memref<8x256xf32, #tpu.memory_space<vmem>>, vector<8x256xf32>
      tpu.vector_store %arg6[%c0_14, %c0_15], %17 {strides = array<i32>} : memref<8x256xf32, #tpu.memory_space<vmem>>, vector<8x256xf32>,
    } else {
    }
    return
  }
  func.func @transform_0(%arg0: i32, %arg1: i32, %arg2: i32) -> (i32, i32) {
    %c0_i32 = arith.constant 0 : i32
    return %arg0, %arg2 : i32, i32
  }
  func.func @transform_1(%arg0: i32, %arg1: i32, %arg2: i32) -> (i32, i32) {
    %c0_i32 = arith.constant 0 : i32
    return %arg2, %arg1 : i32, i32
  }
  func.func @transform_2(%arg0: i32, %arg1: i32, %arg2: i32) -> (i32, i32) {
    %c0_i32 = arith.constant 0 : i32
    %c0_i32_0 = arith.constant 0 : i32
    return %c0_i32, %arg1 : i32, i32
  }
  func.func @transform_3(%arg0: i32, %arg1: i32, %arg2: i32) -> (i32, i32) {
    %c0_i32 = arith.constant 0 : i32
    return %arg0, %arg1 : i32, i32
  }
}

module attributes {stable_mosaic.version = 11 : i64} {
  func.func @kernel(%arg0: i32, %arg1: i32, %arg2: i32, %arg3: memref<8x128xbf16, #tpu.memory_space<vmem>>, %arg4: memref<128x256xbf16, #tpu.memory_space<vmem>>, %arg5: memref<1x256xf32, #tpu.memory_space<vmem>>, %arg6: memref<8x256xf32, #tpu.memory_space<vmem>>, %arg7: memref<8x256xf32, #tpu.memory_space<vmem>>) attributes {dimension_semantics = [#tpu.dimension_semantics<parallel>, #tpu.dimension_semantics<parallel>, #tpu.dimension_semantics<arbitrary>], iteration_bounds = array<i64: 1, 1, 1>, scalar_prefetch = 0 : i64, scratch_operands = 1 : i64, tpu.core_type = #tpu.core_type<tc>, window_params = [{transform_indices = @transform_0, window_bounds = array<i64: 8, 128>}, {transform_indices = @transform_1, window_bounds = array<i64: 128, 256>}, {transform_indices = @transform_2, window_bounds = array<i64: 1, 256>}, {transform_indices = @transform_3, window_bounds = array<i64: 8, 256>}]} {
    %c0_i32 = arith.constant 0 : i32
    %0 = arith.cmpi eq, %arg2, %c0_i32 : i32
    %1 = arith.extui %0 : i1 to i32
    %c0_i32_0 = arith.constant 0 : i32
    %2 = arith.cmpi ne, %1, %c0_i32_0 : i32
    scf.if %2 {
      %cst_10 = arith.constant 0.000000e+00 : f32
      %12 = vector.broadcast %cst_10 : f32 to vector<8x256xf32>
      %c0_11 = arith.constant 0 : index
      %c0_12 = arith.constant 0 : index
      %13 = vector.load %arg7[%c0_11, %c0_12] : memref<8x256xf32, #tpu.memory_space<vmem>>, vector<8x256xf32>
      tpu.vector_store %arg7[%c0_11, %c0_12], %12 {strides = array<i32>} : memref<8x256xf32, #tpu.memory_space<vmem>>, vector<8x256xf32>,
    } else {
    }
    %c0 = arith.constant 0 : index
    %c0_1 = arith.constant 0 : index
    %3 = vector.load %arg7[%c0, %c0_1] : memref<8x256xf32, #tpu.memory_space<vmem>>, vector<8x256xf32>
    %c0_2 = arith.constant 0 : index
    %c0_3 = arith.constant 0 : index
    %4 = vector.load %arg3[%c0_2, %c0_3] : memref<8x128xbf16, #tpu.memory_space<vmem>>, vector<8x128xbf16>
    %c0_4 = arith.constant 0 : index
    %c0_5 = arith.constant 0 : index
    %5 = vector.load %arg4[%c0_4, %c0_5] : memref<128x256xbf16, #tpu.memory_space<vmem>>, vector<128x256xbf16>
    %cst = arith.constant dense<0.000000e+00> : vector<8x256xf32>
    %6 = tpu.matmul %4, %5, %cst {dimension_numbers = #tpu.dot_dimension_numbers<[1], [0], [0], [1], [0, 0, 1, 1], [], []>} : vector<8x128xbf16>, vector<128x256xbf16>, vector<8x256xf32> -> vector<8x256xf32>
    %7 = arith.addf %3, %6 : vector<8x256xf32>
    %c0_6 = arith.constant 0 : index
    %c0_7 = arith.constant 0 : index
    %8 = vector.load %arg7[%c0_6, %c0_7] : memref<8x256xf32, #tpu.memory_space<vmem>>, vector<8x256xf32>
    tpu.vector_store %arg7[%c0_6, %c0_7], %7 {strides = array<i32>} : memref<8x256xf32, #tpu.memory_space<vmem>>, vector<8x256xf32>,
    %c0_i32_8 = arith.constant 0 : i32
    %9 = arith.cmpi eq, %arg2, %c0_i32_8 : i32
    %10 = arith.extui %9 : i1 to i32
    %c0_i32_9 = arith.constant 0 : i32
    %11 = arith.cmpi ne, %10, %c0_i32_9 : i32
    scf.if %11 {
      %c0_10 = arith.constant 0 : index
      %c0_11 = arith.constant 0 : index
      %12 = vector.load %arg7[%c0_10, %c0_11] : memref<8x256xf32, #tpu.memory_space<vmem>>, vector<8x256xf32>
      %c0_12 = arith.constant 0 : index
      %c0_13 = arith.constant 0 : index
      %13 = vector.load %arg5[%c0_12, %c0_13] : memref<1x256xf32, #tpu.memory_space<vmem>>, vector<1x256xf32>
      %14 = vector.broadcast %13 : vector<1x256xf32> to vector<8x256xf32>
      %15 = arith.addf %12, %14 : vector<8x256xf32>
      %c0_14 = arith.constant 0 : index
      %c0_15 = arith.constant 0 : index
      %16 = vector.load %arg6[%c0_14, %c0_15] : memref<8x256xf32, #tpu.memory_space<vmem>>, vector<8x256xf32>
      tpu.vector_store %arg6[%c0_14, %c0_15], %15 {strides = array<i32>} : memref<8x256xf32, #tpu.memory_space<vmem>>, vector<8x256xf32>,
    } else {
    }
    return
  }
  func.func @transform_0(%arg0: i32, %arg1: i32, %arg2: i32) -> (i32, i32) {
    %c0_i32 = arith.constant 0 : i32
    return %arg0, %arg2 : i32, i32
  }
  func.func @transform_1(%arg0: i32, %arg1: i32, %arg2: i32) -> (i32, i32) {
    %c0_i32 = arith.constant 0 : i32
    return %arg2, %arg1 : i32, i32
  }
  func.func @transform_2(%arg0: i32, %arg1: i32, %arg2: i32) -> (i32, i32) {
    %c0_i32 = arith.constant 0 : i32
    %c0_i32_0 = arith.constant 0 : i32
    return %c0_i32, %arg1 : i32, i32
  }
  func.func @transform_3(%arg0: i32, %arg1: i32, %arg2: i32) -> (i32, i32) {
    %c0_i32 = arith.constant 0 : i32
    return %arg0, %arg1 : i32, i32
  }
}

module attributes {stable_mosaic.version = 11 : i64} {
  func.func @kernel(%arg0: i32, %arg1: i32, %arg2: i32, %arg3: memref<8x384xbf16, #tpu.memory_space<vmem>>, %arg4: memref<384x256xbf16, #tpu.memory_space<vmem>>, %arg5: memref<1x256xf32, #tpu.memory_space<vmem>>, %arg6: memref<8x256xf32, #tpu.memory_space<vmem>>, %arg7: memref<8x256xf32, #tpu.memory_space<vmem>>) attributes {dimension_semantics = [#tpu.dimension_semantics<parallel>, #tpu.dimension_semantics<parallel>, #tpu.dimension_semantics<arbitrary>], iteration_bounds = array<i64: 1, 1, 6>, scalar_prefetch = 0 : i64, scratch_operands = 1 : i64, tpu.core_type = #tpu.core_type<tc>, window_params = [{transform_indices = @transform_0, window_bounds = array<i64: 8, 384>}, {transform_indices = @transform_1, window_bounds = array<i64: 384, 256>}, {transform_indices = @transform_2, window_bounds = array<i64: 1, 256>}, {transform_indices = @transform_3, window_bounds = array<i64: 8, 256>}]} {
    %c0_i32 = arith.constant 0 : i32
    %0 = arith.cmpi eq, %arg2, %c0_i32 : i32
    %1 = arith.extui %0 : i1 to i32
    %c0_i32_0 = arith.constant 0 : i32
    %2 = arith.cmpi ne, %1, %c0_i32_0 : i32
    scf.if %2 {
      %cst_9 = arith.constant 0.000000e+00 : f32
      %12 = vector.broadcast %cst_9 : f32 to vector<8x256xf32>
      %c0_10 = arith.constant 0 : index
      %c0_11 = arith.constant 0 : index
      %13 = vector.load %arg7[%c0_10, %c0_11] : memref<8x256xf32, #tpu.memory_space<vmem>>, vector<8x256xf32>
      tpu.vector_store %arg7[%c0_10, %c0_11], %12 {strides = array<i32>} : memref<8x256xf32, #tpu.memory_space<vmem>>, vector<8x256xf32>,
    } else {
    }
    %c0 = arith.constant 0 : index
    %c0_1 = arith.constant 0 : index
    %3 = vector.load %arg7[%c0, %c0_1] : memref<8x256xf32, #tpu.memory_space<vmem>>, vector<8x256xf32>
    %c0_2 = arith.constant 0 : index
    %c0_3 = arith.constant 0 : index
    %4 = vector.load %arg3[%c0_2, %c0_3] : memref<8x384xbf16, #tpu.memory_space<vmem>>, vector<8x384xbf16>
    %c0_4 = arith.constant 0 : index
    %c0_5 = arith.constant 0 : index
    %5 = vector.load %arg4[%c0_4, %c0_5] : memref<384x256xbf16, #tpu.memory_space<vmem>>, vector<384x256xbf16>
    %cst = arith.constant dense<0.000000e+00> : vector<8x256xf32>
    %6 = tpu.matmul %4, %5, %cst {dimension_numbers = #tpu.dot_dimension_numbers<[1], [0], [0], [1], [0, 0, 1, 1], [], []>} : vector<8x384xbf16>, vector<384x256xbf16>, vector<8x256xf32> -> vector<8x256xf32>
    %7 = arith.addf %3, %6 : vector<8x256xf32>
    %c0_6 = arith.constant 0 : index
    %c0_7 = arith.constant 0 : index
    %8 = vector.load %arg7[%c0_6, %c0_7] : memref<8x256xf32, #tpu.memory_space<vmem>>, vector<8x256xf32>
    tpu.vector_store %arg7[%c0_6, %c0_7], %7 {strides = array<i32>} : memref<8x256xf32, #tpu.memory_space<vmem>>, vector<8x256xf32>,
    %c5_i32 = arith.constant 5 : i32
    %9 = arith.cmpi eq, %arg2, %c5_i32 : i32
    %10 = arith.extui %9 : i1 to i32
    %c0_i32_8 = arith.constant 0 : i32
    %11 = arith.cmpi ne, %10, %c0_i32_8 : i32
    scf.if %11 {
      %c0_9 = arith.constant 0 : index
      %c0_10 = arith.constant 0 : index
      %12 = vector.load %arg7[%c0_9, %c0_10] : memref<8x256xf32, #tpu.memory_space<vmem>>, vector<8x256xf32>
      %c0_11 = arith.constant 0 : index
      %c0_12 = arith.constant 0 : index
      %13 = vector.load %arg5[%c0_11, %c0_12] : memref<1x256xf32, #tpu.memory_space<vmem>>, vector<1x256xf32>
      %14 = vector.broadcast %13 : vector<1x256xf32> to vector<8x256xf32>
      %15 = arith.addf %12, %14 : vector<8x256xf32>
      %cst_13 = arith.constant 0.000000e+00 : f32
      %16 = vector.broadcast %cst_13 : f32 to vector<8x256xf32>
      %17 = arith.maximumf %15, %16 : vector<8x256xf32>
      %c0_14 = arith.constant 0 : index
      %c0_15 = arith.constant 0 : index
      %18 = vector.load %arg6[%c0_14, %c0_15] : memref<8x256xf32, #tpu.memory_space<vmem>>, vector<8x256xf32>
      tpu.vector_store %arg6[%c0_14, %c0_15], %17 {strides = array<i32>} : memref<8x256xf32, #tpu.memory_space<vmem>>, vector<8x256xf32>,
    } else {
    }
    return
  }
  func.func @transform_0(%arg0: i32, %arg1: i32, %arg2: i32) -> (i32, i32) {
    %c0_i32 = arith.constant 0 : i32
    return %arg0, %arg2 : i32, i32
  }
  func.func @transform_1(%arg0: i32, %arg1: i32, %arg2: i32) -> (i32, i32) {
    %c0_i32 = arith.constant 0 : i32
    return %arg2, %arg1 : i32, i32
  }
  func.func @transform_2(%arg0: i32, %arg1: i32, %arg2: i32) -> (i32, i32) {
    %c0_i32 = arith.constant 0 : i32
    %c0_i32_0 = arith.constant 0 : i32
    return %c0_i32, %arg1 : i32, i32
  }
  func.func @transform_3(%arg0: i32, %arg1: i32, %arg2: i32) -> (i32, i32) {
    %c0_i32 = arith.constant 0 : i32
    return %arg0, %arg1 : i32, i32
  }
}

module attributes {stable_mosaic.version = 11 : i64} {
  func.func @kernel(%arg0: i32, %arg1: i32, %arg2: i32, %arg3: memref<8x384xbf16, #tpu.memory_space<vmem>>, %arg4: memref<384x256xbf16, #tpu.memory_space<vmem>>, %arg5: memref<1x256xf32, #tpu.memory_space<vmem>>, %arg6: memref<8x256xf32, #tpu.memory_space<vmem>>, %arg7: memref<8x256xf32, #tpu.memory_space<vmem>>, %arg8: memref<8x256xf32, #tpu.memory_space<vmem>>) attributes {dimension_semantics = [#tpu.dimension_semantics<parallel>, #tpu.dimension_semantics<parallel>, #tpu.dimension_semantics<arbitrary>], iteration_bounds = array<i64: 1, 1, 6>, scalar_prefetch = 0 : i64, scratch_operands = 1 : i64, tpu.core_type = #tpu.core_type<tc>, window_params = [{transform_indices = @transform_0, window_bounds = array<i64: 8, 384>}, {transform_indices = @transform_1, window_bounds = array<i64: 384, 256>}, {transform_indices = @transform_2, window_bounds = array<i64: 1, 256>}, {transform_indices = @transform_3, window_bounds = array<i64: 8, 256>}, {transform_indices = @transform_4, window_bounds = array<i64: 8, 256>}]} {
    %c0_i32 = arith.constant 0 : i32
    %0 = arith.cmpi eq, %arg2, %c0_i32 : i32
    %1 = arith.extui %0 : i1 to i32
    %c0_i32_0 = arith.constant 0 : i32
    %2 = arith.cmpi ne, %1, %c0_i32_0 : i32
    scf.if %2 {
      %cst_9 = arith.constant 0.000000e+00 : f32
      %12 = vector.broadcast %cst_9 : f32 to vector<8x256xf32>
      %c0_10 = arith.constant 0 : index
      %c0_11 = arith.constant 0 : index
      %13 = vector.load %arg8[%c0_10, %c0_11] : memref<8x256xf32, #tpu.memory_space<vmem>>, vector<8x256xf32>
      tpu.vector_store %arg8[%c0_10, %c0_11], %12 {strides = array<i32>} : memref<8x256xf32, #tpu.memory_space<vmem>>, vector<8x256xf32>,
    } else {
    }
    %c0 = arith.constant 0 : index
    %c0_1 = arith.constant 0 : index
    %3 = vector.load %arg8[%c0, %c0_1] : memref<8x256xf32, #tpu.memory_space<vmem>>, vector<8x256xf32>
    %c0_2 = arith.constant 0 : index
    %c0_3 = arith.constant 0 : index
    %4 = vector.load %arg3[%c0_2, %c0_3] : memref<8x384xbf16, #tpu.memory_space<vmem>>, vector<8x384xbf16>
    %c0_4 = arith.constant 0 : index
    %c0_5 = arith.constant 0 : index
    %5 = vector.load %arg4[%c0_4, %c0_5] : memref<384x256xbf16, #tpu.memory_space<vmem>>, vector<384x256xbf16>
    %cst = arith.constant dense<0.000000e+00> : vector<8x256xf32>
    %6 = tpu.matmul %4, %5, %cst {dimension_numbers = #tpu.dot_dimension_numbers<[1], [0], [0], [1], [0, 0, 1, 1], [], []>} : vector<8x384xbf16>, vector<384x256xbf16>, vector<8x256xf32> -> vector<8x256xf32>
    %7 = arith.addf %3, %6 : vector<8x256xf32>
    %c0_6 = arith.constant 0 : index
    %c0_7 = arith.constant 0 : index
    %8 = vector.load %arg8[%c0_6, %c0_7] : memref<8x256xf32, #tpu.memory_space<vmem>>, vector<8x256xf32>
    tpu.vector_store %arg8[%c0_6, %c0_7], %7 {strides = array<i32>} : memref<8x256xf32, #tpu.memory_space<vmem>>, vector<8x256xf32>,
    %c5_i32 = arith.constant 5 : i32
    %9 = arith.cmpi eq, %arg2, %c5_i32 : i32
    %10 = arith.extui %9 : i1 to i32
    %c0_i32_8 = arith.constant 0 : i32
    %11 = arith.cmpi ne, %10, %c0_i32_8 : i32
    scf.if %11 {
      %c0_9 = arith.constant 0 : index
      %c0_10 = arith.constant 0 : index
      %12 = vector.load %arg8[%c0_9, %c0_10] : memref<8x256xf32, #tpu.memory_space<vmem>>, vector<8x256xf32>
      %c0_11 = arith.constant 0 : index
      %c0_12 = arith.constant 0 : index
      %13 = vector.load %arg5[%c0_11, %c0_12] : memref<1x256xf32, #tpu.memory_space<vmem>>, vector<1x256xf32>
      %14 = vector.broadcast %13 : vector<1x256xf32> to vector<8x256xf32>
      %15 = arith.addf %12, %14 : vector<8x256xf32>
      %c0_13 = arith.constant 0 : index
      %c0_14 = arith.constant 0 : index
      %16 = vector.load %arg6[%c0_13, %c0_14] : memref<8x256xf32, #tpu.memory_space<vmem>>, vector<8x256xf32>
      %17 = arith.addf %15, %16 : vector<8x256xf32>
      %cst_15 = arith.constant 0.000000e+00 : f32
      %18 = vector.broadcast %cst_15 : f32 to vector<8x256xf32>
      %19 = arith.maximumf %17, %18 : vector<8x256xf32>
      %c0_16 = arith.constant 0 : index
      %c0_17 = arith.constant 0 : index
      %20 = vector.load %arg7[%c0_16, %c0_17] : memref<8x256xf32, #tpu.memory_space<vmem>>, vector<8x256xf32>
      tpu.vector_store %arg7[%c0_16, %c0_17], %19 {strides = array<i32>} : memref<8x256xf32, #tpu.memory_space<vmem>>, vector<8x256xf32>,
    } else {
    }
    return
  }
  func.func @transform_0(%arg0: i32, %arg1: i32, %arg2: i32) -> (i32, i32) {
    %c0_i32 = arith.constant 0 : i32
    return %arg0, %arg2 : i32, i32
  }
  func.func @transform_1(%arg0: i32, %arg1: i32, %arg2: i32) -> (i32, i32) {
    %c0_i32 = arith.constant 0 : i32
    return %arg2, %arg1 : i32, i32
  }
  func.func @transform_2(%arg0: i32, %arg1: i32, %arg2: i32) -> (i32, i32) {
    %c0_i32 = arith.constant 0 : i32
    %c0_i32_0 = arith.constant 0 : i32
    return %c0_i32, %arg1 : i32, i32
  }
  func.func @transform_3(%arg0: i32, %arg1: i32, %arg2: i32) -> (i32, i32) {
    %c0_i32 = arith.constant 0 : i32
    return %arg0, %arg1 : i32, i32
  }
  func.func @transform_4(%arg0: i32, %arg1: i32, %arg2: i32) -> (i32, i32) {
    %c0_i32 = arith.constant 0 : i32
    return %arg0, %arg1 : i32, i32
  }
}

module attributes {stable_mosaic.version = 11 : i64} {
  func.func @kernel(%arg0: i32, %arg1: i32, %arg2: i32, %arg3: memref<8x384xbf16, #tpu.memory_space<vmem>>, %arg4: memref<384x256xbf16, #tpu.memory_space<vmem>>, %arg5: memref<1x256xf32, #tpu.memory_space<vmem>>, %arg6: memref<8x256xf32, #tpu.memory_space<vmem>>, %arg7: memref<8x256xf32, #tpu.memory_space<vmem>>) attributes {dimension_semantics = [#tpu.dimension_semantics<parallel>, #tpu.dimension_semantics<parallel>, #tpu.dimension_semantics<arbitrary>], iteration_bounds = array<i64: 1, 2, 6>, scalar_prefetch = 0 : i64, scratch_operands = 1 : i64, tpu.core_type = #tpu.core_type<tc>, window_params = [{transform_indices = @transform_0, window_bounds = array<i64: 8, 384>}, {transform_indices = @transform_1, window_bounds = array<i64: 384, 256>}, {transform_indices = @transform_2, window_bounds = array<i64: 1, 256>}, {transform_indices = @transform_3, window_bounds = array<i64: 8, 256>}]} {
    %c0_i32 = arith.constant 0 : i32
    %0 = arith.cmpi eq, %arg2, %c0_i32 : i32
    %1 = arith.extui %0 : i1 to i32
    %c0_i32_0 = arith.constant 0 : i32
    %2 = arith.cmpi ne, %1, %c0_i32_0 : i32
    scf.if %2 {
      %cst_9 = arith.constant 0.000000e+00 : f32
      %12 = vector.broadcast %cst_9 : f32 to vector<8x256xf32>
      %c0_10 = arith.constant 0 : index
      %c0_11 = arith.constant 0 : index
      %13 = vector.load %arg7[%c0_10, %c0_11] : memref<8x256xf32, #tpu.memory_space<vmem>>, vector<8x256xf32>
      tpu.vector_store %arg7[%c0_10, %c0_11], %12 {strides = array<i32>} : memref<8x256xf32, #tpu.memory_space<vmem>>, vector<8x256xf32>,
    } else {
    }
    %c0 = arith.constant 0 : index
    %c0_1 = arith.constant 0 : index
    %3 = vector.load %arg7[%c0, %c0_1] : memref<8x256xf32, #tpu.memory_space<vmem>>, vector<8x256xf32>
    %c0_2 = arith.constant 0 : index
    %c0_3 = arith.constant 0 : index
    %4 = vector.load %arg3[%c0_2, %c0_3] : memref<8x384xbf16, #tpu.memory_space<vmem>>, vector<8x384xbf16>
    %c0_4 = arith.constant 0 : index
    %c0_5 = arith.constant 0 : index
    %5 = vector.load %arg4[%c0_4, %c0_5] : memref<384x256xbf16, #tpu.memory_space<vmem>>, vector<384x256xbf16>
    %cst = arith.constant dense<0.000000e+00> : vector<8x256xf32>
    %6 = tpu.matmul %4, %5, %cst {dimension_numbers = #tpu.dot_dimension_numbers<[1], [0], [0], [1], [0, 0, 1, 1], [], []>} : vector<8x384xbf16>, vector<384x256xbf16>, vector<8x256xf32> -> vector<8x256xf32>
    %7 = arith.addf %3, %6 : vector<8x256xf32>
    %c0_6 = arith.constant 0 : index
    %c0_7 = arith.constant 0 : index
    %8 = vector.load %arg7[%c0_6, %c0_7] : memref<8x256xf32, #tpu.memory_space<vmem>>, vector<8x256xf32>
    tpu.vector_store %arg7[%c0_6, %c0_7], %7 {strides = array<i32>} : memref<8x256xf32, #tpu.memory_space<vmem>>, vector<8x256xf32>,
    %c5_i32 = arith.constant 5 : i32
    %9 = arith.cmpi eq, %arg2, %c5_i32 : i32
    %10 = arith.extui %9 : i1 to i32
    %c0_i32_8 = arith.constant 0 : i32
    %11 = arith.cmpi ne, %10, %c0_i32_8 : i32
    scf.if %11 {
      %c0_9 = arith.constant 0 : index
      %c0_10 = arith.constant 0 : index
      %12 = vector.load %arg7[%c0_9, %c0_10] : memref<8x256xf32, #tpu.memory_space<vmem>>, vector<8x256xf32>
      %c0_11 = arith.constant 0 : index
      %c0_12 = arith.constant 0 : index
      %13 = vector.load %arg5[%c0_11, %c0_12] : memref<1x256xf32, #tpu.memory_space<vmem>>, vector<1x256xf32>
      %14 = vector.broadcast %13 : vector<1x256xf32> to vector<8x256xf32>
      %15 = arith.addf %12, %14 : vector<8x256xf32>
      %cst_13 = arith.constant 0.000000e+00 : f32
      %16 = vector.broadcast %cst_13 : f32 to vector<8x256xf32>
      %17 = arith.maximumf %15, %16 : vector<8x256xf32>
      %c0_14 = arith.constant 0 : index
      %c0_15 = arith.constant 0 : index
      %18 = vector.load %arg6[%c0_14, %c0_15] : memref<8x256xf32, #tpu.memory_space<vmem>>, vector<8x256xf32>
      tpu.vector_store %arg6[%c0_14, %c0_15], %17 {strides = array<i32>} : memref<8x256xf32, #tpu.memory_space<vmem>>, vector<8x256xf32>,
    } else {
    }
    return
  }
  func.func @transform_0(%arg0: i32, %arg1: i32, %arg2: i32) -> (i32, i32) {
    %c0_i32 = arith.constant 0 : i32
    return %arg0, %arg2 : i32, i32
  }
  func.func @transform_1(%arg0: i32, %arg1: i32, %arg2: i32) -> (i32, i32) {
    %c0_i32 = arith.constant 0 : i32
    return %arg2, %arg1 : i32, i32
  }
  func.func @transform_2(%arg0: i32, %arg1: i32, %arg2: i32) -> (i32, i32) {
    %c0_i32 = arith.constant 0 : i32
    %c0_i32_0 = arith.constant 0 : i32
    return %c0_i32, %arg1 : i32, i32
  }
  func.func @transform_3(%arg0: i32, %arg1: i32, %arg2: i32) -> (i32, i32) {
    %c0_i32 = arith.constant 0 : i32
    return %arg0, %arg1 : i32, i32
  }
}

module attributes {stable_mosaic.version = 11 : i64} {
  func.func @kernel(%arg0: i32, %arg1: i32, %arg2: i32, %arg3: memref<8x256xbf16, #tpu.memory_space<vmem>>, %arg4: memref<256x256xbf16, #tpu.memory_space<vmem>>, %arg5: memref<1x256xf32, #tpu.memory_space<vmem>>, %arg6: memref<8x256xf32, #tpu.memory_space<vmem>>, %arg7: memref<8x256xf32, #tpu.memory_space<vmem>>) attributes {dimension_semantics = [#tpu.dimension_semantics<parallel>, #tpu.dimension_semantics<parallel>, #tpu.dimension_semantics<arbitrary>], iteration_bounds = array<i64: 1, 2, 1>, scalar_prefetch = 0 : i64, scratch_operands = 1 : i64, tpu.core_type = #tpu.core_type<tc>, window_params = [{transform_indices = @transform_0, window_bounds = array<i64: 8, 256>}, {transform_indices = @transform_1, window_bounds = array<i64: 256, 256>}, {transform_indices = @transform_2, window_bounds = array<i64: 1, 256>}, {transform_indices = @transform_3, window_bounds = array<i64: 8, 256>}]} {
    %c0_i32 = arith.constant 0 : i32
    %0 = arith.cmpi eq, %arg2, %c0_i32 : i32
    %1 = arith.extui %0 : i1 to i32
    %c0_i32_0 = arith.constant 0 : i32
    %2 = arith.cmpi ne, %1, %c0_i32_0 : i32
    scf.if %2 {
      %cst_10 = arith.constant 0.000000e+00 : f32
      %12 = vector.broadcast %cst_10 : f32 to vector<8x256xf32>
      %c0_11 = arith.constant 0 : index
      %c0_12 = arith.constant 0 : index
      %13 = vector.load %arg7[%c0_11, %c0_12] : memref<8x256xf32, #tpu.memory_space<vmem>>, vector<8x256xf32>
      tpu.vector_store %arg7[%c0_11, %c0_12], %12 {strides = array<i32>} : memref<8x256xf32, #tpu.memory_space<vmem>>, vector<8x256xf32>,
    } else {
    }
    %c0 = arith.constant 0 : index
    %c0_1 = arith.constant 0 : index
    %3 = vector.load %arg7[%c0, %c0_1] : memref<8x256xf32, #tpu.memory_space<vmem>>, vector<8x256xf32>
    %c0_2 = arith.constant 0 : index
    %c0_3 = arith.constant 0 : index
    %4 = vector.load %arg3[%c0_2, %c0_3] : memref<8x256xbf16, #tpu.memory_space<vmem>>, vector<8x256xbf16>
    %c0_4 = arith.constant 0 : index
    %c0_5 = arith.constant 0 : index
    %5 = vector.load %arg4[%c0_4, %c0_5] : memref<256x256xbf16, #tpu.memory_space<vmem>>, vector<256x256xbf16>
    %cst = arith.constant dense<0.000000e+00> : vector<8x256xf32>
    %6 = tpu.matmul %4, %5, %cst {dimension_numbers = #tpu.dot_dimension_numbers<[1], [0], [0], [1], [0, 0, 1, 1], [], []>} : vector<8x256xbf16>, vector<256x256xbf16>, vector<8x256xf32> -> vector<8x256xf32>
    %7 = arith.addf %3, %6 : vector<8x256xf32>
    %c0_6 = arith.constant 0 : index
    %c0_7 = arith.constant 0 : index
    %8 = vector.load %arg7[%c0_6, %c0_7] : memref<8x256xf32, #tpu.memory_space<vmem>>, vector<8x256xf32>
    tpu.vector_store %arg7[%c0_6, %c0_7], %7 {strides = array<i32>} : memref<8x256xf32, #tpu.memory_space<vmem>>, vector<8x256xf32>,
    %c0_i32_8 = arith.constant 0 : i32
    %9 = arith.cmpi eq, %arg2, %c0_i32_8 : i32
    %10 = arith.extui %9 : i1 to i32
    %c0_i32_9 = arith.constant 0 : i32
    %11 = arith.cmpi ne, %10, %c0_i32_9 : i32
    scf.if %11 {
      %c0_10 = arith.constant 0 : index
      %c0_11 = arith.constant 0 : index
      %12 = vector.load %arg7[%c0_10, %c0_11] : memref<8x256xf32, #tpu.memory_space<vmem>>, vector<8x256xf32>
      %c0_12 = arith.constant 0 : index
      %c0_13 = arith.constant 0 : index
      %13 = vector.load %arg5[%c0_12, %c0_13] : memref<1x256xf32, #tpu.memory_space<vmem>>, vector<1x256xf32>
      %14 = vector.broadcast %13 : vector<1x256xf32> to vector<8x256xf32>
      %15 = arith.addf %12, %14 : vector<8x256xf32>
      %c0_14 = arith.constant 0 : index
      %c0_15 = arith.constant 0 : index
      %16 = vector.load %arg6[%c0_14, %c0_15] : memref<8x256xf32, #tpu.memory_space<vmem>>, vector<8x256xf32>
      tpu.vector_store %arg6[%c0_14, %c0_15], %15 {strides = array<i32>} : memref<8x256xf32, #tpu.memory_space<vmem>>, vector<8x256xf32>,
    } else {
    }
    return
  }
  func.func @transform_0(%arg0: i32, %arg1: i32, %arg2: i32) -> (i32, i32) {
    %c0_i32 = arith.constant 0 : i32
    return %arg0, %arg2 : i32, i32
  }
  func.func @transform_1(%arg0: i32, %arg1: i32, %arg2: i32) -> (i32, i32) {
    %c0_i32 = arith.constant 0 : i32
    return %arg2, %arg1 : i32, i32
  }
  func.func @transform_2(%arg0: i32, %arg1: i32, %arg2: i32) -> (i32, i32) {
    %c0_i32 = arith.constant 0 : i32
    %c0_i32_0 = arith.constant 0 : i32
    return %c0_i32, %arg1 : i32, i32
  }
  func.func @transform_3(%arg0: i32, %arg1: i32, %arg2: i32) -> (i32, i32) {
    %c0_i32 = arith.constant 0 : i32
    return %arg0, %arg1 : i32, i32
  }
}

module attributes {stable_mosaic.version = 11 : i64} {
  func.func @kernel(%arg0: i32, %arg1: i32, %arg2: i32, %arg3: memref<8x512xbf16, #tpu.memory_space<vmem>>, %arg4: memref<512x256xbf16, #tpu.memory_space<vmem>>, %arg5: memref<1x256xf32, #tpu.memory_space<vmem>>, %arg6: memref<8x256xf32, #tpu.memory_space<vmem>>, %arg7: memref<8x256xf32, #tpu.memory_space<vmem>>, %arg8: memref<8x256xf32, #tpu.memory_space<vmem>>) attributes {dimension_semantics = [#tpu.dimension_semantics<parallel>, #tpu.dimension_semantics<parallel>, #tpu.dimension_semantics<arbitrary>], iteration_bounds = array<i64: 1, 2, 9>, scalar_prefetch = 0 : i64, scratch_operands = 1 : i64, tpu.core_type = #tpu.core_type<tc>, window_params = [{transform_indices = @transform_0, window_bounds = array<i64: 8, 512>}, {transform_indices = @transform_1, window_bounds = array<i64: 512, 256>}, {transform_indices = @transform_2, window_bounds = array<i64: 1, 256>}, {transform_indices = @transform_3, window_bounds = array<i64: 8, 256>}, {transform_indices = @transform_4, window_bounds = array<i64: 8, 256>}]} {
    %c0_i32 = arith.constant 0 : i32
    %0 = arith.cmpi eq, %arg2, %c0_i32 : i32
    %1 = arith.extui %0 : i1 to i32
    %c0_i32_0 = arith.constant 0 : i32
    %2 = arith.cmpi ne, %1, %c0_i32_0 : i32
    scf.if %2 {
      %cst_9 = arith.constant 0.000000e+00 : f32
      %12 = vector.broadcast %cst_9 : f32 to vector<8x256xf32>
      %c0_10 = arith.constant 0 : index
      %c0_11 = arith.constant 0 : index
      %13 = vector.load %arg8[%c0_10, %c0_11] : memref<8x256xf32, #tpu.memory_space<vmem>>, vector<8x256xf32>
      tpu.vector_store %arg8[%c0_10, %c0_11], %12 {strides = array<i32>} : memref<8x256xf32, #tpu.memory_space<vmem>>, vector<8x256xf32>,
    } else {
    }
    %c0 = arith.constant 0 : index
    %c0_1 = arith.constant 0 : index
    %3 = vector.load %arg8[%c0, %c0_1] : memref<8x256xf32, #tpu.memory_space<vmem>>, vector<8x256xf32>
    %c0_2 = arith.constant 0 : index
    %c0_3 = arith.constant 0 : index
    %4 = vector.load %arg3[%c0_2, %c0_3] : memref<8x512xbf16, #tpu.memory_space<vmem>>, vector<8x512xbf16>
    %c0_4 = arith.constant 0 : index
    %c0_5 = arith.constant 0 : index
    %5 = vector.load %arg4[%c0_4, %c0_5] : memref<512x256xbf16, #tpu.memory_space<vmem>>, vector<512x256xbf16>
    %cst = arith.constant dense<0.000000e+00> : vector<8x256xf32>
    %6 = tpu.matmul %4, %5, %cst {dimension_numbers = #tpu.dot_dimension_numbers<[1], [0], [0], [1], [0, 0, 1, 1], [], []>} : vector<8x512xbf16>, vector<512x256xbf16>, vector<8x256xf32> -> vector<8x256xf32>
    %7 = arith.addf %3, %6 : vector<8x256xf32>
    %c0_6 = arith.constant 0 : index
    %c0_7 = arith.constant 0 : index
    %8 = vector.load %arg8[%c0_6, %c0_7] : memref<8x256xf32, #tpu.memory_space<vmem>>, vector<8x256xf32>
    tpu.vector_store %arg8[%c0_6, %c0_7], %7 {strides = array<i32>} : memref<8x256xf32, #tpu.memory_space<vmem>>, vector<8x256xf32>,
    %c8_i32 = arith.constant 8 : i32
    %9 = arith.cmpi eq, %arg2, %c8_i32 : i32
    %10 = arith.extui %9 : i1 to i32
    %c0_i32_8 = arith.constant 0 : i32
    %11 = arith.cmpi ne, %10, %c0_i32_8 : i32
    scf.if %11 {
      %c0_9 = arith.constant 0 : index
      %c0_10 = arith.constant 0 : index
      %12 = vector.load %arg8[%c0_9, %c0_10] : memref<8x256xf32, #tpu.memory_space<vmem>>, vector<8x256xf32>
      %c0_11 = arith.constant 0 : index
      %c0_12 = arith.constant 0 : index
      %13 = vector.load %arg5[%c0_11, %c0_12] : memref<1x256xf32, #tpu.memory_space<vmem>>, vector<1x256xf32>
      %14 = vector.broadcast %13 : vector<1x256xf32> to vector<8x256xf32>
      %15 = arith.addf %12, %14 : vector<8x256xf32>
      %c0_13 = arith.constant 0 : index
      %c0_14 = arith.constant 0 : index
      %16 = vector.load %arg6[%c0_13, %c0_14] : memref<8x256xf32, #tpu.memory_space<vmem>>, vector<8x256xf32>
      %17 = arith.addf %15, %16 : vector<8x256xf32>
      %cst_15 = arith.constant 0.000000e+00 : f32
      %18 = vector.broadcast %cst_15 : f32 to vector<8x256xf32>
      %19 = arith.maximumf %17, %18 : vector<8x256xf32>
      %c0_16 = arith.constant 0 : index
      %c0_17 = arith.constant 0 : index
      %20 = vector.load %arg7[%c0_16, %c0_17] : memref<8x256xf32, #tpu.memory_space<vmem>>, vector<8x256xf32>
      tpu.vector_store %arg7[%c0_16, %c0_17], %19 {strides = array<i32>} : memref<8x256xf32, #tpu.memory_space<vmem>>, vector<8x256xf32>,
    } else {
    }
    return
  }
  func.func @transform_0(%arg0: i32, %arg1: i32, %arg2: i32) -> (i32, i32) {
    %c0_i32 = arith.constant 0 : i32
    return %arg0, %arg2 : i32, i32
  }
  func.func @transform_1(%arg0: i32, %arg1: i32, %arg2: i32) -> (i32, i32) {
    %c0_i32 = arith.constant 0 : i32
    return %arg2, %arg1 : i32, i32
  }
  func.func @transform_2(%arg0: i32, %arg1: i32, %arg2: i32) -> (i32, i32) {
    %c0_i32 = arith.constant 0 : i32
    %c0_i32_0 = arith.constant 0 : i32
    return %c0_i32, %arg1 : i32, i32
  }
  func.func @transform_3(%arg0: i32, %arg1: i32, %arg2: i32) -> (i32, i32) {
    %c0_i32 = arith.constant 0 : i32
    return %arg0, %arg1 : i32, i32
  }
  func.func @transform_4(%arg0: i32, %arg1: i32, %arg2: i32) -> (i32, i32) {
    %c0_i32 = arith.constant 0 : i32
    return %arg0, %arg1 : i32, i32
  }
}

module attributes {stable_mosaic.version = 11 : i64} {
  func.func @kernel(%arg0: i32, %arg1: i32, %arg2: i32, %arg3: memref<8x512xbf16, #tpu.memory_space<vmem>>, %arg4: memref<512x256xbf16, #tpu.memory_space<vmem>>, %arg5: memref<1x256xf32, #tpu.memory_space<vmem>>, %arg6: memref<8x256xf32, #tpu.memory_space<vmem>>, %arg7: memref<8x256xf32, #tpu.memory_space<vmem>>) attributes {dimension_semantics = [#tpu.dimension_semantics<parallel>, #tpu.dimension_semantics<parallel>, #tpu.dimension_semantics<arbitrary>], iteration_bounds = array<i64: 1, 2, 9>, scalar_prefetch = 0 : i64, scratch_operands = 1 : i64, tpu.core_type = #tpu.core_type<tc>, window_params = [{transform_indices = @transform_0, window_bounds = array<i64: 8, 512>}, {transform_indices = @transform_1, window_bounds = array<i64: 512, 256>}, {transform_indices = @transform_2, window_bounds = array<i64: 1, 256>}, {transform_indices = @transform_3, window_bounds = array<i64: 8, 256>}]} {
    %c0_i32 = arith.constant 0 : i32
    %0 = arith.cmpi eq, %arg2, %c0_i32 : i32
    %1 = arith.extui %0 : i1 to i32
    %c0_i32_0 = arith.constant 0 : i32
    %2 = arith.cmpi ne, %1, %c0_i32_0 : i32
    scf.if %2 {
      %cst_9 = arith.constant 0.000000e+00 : f32
      %12 = vector.broadcast %cst_9 : f32 to vector<8x256xf32>
      %c0_10 = arith.constant 0 : index
      %c0_11 = arith.constant 0 : index
      %13 = vector.load %arg7[%c0_10, %c0_11] : memref<8x256xf32, #tpu.memory_space<vmem>>, vector<8x256xf32>
      tpu.vector_store %arg7[%c0_10, %c0_11], %12 {strides = array<i32>} : memref<8x256xf32, #tpu.memory_space<vmem>>, vector<8x256xf32>,
    } else {
    }
    %c0 = arith.constant 0 : index
    %c0_1 = arith.constant 0 : index
    %3 = vector.load %arg7[%c0, %c0_1] : memref<8x256xf32, #tpu.memory_space<vmem>>, vector<8x256xf32>
    %c0_2 = arith.constant 0 : index
    %c0_3 = arith.constant 0 : index
    %4 = vector.load %arg3[%c0_2, %c0_3] : memref<8x512xbf16, #tpu.memory_space<vmem>>, vector<8x512xbf16>
    %c0_4 = arith.constant 0 : index
    %c0_5 = arith.constant 0 : index
    %5 = vector.load %arg4[%c0_4, %c0_5] : memref<512x256xbf16, #tpu.memory_space<vmem>>, vector<512x256xbf16>
    %cst = arith.constant dense<0.000000e+00> : vector<8x256xf32>
    %6 = tpu.matmul %4, %5, %cst {dimension_numbers = #tpu.dot_dimension_numbers<[1], [0], [0], [1], [0, 0, 1, 1], [], []>} : vector<8x512xbf16>, vector<512x256xbf16>, vector<8x256xf32> -> vector<8x256xf32>
    %7 = arith.addf %3, %6 : vector<8x256xf32>
    %c0_6 = arith.constant 0 : index
    %c0_7 = arith.constant 0 : index
    %8 = vector.load %arg7[%c0_6, %c0_7] : memref<8x256xf32, #tpu.memory_space<vmem>>, vector<8x256xf32>
    tpu.vector_store %arg7[%c0_6, %c0_7], %7 {strides = array<i32>} : memref<8x256xf32, #tpu.memory_space<vmem>>, vector<8x256xf32>,
    %c8_i32 = arith.constant 8 : i32
    %9 = arith.cmpi eq, %arg2, %c8_i32 : i32
    %10 = arith.extui %9 : i1 to i32
    %c0_i32_8 = arith.constant 0 : i32
    %11 = arith.cmpi ne, %10, %c0_i32_8 : i32
    scf.if %11 {
      %c0_9 = arith.constant 0 : index
      %c0_10 = arith.constant 0 : index
      %12 = vector.load %arg7[%c0_9, %c0_10] : memref<8x256xf32, #tpu.memory_space<vmem>>, vector<8x256xf32>
      %c0_11 = arith.constant 0 : index
      %c0_12 = arith.constant 0 : index
      %13 = vector.load %arg5[%c0_11, %c0_12] : memref<1x256xf32, #tpu.memory_space<vmem>>, vector<1x256xf32>
      %14 = vector.broadcast %13 : vector<1x256xf32> to vector<8x256xf32>
      %15 = arith.addf %12, %14 : vector<8x256xf32>
      %cst_13 = arith.constant 0.000000e+00 : f32
      %16 = vector.broadcast %cst_13 : f32 to vector<8x256xf32>
      %17 = arith.maximumf %15, %16 : vector<8x256xf32>
      %c0_14 = arith.constant 0 : index
      %c0_15 = arith.constant 0 : index
      %18 = vector.load %arg6[%c0_14, %c0_15] : memref<8x256xf32, #tpu.memory_space<vmem>>, vector<8x256xf32>
      tpu.vector_store %arg6[%c0_14, %c0_15], %17 {strides = array<i32>} : memref<8x256xf32, #tpu.memory_space<vmem>>, vector<8x256xf32>,
    } else {
    }
    return
  }
  func.func @transform_0(%arg0: i32, %arg1: i32, %arg2: i32) -> (i32, i32) {
    %c0_i32 = arith.constant 0 : i32
    return %arg0, %arg2 : i32, i32
  }
  func.func @transform_1(%arg0: i32, %arg1: i32, %arg2: i32) -> (i32, i32) {
    %c0_i32 = arith.constant 0 : i32
    return %arg2, %arg1 : i32, i32
  }
  func.func @transform_2(%arg0: i32, %arg1: i32, %arg2: i32) -> (i32, i32) {
    %c0_i32 = arith.constant 0 : i32
    %c0_i32_0 = arith.constant 0 : i32
    return %c0_i32, %arg1 : i32, i32
  }
  func.func @transform_3(%arg0: i32, %arg1: i32, %arg2: i32) -> (i32, i32) {
    %c0_i32 = arith.constant 0 : i32
    return %arg0, %arg1 : i32, i32
  }
}

module attributes {stable_mosaic.version = 11 : i64} {
  func.func @_avgpool_kernel(%arg0: i32, %arg1: memref<2x1x512xf32, #tpu.memory_space<vmem>>, %arg2: memref<2x512xf32, #tpu.memory_space<vmem>>) attributes {dimension_semantics = [#tpu.dimension_semantics<arbitrary>], iteration_bounds = array<i64: 1>, scalar_prefetch = 0 : i64, scratch_operands = 0 : i64, tpu.core_type = #tpu.core_type<tc>, window_params = [{pipeline_mode = #tpu.pipeline_mode<synchronous>, transform_indices = @transform_0, window_bounds = array<i64: 2, 1, 512>}, {pipeline_mode = #tpu.pipeline_mode<synchronous>, transform_indices = @transform_1, window_bounds = array<i64: 2, 512>}]} {
    %c0 = arith.constant 0 : index
    %c0_0 = arith.constant 0 : index
    %c0_1 = arith.constant 0 : index
    %0 = vector.load %arg1[%c0, %c0_0, %c0_1] : memref<2x1x512xf32, #tpu.memory_space<vmem>>, vector<2x1x512xf32>
    %cst = arith.constant dense<0.000000e+00> : vector<2x512xf32>
    %1 = vector.multi_reduction <add>, %0, %cst [1] : vector<2x1x512xf32> to vector<2x512xf32>
    %cst_2 = arith.constant 1.000000e+00 : f32
    %2 = vector.broadcast %cst_2 : f32 to vector<2x512xf32>
    %3 = arith.mulf %1, %2 : vector<2x512xf32>
    %c0_3 = arith.constant 0 : index
    %c0_4 = arith.constant 0 : index
    %4 = vector.load %arg2[%c0_3, %c0_4] : memref<2x512xf32, #tpu.memory_space<vmem>>, vector<2x512xf32>
    tpu.vector_store %arg2[%c0_3, %c0_4], %3 {strides = array<i32>} : memref<2x512xf32, #tpu.memory_space<vmem>>, vector<2x512xf32>,
    return
  }
  func.func @transform_0(%arg0: i32) -> (i32, i32, i32) {
    %c0_i32 = arith.constant 0 : i32
    %c0_i32_0 = arith.constant 0 : i32
    %c0_i32_1 = arith.constant 0 : i32
    %c0_i32_2 = arith.constant 0 : i32
    return %c0_i32, %c0_i32_0, %c0_i32_1 : i32, i32, i32
  }
  func.func @transform_1(%arg0: i32) -> (i32, i32) {
    %c0_i32 = arith.constant 0 : i32
    %c0_i32_0 = arith.constant 0 : i32
    %c0_i32_1 = arith.constant 0 : i32
    return %c0_i32, %c0_i32_0 : i32, i32
  }
}

module attributes {stable_mosaic.version = 11 : i64} {
  func.func @kernel(%arg0: i32, %arg1: i32, %arg2: i32, %arg3: memref<8x512xbf16, #tpu.memory_space<vmem>>, %arg4: memref<512x128xbf16, #tpu.memory_space<vmem>>, %arg5: memref<1x128xf32, #tpu.memory_space<vmem>>, %arg6: memref<8x128xf32, #tpu.memory_space<vmem>>, %arg7: memref<8x128xf32, #tpu.memory_space<vmem>>) attributes {dimension_semantics = [#tpu.dimension_semantics<parallel>, #tpu.dimension_semantics<parallel>, #tpu.dimension_semantics<arbitrary>], iteration_bounds = array<i64: 1, 1, 1>, scalar_prefetch = 0 : i64, scratch_operands = 1 : i64, tpu.core_type = #tpu.core_type<tc>, window_params = [{transform_indices = @transform_0, window_bounds = array<i64: 8, 512>}, {transform_indices = @transform_1, window_bounds = array<i64: 512, 128>}, {transform_indices = @transform_2, window_bounds = array<i64: 1, 128>}, {transform_indices = @transform_3, window_bounds = array<i64: 8, 128>}]} {
    %c0_i32 = arith.constant 0 : i32
    %0 = arith.cmpi eq, %arg2, %c0_i32 : i32
    %1 = arith.extui %0 : i1 to i32
    %c0_i32_0 = arith.constant 0 : i32
    %2 = arith.cmpi ne, %1, %c0_i32_0 : i32
    scf.if %2 {
      %cst_10 = arith.constant 0.000000e+00 : f32
      %12 = vector.broadcast %cst_10 : f32 to vector<8x128xf32>
      %c0_11 = arith.constant 0 : index
      %c0_12 = arith.constant 0 : index
      %13 = vector.load %arg7[%c0_11, %c0_12] : memref<8x128xf32, #tpu.memory_space<vmem>>, vector<8x128xf32>
      tpu.vector_store %arg7[%c0_11, %c0_12], %12 {strides = array<i32>} : memref<8x128xf32, #tpu.memory_space<vmem>>, vector<8x128xf32>,
    } else {
    }
    %c0 = arith.constant 0 : index
    %c0_1 = arith.constant 0 : index
    %3 = vector.load %arg7[%c0, %c0_1] : memref<8x128xf32, #tpu.memory_space<vmem>>, vector<8x128xf32>
    %c0_2 = arith.constant 0 : index
    %c0_3 = arith.constant 0 : index
    %4 = vector.load %arg3[%c0_2, %c0_3] : memref<8x512xbf16, #tpu.memory_space<vmem>>, vector<8x512xbf16>
    %c0_4 = arith.constant 0 : index
    %c0_5 = arith.constant 0 : index
    %5 = vector.load %arg4[%c0_4, %c0_5] : memref<512x128xbf16, #tpu.memory_space<vmem>>, vector<512x128xbf16>
    %cst = arith.constant dense<0.000000e+00> : vector<8x128xf32>
    %6 = tpu.matmul %4, %5, %cst {dimension_numbers = #tpu.dot_dimension_numbers<[1], [0], [0], [1], [0, 0, 1, 1], [], []>} : vector<8x512xbf16>, vector<512x128xbf16>, vector<8x128xf32> -> vector<8x128xf32>
    %7 = arith.addf %3, %6 : vector<8x128xf32>
    %c0_6 = arith.constant 0 : index
    %c0_7 = arith.constant 0 : index
    %8 = vector.load %arg7[%c0_6, %c0_7] : memref<8x128xf32, #tpu.memory_space<vmem>>, vector<8x128xf32>
    tpu.vector_store %arg7[%c0_6, %c0_7], %7 {strides = array<i32>} : memref<8x128xf32, #tpu.memory_space<vmem>>, vector<8x128xf32>,
    %c0_i32_8 = arith.constant 0 : i32
    %9 = arith.cmpi eq, %arg2, %c0_i32_8 : i32
    %10 = arith.extui %9 : i1 to i32
    %c0_i32_9 = arith.constant 0 : i32
    %11 = arith.cmpi ne, %10, %c0_i32_9 : i32
    scf.if %11 {
      %c0_10 = arith.constant 0 : index
      %c0_11 = arith.constant 0 : index
      %12 = vector.load %arg7[%c0_10, %c0_11] : memref<8x128xf32, #tpu.memory_space<vmem>>, vector<8x128xf32>
      %c0_12 = arith.constant 0 : index
      %c0_13 = arith.constant 0 : index
      %13 = vector.load %arg5[%c0_12, %c0_13] : memref<1x128xf32, #tpu.memory_space<vmem>>, vector<1x128xf32>
      %14 = vector.broadcast %13 : vector<1x128xf32> to vector<8x128xf32>
      %15 = arith.addf %12, %14 : vector<8x128xf32>
      %c0_14 = arith.constant 0 : index
      %c0_15 = arith.constant 0 : index
      %16 = vector.load %arg6[%c0_14, %c0_15] : memref<8x128xf32, #tpu.memory_space<vmem>>, vector<8x128xf32>
      tpu.vector_store %arg6[%c0_14, %c0_15], %15 {strides = array<i32>} : memref<8x128xf32, #tpu.memory_space<vmem>>, vector<8x128xf32>,
    } else {
    }
    return
  }
  func.func @transform_0(%arg0: i32, %arg1: i32, %arg2: i32) -> (i32, i32) {
    %c0_i32 = arith.constant 0 : i32
    return %arg0, %arg2 : i32, i32
  }
  func.func @transform_1(%arg0: i32, %arg1: i32, %arg2: i32) -> (i32, i32) {
    %c0_i32 = arith.constant 0 : i32
    return %arg2, %arg1 : i32, i32
  }
  func.func @transform_2(%arg0: i32, %arg1: i32, %arg2: i32) -> (i32, i32) {
    %c0_i32 = arith.constant 0 : i32
    %c0_i32_0 = arith.constant 0 : i32
    return %c0_i32, %arg1 : i32, i32
  }
  func.func @transform_3(%arg0: i32, %arg1: i32, %arg2: i32) -> (i32, i32) {
    %c0_i32 = arith.constant 0 : i32
    return %arg0, %arg1 : i32, i32
  }
}

</mosaic_0001>

<bundles_post_ra>
// kernel: _lambda_.22
= control target key start
LH: loop header
LB: loop body
LE: loop exit
PB: predicated region body
PF: predicated region fallthrough
CT: control target
= control target key end

     0   :  { %s1457_s12 = smov 0   ;;  %s1459_s13 = smov 0   ;;  %s1650_s0 = inlined_call_operand.vmem [shape: bf16[512,256], index: 0, kind: input, shape index: {}]   ;;  %s1651_s1 = inlined_call_operand.vmem [shape: bf16[256,128], index: 1, kind: input, shape index: {}]   ;;  %s1652_s2 = inlined_call_operand.vmem [shape: f32[1,128], index: 2, kind: input, shape index: {}]   ;;  %s1653_s3 = inlined_call_operand.vmem [shape: f32[512,128], index: 3, kind: output, shape index: {}]  }
   0x1   :  { %s1461_s14 = smov 0  }
   0x2 LB: > { %s32_s15 = sadd.s32 1, %s1431_s13  ;;  %p1139_p0 = scmp.ge.s32.totalorder %s1435_s14, 1  ;;  %s1435_s14 = sphi %s1461_s14, %s13_s14   ;;  %s1431_s13 = sphi %s1459_s13, %s1655_s13   ;;  %s1427_s12 = sphi %s1457_s12, %s1654_s12  }
   0x3   : > { %p34_p1 = scmp.ge.s32.totalorder %s32_s15, 2  ;;  %p191_p2 = scmp.lt.s32.totalorder %s1435_s14, 3 }
   0x5   : > { %s1657_s15 = smov (%p34_p1, %s32_s15), 0  ;;  %p192_p3 = pnand %p1139_p0, %p191_p2 }
   0x6   : > { %s1140_s18 = sshll.u32 (!%p192_p3), %s1427_s12, 5 }
   0x7   : > { %195 = sbr.rel (%p192_p3) target bundleno = 307 (0x133), region = 32  ;;  %p236_p4 = scmp.lt.s32.totalorder (!%p192_p3), %s1140_s18, 63 }
   0xc   : > { %v1349_v0 = vld [vmem:[%s1651_s1 + $0x78] sm:$0xff]   ;;  %v1351_v2 = vld [vmem:[%s1651_s1 + $0x70] sm:$0xff]   ;;  %v1353_v4 = vld [vmem:[%s1651_s1 + $0x68] sm:$0xff]   ;;  %s1659_s18 = smov (!%p236_p4, %s1140_s18), 63 }
   0xd   : > { %v1350_v1 = vld [vmem:[%s1651_s1 + $0x38] sm:$0xff]   ;;  %1197 = vmatprep.subr.bf16.mxu0 %v1349_v0  ;;  %1309 = vmatprep.subr.bf16.mxu1 %v1349_v0  ;;  %v1352_v3 = vld [vmem:[%s1651_s1 + $0x30] sm:$0xff]   ;;  %v1354_v5 = vld [vmem:[%s1651_s1 + $0x28] sm:$0xff]   ;;  %s1196_s6 = sshll.u32 %s1659_s18, 3 }
   0xe   : > { %1198 = vmatpush3.bf16.msra.mxu0 %v1350_v1  ;;  %1317 = vmatpush3.bf16.msra.mxu1 %v1350_v1  ;;  %v1355_v6 = vld [vmem:[%s1651_s1 + $0x60] sm:$0xff]   ;;  %v1357_v8 = vld [vmem:[%s1651_s1 + $0x58] sm:$0xff]   ;;  %s1510_s11 = scalar_lea.vmem %s1650_s0, %s1196_s6  ;;  %v1359_v10 = vld [vmem:[%s1651_s1 + $0x50] sm:$0xff]   ;;  %s1577_s8 = scalar_lea.vmem %s1653_s3, %s1196_s6 }
   0xf   : > { %1199 = vmatprep.subr.bf16.mxu0 %v1351_v2  ;;  %1310 = vmatprep.subr.bf16.mxu1 %v1351_v2  ;;  %v1356_v7 = vld [vmem:[%s1651_s1 + $0x20] sm:$0xff]   ;;  %v1358_v9 = vld [vmem:[%s1651_s1 + $0x18] sm:$0xff]   ;;  %v1360_v13 = vld [vmem:[%s1651_s1 + $0x10] sm:$0xff]  }
  0x10   : > { %v1367_v11 = vld [vmem:[%s1510_s11 + $0x4] ss:$8 sps:$4 sm:$0xff]   ;;  %v1365_v18 = vld [vmem:[%s1510_s11] ss:$8 sps:$4 sm:$0xff]   ;;  %v1371_v20 = vld [vmem:[%s1510_s11 + $0x14] ss:$8 sps:$4 sm:$0xff]  }
  0x11   : > { %v1370_v12 = vld [vmem:[%s1510_s11 + $0x84] ss:$8 sps:$4 sm:$0xff]   ;;  %688 = vmatprep.mubr.bf16.mxu0 %v1367_v11  ;;  %v1368_v19 = vld [vmem:[%s1510_s11 + $0x80] ss:$8 sps:$4 sm:$0xff]   ;;  %v1373_v21 = vld [vmem:[%s1510_s11 + $0x94] ss:$8 sps:$4 sm:$0xff]  }
  0x12   : > { %1200 = vmatpush3.bf16.msra.mxu0 %v1352_v3  ;;  %1318 = vmatpush3.bf16.msra.mxu1 %v1352_v3  ;;  %v1361_v14 = vld [vmem:[%s1651_s1 + $0x48] sm:$0xff]   ;;  %v1363_v16 = vld [vmem:[%s1651_s1 + $0x40] sm:$0xff]   ;;  %v1375_v22 = vld [vmem:[%s1510_s11 + $0x10] ss:$8 sps:$4 sm:$0xff]  }
  0x13   : > { %1201 = vmatprep.subr.bf16.mxu0 %v1353_v4  ;;  %1311 = vmatprep.subr.bf16.mxu1 %v1353_v4  ;;  %v1362_v15 = vld [vmem:[%s1651_s1 + $0x8] sm:$0xff]   ;;  %v1364_v17 = vld [vmem:[%s1651_s1] sm:$0xff]   ;;  %v1376_v23 = vld [vmem:[%s1510_s11 + $0x90] ss:$8 sps:$4 sm:$0xff]  }
  0x14   : > { %752 = vmatprep.mubr.bf16.mxu1 %v1370_v12  ;;  %v1377_v24 = vld [vmem:[%s1510_s11 + $0x24] ss:$8 sps:$4 sm:$0xff]   ;;  %v1381_v26 = vld [vmem:[%s1510_s11 + $0x20] ss:$8 sps:$4 sm:$0xff]   ;;  %v1383_v28 = vld [vmem:[%s1510_s11 + $0x34] ss:$8 sps:$4 sm:$0xff]  }
  0x15   : > { %v1379_v25 = vld [vmem:[%s1510_s11 + $0xa4] ss:$8 sps:$4 sm:$0xff]   ;;  %v1382_v27 = vld [vmem:[%s1510_s11 + $0xa0] ss:$8 sps:$4 sm:$0xff]   ;;  %v1385_v29 = vld [vmem:[%s1510_s11 + $0xb4] ss:$8 sps:$4 sm:$0xff]  }
  0x16   : > { %1202 = vmatpush3.bf16.msra.mxu0 %v1354_v5  ;;  %1319 = vmatpush3.bf16.msra.mxu1 %v1354_v5  ;;  %v1387_v30 = vld [vmem:[%s1510_s11 + $0x30] ss:$8 sps:$4 sm:$0xff]   ;;  %v1389_v32 = vld [vmem:[%s1510_s11 + $0x44] ss:$8 sps:$4 sm:$0xff]   ;;  %v1393_v34 = vld [vmem:[%s1510_s11 + $0x40] ss:$8 sps:$4 sm:$0xff]  }
  0x17   : > { %1203 = vmatprep.subr.bf16.mxu0 %v1355_v6  ;;  %1312 = vmatprep.subr.bf16.mxu1 %v1355_v6  ;;  %v1388_v31 = vld [vmem:[%s1510_s11 + $0xb0] ss:$8 sps:$4 sm:$0xff]   ;;  %v1391_v33 = vld [vmem:[%s1510_s11 + $0xc4] ss:$8 sps:$4 sm:$0xff]   ;;  %v1394_v35 = vld [vmem:[%s1510_s11 + $0xc0] ss:$8 sps:$4 sm:$0xff]  }
  0x18   : > { %v1395_v36 = vld [vmem:[%s1510_s11 + $0x54] ss:$8 sps:$4 sm:$0xff]   ;;  %v1399_v38 = vld [vmem:[%s1510_s11 + $0x50] ss:$8 sps:$4 sm:$0xff]   ;;  %v1401_v40 = vld [vmem:[%s1510_s11 + $0x64] ss:$8 sps:$4 sm:$0xff]  }
  0x19   : > { %v1397_v37 = vld [vmem:[%s1510_s11 + $0xd4] ss:$8 sps:$4 sm:$0xff]   ;;  %v1400_v39 = vld [vmem:[%s1510_s11 + $0xd0] ss:$8 sps:$4 sm:$0xff]   ;;  %v1403_v41 = vld [vmem:[%s1510_s11 + $0xe4] ss:$8 sps:$4 sm:$0xff]  }
  0x1a   : > { %1204 = vmatpush3.bf16.msra.mxu0 %v1356_v7  ;;  %1320 = vmatpush3.bf16.msra.mxu1 %v1356_v7  ;;  %v1405_v42 = vld [vmem:[%s1510_s11 + $0x60] ss:$8 sps:$4 sm:$0xff]   ;;  %v1407_v44 = vld [vmem:[%s1510_s11 + $0x74] ss:$8 sps:$4 sm:$0xff]   ;;  %v1411_v46 = vld [vmem:[%s1510_s11 + $0x70] ss:$8 sps:$4 sm:$0xff]  }
  0x1b   : > { %1205 = vmatprep.subr.bf16.mxu0 %v1357_v8  ;;  %1313 = vmatprep.subr.bf16.mxu1 %v1357_v8  ;;  %v1406_v43 = vld [vmem:[%s1510_s11 + $0xe0] ss:$8 sps:$4 sm:$0xff]   ;;  %v1409_v45 = vld [vmem:[%s1510_s11 + $0xf4] ss:$8 sps:$4 sm:$0xff]   ;;  %v1412_v47 = vld [vmem:[%s1510_s11 + $0xf0] ss:$8 sps:$4 sm:$0xff]  }
  0x1c   : > { %v1568_v51 = vld [vmem:[%s1652_s2] ss:$0 sm:$0xff] }
  0x1e   : > { %1206 = vmatpush3.bf16.msra.mxu0 %v1358_v9  ;;  %1321 = vmatpush3.bf16.msra.mxu1 %v1358_v9 }
  0x1f   : > { %1207 = vmatprep.subr.bf16.mxu0 %v1359_v10  ;;  %1314 = vmatprep.subr.bf16.mxu1 %v1359_v10 }
  0x22   : > { %1208 = vmatpush3.bf16.msra.mxu0 %v1360_v13  ;;  %1322 = vmatpush3.bf16.msra.mxu1 %v1360_v13 }
  0x23   : > { %1209 = vmatprep.subr.bf16.mxu0 %v1361_v14  ;;  %1315 = vmatprep.subr.bf16.mxu1 %v1361_v14 }
  0x26   : > { %1210 = vmatpush3.bf16.msra.mxu0 %v1362_v15  ;;  %1323 = vmatpush3.bf16.msra.mxu1 %v1362_v15 }
  0x27   : > { %1211 = vmatprep.subr.bf16.mxu0 %v1363_v16  ;;  %1316 = vmatprep.subr.bf16.mxu1 %v1363_v16 }
  0x2a   : > { %1212 = vmatpush3.bf16.msra.mxu0 %v1364_v17  ;;  %1324 = vmatpush3.bf16.msra.mxu1 %v1364_v17 }
  0x2d   : > { %689 = vmatmul.mubr.bf16.vlgmr.msra.gmra.mxu0 %v1365_v18  ;;  %753 = vmatmul.mubr.bf16.vlgmr.msra.gmra.mxu1 %v1368_v19 }
  0x2e   : > { %696 = vmatprep.mubr.bf16.mxu0 %v1371_v20  ;;  %760 = vmatprep.mubr.bf16.mxu1 %v1373_v21 }
  0x35   : > { %697 = vmatmul.mubr.bf16.gmra.mxu0 %v1375_v22  ;;  %761 = vmatmul.mubr.bf16.gmra.mxu1 %v1376_v23 }
  0x36   : > { %704 = vmatprep.mubr.bf16.mxu0 %v1377_v24  ;;  %768 = vmatprep.mubr.bf16.mxu1 %v1379_v25 }
  0x3d   : > { %705 = vmatmul.mubr.bf16.gmra.mxu0 %v1381_v26  ;;  %769 = vmatmul.mubr.bf16.gmra.mxu1 %v1382_v27 }
  0x3e   : > { %712 = vmatprep.mubr.bf16.mxu0 %v1383_v28  ;;  %776 = vmatprep.mubr.bf16.mxu1 %v1385_v29 }
  0x45   : > { %713 = vmatmul.mubr.bf16.gmra.mxu0 %v1387_v30  ;;  %777 = vmatmul.mubr.bf16.gmra.mxu1 %v1388_v31 }
  0x46   : > { %720 = vmatprep.mubr.bf16.mxu0 %v1389_v32  ;;  %784 = vmatprep.mubr.bf16.mxu1 %v1391_v33 }
  0x4d   : > { %721 = vmatmul.mubr.bf16.gmra.mxu0 %v1393_v34  ;;  %785 = vmatmul.mubr.bf16.gmra.mxu1 %v1394_v35 }
  0x4e   : > { %728 = vmatprep.mubr.bf16.mxu0 %v1395_v36  ;;  %792 = vmatprep.mubr.bf16.mxu1 %v1397_v37 }
  0x55   : > { %729 = vmatmul.mubr.bf16.gmra.mxu0 %v1399_v38  ;;  %793 = vmatmul.mubr.bf16.gmra.mxu1 %v1400_v39 }
  0x56   : > { %736 = vmatprep.mubr.bf16.mxu0 %v1401_v40  ;;  %800 = vmatprep.mubr.bf16.mxu1 %v1403_v41 }
  0x5d   : > { %737 = vmatmul.mubr.bf16.gmra.mxu0 %v1405_v42  ;;  %801 = vmatmul.mubr.bf16.gmra.mxu1 %v1406_v43 }
  0x5e   : > { %744 = vmatprep.mubr.bf16.mxu0 %v1407_v44  ;;  %808 = vmatprep.mubr.bf16.mxu1 %v1409_v45 }
  0x65   : > { %745 = vmatmul.mubr.bf16.gmra.mxu0 %v1411_v46  ;;  %809 = vmatmul.mubr.bf16.gmra.mxu1 %v1412_v47 }
  0xed   : > { %v1213_v48 = vpop.f32.mrf.mxu0  ;;  %v1261_v49 = vpop.f32.mrf.mxu1 }
  0xef   : > { %v1214_v50 = vpop.f32.mrf.mxu0  ;;  %v1262_v52 = vpop.f32.mrf.mxu1 }
  0xf0   : > { %v1215_v53 = vadd.f32 %v1214_v50, %v1213_v48  ;;  %v1263_v54 = vadd.f32 %v1262_v52, %v1261_v49 }
  0xf1   : > { %v1216_v55 = vpop.f32.mrf.mxu0  ;;  %v1264_v56 = vpop.f32.mrf.mxu1 }
  0xf2   : > { %v923_v57 = vadd.f32 %v1215_v53, %v1568_v51  ;;  %v939_v58 = vadd.f32 %v1263_v54, %v1568_v51 }
  0xf3   : > { %v1217_v59 = vpop.f32.mrf.mxu0  ;;  %v1265_v60 = vpop.f32.mrf.mxu1 }
  0xf4   : > { %v955_v61 = vmax.f32 %v923_v57, 0.0  ;;  %v971_v62 = vmax.f32 %v939_v58, 0.0  ;;  %v1218_v63 = vadd.f32 %v1217_v59, %v1216_v55  ;;  %v1266_v0 = vadd.f32 %v1265_v60, %v1264_v56 }
  0xf5   : > { %v1219_v1 = vpop.f32.mrf.mxu0  ;;  %v1267_v2 = vpop.f32.mrf.mxu1 }
  0xf6   : > { %987 = vst [vmem:[%s1577_s8] sm:$0xff] %v955_v61  ;;  %1003 = vst [vmem:[%s1577_s8 + $0x80] sm:$0xff] %v971_v62  ;;  %v924_v3 = vadd.f32 %v1218_v63, %v1568_v51  ;;  %v940_v4 = vadd.f32 %v1266_v0, %v1568_v51 }
  0xf7   : > { %v1220_v5 = vpop.f32.mrf.mxu0  ;;  %v1268_v6 = vpop.f32.mrf.mxu1 }
  0xf8   : > { %v956_v7 = vmax.f32 %v924_v3, 0.0  ;;  %v972_v8 = vmax.f32 %v940_v4, 0.0  ;;  %v1221_v9 = vadd.f32 %v1220_v5, %v1219_v1  ;;  %v1269_v10 = vadd.f32 %v1268_v6, %v1267_v2 }
  0xf9   : > { %v1222_v11 = vpop.f32.mrf.mxu0  ;;  %v1270_v12 = vpop.f32.mrf.mxu1 }
  0xfa   : > { %988 = vst [vmem:[%s1577_s8 + $0x8] sm:$0xff] %v956_v7  ;;  %1004 = vst [vmem:[%s1577_s8 + $0x88] sm:$0xff] %v972_v8  ;;  %v925_v13 = vadd.f32 %v1221_v9, %v1568_v51  ;;  %v941_v14 = vadd.f32 %v1269_v10, %v1568_v51 }
  0xfb   : > { %v1223_v15 = vpop.f32.mrf.mxu0  ;;  %v1271_v16 = vpop.f32.mrf.mxu1 }
  0xfc   : > { %v957_v17 = vmax.f32 %v925_v13, 0.0  ;;  %v973_v18 = vmax.f32 %v941_v14, 0.0  ;;  %v1224_v19 = vadd.f32 %v1223_v15, %v1222_v11  ;;  %v1272_v20 = vadd.f32 %v1271_v16, %v1270_v12 }
  0xfd   : > { %v1225_v21 = vpop.f32.mrf.mxu0  ;;  %v1273_v22 = vpop.f32.mrf.mxu1 }
  0xfe   : > { %989 = vst [vmem:[%s1577_s8 + $0x10] sm:$0xff] %v957_v17  ;;  %1005 = vst [vmem:[%s1577_s8 + $0x90] sm:$0xff] %v973_v18  ;;  %v926_v23 = vadd.f32 %v1224_v19, %v1568_v51  ;;  %v942_v24 = vadd.f32 %v1272_v20, %v1568_v51 }
  0xff   : > { %v1226_v25 = vpop.f32.mrf.mxu0  ;;  %v1274_v26 = vpop.f32.mrf.mxu1 }
 0x100   : > { %v958_v27 = vmax.f32 %v926_v23, 0.0  ;;  %v974_v28 = vmax.f32 %v942_v24, 0.0  ;;  %v1227_v29 = vadd.f32 %v1226_v25, %v1225_v21  ;;  %v1275_v30 = vadd.f32 %v1274_v26, %v1273_v22 }
 0x101   : > { %v1228_v31 = vpop.f32.mrf.mxu0  ;;  %v1276_v32 = vpop.f32.mrf.mxu1 }
 0x102   : > { %990 = vst [vmem:[%s1577_s8 + $0x18] sm:$0xff] %v958_v27  ;;  %1006 = vst [vmem:[%s1577_s8 + $0x98] sm:$0xff] %v974_v28  ;;  %v927_v33 = vadd.f32 %v1227_v29, %v1568_v51  ;;  %v943_v34 = vadd.f32 %v1275_v30, %v1568_v51 }
 0x103   : > { %v1229_v35 = vpop.f32.mrf.mxu0  ;;  %v1277_v36 = vpop.f32.mrf.mxu1 }
 0x104   : > { %v959_v37 = vmax.f32 %v927_v33, 0.0  ;;  %v975_v38 = vmax.f32 %v943_v34, 0.0  ;;  %v1230_v39 = vadd.f32 %v1229_v35, %v1228_v31  ;;  %v1278_v40 = vadd.f32 %v1277_v36, %v1276_v32 }
 0x105   : > { %v1231_v41 = vpop.f32.mrf.mxu0  ;;  %v1279_v42 = vpop.f32.mrf.mxu1 }
 0x106   : > { %991 = vst [vmem:[%s1577_s8 + $0x20] sm:$0xff] %v959_v37  ;;  %1007 = vst [vmem:[%s1577_s8 + $0xa0] sm:$0xff] %v975_v38  ;;  %v928_v43 = vadd.f32 %v1230_v39, %v1568_v51  ;;  %v944_v44 = vadd.f32 %v1278_v40, %v1568_v51 }
 0x107   : > { %v1232_v45 = vpop.f32.mrf.mxu0  ;;  %v1280_v46 = vpop.f32.mrf.mxu1 }
 0x108   : > { %v960_v47 = vmax.f32 %v928_v43, 0.0  ;;  %v976_v48 = vmax.f32 %v944_v44, 0.0  ;;  %v1233_v49 = vadd.f32 %v1232_v45, %v1231_v41  ;;  %v1281_v50 = vadd.f32 %v1280_v46, %v1279_v42 }
 0x109   : > { %v1234_v52 = vpop.f32.mrf.mxu0  ;;  %v1282_v53 = vpop.f32.mrf.mxu1 }
 0x10a   : > { %992 = vst [vmem:[%s1577_s8 + $0x28] sm:$0xff] %v960_v47  ;;  %1008 = vst [vmem:[%s1577_s8 + $0xa8] sm:$0xff] %v976_v48  ;;  %v929_v54 = vadd.f32 %v1233_v49, %v1568_v51  ;;  %v945_v55 = vadd.f32 %v1281_v50, %v1568_v51 }
 0x10b   : > { %v1235_v56 = vpop.f32.mrf.mxu0  ;;  %v1283_v57 = vpop.f32.mrf.mxu1 }
 0x10c   : > { %v961_v58 = vmax.f32 %v929_v54, 0.0  ;;  %v977_v59 = vmax.f32 %v945_v55, 0.0  ;;  %v1236_v60 = vadd.f32 %v1235_v56, %v1234_v52  ;;  %v1284_v61 = vadd.f32 %v1283_v57, %v1282_v53 }
 0x10d   : > { %v1237_v62 = vpop.f32.mrf.mxu0  ;;  %v1285_v63 = vpop.f32.mrf.mxu1 }
 0x10e   : > { %993 = vst [vmem:[%s1577_s8 + $0x30] sm:$0xff] %v961_v58  ;;  %1009 = vst [vmem:[%s1577_s8 + $0xb0] sm:$0xff] %v977_v59  ;;  %v930_v0 = vadd.f32 %v1236_v60, %v1568_v51  ;;  %v946_v1 = vadd.f32 %v1284_v61, %v1568_v51 }
 0x10f   : > { %v1238_v2 = vpop.f32.mrf.mxu0  ;;  %v1286_v3 = vpop.f32.mrf.mxu1 }
 0x110   : > { %v962_v4 = vmax.f32 %v930_v0, 0.0  ;;  %v978_v5 = vmax.f32 %v946_v1, 0.0  ;;  %v1239_v6 = vadd.f32 %v1238_v2, %v1237_v62  ;;  %v1287_v7 = vadd.f32 %v1286_v3, %v1285_v63 }
 0x111   : > { %v1240_v8 = vpop.f32.mrf.mxu0  ;;  %v1288_v9 = vpop.f32.mrf.mxu1 }
 0x112   : > { %994 = vst [vmem:[%s1577_s8 + $0x38] sm:$0xff] %v962_v4  ;;  %1010 = vst [vmem:[%s1577_s8 + $0xb8] sm:$0xff] %v978_v5  ;;  %v931_v10 = vadd.f32 %v1239_v6, %v1568_v51  ;;  %v947_v11 = vadd.f32 %v1287_v7, %v1568_v51 }
 0x113   : > { %v1241_v12 = vpop.f32.mrf.mxu0  ;;  %v1289_v13 = vpop.f32.mrf.mxu1 }
 0x114   : > { %v963_v14 = vmax.f32 %v931_v10, 0.0  ;;  %v979_v15 = vmax.f32 %v947_v11, 0.0  ;;  %v1242_v16 = vadd.f32 %v1241_v12, %v1240_v8  ;;  %v1290_v17 = vadd.f32 %v1289_v13, %v1288_v9 }
 0x115   : > { %v1243_v18 = vpop.f32.mrf.mxu0  ;;  %v1291_v19 = vpop.f32.mrf.mxu1 }
 0x116   : > { %995 = vst [vmem:[%s1577_s8 + $0x40] sm:$0xff] %v963_v14  ;;  %1011 = vst [vmem:[%s1577_s8 + $0xc0] sm:$0xff] %v979_v15  ;;  %v932_v20 = vadd.f32 %v1242_v16, %v1568_v51  ;;  %v948_v21 = vadd.f32 %v1290_v17, %v1568_v51 }
 0x117   : > { %v1244_v22 = vpop.f32.mrf.mxu0  ;;  %v1292_v23 = vpop.f32.mrf.mxu1 }
 0x118   : > { %v964_v24 = vmax.f32 %v932_v20, 0.0  ;;  %v980_v25 = vmax.f32 %v948_v21, 0.0  ;;  %v1245_v26 = vadd.f32 %v1244_v22, %v1243_v18  ;;  %v1293_v27 = vadd.f32 %v1292_v23, %v1291_v19 }
 0x119   : > { %v1246_v28 = vpop.f32.mrf.mxu0  ;;  %v1294_v29 = vpop.f32.mrf.mxu1 }
 0x11a   : > { %996 = vst [vmem:[%s1577_s8 + $0x48] sm:$0xff] %v964_v24  ;;  %1012 = vst [vmem:[%s1577_s8 + $0xc8] sm:$0xff] %v980_v25  ;;  %v933_v30 = vadd.f32 %v1245_v26, %v1568_v51  ;;  %v949_v31 = vadd.f32 %v1293_v27, %v1568_v51 }
 0x11b   : > { %v1247_v32 = vpop.f32.mrf.mxu0  ;;  %v1295_v33 = vpop.f32.mrf.mxu1 }
 0x11c   : > { %v965_v34 = vmax.f32 %v933_v30, 0.0  ;;  %v981_v35 = vmax.f32 %v949_v31, 0.0  ;;  %v1248_v36 = vadd.f32 %v1247_v32, %v1246_v28  ;;  %v1296_v37 = vadd.f32 %v1295_v33, %v1294_v29 }
 0x11d   : > { %v1249_v38 = vpop.f32.mrf.mxu0  ;;  %v1297_v39 = vpop.f32.mrf.mxu1 }
 0x11e   : > { %997 = vst [vmem:[%s1577_s8 + $0x50] sm:$0xff] %v965_v34  ;;  %1013 = vst [vmem:[%s1577_s8 + $0xd0] sm:$0xff] %v981_v35  ;;  %v934_v40 = vadd.f32 %v1248_v36, %v1568_v51  ;;  %v950_v41 = vadd.f32 %v1296_v37, %v1568_v51 }
 0x11f   : > { %v1250_v42 = vpop.f32.mrf.mxu0  ;;  %v1298_v43 = vpop.f32.mrf.mxu1 }
 0x120   : > { %v966_v44 = vmax.f32 %v934_v40, 0.0  ;;  %v982_v45 = vmax.f32 %v950_v41, 0.0  ;;  %v1251_v46 = vadd.f32 %v1250_v42, %v1249_v38  ;;  %v1299_v47 = vadd.f32 %v1298_v43, %v1297_v39 }
 0x121   : > { %v1252_v48 = vpop.f32.mrf.mxu0  ;;  %v1300_v49 = vpop.f32.mrf.mxu1 }
 0x122   : > { %998 = vst [vmem:[%s1577_s8 + $0x58] sm:$0xff] %v966_v44  ;;  %1014 = vst [vmem:[%s1577_s8 + $0xd8] sm:$0xff] %v982_v45  ;;  %v935_v50 = vadd.f32 %v1251_v46, %v1568_v51  ;;  %v951_v52 = vadd.f32 %v1299_v47, %v1568_v51 }
 0x123   : > { %v1253_v53 = vpop.f32.mrf.mxu0  ;;  %v1301_v54 = vpop.f32.mrf.mxu1 }
 0x124   : > { %v967_v55 = vmax.f32 %v935_v50, 0.0  ;;  %v983_v56 = vmax.f32 %v951_v52, 0.0  ;;  %v1254_v57 = vadd.f32 %v1253_v53, %v1252_v48  ;;  %v1302_v58 = vadd.f32 %v1301_v54, %v1300_v49 }
 0x125   : > { %v1255_v59 = vpop.f32.mrf.mxu0  ;;  %v1303_v60 = vpop.f32.mrf.mxu1 }
 0x126   : > { %999 = vst [vmem:[%s1577_s8 + $0x60] sm:$0xff] %v967_v55  ;;  %1015 = vst [vmem:[%s1577_s8 + $0xe0] sm:$0xff] %v983_v56  ;;  %v936_v61 = vadd.f32 %v1254_v57, %v1568_v51  ;;  %v952_v62 = vadd.f32 %v1302_v58, %v1568_v51 }
 0x127   : > { %v1256_v63 = vpop.f32.mrf.mxu0  ;;  %v1304_v0 = vpop.f32.mrf.mxu1 }
 0x128   : > { %v968_v1 = vmax.f32 %v936_v61, 0.0  ;;  %v984_v2 = vmax.f32 %v952_v62, 0.0  ;;  %v1257_v3 = vadd.f32 %v1256_v63, %v1255_v59  ;;  %v1305_v4 = vadd.f32 %v1304_v0, %v1303_v60 }
 0x129   : > { %v1258_v5 = vpop.f32.mrf.mxu0  ;;  %v1306_v6 = vpop.f32.mrf.mxu1 }
 0x12a   : > { %1000 = vst [vmem:[%s1577_s8 + $0x68] sm:$0xff] %v968_v1  ;;  %1016 = vst [vmem:[%s1577_s8 + $0xe8] sm:$0xff] %v984_v2  ;;  %v937_v7 = vadd.f32 %v1257_v3, %v1568_v51  ;;  %v953_v8 = vadd.f32 %v1305_v4, %v1568_v51 }
 0x12b   : > { %v1259_v9 = vpop.f32.mrf.mxu0  ;;  %v1307_v10 = vpop.f32.mrf.mxu1 }
 0x12c   : > { %v969_v11 = vmax.f32 %v937_v7, 0.0  ;;  %v985_v12 = vmax.f32 %v953_v8, 0.0  ;;  %v1260_v13 = vadd.f32 %v1259_v9, %v1258_v5  ;;  %v1308_v14 = vadd.f32 %v1307_v10, %v1306_v6 }
 0x12e   : > { %1001 = vst [vmem:[%s1577_s8 + $0x70] sm:$0xff] %v969_v11  ;;  %1017 = vst [vmem:[%s1577_s8 + $0xf0] sm:$0xff] %v985_v12  ;;  %v938_v15 = vadd.f32 %v1260_v13, %v1568_v51  ;;  %v954_v16 = vadd.f32 %v1308_v14, %v1568_v51 }
 0x130   : > { %v970_v17 = vmax.f32 %v938_v15, 0.0  ;;  %v986_v18 = vmax.f32 %v954_v16, 0.0 }
 0x132   : > { %1002 = vst [vmem:[%s1577_s8 + $0x78] sm:$0xff] %v970_v17  ;;  %1018 = vst [vmem:[%s1577_s8 + $0xf8] sm:$0xff] %v986_v18 }
 0x133 PF: > { %s13_s14 = sadd.s32 1, %s1435_s14   ;;  %s1654_s12 = smov %s1431_s13 }
 0x134   : > { %p10_p5 = scmp.ge.s32.totalorder %s13_s14, 4   ;;  %s1655_s13 = smov %s1657_s15 }
 0x136   :  { %12 = sbr.rel (!%p10_p5) target bundleno = 2 (0x2), region = 76 }

// kernel: _lambda_.23
= control target key start
LH: loop header
LB: loop body
LE: loop exit
PB: predicated region body
PF: predicated region fallthrough
CT: control target
= control target key end

     0   :  { %s1049_s12 = smov 0   ;;  %s1051_s13 = smov 0   ;;  %s1205_s0 = inlined_call_operand.vmem [shape: bf16[128,640], index: 0, kind: input, shape index: {}]   ;;  %s1206_s1 = inlined_call_operand.vmem [shape: bf16[640,128], index: 1, kind: input, shape index: {}]   ;;  %s1207_s2 = inlined_call_operand.vmem [shape: f32[1,128], index: 2, kind: input, shape index: {}]   ;;  %s1208_s3 = inlined_call_operand.vmem [shape: f32[128,128], index: 3, kind: output, shape index: {}]  }
   0x1   :  { %s1053_s14 = smov 0   ;;  %s1055_s15 = smov 0  }
   0x2   :  { %s1057_s16 = smov 0  }
   0x3 LB: > { %s25_s17 = sadd.s32 1, %s1022_s15  ;;  %p48_p1 = scmp.ne.s32.totalorder %s1014_s13, %s1010_s12  ;;  %s1026_s16 = sphi %s1057_s16, %s13_s16   ;;  %s1022_s15 = sphi %s1055_s15, %s1212_s15   ;;  %s1018_s14 = sphi %s1053_s14, %s1211_s14   ;;  %s1014_s13 = sphi %s1051_s13, %s1210_s13   ;;  %s1010_s12 = sphi %s1049_s12, %s1209_s12  }
   0x4   : > { %p26_p0 = scmp.ge.s32.totalorder %s25_s17, 5  ;;  %p49_p2 = scmp.eq.s32.totalorder %s1026_s16, 0 }
   0x5   : > { %s41_s19 = sadd.s32 1, %s1014_s13  ;;  %p837_p5 = scmp.ge.s32.totalorder %s1026_s16, 5 }
   0x6   : > { %s1214_s17 = smov (%p26_p0, %s25_s17), 0  ;;  %p50_p3 = por %p49_p2, %p48_p1 }
   0x7   : > { %s37_s18 = ssub.s32 %s1022_s15, %s1214_s17  ;;  %162 = sbr.rel (%p837_p5) target bundleno = 26 (0x1a), region = 20 }
   0x8   : > { %p39_p4 = scmp.eq.s32.totalorder %s37_s18, 0 }
   0xa   : > { %s1084_s20 = scalar_select %p39_p4, %s1014_s13, %s41_s19  }
   0xc   : > { %165 = sbr.rel (!%p50_p3) target bundleno = 26 (0x1a), region = 24  ;;  %s167_s21 = sand.u32 (%p50_p3), 1, %s1014_s13  }
   0xd   : > { %s839_s22 = sshll.u32 (%p50_p3), %s1022_s15, 2  ;;  %s838_s23 = sshll.u32 (%p50_p3), %s167_s21, 6 }
   0xe   : > { %s1092_s26 = scalar_lea.vmem (%p50_p3), %s1205_s0, %s839_s22  ;;  %s169_s27 = scalar_lea.vmem (%p50_p3), [#allocation3], %s838_s23 }
   0xf   : > { %v191_v0 = vld [vmem:[%s1092_s26] sm:$0xf] (%p50_p3)  ;;  %v193_v1 = vld [vmem:[%s1092_s26 + $0x14] sm:$0xf] (%p50_p3)  ;;  %v195_v2 = vld [vmem:[%s1092_s26 + $0x28] sm:$0xf] (%p50_p3) }
  0x10   : > { %192 = vst [vmem:[%s169_s27] sm:$0xf] (%p50_p3), %v191_v0  ;;  %194 = vst [vmem:[%s169_s27 + $0x4] sm:$0xf] (%p50_p3), %v193_v1  ;;  %v197_v3 = vld [vmem:[%s1092_s26 + $0x3c] sm:$0xf] (%p50_p3) }
  0x11   : > { %v199_v4 = vld [vmem:[%s1092_s26 + $0x50] sm:$0xf]  ;;  %196 = vst [vmem:[%s169_s27 + $0x8] sm:$0xf] %v195_v2  ;;  %198 = vst [vmem:[%s169_s27 + $0xc] sm:$0xf] %v197_v3 }
  0x12   : > { %200 = vst [vmem:[%s169_s27 + $0x10] sm:$0xf] %v199_v4  ;;  %v201_v5 = vld [vmem:[%s1092_s26 + $0x64] sm:$0xf]  ;;  %v203_v6 = vld [vmem:[%s1092_s26 + $0x78] sm:$0xf] }
  0x13   : > { %v205_v7 = vld [vmem:[%s1092_s26 + $0x8c] sm:$0xf]  ;;  %202 = vst [vmem:[%s169_s27 + $0x14] sm:$0xf] %v201_v5  ;;  %204 = vst [vmem:[%s169_s27 + $0x18] sm:$0xf] %v203_v6 }
  0x14   : > { %206 = vst [vmem:[%s169_s27 + $0x1c] sm:$0xf] %v205_v7  ;;  %v207_v8 = vld [vmem:[%s1092_s26 + $0xa0] sm:$0xf]  ;;  %v209_v9 = vld [vmem:[%s1092_s26 + $0xb4] sm:$0xf] }
  0x15   : > { %v211_v10 = vld [vmem:[%s1092_s26 + $0xc8] sm:$0xf]  ;;  %208 = vst [vmem:[%s169_s27 + $0x20] sm:$0xf] %v207_v8  ;;  %210 = vst [vmem:[%s169_s27 + $0x24] sm:$0xf] %v209_v9 }
  0x16   : > { %212 = vst [vmem:[%s169_s27 + $0x28] sm:$0xf] %v211_v10  ;;  %v213_v11 = vld [vmem:[%s1092_s26 + $0xdc] sm:$0xf]  ;;  %v215_v12 = vld [vmem:[%s1092_s26 + $0xf0] sm:$0xf] }
  0x17   : > { %v217_v13 = vld [vmem:[%s1092_s26 + $0x104] sm:$0xf]  ;;  %214 = vst [vmem:[%s169_s27 + $0x2c] sm:$0xf] %v213_v11  ;;  %216 = vst [vmem:[%s169_s27 + $0x30] sm:$0xf] %v215_v12 }
  0x18   : > { %218 = vst [vmem:[%s169_s27 + $0x34] sm:$0xf] %v217_v13  ;;  %v219_v14 = vld [vmem:[%s1092_s26 + $0x118] sm:$0xf]  ;;  %v221_v15 = vld [vmem:[%s1092_s26 + $0x12c] sm:$0xf] }
  0x19   : > { %220 = vst [vmem:[%s169_s27 + $0x38] sm:$0xf] %v219_v14  ;;  %222 = vst [vmem:[%s169_s27 + $0x3c] sm:$0xf] %v221_v15 }
  0x1a PF: > { %p840_p6 = scmp.ge.s32.totalorder %s1026_s16, 1  ;;  %p289_p7 = scmp.lt.s32.totalorder %s1026_s16, 6 }
  0x1c   : > { %p290_p8 = pnand %p840_p6, %p289_p7 }
  0x1d   : > { %s296_s28 = sand.u32 (!%p290_p8), 1, %s1010_s12   ;;  %s842_s29 = sshll.u32 (!%p290_p8), %s1018_s14, 4 }
  0x1e   : > { %293 = sbr.rel (%p290_p8) target bundleno = 305 (0x131), region = 69  ;;  %s841_s30 = sshll.u32 (!%p290_p8), %s296_s28, 6 }
  0x1f   : > { %p335_p9 = scmp.lt.s32.totalorder (!%p290_p8), %s842_s29, 79  ;;  %s1119_s8 = scalar_lea.vmem (!%p290_p8), [#allocation3], %s841_s30 }
  0x20   : > { %p844_p10 = scmp.ne.s32.totalorder (!%p290_p8), %s1018_s14, 0 }
  0x23   : > { %s1216_s29 = smov (!%p335_p9, %s842_s29), 79  ;;  %359 = sbr.rel (%p844_p10) target bundleno = 49 (0x31), region = 77 }
  0x24   : > { %s843_s4 = sshll.u32 %s1216_s29, 2 }
  0x25   : > { %s1117_s7 = scalar_lea.vmem %s1206_s1, %s843_s4 }
  0x28   : > { %v1028_v16 = vmov 0.0  }
  0x29   : > { %360 = vst [vmem:[#allocation2 + $0x30] sm:$0xff] %v1028_v16  ;;  %361 = vst [vmem:[#allocation2] sm:$0xff] %v1028_v16 }
  0x2a   : > { %362 = vst [vmem:[#allocation2 + $0x58] sm:$0xff] %v1028_v16  ;;  %363 = vst [vmem:[#allocation2 + $0x18] sm:$0xff] %v1028_v16 }
  0x2b   : > { %364 = vst [vmem:[#allocation2 + $0x50] sm:$0xff] %v1028_v16  ;;  %365 = vst [vmem:[#allocation2 + $0x68] sm:$0xff] %v1028_v16 }
  0x2c   : > { %366 = vst [vmem:[#allocation2 + $0x8] sm:$0xff] %v1028_v16  ;;  %367 = vst [vmem:[#allocation2 + $0x48] sm:$0xff] %v1028_v16 }
  0x2d   : > { %368 = vst [vmem:[#allocation2 + $0x40] sm:$0xff] %v1028_v16  ;;  %369 = vst [vmem:[#allocation2 + $0x20] sm:$0xff] %v1028_v16 }
  0x2e   : > { %370 = vst [vmem:[#allocation2 + $0x10] sm:$0xff] %v1028_v16  ;;  %371 = vst [vmem:[#allocation2 + $0x38] sm:$0xff] %v1028_v16 }
  0x2f   : > { %372 = vst [vmem:[#allocation2 + $0x60] sm:$0xff] %v1028_v16  ;;  %373 = vst [vmem:[#allocation2 + $0x70] sm:$0xff] %v1028_v16 }
  0x30   : > { %374 = vst [vmem:[#allocation2 + $0x78] sm:$0xff] %v1028_v16  ;;  %375 = vst [vmem:[#allocation2 + $0x28] sm:$0xff] %v1028_v16 }
  0x31 PF: > { %v972_v17 = vld [vmem:[%s1117_s7 + $0x38] sm:$0xff]   ;;  %v973_v18 = vld [vmem:[%s1117_s7 + $0x30] sm:$0xff]   ;;  %v974_v19 = vld [vmem:[%s1117_s7 + $0x28] sm:$0xff]   ;;  %p861_p11 = scmp.ne.s32.totalorder %s1018_s14, 4 }
  0x32   : > { %883 = vmatprep.subr.bf16.mxu0 %v972_v17  ;;  %915 = vmatprep.subr.bf16.mxu1 %v972_v17  ;;  %v975_v20 = vld [vmem:[%s1117_s7 + $0x20] sm:$0xff]   ;;  %v976_v23 = vld [vmem:[%s1117_s7 + $0x18] sm:$0xff]   ;;  %v977_v24 = vld [vmem:[%s1117_s7 + $0x10] sm:$0xff]  }
  0x33   : > { %884 = vmatpush3.bf16.msra.mxu0 %v972_v17  ;;  %923 = vmatpush3.bf16.msra.mxu1 %v972_v17  ;;  %v980_v21 = vld [vmem:[%s1119_s8] sm:$0xff]   ;;  %v978_v25 = vld [vmem:[%s1117_s7 + $0x8] sm:$0xff]   ;;  %v984_v29 = vld [vmem:[%s1119_s8 + $0x10] sm:$0xff]  }
  0x34   : > { %885 = vmatprep.subr.bf16.mxu0 %v973_v18  ;;  %916 = vmatprep.subr.bf16.mxu1 %v973_v18  ;;  %v981_v22 = vld [vmem:[%s1119_s8 + $0x20] sm:$0xff]   ;;  %v982_v27 = vld [vmem:[%s1119_s8 + $0x8] sm:$0xff]   ;;  %v985_v30 = vld [vmem:[%s1119_s8 + $0x30] sm:$0xff]  }
  0x35   : > { %899 = vmatprep.mubr.bf16.mxu0 %v980_v21  ;;  %907 = vmatprep.mubr.bf16.mxu1 %v981_v22  ;;  %v979_v26 = vld [vmem:[%s1117_s7] sm:$0xff]   ;;  %v983_v28 = vld [vmem:[%s1119_s8 + $0x28] sm:$0xff]   ;;  %v986_v31 = vld [vmem:[%s1119_s8 + $0x18] sm:$0xff]  }
  0x36   : > { %v987_v32 = vld [vmem:[%s1119_s8 + $0x38] sm:$0xff]   ;;  %v386_v34 = vld [vmem:[#allocation2 + $0x10] sm:$0xff]  ;;  %v384_v38 = vld [vmem:[#allocation2 + $0x40] sm:$0xff] }
  0x37   : > { %886 = vmatpush3.bf16.msra.mxu0 %v973_v18  ;;  %924 = vmatpush3.bf16.msra.mxu1 %v973_v18  ;;  %v378_v33 = vld [vmem:[#allocation2 + $0x58] sm:$0xff]  ;;  %v376_v37 = vld [vmem:[#allocation2 + $0x30] sm:$0xff]  ;;  %v377_v49 = vld [vmem:[#allocation2] sm:$0xff] }
  0x38   : > { %887 = vmatprep.subr.bf16.mxu0 %v974_v19  ;;  %917 = vmatprep.subr.bf16.mxu1 %v974_v19  ;;  %v379_v43 = vld [vmem:[#allocation2 + $0x18] sm:$0xff]  ;;  %v385_v50 = vld [vmem:[#allocation2 + $0x20] sm:$0xff]  ;;  %v382_v55 = vld [vmem:[#allocation2 + $0x8] sm:$0xff] }
  0x39   : > { %v387_v44 = vld [vmem:[#allocation2 + $0x38] sm:$0xff]  ;;  %v380_v61 = vld [vmem:[#allocation2 + $0x50] sm:$0xff]  ;;  %v388_v62 = vld [vmem:[#allocation2 + $0x60] sm:$0xff] }
  0x3a   : > { %v390_v56 = vld [vmem:[#allocation2 + $0x78] sm:$0xff]  ;;  %v383_v3 = vld [vmem:[#allocation2 + $0x48] sm:$0xff]  ;;  %v389_v10 = vld [vmem:[#allocation2 + $0x70] sm:$0xff] }
  0x3b   : > { %888 = vmatpush3.bf16.msra.mxu0 %v974_v19  ;;  %925 = vmatpush3.bf16.msra.mxu1 %v974_v19  ;;  %v391_v4 = vld [vmem:[#allocation2 + $0x28] sm:$0xff] }
  0x3c   : > { %889 = vmatprep.subr.bf16.mxu0 %v975_v20  ;;  %918 = vmatprep.subr.bf16.mxu1 %v975_v20  ;;  %v381_v9 = vld [vmem:[#allocation2 + $0x68] sm:$0xff] }
  0x3f   : > { %890 = vmatpush3.bf16.msra.mxu0 %v975_v20  ;;  %926 = vmatpush3.bf16.msra.mxu1 %v975_v20 }
  0x40   : > { %891 = vmatprep.subr.bf16.mxu0 %v976_v23  ;;  %919 = vmatprep.subr.bf16.mxu1 %v976_v23 }
  0x43   : > { %892 = vmatpush3.bf16.msra.mxu0 %v976_v23  ;;  %927 = vmatpush3.bf16.msra.mxu1 %v976_v23 }
  0x44   : > { %893 = vmatprep.subr.bf16.mxu0 %v977_v24  ;;  %920 = vmatprep.subr.bf16.mxu1 %v977_v24 }
  0x47   : > { %894 = vmatpush3.bf16.msra.mxu0 %v977_v24  ;;  %928 = vmatpush3.bf16.msra.mxu1 %v977_v24 }
  0x48   : > { %895 = vmatprep.subr.bf16.mxu0 %v978_v25  ;;  %921 = vmatprep.subr.bf16.mxu1 %v978_v25 }
  0x4b   : > { %896 = vmatpush3.bf16.msra.mxu0 %v978_v25  ;;  %929 = vmatpush3.bf16.msra.mxu1 %v978_v25 }
  0x4c   : > { %897 = vmatprep.subr.bf16.mxu0 %v979_v26  ;;  %922 = vmatprep.subr.bf16.mxu1 %v979_v26 }
  0x4f   : > { %898 = vmatpush3.bf16.msra.mxu0 %v979_v26  ;;  %930 = vmatpush3.bf16.msra.mxu1 %v979_v26 }
  0x52   : > { %900 = vmatmul.mubr.bf16.vlgmr.msra.gmra.mxu0 %v982_v27  ;;  %908 = vmatmul.mubr.bf16.vlgmr.msra.gmra.mxu1 %v983_v28 }
  0x53   : > { %903 = vmatprep.mubr.bf16.mxu0 %v984_v29  ;;  %911 = vmatprep.mubr.bf16.mxu1 %v985_v30 }
  0x5a   : > { %904 = vmatmul.mubr.bf16.gmra.mxu0 %v986_v31  ;;  %912 = vmatmul.mubr.bf16.gmra.mxu1 %v987_v32 }
 0x112   : > { %v901_v35 = vpop.f32.mrf.mxu0  ;;  %v909_v36 = vpop.f32.mrf.mxu1 }
 0x113   : > { %v619_v39 = vadd.f32 %v901_v35, %v378_v33  ;;  %v627_v40 = vadd.f32 %v909_v36, %v386_v34 }
 0x114   : > { %v554_v41 = vpop.f32.mrf.mxu0  ;;  %v586_v42 = vpop.f32.mrf.mxu1 }
 0x115   : > { %635 = vst [vmem:[#allocation2 + $0x58] sm:$0xff] %v619_v39  ;;  %643 = vst [vmem:[#allocation2 + $0x10] sm:$0xff] %v627_v40  ;;  %v617_v45 = vadd.f32 %v554_v41, %v376_v37  ;;  %v625_v46 = vadd.f32 %v586_v42, %v384_v38 }
 0x116   : > { %v902_v47 = vpop.f32.mrf.mxu0  ;;  %v910_v48 = vpop.f32.mrf.mxu1 }
 0x117   : > { %633 = vst [vmem:[#allocation2 + $0x30] sm:$0xff] %v617_v45  ;;  %641 = vst [vmem:[#allocation2 + $0x40] sm:$0xff] %v625_v46  ;;  %v620_v51 = vadd.f32 %v902_v47, %v379_v43  ;;  %v628_v52 = vadd.f32 %v910_v48, %v387_v44 }
 0x118   : > { %v557_v53 = vpop.f32.mrf.mxu0  ;;  %v589_v54 = vpop.f32.mrf.mxu1 }
 0x119   : > { %636 = vst [vmem:[#allocation2 + $0x18] sm:$0xff] %v620_v51  ;;  %644 = vst [vmem:[#allocation2 + $0x38] sm:$0xff] %v628_v52  ;;  %v618_v57 = vadd.f32 %v557_v53, %v377_v49  ;;  %v626_v58 = vadd.f32 %v589_v54, %v385_v50 }
 0x11a   : > { %v905_v59 = vpop.f32.mrf.mxu0  ;;  %v913_v60 = vpop.f32.mrf.mxu1 }
 0x11b   : > { %634 = vst [vmem:[#allocation2] sm:$0xff] %v618_v57  ;;  %642 = vst [vmem:[#allocation2 + $0x20] sm:$0xff] %v626_v58  ;;  %v623_v63 = vadd.f32 %v905_v59, %v382_v55  ;;  %v631_v0 = vadd.f32 %v913_v60, %v390_v56 }
 0x11c   : > { %v570_v1 = vpop.f32.mrf.mxu0  ;;  %v602_v2 = vpop.f32.mrf.mxu1 }
 0x11d   : > { %639 = vst [vmem:[#allocation2 + $0x8] sm:$0xff] %v623_v63  ;;  %647 = vst [vmem:[#allocation2 + $0x78] sm:$0xff] %v631_v0  ;;  %v621_v5 = vadd.f32 %v570_v1, %v380_v61  ;;  %v629_v6 = vadd.f32 %v602_v2, %v388_v62 }
 0x11e   : > { %v906_v7 = vpop.f32.mrf.mxu0  ;;  %v914_v8 = vpop.f32.mrf.mxu1 }
 0x11f   : > { %637 = vst [vmem:[#allocation2 + $0x50] sm:$0xff] %v621_v5  ;;  %645 = vst [vmem:[#allocation2 + $0x60] sm:$0xff] %v629_v6  ;;  %v624_v11 = vadd.f32 %v906_v7, %v383_v3  ;;  %v632_v12 = vadd.f32 %v914_v8, %v391_v4  ;;  %652 = sbr.rel (%p861_p11) target bundleno = 305 (0x131), region = 81 }
 0x120   : > { %v573_v13 = vpop.f32.mrf.mxu0  ;;  %v605_v14 = vpop.f32.mrf.mxu1 }
 0x121   : > { %640 = vst [vmem:[#allocation2 + $0x48] sm:$0xff] %v624_v11  ;;  %648 = vst [vmem:[#allocation2 + $0x28] sm:$0xff] %v632_v12  ;;  %v622_v15 = vadd.f32 %v573_v13, %v381_v9  ;;  %v630_v16 = vadd.f32 %v605_v14, %v389_v10 }
 0x123   : > { %638 = vst [vmem:[#allocation2 + $0x68] sm:$0xff] %v622_v15  ;;  %646 = vst [vmem:[#allocation2 + $0x70] sm:$0xff] %v630_v16 }
 0x124   : > { %v653_v17 = vld [vmem:[#allocation2 + $0x30] sm:$0xff]  ;;  %v862_v18 = vld [vmem:[%s1207_s2] ss:$0 sm:$0xff]  ;;  %v655_v22 = vld [vmem:[#allocation2 + $0x58] sm:$0xff] }
 0x125   : > { %v654_v19 = vld [vmem:[#allocation2] sm:$0xff]  ;;  %v676_v20 = vadd.f32 %v862_v18, %v653_v17  ;;  %v656_v23 = vld [vmem:[#allocation2 + $0x18] sm:$0xff]  ;;  %v678_v25 = vadd.f32 %v862_v18, %v655_v22  ;;  %v659_v29 = vld [vmem:[#allocation2 + $0x8] sm:$0xff] }
 0x126   : > { %v677_v21 = vadd.f32 %v862_v18, %v654_v19  ;;  %v657_v24 = vld [vmem:[#allocation2 + $0x50] sm:$0xff]  ;;  %v679_v26 = vadd.f32 %v862_v18, %v656_v23  ;;  %v682_v34 = vadd.f32 %v862_v18, %v659_v29  ;;  %v661_v35 = vld [vmem:[#allocation2 + $0x40] sm:$0xff]  ;;  %v664_v42 = vld [vmem:[#allocation2 + $0x38] sm:$0xff] }
 0x127   : > { %v680_v27 = vadd.f32 %v862_v18, %v657_v24  ;;  %v692_v31 = vmax.f32 %v676_v20, 0.0  ;;  %v662_v36 = vld [vmem:[#allocation2 + $0x20] sm:$0xff]  ;;  %v663_v37 = vld [vmem:[#allocation2 + $0x10] sm:$0xff]  ;;  %v694_v38 = vmax.f32 %v678_v25, 0.0  ;;  %v684_v47 = vadd.f32 %v862_v18, %v661_v35  ;;  %v667_v49 = vld [vmem:[#allocation2 + $0x78] sm:$0xff] }
 0x128   : > { %v660_v30 = vld [vmem:[#allocation2 + $0x48] sm:$0xff]  ;;  %v693_v32 = vmax.f32 %v677_v21, 0.0  ;;  %v695_v39 = vmax.f32 %v679_v26, 0.0  ;;  %v665_v43 = vld [vmem:[#allocation2 + $0x60] sm:$0xff]  ;;  %v698_v46 = vmax.f32 %v682_v34, 0.0  ;;  %v685_v48 = vadd.f32 %v862_v18, %v662_v36 }
 0x129   : > { %v696_v40 = vmax.f32 %v680_v27, 0.0  ;;  %v683_v41 = vadd.f32 %v862_v18, %v660_v30  ;;  %708 = vst [vmem:[%s1208_s3] sm:$0xff] %v692_v31  ;;  %v668_v50 = vld [vmem:[#allocation2 + $0x28] sm:$0xff]  ;;  %710 = vst [vmem:[%s1208_s3 + $0x10] sm:$0xff] %v694_v38  ;;  %v686_v52 = vadd.f32 %v862_v18, %v663_v37  ;;  %v687_v53 = vadd.f32 %v862_v18, %v664_v42 }
 0x12a   : > { %v658_v28 = vld [vmem:[#allocation2 + $0x68] sm:$0xff]  ;;  %v666_v44 = vld [vmem:[#allocation2 + $0x70] sm:$0xff]  ;;  %709 = vst [vmem:[%s1208_s3 + $0x8] sm:$0xff] %v693_v32  ;;  %711 = vst [vmem:[%s1208_s3 + $0x18] sm:$0xff] %v695_v39  ;;  %v688_v54 = vadd.f32 %v862_v18, %v665_v43  ;;  %v700_v55 = vmax.f32 %v684_v47, 0.0  ;;  %v701_v56 = vmax.f32 %v685_v48, 0.0  ;;  %v690_v58 = vadd.f32 %v862_v18, %v667_v49 }
 0x12b   : > { %v681_v33 = vadd.f32 %v862_v18, %v658_v28  ;;  %712 = vst [vmem:[%s1208_s3 + $0x20] sm:$0xff] %v696_v40  ;;  %v699_v51 = vmax.f32 %v683_v41, 0.0  ;;  %714 = vst [vmem:[%s1208_s3 + $0x30] sm:$0xff] %v698_v46  ;;  %v689_v57 = vadd.f32 %v862_v18, %v666_v44  ;;  %v702_v59 = vmax.f32 %v686_v52, 0.0 }
 0x12c   : > { %v703_v60 = vmax.f32 %v687_v53, 0.0  ;;  %v704_v61 = vmax.f32 %v688_v54, 0.0  ;;  %v691_v62 = vadd.f32 %v862_v18, %v668_v50  ;;  %716 = vst [vmem:[%s1208_s3 + $0x40] sm:$0xff] %v700_v55  ;;  %717 = vst [vmem:[%s1208_s3 + $0x48] sm:$0xff] %v701_v56  ;;  %v706_v0 = vmax.f32 %v690_v58, 0.0 }
 0x12d   : > { %v697_v45 = vmax.f32 %v681_v33, 0.0  ;;  %715 = vst [vmem:[%s1208_s3 + $0x38] sm:$0xff] %v699_v51  ;;  %v705_v63 = vmax.f32 %v689_v57, 0.0  ;;  %718 = vst [vmem:[%s1208_s3 + $0x50] sm:$0xff] %v702_v59 }
 0x12e   : > { %719 = vst [vmem:[%s1208_s3 + $0x58] sm:$0xff] %v703_v60  ;;  %720 = vst [vmem:[%s1208_s3 + $0x60] sm:$0xff] %v704_v61  ;;  %v707_v1 = vmax.f32 %v691_v62, 0.0 }
 0x12f   : > { %713 = vst [vmem:[%s1208_s3 + $0x28] sm:$0xff] %v697_v45  ;;  %721 = vst [vmem:[%s1208_s3 + $0x68] sm:$0xff] %v705_v63 }
 0x130   : > { %722 = vst [vmem:[%s1208_s3 + $0x70] sm:$0xff] %v706_v0  ;;  %723 = vst [vmem:[%s1208_s3 + $0x78] sm:$0xff] %v707_v1 }
 0x131 PF: > { %s13_s16 = sadd.s32 1, %s1026_s16   ;;  %s1209_s12 = smov %s1014_s13 }
 0x132   : > { %p10_p12 = scmp.ge.s32.totalorder %s13_s16, 7   ;;  %s1210_s13 = smov %s1084_s20 }
 0x133   : > { %s1211_s14 = smov %s1022_s15  ;;  %s1212_s15 = smov %s1214_s17 }
 0x134   :  { %12 = sbr.rel (!%p10_p12) target bundleno = 3 (0x3), region = 122 }

// kernel: _lambda_.24
= control target key start
LH: loop header
LB: loop body
LE: loop exit
PB: predicated region body
PF: predicated region fallthrough
CT: control target
= control target key end

     0   :  { %s1165_s15 = smov 0   ;;  %s1167_s16 = smov 0   ;;  %s1387_s0 = inlined_call_operand.vmem [shape: bf16[128,640], index: 0, kind: input, shape index: {}]   ;;  %s1388_s1 = inlined_call_operand.vmem [shape: bf16[640,128], index: 1, kind: input, shape index: {}]   ;;  %s1389_s2 = inlined_call_operand.vmem [shape: f32[1,128], index: 2, kind: input, shape index: {}]   ;;  %s1390_s3 = inlined_call_operand.vmem [shape: f32[128,128], index: 3, kind: input, shape index: {}]   ;;  %s1391_s4 = inlined_call_operand.vmem [shape: f32[128,128], index: 4, kind: output, shape index: {}]  }
   0x1   :  { %s1169_s17 = smov 0   ;;  %s1171_s18 = smov 0  }
   0x2   :  { %s1173_s19 = smov 0  }
   0x3 LB: > { %s26_s20 = sadd.s32 1, %s1133_s18  ;;  %p49_p1 = scmp.ne.s32.totalorder %s1125_s16, %s1121_s15  ;;  %s1137_s19 = sphi %s1173_s19, %s14_s19   ;;  %s1133_s18 = sphi %s1171_s18, %s1395_s18   ;;  %s1129_s17 = sphi %s1169_s17, %s1394_s17   ;;  %s1125_s16 = sphi %s1167_s16, %s1393_s16   ;;  %s1121_s15 = sphi %s1165_s15, %s1392_s15  }
   0x4   : > { %p27_p0 = scmp.ge.s32.totalorder %s26_s20, 5  ;;  %p50_p2 = scmp.eq.s32.totalorder %s1137_s19, 0 }
   0x5   : > { %s42_s22 = sadd.s32 1, %s1125_s16  ;;  %p948_p5 = scmp.ge.s32.totalorder %s1137_s19, 5 }
   0x6   : > { %s1397_s20 = smov (%p27_p0, %s26_s20), 0  ;;  %p51_p3 = por %p50_p2, %p49_p1 }
   0x7   : > { %s38_s21 = ssub.s32 %s1133_s18, %s1397_s20  ;;  %203 = sbr.rel (%p948_p5) target bundleno = 26 (0x1a), region = 24 }
   0x8   : > { %p40_p4 = scmp.eq.s32.totalorder %s38_s21, 0 }
   0xa   : > { %s1200_s23 = scalar_select %p40_p4, %s1125_s16, %s42_s22  }
   0xc   : > { %206 = sbr.rel (!%p51_p3) target bundleno = 26 (0x1a), region = 28  ;;  %s208_s24 = sand.u32 (%p51_p3), 1, %s1125_s16  }
   0xd   : > { %s950_s25 = sshll.u32 (%p51_p3), %s1133_s18, 2  ;;  %s949_s26 = sshll.u32 (%p51_p3), %s208_s24, 6 }
   0xe   : > { %s1208_s29 = scalar_lea.vmem (%p51_p3), %s1387_s0, %s950_s25  ;;  %s210_s30 = scalar_lea.vmem (%p51_p3), [#allocation3], %s949_s26 }
   0xf   : > { %v232_v0 = vld [vmem:[%s1208_s29] sm:$0xf] (%p51_p3)  ;;  %v234_v1 = vld [vmem:[%s1208_s29 + $0x14] sm:$0xf] (%p51_p3)  ;;  %v236_v2 = vld [vmem:[%s1208_s29 + $0x28] sm:$0xf] (%p51_p3) }
  0x10   : > { %233 = vst [vmem:[%s210_s30] sm:$0xf] (%p51_p3), %v232_v0  ;;  %235 = vst [vmem:[%s210_s30 + $0x4] sm:$0xf] (%p51_p3), %v234_v1  ;;  %v238_v3 = vld [vmem:[%s1208_s29 + $0x3c] sm:$0xf] (%p51_p3) }
  0x11   : > { %v240_v4 = vld [vmem:[%s1208_s29 + $0x50] sm:$0xf]  ;;  %237 = vst [vmem:[%s210_s30 + $0x8] sm:$0xf] %v236_v2  ;;  %239 = vst [vmem:[%s210_s30 + $0xc] sm:$0xf] %v238_v3 }
  0x12   : > { %241 = vst [vmem:[%s210_s30 + $0x10] sm:$0xf] %v240_v4  ;;  %v242_v5 = vld [vmem:[%s1208_s29 + $0x64] sm:$0xf]  ;;  %v244_v6 = vld [vmem:[%s1208_s29 + $0x78] sm:$0xf] }
  0x13   : > { %v246_v7 = vld [vmem:[%s1208_s29 + $0x8c] sm:$0xf]  ;;  %243 = vst [vmem:[%s210_s30 + $0x14] sm:$0xf] %v242_v5  ;;  %245 = vst [vmem:[%s210_s30 + $0x18] sm:$0xf] %v244_v6 }
  0x14   : > { %247 = vst [vmem:[%s210_s30 + $0x1c] sm:$0xf] %v246_v7  ;;  %v248_v8 = vld [vmem:[%s1208_s29 + $0xa0] sm:$0xf]  ;;  %v250_v9 = vld [vmem:[%s1208_s29 + $0xb4] sm:$0xf] }
  0x15   : > { %v252_v10 = vld [vmem:[%s1208_s29 + $0xc8] sm:$0xf]  ;;  %249 = vst [vmem:[%s210_s30 + $0x20] sm:$0xf] %v248_v8  ;;  %251 = vst [vmem:[%s210_s30 + $0x24] sm:$0xf] %v250_v9 }
  0x16   : > { %253 = vst [vmem:[%s210_s30 + $0x28] sm:$0xf] %v252_v10  ;;  %v254_v11 = vld [vmem:[%s1208_s29 + $0xdc] sm:$0xf]  ;;  %v256_v12 = vld [vmem:[%s1208_s29 + $0xf0] sm:$0xf] }
  0x17   : > { %v258_v13 = vld [vmem:[%s1208_s29 + $0x104] sm:$0xf]  ;;  %255 = vst [vmem:[%s210_s30 + $0x2c] sm:$0xf] %v254_v11  ;;  %257 = vst [vmem:[%s210_s30 + $0x30] sm:$0xf] %v256_v12 }
  0x18   : > { %259 = vst [vmem:[%s210_s30 + $0x34] sm:$0xf] %v258_v13  ;;  %v260_v14 = vld [vmem:[%s1208_s29 + $0x118] sm:$0xf]  ;;  %v262_v15 = vld [vmem:[%s1208_s29 + $0x12c] sm:$0xf] }
  0x19   : > { %261 = vst [vmem:[%s210_s30 + $0x38] sm:$0xf] %v260_v14  ;;  %263 = vst [vmem:[%s210_s30 + $0x3c] sm:$0xf] %v262_v15 }
  0x1a PF: > { %p951_p6 = scmp.ge.s32.totalorder %s1137_s19, 1  ;;  %p330_p7 = scmp.lt.s32.totalorder %s1137_s19, 6 }
  0x1c   : > { %p331_p8 = pnand %p951_p6, %p330_p7 }
  0x1d   : > { %s337_s5 = sand.u32 (!%p331_p8), 1, %s1121_s15   ;;  %s953_s6 = sshll.u32 (!%p331_p8), %s1129_s17, 4 }
  0x1e   : > { %334 = sbr.rel (%p331_p8) target bundleno = 312 (0x138), region = 73  ;;  %s952_s7 = sshll.u32 (!%p331_p8), %s337_s5, 6 }
  0x1f   : > { %p386_p9 = scmp.lt.s32.totalorder (!%p331_p8), %s953_s6, 79  ;;  %s1235_s12 = scalar_lea.vmem (!%p331_p8), [#allocation3], %s952_s7 }
  0x20   : > { %p955_p10 = scmp.ne.s32.totalorder (!%p331_p8), %s1129_s17, 0 }
  0x23   : > { %s1399_s6 = smov (!%p386_p9, %s953_s6), 79  ;;  %419 = sbr.rel (%p955_p10) target bundleno = 49 (0x31), region = 81 }
  0x24   : > { %s954_s8 = sshll.u32 %s1399_s6, 2 }
  0x25   : > { %s1233_s11 = scalar_lea.vmem %s1388_s1, %s954_s8 }
  0x28   : > { %v1139_v16 = vmov 0.0  }
  0x29   : > { %420 = vst [vmem:[#allocation2 + $0x30] sm:$0xff] %v1139_v16  ;;  %421 = vst [vmem:[#allocation2] sm:$0xff] %v1139_v16 }
  0x2a   : > { %422 = vst [vmem:[#allocation2 + $0x58] sm:$0xff] %v1139_v16  ;;  %423 = vst [vmem:[#allocation2 + $0x18] sm:$0xff] %v1139_v16 }
  0x2b   : > { %424 = vst [vmem:[#allocation2 + $0x50] sm:$0xff] %v1139_v16  ;;  %425 = vst [vmem:[#allocation2 + $0x68] sm:$0xff] %v1139_v16 }
  0x2c   : > { %426 = vst [vmem:[#allocation2 + $0x8] sm:$0xff] %v1139_v16  ;;  %427 = vst [vmem:[#allocation2 + $0x48] sm:$0xff] %v1139_v16 }
  0x2d   : > { %428 = vst [vmem:[#allocation2 + $0x40] sm:$0xff] %v1139_v16  ;;  %429 = vst [vmem:[#allocation2 + $0x20] sm:$0xff] %v1139_v16 }
  0x2e   : > { %430 = vst [vmem:[#allocation2 + $0x10] sm:$0xff] %v1139_v16  ;;  %431 = vst [vmem:[#allocation2 + $0x38] sm:$0xff] %v1139_v16 }
  0x2f   : > { %432 = vst [vmem:[#allocation2 + $0x60] sm:$0xff] %v1139_v16  ;;  %433 = vst [vmem:[#allocation2 + $0x70] sm:$0xff] %v1139_v16 }
  0x30   : > { %434 = vst [vmem:[#allocation2 + $0x78] sm:$0xff] %v1139_v16  ;;  %435 = vst [vmem:[#allocation2 + $0x28] sm:$0xff] %v1139_v16 }
  0x31 PF: > { %v1083_v17 = vld [vmem:[%s1233_s11 + $0x38] sm:$0xff]   ;;  %v1084_v18 = vld [vmem:[%s1233_s11 + $0x30] sm:$0xff]   ;;  %v1085_v19 = vld [vmem:[%s1233_s11 + $0x28] sm:$0xff]   ;;  %p972_p11 = scmp.ne.s32.totalorder %s1129_s17, 4 }
  0x32   : > { %994 = vmatprep.subr.bf16.mxu0 %v1083_v17  ;;  %1026 = vmatprep.subr.bf16.mxu1 %v1083_v17  ;;  %v1086_v20 = vld [vmem:[%s1233_s11 + $0x20] sm:$0xff]   ;;  %v1087_v23 = vld [vmem:[%s1233_s11 + $0x18] sm:$0xff]   ;;  %v1088_v24 = vld [vmem:[%s1233_s11 + $0x10] sm:$0xff]  }
  0x33   : > { %995 = vmatpush3.bf16.msra.mxu0 %v1083_v17  ;;  %1034 = vmatpush3.bf16.msra.mxu1 %v1083_v17  ;;  %v1091_v21 = vld [vmem:[%s1235_s12] sm:$0xff]   ;;  %v1089_v25 = vld [vmem:[%s1233_s11 + $0x8] sm:$0xff]   ;;  %v1095_v29 = vld [vmem:[%s1235_s12 + $0x10] sm:$0xff]  }
  0x34   : > { %996 = vmatprep.subr.bf16.mxu0 %v1084_v18  ;;  %1027 = vmatprep.subr.bf16.mxu1 %v1084_v18  ;;  %v1092_v22 = vld [vmem:[%s1235_s12 + $0x20] sm:$0xff]   ;;  %v1093_v27 = vld [vmem:[%s1235_s12 + $0x8] sm:$0xff]   ;;  %v1096_v30 = vld [vmem:[%s1235_s12 + $0x30] sm:$0xff]  }
  0x35   : > { %1010 = vmatprep.mubr.bf16.mxu0 %v1091_v21  ;;  %1018 = vmatprep.mubr.bf16.mxu1 %v1092_v22  ;;  %v1090_v26 = vld [vmem:[%s1233_s11] sm:$0xff]   ;;  %v1094_v28 = vld [vmem:[%s1235_s12 + $0x28] sm:$0xff]   ;;  %v1097_v31 = vld [vmem:[%s1235_s12 + $0x18] sm:$0xff]  }
  0x36   : > { %v1098_v32 = vld [vmem:[%s1235_s12 + $0x38] sm:$0xff]   ;;  %v446_v34 = vld [vmem:[#allocation2 + $0x10] sm:$0xff]  ;;  %v444_v38 = vld [vmem:[#allocation2 + $0x40] sm:$0xff] }
  0x37   : > { %997 = vmatpush3.bf16.msra.mxu0 %v1084_v18  ;;  %1035 = vmatpush3.bf16.msra.mxu1 %v1084_v18  ;;  %v438_v33 = vld [vmem:[#allocation2 + $0x58] sm:$0xff]  ;;  %v436_v37 = vld [vmem:[#allocation2 + $0x30] sm:$0xff]  ;;  %v437_v49 = vld [vmem:[#allocation2] sm:$0xff] }
  0x38   : > { %998 = vmatprep.subr.bf16.mxu0 %v1085_v19  ;;  %1028 = vmatprep.subr.bf16.mxu1 %v1085_v19  ;;  %v439_v43 = vld [vmem:[#allocation2 + $0x18] sm:$0xff]  ;;  %v445_v50 = vld [vmem:[#allocation2 + $0x20] sm:$0xff]  ;;  %v442_v55 = vld [vmem:[#allocation2 + $0x8] sm:$0xff] }
  0x39   : > { %v447_v44 = vld [vmem:[#allocation2 + $0x38] sm:$0xff]  ;;  %v440_v61 = vld [vmem:[#allocation2 + $0x50] sm:$0xff]  ;;  %v448_v62 = vld [vmem:[#allocation2 + $0x60] sm:$0xff] }
  0x3a   : > { %v450_v56 = vld [vmem:[#allocation2 + $0x78] sm:$0xff]  ;;  %v443_v3 = vld [vmem:[#allocation2 + $0x48] sm:$0xff]  ;;  %v449_v10 = vld [vmem:[#allocation2 + $0x70] sm:$0xff] }
  0x3b   : > { %999 = vmatpush3.bf16.msra.mxu0 %v1085_v19  ;;  %1036 = vmatpush3.bf16.msra.mxu1 %v1085_v19  ;;  %v451_v4 = vld [vmem:[#allocation2 + $0x28] sm:$0xff] }
  0x3c   : > { %1000 = vmatprep.subr.bf16.mxu0 %v1086_v20  ;;  %1029 = vmatprep.subr.bf16.mxu1 %v1086_v20  ;;  %v441_v9 = vld [vmem:[#allocation2 + $0x68] sm:$0xff] }
  0x3f   : > { %1001 = vmatpush3.bf16.msra.mxu0 %v1086_v20  ;;  %1037 = vmatpush3.bf16.msra.mxu1 %v1086_v20 }
  0x40   : > { %1002 = vmatprep.subr.bf16.mxu0 %v1087_v23  ;;  %1030 = vmatprep.subr.bf16.mxu1 %v1087_v23 }
  0x43   : > { %1003 = vmatpush3.bf16.msra.mxu0 %v1087_v23  ;;  %1038 = vmatpush3.bf16.msra.mxu1 %v1087_v23 }
  0x44   : > { %1004 = vmatprep.subr.bf16.mxu0 %v1088_v24  ;;  %1031 = vmatprep.subr.bf16.mxu1 %v1088_v24 }
  0x47   : > { %1005 = vmatpush3.bf16.msra.mxu0 %v1088_v24  ;;  %1039 = vmatpush3.bf16.msra.mxu1 %v1088_v24 }
  0x48   : > { %1006 = vmatprep.subr.bf16.mxu0 %v1089_v25  ;;  %1032 = vmatprep.subr.bf16.mxu1 %v1089_v25 }
  0x4b   : > { %1007 = vmatpush3.bf16.msra.mxu0 %v1089_v25  ;;  %1040 = vmatpush3.bf16.msra.mxu1 %v1089_v25 }
  0x4c   : > { %1008 = vmatprep.subr.bf16.mxu0 %v1090_v26  ;;  %1033 = vmatprep.subr.bf16.mxu1 %v1090_v26 }
  0x4f   : > { %1009 = vmatpush3.bf16.msra.mxu0 %v1090_v26  ;;  %1041 = vmatpush3.bf16.msra.mxu1 %v1090_v26 }
  0x52   : > { %1011 = vmatmul.mubr.bf16.vlgmr.msra.gmra.mxu0 %v1093_v27  ;;  %1019 = vmatmul.mubr.bf16.vlgmr.msra.gmra.mxu1 %v1094_v28 }
  0x53   : > { %1014 = vmatprep.mubr.bf16.mxu0 %v1095_v29  ;;  %1022 = vmatprep.mubr.bf16.mxu1 %v1096_v30 }
  0x5a   : > { %1015 = vmatmul.mubr.bf16.gmra.mxu0 %v1097_v31  ;;  %1023 = vmatmul.mubr.bf16.gmra.mxu1 %v1098_v32 }
 0x112   : > { %v1012_v35 = vpop.f32.mrf.mxu0  ;;  %v1020_v36 = vpop.f32.mrf.mxu1 }
 0x113   : > { %v679_v39 = vadd.f32 %v1012_v35, %v438_v33  ;;  %v687_v40 = vadd.f32 %v1020_v36, %v446_v34 }
 0x114   : > { %v614_v41 = vpop.f32.mrf.mxu0  ;;  %v646_v42 = vpop.f32.mrf.mxu1 }
 0x115   : > { %695 = vst [vmem:[#allocation2 + $0x58] sm:$0xff] %v679_v39  ;;  %703 = vst [vmem:[#allocation2 + $0x10] sm:$0xff] %v687_v40  ;;  %v677_v45 = vadd.f32 %v614_v41, %v436_v37  ;;  %v685_v46 = vadd.f32 %v646_v42, %v444_v38 }
 0x116   : > { %v1013_v47 = vpop.f32.mrf.mxu0  ;;  %v1021_v48 = vpop.f32.mrf.mxu1 }
 0x117   : > { %693 = vst [vmem:[#allocation2 + $0x30] sm:$0xff] %v677_v45  ;;  %701 = vst [vmem:[#allocation2 + $0x40] sm:$0xff] %v685_v46  ;;  %v680_v51 = vadd.f32 %v1013_v47, %v439_v43  ;;  %v688_v52 = vadd.f32 %v1021_v48, %v447_v44 }
 0x118   : > { %v617_v53 = vpop.f32.mrf.mxu0  ;;  %v649_v54 = vpop.f32.mrf.mxu1 }
 0x119   : > { %696 = vst [vmem:[#allocation2 + $0x18] sm:$0xff] %v680_v51  ;;  %704 = vst [vmem:[#allocation2 + $0x38] sm:$0xff] %v688_v52  ;;  %v678_v57 = vadd.f32 %v617_v53, %v437_v49  ;;  %v686_v58 = vadd.f32 %v649_v54, %v445_v50 }
 0x11a   : > { %v1016_v59 = vpop.f32.mrf.mxu0  ;;  %v1024_v60 = vpop.f32.mrf.mxu1 }
 0x11b   : > { %694 = vst [vmem:[#allocation2] sm:$0xff] %v678_v57  ;;  %702 = vst [vmem:[#allocation2 + $0x20] sm:$0xff] %v686_v58  ;;  %v683_v63 = vadd.f32 %v1016_v59, %v442_v55  ;;  %v691_v0 = vadd.f32 %v1024_v60, %v450_v56 }
 0x11c   : > { %v630_v1 = vpop.f32.mrf.mxu0  ;;  %v662_v2 = vpop.f32.mrf.mxu1 }
 0x11d   : > { %699 = vst [vmem:[#allocation2 + $0x8] sm:$0xff] %v683_v63  ;;  %707 = vst [vmem:[#allocation2 + $0x78] sm:$0xff] %v691_v0  ;;  %v681_v5 = vadd.f32 %v630_v1, %v440_v61  ;;  %v689_v6 = vadd.f32 %v662_v2, %v448_v62 }
 0x11e   : > { %v1017_v7 = vpop.f32.mrf.mxu0  ;;  %v1025_v8 = vpop.f32.mrf.mxu1 }
 0x11f   : > { %697 = vst [vmem:[#allocation2 + $0x50] sm:$0xff] %v681_v5  ;;  %705 = vst [vmem:[#allocation2 + $0x60] sm:$0xff] %v689_v6  ;;  %v684_v11 = vadd.f32 %v1017_v7, %v443_v3  ;;  %v692_v12 = vadd.f32 %v1025_v8, %v451_v4  ;;  %712 = sbr.rel (%p972_p11) target bundleno = 312 (0x138), region = 85 }
 0x120   : > { %v633_v13 = vpop.f32.mrf.mxu0  ;;  %v665_v14 = vpop.f32.mrf.mxu1 }
 0x121   : > { %700 = vst [vmem:[#allocation2 + $0x48] sm:$0xff] %v684_v11  ;;  %708 = vst [vmem:[#allocation2 + $0x28] sm:$0xff] %v692_v12  ;;  %v682_v15 = vadd.f32 %v633_v13, %v441_v9  ;;  %v690_v16 = vadd.f32 %v665_v14, %v449_v10 }
 0x123   : > { %698 = vst [vmem:[#allocation2 + $0x68] sm:$0xff] %v682_v15  ;;  %706 = vst [vmem:[#allocation2 + $0x70] sm:$0xff] %v690_v16 }
 0x124   : > { %v713_v17 = vld [vmem:[#allocation2 + $0x30] sm:$0xff]  ;;  %v1258_v18 = vld [vmem:[%s1389_s2] ss:$0 sm:$0xff]  ;;  %v753_v22 = vld [vmem:[%s1390_s3 + $0x8] sm:$0xff] }
 0x125   : > { %v752_v19 = vld [vmem:[%s1390_s3] sm:$0xff]  ;;  %v736_v20 = vadd.f32 %v1258_v18, %v713_v17  ;;  %v715_v23 = vld [vmem:[#allocation2 + $0x58] sm:$0xff]  ;;  %v754_v26 = vld [vmem:[%s1390_s3 + $0x10] sm:$0xff] }
 0x126   : > { %v714_v21 = vld [vmem:[#allocation2] sm:$0xff]  ;;  %v738_v25 = vadd.f32 %v1258_v18, %v715_v23  ;;  %v716_v27 = vld [vmem:[#allocation2 + $0x18] sm:$0xff]  ;;  %v717_v31 = vld [vmem:[#allocation2 + $0x50] sm:$0xff] }
 0x127   : > { %v737_v24 = vadd.f32 %v1258_v18, %v714_v21  ;;  %v755_v28 = vld [vmem:[%s1390_s3 + $0x18] sm:$0xff]  ;;  %v768_v29 = vadd.f32 %v752_v19, %v736_v20  ;;  %v739_v30 = vadd.f32 %v1258_v18, %v716_v27  ;;  %v756_v32 = vld [vmem:[%s1390_s3 + $0x20] sm:$0xff]  ;;  %v740_v36 = vadd.f32 %v1258_v18, %v717_v31  ;;  %v757_v38 = vld [vmem:[%s1390_s3 + $0x28] sm:$0xff] }
 0x128   : > { %v770_v35 = vadd.f32 %v754_v26, %v738_v25  ;;  %v719_v39 = vld [vmem:[#allocation2 + $0x8] sm:$0xff]  ;;  %v758_v40 = vld [vmem:[%s1390_s3 + $0x30] sm:$0xff]  ;;  %v759_v45 = vld [vmem:[%s1390_s3 + $0x38] sm:$0xff] }
 0x129   : > { %v769_v34 = vadd.f32 %v753_v22, %v737_v24  ;;  %v784_v41 = vmax.f32 %v768_v29, 0.0  ;;  %v771_v42 = vadd.f32 %v755_v28, %v739_v30  ;;  %v742_v43 = vadd.f32 %v1258_v18, %v719_v39  ;;  %v720_v44 = vld [vmem:[#allocation2 + $0x48] sm:$0xff]  ;;  %v721_v46 = vld [vmem:[#allocation2 + $0x40] sm:$0xff]  ;;  %v723_v58 = vld [vmem:[#allocation2 + $0x10] sm:$0xff] }
 0x12a   : > { %v718_v33 = vld [vmem:[#allocation2 + $0x68] sm:$0xff]  ;;  %v786_v48 = vmax.f32 %v770_v35, 0.0  ;;  %v772_v49 = vadd.f32 %v756_v32, %v740_v36  ;;  %v760_v51 = vld [vmem:[%s1390_s3 + $0x40] sm:$0xff]  ;;  %v743_v56 = vadd.f32 %v1258_v18, %v720_v44  ;;  %v744_v57 = vadd.f32 %v1258_v18, %v721_v46  ;;  %v762_v59 = vld [vmem:[%s1390_s3 + $0x50] sm:$0xff] }
 0x12b   : > { %v741_v37 = vadd.f32 %v1258_v18, %v718_v33  ;;  %v785_v47 = vmax.f32 %v769_v34, 0.0  ;;  %v722_v52 = vld [vmem:[#allocation2 + $0x20] sm:$0xff]  ;;  %v761_v53 = vld [vmem:[%s1390_s3 + $0x48] sm:$0xff]  ;;  %800 = vst [vmem:[%s1391_s4] sm:$0xff] %v784_v41  ;;  %v787_v54 = vmax.f32 %v771_v42, 0.0  ;;  %v774_v55 = vadd.f32 %v758_v40, %v742_v43  ;;  %v724_v60 = vld [vmem:[#allocation2 + $0x38] sm:$0xff] }
 0x12c   : > { %802 = vst [vmem:[%s1391_s4 + $0x10] sm:$0xff] %v786_v48  ;;  %v788_v61 = vmax.f32 %v772_v49, 0.0  ;;  %v745_v63 = vadd.f32 %v1258_v18, %v722_v52  ;;  %v746_v0 = vadd.f32 %v1258_v18, %v723_v58  ;;  %v763_v1 = vld [vmem:[%s1390_s3 + $0x58] sm:$0xff]  ;;  %v725_v2 = vld [vmem:[#allocation2 + $0x60] sm:$0xff]  ;;  %v775_v5 = vadd.f32 %v759_v45, %v743_v56  ;;  %v726_v8 = vld [vmem:[#allocation2 + $0x70] sm:$0xff] }
 0x12d   : > { %v773_v50 = vadd.f32 %v757_v38, %v741_v37  ;;  %801 = vst [vmem:[%s1391_s4 + $0x8] sm:$0xff] %v785_v47  ;;  %v764_v3 = vld [vmem:[%s1390_s3 + $0x60] sm:$0xff]  ;;  %803 = vst [vmem:[%s1391_s4 + $0x18] sm:$0xff] %v787_v54  ;;  %v790_v4 = vmax.f32 %v774_v55, 0.0  ;;  %v776_v6 = vadd.f32 %v760_v51, %v744_v57  ;;  %v747_v7 = vadd.f32 %v1258_v18, %v724_v60  ;;  %v765_v9 = vld [vmem:[%s1390_s3 + $0x68] sm:$0xff] }
 0x12e   : > { %v727_v10 = vld [vmem:[#allocation2 + $0x78] sm:$0xff]  ;;  %804 = vst [vmem:[%s1391_s4 + $0x20] sm:$0xff] %v788_v61  ;;  %v777_v11 = vadd.f32 %v761_v53, %v745_v63  ;;  %v778_v12 = vadd.f32 %v762_v59, %v746_v0  ;;  %v748_v13 = vadd.f32 %v1258_v18, %v725_v2  ;;  %v749_v14 = vadd.f32 %v1258_v18, %v726_v8  ;;  %v766_v15 = vld [vmem:[%s1390_s3 + $0x70] sm:$0xff]  ;;  %v728_v16 = vld [vmem:[#allocation2 + $0x28] sm:$0xff] }
 0x12f   : > { %v789_v62 = vmax.f32 %v773_v50, 0.0  ;;  %806 = vst [vmem:[%s1391_s4 + $0x30] sm:$0xff] %v790_v4  ;;  %v791_v17 = vmax.f32 %v775_v5, 0.0  ;;  %v792_v19 = vmax.f32 %v776_v6, 0.0  ;;  %v779_v20 = vadd.f32 %v763_v1, %v747_v7  ;;  %v767_v26 = vld [vmem:[%s1390_s3 + $0x78] sm:$0xff] }
 0x130   : > { %v750_v21 = vadd.f32 %v1258_v18, %v727_v10  ;;  %v793_v22 = vmax.f32 %v777_v11, 0.0  ;;  %v794_v23 = vmax.f32 %v778_v12, 0.0  ;;  %v780_v24 = vadd.f32 %v764_v3, %v748_v13 }
 0x131   : > { %805 = vst [vmem:[%s1391_s4 + $0x28] sm:$0xff] %v789_v62  ;;  %v781_v25 = vadd.f32 %v765_v9, %v749_v14  ;;  %807 = vst [vmem:[%s1391_s4 + $0x38] sm:$0xff] %v791_v17  ;;  %v795_v27 = vmax.f32 %v779_v20, 0.0  ;;  %v751_v29 = vadd.f32 %v1258_v18, %v728_v16 }
 0x132   : > { %808 = vst [vmem:[%s1391_s4 + $0x40] sm:$0xff] %v792_v19  ;;  %v782_v28 = vadd.f32 %v766_v15, %v750_v21  ;;  %809 = vst [vmem:[%s1391_s4 + $0x48] sm:$0xff] %v793_v22  ;;  %v796_v30 = vmax.f32 %v780_v24, 0.0 }
 0x133   : > { %810 = vst [vmem:[%s1391_s4 + $0x50] sm:$0xff] %v794_v23  ;;  %v797_v31 = vmax.f32 %v781_v25, 0.0  ;;  %811 = vst [vmem:[%s1391_s4 + $0x58] sm:$0xff] %v795_v27  ;;  %v783_v33 = vadd.f32 %v767_v26, %v751_v29 }
 0x134   : > { %v798_v32 = vmax.f32 %v782_v28, 0.0  ;;  %812 = vst [vmem:[%s1391_s4 + $0x60] sm:$0xff] %v796_v30 }
 0x135   : > { %813 = vst [vmem:[%s1391_s4 + $0x68] sm:$0xff] %v797_v31  ;;  %v799_v18 = vmax.f32 %v783_v33, 0.0 }
 0x136   : > { %814 = vst [vmem:[%s1391_s4 + $0x70] sm:$0xff] %v798_v32 }
 0x137   : > { %815 = vst [vmem:[%s1391_s4 + $0x78] sm:$0xff] %v799_v18 }
 0x138 PF: > { %s14_s19 = sadd.s32 1, %s1137_s19   ;;  %s1392_s15 = smov %s1125_s16 }
 0x139   : > { %p11_p12 = scmp.ge.s32.totalorder %s14_s19, 7   ;;  %s1393_s16 = smov %s1200_s23 }
 0x13a   : > { %s1394_s17 = smov %s1133_s18  ;;  %s1395_s18 = smov %s1397_s20 }
 0x13b   :  { %13 = sbr.rel (!%p11_p12) target bundleno = 3 (0x3), region = 129 }

// kernel: _lambda_.28
= control target key start
LH: loop header
LB: loop body
LE: loop exit
PB: predicated region body
PF: predicated region fallthrough
CT: control target
= control target key end

     0   :  { %s763_s12 = smov 0   ;;  %s765_s13 = smov 0   ;;  %s862_s0 = inlined_call_operand.vmem [shape: bf16[32,640], index: 0, kind: input, shape index: {}]   ;;  %s863_s1 = inlined_call_operand.vmem [shape: bf16[640,128], index: 1, kind: input, shape index: {}]   ;;  %s864_s2 = inlined_call_operand.vmem [shape: f32[1,128], index: 2, kind: input, shape index: {}]   ;;  %s865_s3 = inlined_call_operand.vmem [shape: f32[32,128], index: 3, kind: output, shape index: {}]  }
   0x1   :  { %s767_s14 = smov 0   ;;  %s769_s15 = smov 0  }
   0x2   :  { %s771_s16 = smov 0  }
   0x3 LB: > { %s25_s17 = sadd.s32 1, %s736_s15  ;;  %p48_p1 = scmp.ne.s32.totalorder %s728_s13, %s724_s12  ;;  %s740_s16 = sphi %s771_s16, %s13_s16   ;;  %s736_s15 = sphi %s769_s15, %s869_s15   ;;  %s732_s14 = sphi %s767_s14, %s868_s14   ;;  %s728_s13 = sphi %s765_s13, %s867_s13   ;;  %s724_s12 = sphi %s763_s12, %s866_s12  }
   0x4   : > { %p26_p0 = scmp.ge.s32.totalorder %s25_s17, 5  ;;  %p49_p2 = scmp.eq.s32.totalorder %s740_s16, 0 }
   0x5   : > { %s41_s19 = sadd.s32 1, %s728_s13  ;;  %p597_p5 = scmp.ge.s32.totalorder %s740_s16, 5 }
   0x6   : > { %s871_s17 = smov (%p26_p0, %s25_s17), 0  ;;  %p50_p3 = por %p49_p2, %p48_p1 }
   0x7   : > { %s37_s18 = ssub.s32 %s736_s15, %s871_s17  ;;  %162 = sbr.rel (%p597_p5) target bundleno = 18 (0x12), region = 20 }
   0x8   : > { %p39_p4 = scmp.eq.s32.totalorder %s37_s18, 0 }
   0xa   : > { %s798_s20 = scalar_select %p39_p4, %s728_s13, %s41_s19  }
   0xc   : > { %165 = sbr.rel (!%p50_p3) target bundleno = 18 (0x12), region = 24  ;;  %s167_s21 = sand.u32 (%p50_p3), 1, %s728_s13  }
   0xd   : > { %s599_s22 = sshll.u32 (%p50_p3), %s736_s15, 2  ;;  %s598_s23 = sshll.u32 (%p50_p3), %s167_s21, 4 }
   0xe   : > { %s174_s26 = scalar_lea.vmem (%p50_p3), %s862_s0, %s599_s22  ;;  %s169_s27 = scalar_lea.vmem (%p50_p3), [#allocation3], %s598_s23 }
   0xf   : > { %v191_v0 = vld [vmem:[%s174_s26] sm:$0xf] (%p50_p3)  ;;  %v193_v1 = vld [vmem:[%s174_s26 + $0x14] sm:$0xf] (%p50_p3)  ;;  %v195_v2 = vld [vmem:[%s174_s26 + $0x28] sm:$0xf] (%p50_p3) }
  0x10   : > { %192 = vst [vmem:[%s169_s27] sm:$0xf] (%p50_p3), %v191_v0  ;;  %194 = vst [vmem:[%s169_s27 + $0x4] sm:$0xf] (%p50_p3), %v193_v1  ;;  %v197_v3 = vld [vmem:[%s174_s26 + $0x3c] sm:$0xf] (%p50_p3) }
  0x11   : > { %196 = vst [vmem:[%s169_s27 + $0x8] sm:$0xf] %v195_v2  ;;  %198 = vst [vmem:[%s169_s27 + $0xc] sm:$0xf] %v197_v3 }
  0x12 PF: > { %p600_p6 = scmp.ge.s32.totalorder %s740_s16, 1  ;;  %p241_p7 = scmp.lt.s32.totalorder %s740_s16, 6 }
  0x14   : > { %p242_p8 = pnand %p600_p6, %p241_p7 }
  0x15   : > { %s248_s28 = sand.u32 (!%p242_p8), 1, %s724_s12   ;;  %s602_s29 = sshll.u32 (!%p242_p8), %s732_s14, 4 }
  0x16   : > { %245 = sbr.rel (%p242_p8) target bundleno = 282 (0x11a), region = 69  ;;  %s810_s30 = sshll.u32 (!%p242_p8), %s248_s28, 4 }
  0x17   : > { %p287_p9 = scmp.lt.s32.totalorder (!%p242_p8), %s602_s29, 79  ;;  %s250_s8 = scalar_lea.vmem (!%p242_p8), [#allocation3], %s810_s30 }
  0x18   : > { %p604_p10 = scmp.ne.s32.totalorder (!%p242_p8), %s732_s14, 0 }
  0x1b   : > { %s873_s29 = smov (!%p287_p9, %s602_s29), 79  ;;  %311 = sbr.rel (%p604_p10) target bundleno = 35 (0x23), region = 77 }
  0x1c   : > { %s603_s4 = sshll.u32 %s873_s29, 2 }
  0x1d   : > { %s815_s7 = scalar_lea.vmem %s863_s1, %s603_s4 }
  0x20   : > { %v742_v4 = vmov 0.0  }
  0x21   : > { %312 = vst [vmem:[#allocation2 + $0x10] sm:$0xff] %v742_v4  ;;  %313 = vst [vmem:[#allocation2] sm:$0xff] %v742_v4 }
  0x22   : > { %314 = vst [vmem:[#allocation2 + $0x18] sm:$0xff] %v742_v4  ;;  %315 = vst [vmem:[#allocation2 + $0x8] sm:$0xff] %v742_v4 }
  0x23 PF: > { %v692_v5 = vld [vmem:[%s815_s7 + $0x38] sm:$0xff]   ;;  %v693_v6 = vld [vmem:[%s815_s7 + $0x30] sm:$0xff]   ;;  %v694_v7 = vld [vmem:[%s815_s7 + $0x28] sm:$0xff]   ;;  %p615_p11 = scmp.ne.s32.totalorder %s732_s14, 4 }
  0x24   : > { %631 = vmatprep.subr.bf16.mxu0 %v692_v5  ;;  %v695_v8 = vld [vmem:[%s815_s7 + $0x20] sm:$0xff]   ;;  %v696_v10 = vld [vmem:[%s815_s7 + $0x18] sm:$0xff]   ;;  %v697_v11 = vld [vmem:[%s815_s7 + $0x10] sm:$0xff]  }
  0x25   : > { %632 = vmatpush3.bf16.msra.mxu0 %v692_v5  ;;  %v700_v9 = vld [vmem:[%s250_s8] sm:$0xff]   ;;  %v698_v12 = vld [vmem:[%s815_s7 + $0x8] sm:$0xff]  }
  0x26   : > { %633 = vmatprep.subr.bf16.mxu0 %v693_v6  ;;  %647 = vmatprep.mubr.bf16.mxu0 %v700_v9  ;;  %v699_v13 = vld [vmem:[%s815_s7] sm:$0xff]   ;;  %v701_v14 = vld [vmem:[%s250_s8 + $0x8] sm:$0xff]  }
  0x28   : > { %v316_v17 = vld [vmem:[#allocation2 + $0x10] sm:$0xff]  ;;  %v317_v23 = vld [vmem:[#allocation2] sm:$0xff] }
  0x29   : > { %634 = vmatpush3.bf16.msra.mxu0 %v693_v6  ;;  %v318_v15 = vld [vmem:[#allocation2 + $0x18] sm:$0xff]  ;;  %v319_v20 = vld [vmem:[#allocation2 + $0x8] sm:$0xff] }
  0x2a   : > { %635 = vmatprep.subr.bf16.mxu0 %v694_v7 }
  0x2d   : > { %636 = vmatpush3.bf16.msra.mxu0 %v694_v7 }
  0x2e   : > { %637 = vmatprep.subr.bf16.mxu0 %v695_v8 }
  0x31   : > { %638 = vmatpush3.bf16.msra.mxu0 %v695_v8 }
  0x32   : > { %639 = vmatprep.subr.bf16.mxu0 %v696_v10 }
  0x35   : > { %640 = vmatpush3.bf16.msra.mxu0 %v696_v10 }
  0x36   : > { %641 = vmatprep.subr.bf16.mxu0 %v697_v11 }
  0x39   : > { %642 = vmatpush3.bf16.msra.mxu0 %v697_v11 }
  0x3a   : > { %643 = vmatprep.subr.bf16.mxu0 %v698_v12 }
  0x3d   : > { %644 = vmatpush3.bf16.msra.mxu0 %v698_v12 }
  0x3e   : > { %645 = vmatprep.subr.bf16.mxu0 %v699_v13 }
  0x41   : > { %646 = vmatpush3.bf16.msra.mxu0 %v699_v13 }
  0x44   : > { %648 = vmatmul.mubr.bf16.vlgmr.msra.gmra.mxu0 %v701_v14 }
 0x104   : > { %v649_v16 = vpop.f32.mrf.mxu0 }
 0x105   : > { %v451_v18 = vadd.f32 %v649_v16, %v318_v15 }
 0x106   : > { %v434_v19 = vpop.f32.mrf.mxu0 }
 0x107   : > { %455 = vst [vmem:[#allocation2 + $0x18] sm:$0xff] %v451_v18  ;;  %v449_v21 = vadd.f32 %v434_v19, %v316_v17 }
 0x108   : > { %v650_v22 = vpop.f32.mrf.mxu0 }
 0x109   : > { %453 = vst [vmem:[#allocation2 + $0x10] sm:$0xff] %v449_v21  ;;  %v452_v24 = vadd.f32 %v650_v22, %v319_v20  ;;  %460 = sbr.rel (%p615_p11) target bundleno = 282 (0x11a), region = 81 }
 0x10a   : > { %v437_v25 = vpop.f32.mrf.mxu0 }
 0x10b   : > { %456 = vst [vmem:[#allocation2 + $0x8] sm:$0xff] %v452_v24  ;;  %v450_v26 = vadd.f32 %v437_v25, %v317_v23 }
 0x10d   : > { %454 = vst [vmem:[#allocation2] sm:$0xff] %v450_v26 }
 0x10e   : > { %v616_v28 = vld [vmem:[%s864_s2] ss:$0 sm:$0xff]  ;;  %v463_v32 = vld [vmem:[#allocation2 + $0x18] sm:$0xff] }
 0x10f   : > { %v474_v34 = vadd.f32 %v616_v28, %v463_v32 }
 0x110   : > { %v461_v27 = vld [vmem:[#allocation2 + $0x10] sm:$0xff] }
 0x111   : > { %v472_v30 = vadd.f32 %v616_v28, %v461_v27  ;;  %v478_v38 = vmax.f32 %v474_v34, 0.0 }
 0x112   : > { %v464_v33 = vld [vmem:[#allocation2 + $0x8] sm:$0xff] }
 0x113   : > { %v475_v35 = vadd.f32 %v616_v28, %v464_v33  ;;  %v476_v36 = vmax.f32 %v472_v30, 0.0  ;;  %482 = vst [vmem:[%s865_s3 + $0x10] sm:$0xff] %v478_v38 }
 0x114   : > { %v462_v29 = vld [vmem:[#allocation2] sm:$0xff] }
 0x115   : > { %v473_v31 = vadd.f32 %v616_v28, %v462_v29  ;;  %v479_v39 = vmax.f32 %v475_v35, 0.0  ;;  %480 = vst [vmem:[%s865_s3] sm:$0xff] %v476_v36 }
 0x117   : > { %v477_v37 = vmax.f32 %v473_v31, 0.0  ;;  %483 = vst [vmem:[%s865_s3 + $0x18] sm:$0xff] %v479_v39 }
 0x119   : > { %481 = vst [vmem:[%s865_s3 + $0x8] sm:$0xff] %v477_v37 }
 0x11a PF: > { %s13_s16 = sadd.s32 1, %s740_s16   ;;  %s866_s12 = smov %s728_s13 }
 0x11b   : > { %p10_p12 = scmp.ge.s32.totalorder %s13_s16, 7   ;;  %s867_s13 = smov %s798_s20 }
 0x11c   : > { %s868_s14 = smov %s736_s15  ;;  %s869_s15 = smov %s871_s17 }
 0x11d   :  { %12 = sbr.rel (!%p10_p12) target bundleno = 3 (0x3), region = 122 }

// kernel: _lambda_.27
= control target key start
LH: loop header
LB: loop body
LE: loop exit
PB: predicated region body
PF: predicated region fallthrough
CT: control target
= control target key end

     0   :  { %s306_s1 = inlined_call_operand.vmem [shape: bf16[128,128], index: 1, kind: input, shape index: {}]   ;;  %s307_s0 = inlined_call_operand.vmem [shape: bf16[32,128], index: 0, kind: input, shape index: {}]   ;;  %s308_s2 = inlined_call_operand.vmem [shape: f32[1,128], index: 2, kind: input, shape index: {}]   ;;  %s309_s3 = inlined_call_operand.vmem [shape: f32[32,128], index: 3, kind: output, shape index: {}]  }
   0x1   :  { %v231_v0 = vld [vmem:[%s306_s1 + $0x38] sm:$0xff]   ;;  %v232_v1 = vld [vmem:[%s306_s1 + $0x30] sm:$0xff]   ;;  %v233_v2 = vld [vmem:[%s306_s1 + $0x28] sm:$0xff]  }
   0x2   :  { %211 = vmatprep.subr.bf16.mxu0 %v231_v0  ;;  %v234_v3 = vld [vmem:[%s306_s1 + $0x20] sm:$0xff]   ;;  %v235_v5 = vld [vmem:[%s306_s1 + $0x18] sm:$0xff]   ;;  %v236_v6 = vld [vmem:[%s306_s1 + $0x10] sm:$0xff]  }
   0x3   :  { %212 = vmatpush3.bf16.msra.mxu0 %v231_v0  ;;  %v239_v4 = vld [vmem:[%s307_s0] sm:$0xff]   ;;  %v237_v7 = vld [vmem:[%s306_s1 + $0x8] sm:$0xff]  }
   0x4   :  { %213 = vmatprep.subr.bf16.mxu0 %v232_v1  ;;  %227 = vmatprep.mubr.bf16.mxu0 %v239_v4  ;;  %v238_v8 = vld [vmem:[%s306_s1] sm:$0xff]   ;;  %v240_v9 = vld [vmem:[%s307_s0 + $0x8] sm:$0xff]  }
   0x5   :  { %v200_v10 = vld [vmem:[%s308_s2] ss:$0 sm:$0xff] }
   0x7   :  { %214 = vmatpush3.bf16.msra.mxu0 %v232_v1 }
   0x8   :  { %215 = vmatprep.subr.bf16.mxu0 %v233_v2 }
   0xb   :  { %216 = vmatpush3.bf16.msra.mxu0 %v233_v2 }
   0xc   :  { %217 = vmatprep.subr.bf16.mxu0 %v234_v3 }
   0xf   :  { %218 = vmatpush3.bf16.msra.mxu0 %v234_v3 }
  0x10   :  { %219 = vmatprep.subr.bf16.mxu0 %v235_v5 }
  0x13   :  { %220 = vmatpush3.bf16.msra.mxu0 %v235_v5 }
  0x14   :  { %221 = vmatprep.subr.bf16.mxu0 %v236_v6 }
  0x17   :  { %222 = vmatpush3.bf16.msra.mxu0 %v236_v6 }
  0x18   :  { %223 = vmatprep.subr.bf16.mxu0 %v237_v7 }
  0x1b   :  { %224 = vmatpush3.bf16.msra.mxu0 %v237_v7 }
  0x1c   :  { %225 = vmatprep.subr.bf16.mxu0 %v238_v8 }
  0x1f   :  { %226 = vmatpush3.bf16.msra.mxu0 %v238_v8 }
  0x22   :  { %228 = vmatmul.mubr.bf16.vlgmr.msra.gmra.mxu0 %v240_v9 }
  0xe2   :  { %v229_v11 = vpop.f32.mrf.mxu0 }
  0xe3   :  { %v180_v12 = vadd.f32 %v229_v11, %v200_v10 }
  0xe4   :  { %v141_v13 = vpop.f32.mrf.mxu0 }
  0xe5   :  { %184 = vst [vmem:[%s309_s3 + $0x10] sm:$0xff] %v180_v12  ;;  %v178_v14 = vadd.f32 %v200_v10, %v141_v13 }
  0xe6   :  { %v230_v15 = vpop.f32.mrf.mxu0 }
  0xe7   :  { %182 = vst [vmem:[%s309_s3] sm:$0xff] %v178_v14  ;;  %v181_v16 = vadd.f32 %v230_v15, %v200_v10 }
  0xe8   :  { %v144_v17 = vpop.f32.mrf.mxu0 }
  0xe9   :  { %185 = vst [vmem:[%s309_s3 + $0x18] sm:$0xff] %v181_v16  ;;  %v179_v18 = vadd.f32 %v200_v10, %v144_v17 }
  0xeb   :  { %183 = vst [vmem:[%s309_s3 + $0x8] sm:$0xff] %v179_v18 }

// kernel: _lambda_.30
= control target key start
LH: loop header
LB: loop body
LE: loop exit
PB: predicated region body
PF: predicated region fallthrough
CT: control target
= control target key end

     0   :  { %s1037_s12 = smov 0   ;;  %s1039_s13 = smov 0   ;;  %s1153_s0 = inlined_call_operand.vmem [shape: bf16[32,1152], index: 0, kind: input, shape index: {}]   ;;  %s1154_s1 = inlined_call_operand.vmem [shape: bf16[1152,128], index: 1, kind: input, shape index: {}]   ;;  %s1155_s2 = inlined_call_operand.vmem [shape: f32[1,128], index: 2, kind: input, shape index: {}]   ;;  %s1156_s3 = inlined_call_operand.vmem [shape: f32[32,128], index: 3, kind: output, shape index: {}]  }
   0x1   :  { %s1041_s14 = smov 0   ;;  %s1043_s15 = smov 0  }
   0x2   :  { %s1045_s16 = smov 0  }
   0x3 LB: > { %s25_s17 = sadd.s32 1, %s1010_s15  ;;  %p48_p1 = scmp.ne.s32.totalorder %s1002_s13, %s998_s12  ;;  %s1014_s16 = sphi %s1045_s16, %s13_s16   ;;  %s1010_s15 = sphi %s1043_s15, %s1160_s15   ;;  %s1006_s14 = sphi %s1041_s14, %s1159_s14   ;;  %s1002_s13 = sphi %s1039_s13, %s1158_s13   ;;  %s998_s12 = sphi %s1037_s12, %s1157_s12  }
   0x4   : > { %p26_p0 = scmp.ge.s32.totalorder %s25_s17, 3  ;;  %p49_p2 = scmp.eq.s32.totalorder %s1014_s16, 0 }
   0x5   : > { %s41_s19 = sadd.s32 1, %s1002_s13  ;;  %p793_p5 = scmp.ge.s32.totalorder %s1014_s16, 3 }
   0x6   : > { %s1162_s17 = smov (%p26_p0, %s25_s17), 0  ;;  %p50_p3 = por %p49_p2, %p48_p1 }
   0x7   : > { %s37_s18 = ssub.s32 %s1010_s15, %s1162_s17  ;;  %162 = sbr.rel (%p793_p5) target bundleno = 21 (0x15), region = 20 }
   0x8   : > { %p39_p4 = scmp.eq.s32.totalorder %s37_s18, 0 }
   0xa   : > { %s1072_s20 = scalar_select %p39_p4, %s1002_s13, %s41_s19  }
   0xc   : > { %165 = sbr.rel (!%p50_p3) target bundleno = 21 (0x15), region = 24  ;;  %s167_s21 = sand.u32 (%p50_p3), 1, %s1002_s13  }
   0xd   : > { %s842_s22 = smul.u32 (%p50_p3), 12, %s1010_s15 }
   0xe   : > { %s901_s23 = smul.u32 (%p50_p3), 48, %s167_s21 }
   0xf   : > { %s175_s26 = scalar_lea.vmem (%p50_p3), %s1153_s0, %s842_s22 }
  0x10   : > { %v190_v0 = vld [vmem:[%s175_s26] sm:$0xff] (%p50_p3)  ;;  %v194_v2 = vld [vmem:[%s175_s26 + $0x48] sm:$0xff] (%p50_p3)  ;;  %s169_s27 = scalar_lea.vmem (%p50_p3), [#allocation3], %s901_s23  ;;  %v799_v6 = vld [vmem:[%s175_s26 + $0x50] sm:$0xf] (%p50_p3) }
  0x11   : > { %v192_v1 = vld [vmem:[%s175_s26 + $0x24] sm:$0xff]  ;;  %191 = vst [vmem:[%s169_s27] sm:$0xff] %v190_v0  ;;  %195 = vst [vmem:[%s169_s27 + $0x18] sm:$0xff] %v194_v2  ;;  %v196_v3 = vld [vmem:[%s175_s26 + $0x6c] sm:$0xff] }
  0x12   : > { %193 = vst [vmem:[%s169_s27 + $0xc] sm:$0xff] %v192_v1  ;;  %v795_v4 = vld [vmem:[%s175_s26 + $0x8] sm:$0xf]  ;;  %v797_v5 = vld [vmem:[%s175_s26 + $0x2c] sm:$0xf]  ;;  %197 = vst [vmem:[%s169_s27 + $0x24] sm:$0xff] %v196_v3 }
  0x13   : > { %796 = vst [vmem:[%s169_s27 + $0x8] sm:$0xf] %v795_v4  ;;  %798 = vst [vmem:[%s169_s27 + $0x14] sm:$0xf] %v797_v5  ;;  %v801_v7 = vld [vmem:[%s175_s26 + $0x74] sm:$0xf] }
  0x14   : > { %800 = vst [vmem:[%s169_s27 + $0x20] sm:$0xf] %v799_v6  ;;  %802 = vst [vmem:[%s169_s27 + $0x2c] sm:$0xf] %v801_v7 }
  0x15 PF: > { %p803_p6 = scmp.ge.s32.totalorder %s1014_s16, 1  ;;  %p230_p7 = scmp.lt.s32.totalorder %s1014_s16, 4 }
  0x17   : > { %p231_p8 = pnand %p803_p6, %p230_p7 }
  0x18   : > { %s237_s28 = sand.u32 (!%p231_p8), 1, %s998_s12   ;;  %s276_s29 = smul.u32 (!%p231_p8), 48, %s1006_s14 }
  0x19   : > { %234 = sbr.rel (%p231_p8) target bundleno = 297 (0x129), region = 54  ;;  %p805_p10 = scmp.ne.s32.totalorder (!%p231_p8), %s1006_s14, 0 }
  0x1a   : > { %s902_s30 = smul.u32 (!%p231_p8), 48, %s237_s28  ;;  %p277_p9 = scmp.lt.s32.totalorder (!%p231_p8), %s276_s29, 143 }
  0x1c   : > { %s1089_s8 = scalar_lea.vmem (!%p231_p8), [#allocation3], %s902_s30 }
  0x1e   : > { %s1164_s29 = smov (!%p277_p9, %s276_s29), 143  ;;  %301 = sbr.rel (%p805_p10) target bundleno = 38 (0x26), region = 62 }
  0x1f   : > { %s804_s4 = sshll.u32 %s1164_s29, 2 }
  0x20   : > { %s1087_s7 = scalar_lea.vmem %s1154_s1, %s804_s4 }
  0x23   : > { %v1016_v8 = vmov 0.0  }
  0x24   : > { %302 = vst [vmem:[#allocation2 + $0x10] sm:$0xff] %v1016_v8  ;;  %303 = vst [vmem:[#allocation2] sm:$0xff] %v1016_v8 }
  0x25   : > { %304 = vst [vmem:[#allocation2 + $0x18] sm:$0xff] %v1016_v8  ;;  %305 = vst [vmem:[#allocation2 + $0x8] sm:$0xff] %v1016_v8 }
  0x26 PF: > { %v944_v9 = vld [vmem:[%s1087_s7 + $0x78] sm:$0xff]   ;;  %v947_v12 = vld [vmem:[%s1087_s7 + $0x70] sm:$0xff]   ;;  %v950_v15 = vld [vmem:[%s1087_s7 + $0x68] sm:$0xff]   ;;  %p836_p11 = scmp.ne.s32.totalorder %s1006_s14, 2 }
  0x27   : > { %v945_v10 = vld [vmem:[%s1087_s7 + $0x38] sm:$0xff]   ;;  %843 = vmatprep.subr.bf16.mxu0 %v944_v9  ;;  %v948_v13 = vld [vmem:[%s1087_s7 + $0x30] sm:$0xff]   ;;  %v951_v16 = vld [vmem:[%s1087_s7 + $0x28] sm:$0xff]  }
  0x28   : > { %v946_v11 = vld [vmem:[%s1087_s7 + $0xb8] sm:$0xff]   ;;  %844 = vmatpush3.bf16.msra.mxu0 %v945_v10  ;;  %v949_v14 = vld [vmem:[%s1087_s7 + $0xb0] sm:$0xff]   ;;  %v952_v17 = vld [vmem:[%s1087_s7 + $0xa8] sm:$0xff]  }
  0x29   : > { %881 = vmatprep.subr.bf16.mxu1 %v946_v11  ;;  %845 = vmatprep.subr.bf16.mxu0 %v947_v12  ;;  %v953_v18 = vld [vmem:[%s1087_s7 + $0x60] sm:$0xff]   ;;  %v956_v21 = vld [vmem:[%s1087_s7 + $0x58] sm:$0xff]   ;;  %v959_v24 = vld [vmem:[%s1087_s7 + $0x50] sm:$0xff]  }
  0x2a   : > { %882 = vmatpush3.bf16.msra.mxu1 %v946_v11  ;;  %v954_v19 = vld [vmem:[%s1087_s7 + $0x20] sm:$0xff]   ;;  %v958_v22 = vld [vmem:[%s1087_s7 + $0x98] sm:$0xff]   ;;  %v961_v25 = vld [vmem:[%s1087_s7 + $0x90] sm:$0xff]  }
  0x2b   : > { %883 = vmatprep.subr.bf16.mxu1 %v949_v14  ;;  %v955_v20 = vld [vmem:[%s1087_s7 + $0xa0] sm:$0xff]   ;;  %v957_v23 = vld [vmem:[%s1087_s7 + $0x18] sm:$0xff]   ;;  %v960_v26 = vld [vmem:[%s1087_s7 + $0x10] sm:$0xff]  }
  0x2c   : > { %846 = vmatpush3.bf16.msra.mxu0 %v948_v13  ;;  %v962_v27 = vld [vmem:[%s1087_s7 + $0x48] sm:$0xff]   ;;  %v965_v30 = vld [vmem:[%s1087_s7 + $0x40] sm:$0xff]   ;;  %v306_v44 = vld [vmem:[#allocation2 + $0x10] sm:$0xff] }
  0x2d   : > { %847 = vmatprep.subr.bf16.mxu0 %v950_v15  ;;  %v963_v28 = vld [vmem:[%s1087_s7 + $0x8] sm:$0xff]   ;;  %v967_v31 = vld [vmem:[%s1087_s7 + $0x80] sm:$0xff]   ;;  %v308_v58 = vld [vmem:[#allocation2 + $0x18] sm:$0xff] }
  0x2e   : > { %884 = vmatpush3.bf16.msra.mxu1 %v949_v14  ;;  %v964_v29 = vld [vmem:[%s1087_s7 + $0x88] sm:$0xff]   ;;  %v970_v32 = vld [vmem:[%s1089_s8 + $0x4] ss:$12 sps:$4 sm:$0xff]  }
  0x2f   : > { %885 = vmatprep.subr.bf16.mxu1 %v952_v17  ;;  %v971_v33 = vld [vmem:[%s1089_s8 + $0x8] ss:$12 sps:$4 sm:$0xff]   ;;  %574 = vmatprep.mubr.bf16.mxu0 %v970_v32  ;;  %v968_v35 = vld [vmem:[%s1089_s8] ss:$12 sps:$4 sm:$0xff]   ;;  %v975_v38 = vld [vmem:[%s1089_s8 + $0x18] ss:$12 sps:$4 sm:$0xff]  }
  0x30   : > { %848 = vmatpush3.bf16.msra.mxu0 %v951_v16  ;;  %v966_v34 = vld [vmem:[%s1087_s7] sm:$0xff]   ;;  %897 = vmatprep.mubr.bf16.mxu1 %v971_v33  ;;  %v973_v36 = vld [vmem:[%s1089_s8 + $0x1c] ss:$12 sps:$4 sm:$0xff]  }
  0x31   : > { %849 = vmatprep.subr.bf16.mxu0 %v953_v18  ;;  %v972_v37 = vld [vmem:[%s1089_s8 + $0x20] ss:$12 sps:$4 sm:$0xff]  }
  0x32   : > { %886 = vmatpush3.bf16.msra.mxu1 %v952_v17  ;;  %v307_v52 = vld [vmem:[#allocation2] sm:$0xff]  ;;  %v309_v0 = vld [vmem:[#allocation2 + $0x8] sm:$0xff] }
  0x33   : > { %887 = vmatprep.subr.bf16.mxu1 %v955_v20 }
  0x34   : > { %850 = vmatpush3.bf16.msra.mxu0 %v954_v19 }
  0x35   : > { %851 = vmatprep.subr.bf16.mxu0 %v956_v21 }
  0x36   : > { %888 = vmatpush3.bf16.msra.mxu1 %v955_v20 }
  0x37   : > { %889 = vmatprep.subr.bf16.mxu1 %v958_v22 }
  0x38   : > { %852 = vmatpush3.bf16.msra.mxu0 %v957_v23 }
  0x39   : > { %853 = vmatprep.subr.bf16.mxu0 %v959_v24 }
  0x3a   : > { %890 = vmatpush3.bf16.msra.mxu1 %v958_v22 }
  0x3b   : > { %891 = vmatprep.subr.bf16.mxu1 %v961_v25 }
  0x3c   : > { %854 = vmatpush3.bf16.msra.mxu0 %v960_v26 }
  0x3d   : > { %855 = vmatprep.subr.bf16.mxu0 %v962_v27 }
  0x3e   : > { %892 = vmatpush3.bf16.msra.mxu1 %v961_v25 }
  0x3f   : > { %893 = vmatprep.subr.bf16.mxu1 %v964_v29 }
  0x40   : > { %856 = vmatpush3.bf16.msra.mxu0 %v963_v28 }
  0x41   : > { %857 = vmatprep.subr.bf16.mxu0 %v965_v30 }
  0x42   : > { %894 = vmatpush3.bf16.msra.mxu1 %v964_v29 }
  0x43   : > { %895 = vmatprep.subr.bf16.mxu1 %v967_v31 }
  0x44   : > { %858 = vmatpush3.bf16.msra.mxu0 %v966_v34 }
  0x46   : > { %896 = vmatpush3.bf16.msra.mxu1 %v967_v31 }
  0x47   : > { %575 = vmatmul.mubr.bf16.vlgmr.msra.gmra.mxu0 %v968_v35 }
  0x48   : > { %582 = vmatprep.mubr.bf16.mxu0 %v973_v36 }
  0x49   : > { %898 = vmatmul.mubr.bf16.vlgmr.msra.gmra.mxu1 %v972_v37 }
  0x4f   : > { %583 = vmatmul.mubr.bf16.gmra.mxu0 %v975_v38 }
 0x107   : > { %v859_v39 = vpop.f32.mrf.mxu0 }
 0x109   : > { %v860_v40 = vpop.f32.mrf.mxu0  ;;  %v899_v41 = vpop.f32.mrf.mxu1 }
 0x10a   : > { %v861_v42 = vadd.f32 %v860_v40, %v859_v39 }
 0x10b   : > { %v862_v43 = vpop.f32.mrf.mxu0  ;;  %v625_v45 = vpop.f32.mrf.mxu1 }
 0x10c   : > { %v626_v46 = vadd.f32 %v861_v42, %v625_v45 }
 0x10d   : > { %v863_v47 = vpop.f32.mrf.mxu0  ;;  %v900_v48 = vpop.f32.mrf.mxu1 }
 0x10e   : > { %v640_v49 = vadd.f32 %v626_v46, %v306_v44  ;;  %v864_v50 = vadd.f32 %v863_v47, %v862_v43 }
 0x10f   : > { %v865_v51 = vpop.f32.mrf.mxu0  ;;  %v628_v53 = vpop.f32.mrf.mxu1 }
 0x110   : > { %644 = vst [vmem:[#allocation2 + $0x10] sm:$0xff] %v640_v49  ;;  %v629_v54 = vadd.f32 %v864_v50, %v628_v53 }
 0x111   : > { %v866_v55 = vpop.f32.mrf.mxu0 }
 0x112   : > { %v641_v56 = vadd.f32 %v629_v54, %v307_v52  ;;  %v867_v57 = vadd.f32 %v866_v55, %v865_v51 }
 0x113   : > { %v868_v59 = vpop.f32.mrf.mxu0 }
 0x114   : > { %645 = vst [vmem:[#allocation2] sm:$0xff] %v641_v56  ;;  %v634_v60 = vadd.f32 %v899_v41, %v867_v57 }
 0x115   : > { %v869_v61 = vpop.f32.mrf.mxu0 }
 0x116   : > { %v642_v62 = vadd.f32 %v634_v60, %v308_v58  ;;  %v870_v63 = vadd.f32 %v869_v61, %v868_v59 }
 0x118   : > { %646 = vst [vmem:[#allocation2 + $0x18] sm:$0xff] %v642_v62  ;;  %v637_v1 = vadd.f32 %v900_v48, %v870_v63  ;;  %651 = sbr.rel (%p836_p11) target bundleno = 297 (0x129), region = 66 }
 0x11a   : > { %v643_v2 = vadd.f32 %v637_v1, %v309_v0 }
 0x11c   : > { %647 = vst [vmem:[#allocation2 + $0x8] sm:$0xff] %v643_v2 }
 0x11d   : > { %v652_v3 = vld [vmem:[#allocation2 + $0x10] sm:$0xff]  ;;  %v837_v4 = vld [vmem:[%s1155_s2] ss:$0 sm:$0xff] }
 0x11e   : > { %v653_v5 = vld [vmem:[#allocation2] sm:$0xff]  ;;  %v663_v6 = vadd.f32 %v837_v4, %v652_v3 }
 0x11f   : > { %v664_v7 = vadd.f32 %v837_v4, %v653_v5  ;;  %v654_v8 = vld [vmem:[#allocation2 + $0x18] sm:$0xff] }
 0x120   : > { %v665_v10 = vadd.f32 %v837_v4, %v654_v8  ;;  %v667_v12 = vmax.f32 %v663_v6, 0.0 }
 0x121   : > { %v668_v13 = vmax.f32 %v664_v7, 0.0 }
 0x122   : > { %v669_v14 = vmax.f32 %v665_v10, 0.0  ;;  %671 = vst [vmem:[%s1156_s3] sm:$0xff] %v667_v12 }
 0x123   : > { %v655_v9 = vld [vmem:[#allocation2 + $0x8] sm:$0xff]  ;;  %672 = vst [vmem:[%s1156_s3 + $0x8] sm:$0xff] %v668_v13 }
 0x124   : > { %v666_v11 = vadd.f32 %v837_v4, %v655_v9  ;;  %673 = vst [vmem:[%s1156_s3 + $0x10] sm:$0xff] %v669_v14 }
 0x126   : > { %v670_v15 = vmax.f32 %v666_v11, 0.0 }
 0x128   : > { %674 = vst [vmem:[%s1156_s3 + $0x18] sm:$0xff] %v670_v15 }
 0x129 PF: > { %s13_s16 = sadd.s32 1, %s1014_s16   ;;  %s1157_s12 = smov %s1002_s13 }
 0x12a   : > { %p10_p12 = scmp.ge.s32.totalorder %s13_s16, 5   ;;  %s1158_s13 = smov %s1072_s20 }
 0x12b   : > { %s1159_s14 = smov %s1010_s15  ;;  %s1160_s15 = smov %s1162_s17 }
 0x12c   :  { %12 = sbr.rel (!%p10_p12) target bundleno = 3 (0x3), region = 113 }

// kernel: _lambda_.29
= control target key start
LH: loop header
LB: loop body
LE: loop exit
PB: predicated region body
PF: predicated region fallthrough
CT: control target
= control target key end

     0   :  { %s1129_s15 = smov 0   ;;  %s1131_s16 = smov 0   ;;  %s1257_s0 = inlined_call_operand.vmem [shape: bf16[32,1152], index: 0, kind: input, shape index: {}]   ;;  %s1258_s1 = inlined_call_operand.vmem [shape: bf16[1152,128], index: 1, kind: input, shape index: {}]   ;;  %s1259_s2 = inlined_call_operand.vmem [shape: f32[1,128], index: 2, kind: input, shape index: {}]   ;;  %s1260_s3 = inlined_call_operand.vmem [shape: f32[32,128], index: 3, kind: input, shape index: {}]   ;;  %s1261_s4 = inlined_call_operand.vmem [shape: f32[32,128], index: 4, kind: output, shape index: {}]  }
   0x1   :  { %s1133_s17 = smov 0   ;;  %s1135_s18 = smov 0  }
   0x2   :  { %s1137_s19 = smov 0  }
   0x3 LB: > { %s26_s20 = sadd.s32 1, %s1097_s18  ;;  %p49_p1 = scmp.ne.s32.totalorder %s1089_s16, %s1085_s15  ;;  %s1101_s19 = sphi %s1137_s19, %s14_s19   ;;  %s1097_s18 = sphi %s1135_s18, %s1265_s18   ;;  %s1093_s17 = sphi %s1133_s17, %s1264_s17   ;;  %s1089_s16 = sphi %s1131_s16, %s1263_s16   ;;  %s1085_s15 = sphi %s1129_s15, %s1262_s15  }
   0x4   : > { %p27_p0 = scmp.ge.s32.totalorder %s26_s20, 3  ;;  %p50_p2 = scmp.eq.s32.totalorder %s1101_s19, 0 }
   0x5   : > { %s42_s22 = sadd.s32 1, %s1089_s16  ;;  %p880_p5 = scmp.ge.s32.totalorder %s1101_s19, 3 }
   0x6   : > { %s1267_s20 = smov (%p27_p0, %s26_s20), 0  ;;  %p51_p3 = por %p50_p2, %p49_p1 }
   0x7   : > { %s38_s21 = ssub.s32 %s1097_s18, %s1267_s20  ;;  %203 = sbr.rel (%p880_p5) target bundleno = 21 (0x15), region = 24 }
   0x8   : > { %p40_p4 = scmp.eq.s32.totalorder %s38_s21, 0 }
   0xa   : > { %s1164_s23 = scalar_select %p40_p4, %s1089_s16, %s42_s22  }
   0xc   : > { %206 = sbr.rel (!%p51_p3) target bundleno = 21 (0x15), region = 28  ;;  %s208_s24 = sand.u32 (%p51_p3), 1, %s1089_s16  }
   0xd   : > { %s929_s25 = smul.u32 (%p51_p3), 12, %s1097_s18 }
   0xe   : > { %s988_s26 = smul.u32 (%p51_p3), 48, %s208_s24 }
   0xf   : > { %s216_s29 = scalar_lea.vmem (%p51_p3), %s1257_s0, %s929_s25 }
  0x10   : > { %v231_v0 = vld [vmem:[%s216_s29] sm:$0xff] (%p51_p3)  ;;  %v235_v2 = vld [vmem:[%s216_s29 + $0x48] sm:$0xff] (%p51_p3)  ;;  %s210_s30 = scalar_lea.vmem (%p51_p3), [#allocation3], %s988_s26  ;;  %v886_v6 = vld [vmem:[%s216_s29 + $0x50] sm:$0xf] (%p51_p3) }
  0x11   : > { %v233_v1 = vld [vmem:[%s216_s29 + $0x24] sm:$0xff]  ;;  %232 = vst [vmem:[%s210_s30] sm:$0xff] %v231_v0  ;;  %236 = vst [vmem:[%s210_s30 + $0x18] sm:$0xff] %v235_v2  ;;  %v237_v3 = vld [vmem:[%s216_s29 + $0x6c] sm:$0xff] }
  0x12   : > { %234 = vst [vmem:[%s210_s30 + $0xc] sm:$0xff] %v233_v1  ;;  %v882_v4 = vld [vmem:[%s216_s29 + $0x8] sm:$0xf]  ;;  %v884_v5 = vld [vmem:[%s216_s29 + $0x2c] sm:$0xf]  ;;  %238 = vst [vmem:[%s210_s30 + $0x24] sm:$0xff] %v237_v3 }
  0x13   : > { %883 = vst [vmem:[%s210_s30 + $0x8] sm:$0xf] %v882_v4  ;;  %885 = vst [vmem:[%s210_s30 + $0x14] sm:$0xf] %v884_v5  ;;  %v888_v7 = vld [vmem:[%s216_s29 + $0x74] sm:$0xf] }
  0x14   : > { %887 = vst [vmem:[%s210_s30 + $0x20] sm:$0xf] %v886_v6  ;;  %889 = vst [vmem:[%s210_s30 + $0x2c] sm:$0xf] %v888_v7 }
  0x15 PF: > { %p890_p6 = scmp.ge.s32.totalorder %s1101_s19, 1  ;;  %p271_p7 = scmp.lt.s32.totalorder %s1101_s19, 4 }
  0x17   : > { %p272_p8 = pnand %p890_p6, %p271_p7 }
  0x18   : > { %s278_s5 = sand.u32 (!%p272_p8), 1, %s1085_s15   ;;  %s327_s6 = smul.u32 (!%p272_p8), 48, %s1093_s17 }
  0x19   : > { %275 = sbr.rel (%p272_p8) target bundleno = 299 (0x12b), region = 58  ;;  %p892_p10 = scmp.ne.s32.totalorder (!%p272_p8), %s1093_s17, 0 }
  0x1a   : > { %s989_s7 = smul.u32 (!%p272_p8), 48, %s278_s5  ;;  %p328_p9 = scmp.lt.s32.totalorder (!%p272_p8), %s327_s6, 143 }
  0x1c   : > { %s1181_s12 = scalar_lea.vmem (!%p272_p8), [#allocation3], %s989_s7 }
  0x1e   : > { %s1269_s6 = smov (!%p328_p9, %s327_s6), 143  ;;  %361 = sbr.rel (%p892_p10) target bundleno = 38 (0x26), region = 66 }
  0x1f   : > { %s891_s8 = sshll.u32 %s1269_s6, 2 }
  0x20   : > { %s1179_s11 = scalar_lea.vmem %s1258_s1, %s891_s8 }
  0x23   : > { %v1103_v8 = vmov 0.0  }
  0x24   : > { %362 = vst [vmem:[#allocation2 + $0x10] sm:$0xff] %v1103_v8  ;;  %363 = vst [vmem:[#allocation2] sm:$0xff] %v1103_v8 }
  0x25   : > { %364 = vst [vmem:[#allocation2 + $0x18] sm:$0xff] %v1103_v8  ;;  %365 = vst [vmem:[#allocation2 + $0x8] sm:$0xff] %v1103_v8 }
  0x26 PF: > { %v1031_v9 = vld [vmem:[%s1179_s11 + $0x78] sm:$0xff]   ;;  %v1034_v12 = vld [vmem:[%s1179_s11 + $0x70] sm:$0xff]   ;;  %v1037_v15 = vld [vmem:[%s1179_s11 + $0x68] sm:$0xff]   ;;  %p923_p11 = scmp.ne.s32.totalorder %s1093_s17, 2 }
  0x27   : > { %v1032_v10 = vld [vmem:[%s1179_s11 + $0x38] sm:$0xff]   ;;  %930 = vmatprep.subr.bf16.mxu0 %v1031_v9  ;;  %v1035_v13 = vld [vmem:[%s1179_s11 + $0x30] sm:$0xff]   ;;  %v1038_v16 = vld [vmem:[%s1179_s11 + $0x28] sm:$0xff]  }
  0x28   : > { %v1033_v11 = vld [vmem:[%s1179_s11 + $0xb8] sm:$0xff]   ;;  %931 = vmatpush3.bf16.msra.mxu0 %v1032_v10  ;;  %v1036_v14 = vld [vmem:[%s1179_s11 + $0xb0] sm:$0xff]   ;;  %v1039_v17 = vld [vmem:[%s1179_s11 + $0xa8] sm:$0xff]  }
  0x29   : > { %968 = vmatprep.subr.bf16.mxu1 %v1033_v11  ;;  %932 = vmatprep.subr.bf16.mxu0 %v1034_v12  ;;  %v1040_v18 = vld [vmem:[%s1179_s11 + $0x60] sm:$0xff]   ;;  %v1043_v21 = vld [vmem:[%s1179_s11 + $0x58] sm:$0xff]   ;;  %v1046_v24 = vld [vmem:[%s1179_s11 + $0x50] sm:$0xff]  }
  0x2a   : > { %969 = vmatpush3.bf16.msra.mxu1 %v1033_v11  ;;  %v1041_v19 = vld [vmem:[%s1179_s11 + $0x20] sm:$0xff]   ;;  %v1045_v22 = vld [vmem:[%s1179_s11 + $0x98] sm:$0xff]   ;;  %v1048_v25 = vld [vmem:[%s1179_s11 + $0x90] sm:$0xff]  }
  0x2b   : > { %970 = vmatprep.subr.bf16.mxu1 %v1036_v14  ;;  %v1042_v20 = vld [vmem:[%s1179_s11 + $0xa0] sm:$0xff]   ;;  %v1044_v23 = vld [vmem:[%s1179_s11 + $0x18] sm:$0xff]   ;;  %v1047_v26 = vld [vmem:[%s1179_s11 + $0x10] sm:$0xff]  }
  0x2c   : > { %933 = vmatpush3.bf16.msra.mxu0 %v1035_v13  ;;  %v1049_v27 = vld [vmem:[%s1179_s11 + $0x48] sm:$0xff]   ;;  %v1052_v30 = vld [vmem:[%s1179_s11 + $0x40] sm:$0xff]   ;;  %v366_v44 = vld [vmem:[#allocation2 + $0x10] sm:$0xff] }
  0x2d   : > { %934 = vmatprep.subr.bf16.mxu0 %v1037_v15  ;;  %v1050_v28 = vld [vmem:[%s1179_s11 + $0x8] sm:$0xff]   ;;  %v1054_v31 = vld [vmem:[%s1179_s11 + $0x80] sm:$0xff]   ;;  %v368_v58 = vld [vmem:[#allocation2 + $0x18] sm:$0xff] }
  0x2e   : > { %971 = vmatpush3.bf16.msra.mxu1 %v1036_v14  ;;  %v1051_v29 = vld [vmem:[%s1179_s11 + $0x88] sm:$0xff]   ;;  %v1057_v32 = vld [vmem:[%s1181_s12 + $0x4] ss:$12 sps:$4 sm:$0xff]  }
  0x2f   : > { %972 = vmatprep.subr.bf16.mxu1 %v1039_v17  ;;  %v1058_v33 = vld [vmem:[%s1181_s12 + $0x8] ss:$12 sps:$4 sm:$0xff]   ;;  %634 = vmatprep.mubr.bf16.mxu0 %v1057_v32  ;;  %v1055_v35 = vld [vmem:[%s1181_s12] ss:$12 sps:$4 sm:$0xff]   ;;  %v1062_v38 = vld [vmem:[%s1181_s12 + $0x18] ss:$12 sps:$4 sm:$0xff]  }
  0x30   : > { %935 = vmatpush3.bf16.msra.mxu0 %v1038_v16  ;;  %v1053_v34 = vld [vmem:[%s1179_s11] sm:$0xff]   ;;  %984 = vmatprep.mubr.bf16.mxu1 %v1058_v33  ;;  %v1060_v36 = vld [vmem:[%s1181_s12 + $0x1c] ss:$12 sps:$4 sm:$0xff]  }
  0x31   : > { %936 = vmatprep.subr.bf16.mxu0 %v1040_v18  ;;  %v1059_v37 = vld [vmem:[%s1181_s12 + $0x20] ss:$12 sps:$4 sm:$0xff]  }
  0x32   : > { %973 = vmatpush3.bf16.msra.mxu1 %v1039_v17  ;;  %v367_v52 = vld [vmem:[#allocation2] sm:$0xff]  ;;  %v369_v0 = vld [vmem:[#allocation2 + $0x8] sm:$0xff] }
  0x33   : > { %974 = vmatprep.subr.bf16.mxu1 %v1042_v20 }
  0x34   : > { %937 = vmatpush3.bf16.msra.mxu0 %v1041_v19 }
  0x35   : > { %938 = vmatprep.subr.bf16.mxu0 %v1043_v21 }
  0x36   : > { %975 = vmatpush3.bf16.msra.mxu1 %v1042_v20 }
  0x37   : > { %976 = vmatprep.subr.bf16.mxu1 %v1045_v22 }
  0x38   : > { %939 = vmatpush3.bf16.msra.mxu0 %v1044_v23 }
  0x39   : > { %940 = vmatprep.subr.bf16.mxu0 %v1046_v24 }
  0x3a   : > { %977 = vmatpush3.bf16.msra.mxu1 %v1045_v22 }
  0x3b   : > { %978 = vmatprep.subr.bf16.mxu1 %v1048_v25 }
  0x3c   : > { %941 = vmatpush3.bf16.msra.mxu0 %v1047_v26 }
  0x3d   : > { %942 = vmatprep.subr.bf16.mxu0 %v1049_v27 }
  0x3e   : > { %979 = vmatpush3.bf16.msra.mxu1 %v1048_v25 }
  0x3f   : > { %980 = vmatprep.subr.bf16.mxu1 %v1051_v29 }
  0x40   : > { %943 = vmatpush3.bf16.msra.mxu0 %v1050_v28 }
  0x41   : > { %944 = vmatprep.subr.bf16.mxu0 %v1052_v30 }
  0x42   : > { %981 = vmatpush3.bf16.msra.mxu1 %v1051_v29 }
  0x43   : > { %982 = vmatprep.subr.bf16.mxu1 %v1054_v31 }
  0x44   : > { %945 = vmatpush3.bf16.msra.mxu0 %v1053_v34 }
  0x46   : > { %983 = vmatpush3.bf16.msra.mxu1 %v1054_v31 }
  0x47   : > { %635 = vmatmul.mubr.bf16.vlgmr.msra.gmra.mxu0 %v1055_v35 }
  0x48   : > { %642 = vmatprep.mubr.bf16.mxu0 %v1060_v36 }
  0x49   : > { %985 = vmatmul.mubr.bf16.vlgmr.msra.gmra.mxu1 %v1059_v37 }
  0x4f   : > { %643 = vmatmul.mubr.bf16.gmra.mxu0 %v1062_v38 }
 0x107   : > { %v946_v39 = vpop.f32.mrf.mxu0 }
 0x109   : > { %v947_v40 = vpop.f32.mrf.mxu0  ;;  %v986_v41 = vpop.f32.mrf.mxu1 }
 0x10a   : > { %v948_v42 = vadd.f32 %v947_v40, %v946_v39 }
 0x10b   : > { %v949_v43 = vpop.f32.mrf.mxu0  ;;  %v685_v45 = vpop.f32.mrf.mxu1 }
 0x10c   : > { %v686_v46 = vadd.f32 %v948_v42, %v685_v45 }
 0x10d   : > { %v950_v47 = vpop.f32.mrf.mxu0  ;;  %v987_v48 = vpop.f32.mrf.mxu1 }
 0x10e   : > { %v700_v49 = vadd.f32 %v686_v46, %v366_v44  ;;  %v951_v50 = vadd.f32 %v950_v47, %v949_v43 }
 0x10f   : > { %v952_v51 = vpop.f32.mrf.mxu0  ;;  %v688_v53 = vpop.f32.mrf.mxu1 }
 0x110   : > { %704 = vst [vmem:[#allocation2 + $0x10] sm:$0xff] %v700_v49  ;;  %v689_v54 = vadd.f32 %v951_v50, %v688_v53 }
 0x111   : > { %v953_v55 = vpop.f32.mrf.mxu0 }
 0x112   : > { %v701_v56 = vadd.f32 %v689_v54, %v367_v52  ;;  %v954_v57 = vadd.f32 %v953_v55, %v952_v51 }
 0x113   : > { %v955_v59 = vpop.f32.mrf.mxu0 }
 0x114   : > { %705 = vst [vmem:[#allocation2] sm:$0xff] %v701_v56  ;;  %v694_v60 = vadd.f32 %v986_v41, %v954_v57 }
 0x115   : > { %v956_v61 = vpop.f32.mrf.mxu0 }
 0x116   : > { %v702_v62 = vadd.f32 %v694_v60, %v368_v58  ;;  %v957_v63 = vadd.f32 %v956_v61, %v955_v59 }
 0x118   : > { %706 = vst [vmem:[#allocation2 + $0x18] sm:$0xff] %v702_v62  ;;  %v697_v1 = vadd.f32 %v987_v48, %v957_v63  ;;  %711 = sbr.rel (%p923_p11) target bundleno = 299 (0x12b), region = 70 }
 0x11a   : > { %v703_v2 = vadd.f32 %v697_v1, %v369_v0 }
 0x11c   : > { %707 = vst [vmem:[#allocation2 + $0x8] sm:$0xff] %v703_v2 }
 0x11d   : > { %v712_v3 = vld [vmem:[#allocation2 + $0x10] sm:$0xff]  ;;  %v924_v4 = vld [vmem:[%s1259_s2] ss:$0 sm:$0xff]  ;;  %v728_v8 = vld [vmem:[%s1260_s3 + $0x8] sm:$0xff] }
 0x11e   : > { %v727_v5 = vld [vmem:[%s1260_s3] sm:$0xff]  ;;  %v723_v6 = vadd.f32 %v924_v4, %v712_v3  ;;  %v729_v12 = vld [vmem:[%s1260_s3 + $0x10] sm:$0xff]  ;;  %v730_v14 = vld [vmem:[%s1260_s3 + $0x18] sm:$0xff] }
 0x11f   : > { %v713_v7 = vld [vmem:[#allocation2] sm:$0xff]  ;;  %v714_v9 = vld [vmem:[#allocation2 + $0x18] sm:$0xff] }
 0x120   : > { %v724_v10 = vadd.f32 %v924_v4, %v713_v7  ;;  %v725_v11 = vadd.f32 %v924_v4, %v714_v9  ;;  %v731_v15 = vadd.f32 %v727_v5, %v723_v6 }
 0x122   : > { %v732_v17 = vadd.f32 %v728_v8, %v724_v10  ;;  %v733_v18 = vadd.f32 %v729_v12, %v725_v11  ;;  %v735_v19 = vmax.f32 %v731_v15, 0.0 }
 0x123   : > { %v715_v13 = vld [vmem:[#allocation2 + $0x8] sm:$0xff] }
 0x124   : > { %v726_v16 = vadd.f32 %v924_v4, %v715_v13  ;;  %v736_v21 = vmax.f32 %v732_v17, 0.0  ;;  %v737_v22 = vmax.f32 %v733_v18, 0.0  ;;  %739 = vst [vmem:[%s1261_s4] sm:$0xff] %v735_v19 }
 0x126   : > { %v734_v20 = vadd.f32 %v730_v14, %v726_v16  ;;  %740 = vst [vmem:[%s1261_s4 + $0x8] sm:$0xff] %v736_v21  ;;  %741 = vst [vmem:[%s1261_s4 + $0x10] sm:$0xff] %v737_v22 }
 0x128   : > { %v738_v23 = vmax.f32 %v734_v20, 0.0 }
 0x12a   : > { %742 = vst [vmem:[%s1261_s4 + $0x18] sm:$0xff] %v738_v23 }
 0x12b PF: > { %s14_s19 = sadd.s32 1, %s1101_s19   ;;  %s1262_s15 = smov %s1089_s16 }
 0x12c   : > { %p11_p12 = scmp.ge.s32.totalorder %s14_s19, 5   ;;  %s1263_s16 = smov %s1164_s23 }
 0x12d   : > { %s1264_s17 = smov %s1097_s18  ;;  %s1265_s18 = smov %s1267_s20 }
 0x12e   :  { %13 = sbr.rel (!%p11_p12) target bundleno = 3 (0x3), region = 120 }

// kernel: _lambda_.33
= control target key start
LH: loop header
LB: loop body
LE: loop exit
PB: predicated region body
PF: predicated region fallthrough
CT: control target
= control target key end

     0   :  { %s1027_s12 = smov 0   ;;  %s1029_s13 = smov 0   ;;  %s1129_s0 = inlined_call_operand.vmem [shape: bf16[8,1152], index: 0, kind: input, shape index: {}]   ;;  %s1130_s1 = inlined_call_operand.vmem [shape: bf16[1152,256], index: 1, kind: input, shape index: {}]   ;;  %s1131_s2 = inlined_call_operand.vmem [shape: f32[1,256], index: 2, kind: input, shape index: {}]   ;;  %s1132_s3 = inlined_call_operand.vmem [shape: f32[8,256], index: 3, kind: output, shape index: {}]  }
   0x1   :  { %s1031_s14 = smov 0  }
   0x2 LB: > { %s25_s15 = sadd.s32 1, %s999_s13  ;;  %p818_p0 = scmp.ge.s32.totalorder %s1003_s14, 1  ;;  %s1003_s14 = sphi %s1031_s14, %s13_s14   ;;  %s999_s13 = sphi %s1029_s13, %s1134_s13   ;;  %s995_s12 = sphi %s1027_s12, %s1133_s12  }
   0x3   : > { %p26_p1 = scmp.ge.s32.totalorder %s25_s15, 3  ;;  %p194_p2 = scmp.lt.s32.totalorder %s1003_s14, 4 }
   0x5   : > { %s1136_s15 = smov (%p26_p1, %s25_s15), 0  ;;  %p195_p3 = pnand %p818_p0, %p194_p2 }
   0x6   : > { %s240_s16 = smul.u32 (!%p195_p3), 3, %s995_s12  ;;  %p822_p6 = scmp.ne.s32.totalorder (!%p195_p3), %s995_s12, 0 }
   0x7   : > { %198 = sbr.rel (%p195_p3) target bundleno = 300 (0x12c), region = 32 }
   0x8   : > { %s250_s17 = smul.u32 (!%p195_p3), 48, %s995_s12  ;;  %p243_p4 = scmp.lt.s32.totalorder (!%p195_p3), %s240_s16, 8 }
   0xa   : > { %p252_p5 = scmp.lt.s32.totalorder (!%p195_p3), %s250_s17, 143 }
   0xc   : > { %s1138_s16 = smov (!%p243_p4, %s240_s16), 8  ;;  %s1140_s17 = smov (!%p252_p5, %s250_s17), 143 }
   0xd   : > { %s819_s18 = sshll.u32 %s1138_s16, 2  ;;  %s879_s22 = sshll.u32 %s1140_s17, 3 }
   0xe   : > { %s1052_s21 = scalar_lea.vmem %s1129_s0, %s819_s18  ;;  %s1057_s25 = scalar_lea.vmem %s1130_s1, %s879_s22 }
   0xf   : > { %281 = sbr.rel (%p822_p6) target bundleno = 22 (0x16), region = 36 }
  0x14   : > { %v1005_v0 = vmov 0.0  }
  0x15   : > { %282 = vst [vmem:[#allocation2] sm:$0xff] %v1005_v0  ;;  %283 = vst [vmem:[#allocation2 + $0x8] sm:$0xff] %v1005_v0 }
  0x16 PF: > { %v906_v1 = vld [vmem:[%s1057_s25 + $0x74] ss:$8 sps:$4 sm:$0xff]   ;;  %v908_v2 = vld [vmem:[%s1057_s25 + $0x70] ss:$8 sps:$4 sm:$0xff]   ;;  %v1006_v3 = vmov 0   ;;  %v286_v34 = vld [vmem:[%s1052_s21] sm:$0xff] }
  0x17   : > { %660 = vmatprep.mubr.bf16.mxu1 %v1006_v3  ;;  %587 = vmatprep.subr.bf16.mxu0 %v906_v1  ;;  %v909_v4 = vld [vmem:[%s1057_s25 + $0x64] ss:$8 sps:$4 sm:$0xff]   ;;  %v911_v5 = vld [vmem:[%s1057_s25 + $0x60] ss:$8 sps:$4 sm:$0xff]   ;;  %v912_v6 = vld [vmem:[%s1057_s25 + $0x54] ss:$8 sps:$4 sm:$0xff]   ;;  %v824_v36 = vcombine.high %v286_v34, %v286_v34  ;;  %v823_v53 = vcombine.low %v286_v34, %v286_v34 }
  0x18   : > { %588 = vmatpush1.bf16.msra.mxu0 %v908_v2  ;;  %v914_v7 = vld [vmem:[%s1057_s25 + $0x50] ss:$8 sps:$4 sm:$0xff]   ;;  %v915_v8 = vld [vmem:[%s1057_s25 + $0x44] ss:$8 sps:$4 sm:$0xff]   ;;  %v927_v9 = vld [vmem:[%s1057_s25 + $0x174] ss:$8 sps:$4 sm:$0xff]  }
  0x19   : > { %589 = vmatprep.subr.bf16.mxu0 %v909_v4  ;;  %v929_v10 = vld [vmem:[%s1057_s25 + $0x170] ss:$8 sps:$4 sm:$0xff]   ;;  %v917_v11 = vld [vmem:[%s1057_s25 + $0x40] ss:$8 sps:$4 sm:$0xff]   ;;  %v918_v12 = vld [vmem:[%s1057_s25 + $0x34] ss:$8 sps:$4 sm:$0xff]   ;;  %628 = vmatprep.subr.bf16.mxu1 %v927_v9 }
  0x1a   : > { %v933_v13 = vld [vmem:[%s1057_s25 + $0x164] ss:$8 sps:$4 sm:$0xff]   ;;  %629 = vmatpush1.bf16.msra.mxu1 %v929_v10  ;;  %v935_v14 = vld [vmem:[%s1057_s25 + $0x160] ss:$8 sps:$4 sm:$0xff]   ;;  %v920_v15 = vld [vmem:[%s1057_s25 + $0x30] ss:$8 sps:$4 sm:$0xff]   ;;  %619 = vmatprep.mubr.bf16.mxu0 %v824_v36 }
  0x1b   : > { %630 = vmatprep.subr.bf16.mxu1 %v933_v13  ;;  %v939_v16 = vld [vmem:[%s1057_s25 + $0x154] ss:$8 sps:$4 sm:$0xff]   ;;  %v921_v17 = vld [vmem:[%s1057_s25 + $0x24] ss:$8 sps:$4 sm:$0xff]   ;;  %v941_v18 = vld [vmem:[%s1057_s25 + $0x150] ss:$8 sps:$4 sm:$0xff]  }
  0x1c   : > { %590 = vmatpush1.bf16.msra.mxu0 %v911_v5  ;;  %v945_v19 = vld [vmem:[%s1057_s25 + $0x144] ss:$8 sps:$4 sm:$0xff]   ;;  %v923_v20 = vld [vmem:[%s1057_s25 + $0x20] ss:$8 sps:$4 sm:$0xff]   ;;  %v924_v21 = vld [vmem:[%s1057_s25 + $0x14] ss:$8 sps:$4 sm:$0xff]  }
  0x1d   : > { %591 = vmatprep.subr.bf16.mxu0 %v912_v6  ;;  %v947_v22 = vld [vmem:[%s1057_s25 + $0x140] ss:$8 sps:$4 sm:$0xff]   ;;  %v951_v23 = vld [vmem:[%s1057_s25 + $0x134] ss:$8 sps:$4 sm:$0xff]   ;;  %v926_v24 = vld [vmem:[%s1057_s25 + $0x10] ss:$8 sps:$4 sm:$0xff]  }
  0x1e   : > { %631 = vmatpush1.bf16.msra.mxu1 %v935_v14  ;;  %v930_v25 = vld [vmem:[%s1057_s25 + $0x4] ss:$8 sps:$4 sm:$0xff]   ;;  %v953_v26 = vld [vmem:[%s1057_s25 + $0x130] ss:$8 sps:$4 sm:$0xff]   ;;  %v932_v28 = vld [vmem:[%s1057_s25] ss:$8 sps:$4 sm:$0xff]  }
  0x1f   : > { %632 = vmatprep.subr.bf16.mxu1 %v939_v16  ;;  %v957_v27 = vld [vmem:[%s1057_s25 + $0x124] ss:$8 sps:$4 sm:$0xff]   ;;  %v936_v29 = vld [vmem:[%s1057_s25 + $0xf4] ss:$8 sps:$4 sm:$0xff]   ;;  %v959_v30 = vld [vmem:[%s1057_s25 + $0x120] ss:$8 sps:$4 sm:$0xff]  }
  0x20   : > { %592 = vmatpush1.bf16.msra.mxu0 %v914_v7  ;;  %v963_v31 = vld [vmem:[%s1057_s25 + $0x114] ss:$8 sps:$4 sm:$0xff]   ;;  %v938_v32 = vld [vmem:[%s1057_s25 + $0xf0] ss:$8 sps:$4 sm:$0xff]   ;;  %v942_v33 = vld [vmem:[%s1057_s25 + $0xe4] ss:$8 sps:$4 sm:$0xff]  }
  0x21   : > { %593 = vmatprep.subr.bf16.mxu0 %v915_v8  ;;  %v965_v35 = vld [vmem:[%s1057_s25 + $0x110] ss:$8 sps:$4 sm:$0xff]   ;;  %v969_v37 = vld [vmem:[%s1057_s25 + $0x104] ss:$8 sps:$4 sm:$0xff]   ;;  %v944_v38 = vld [vmem:[%s1057_s25 + $0xe0] ss:$8 sps:$4 sm:$0xff]  }
  0x22   : > { %633 = vmatpush1.bf16.msra.mxu1 %v941_v18  ;;  %v948_v39 = vld [vmem:[%s1057_s25 + $0xd4] ss:$8 sps:$4 sm:$0xff]   ;;  %v971_v40 = vld [vmem:[%s1057_s25 + $0x100] ss:$8 sps:$4 sm:$0xff]   ;;  %v950_v41 = vld [vmem:[%s1057_s25 + $0xd0] ss:$8 sps:$4 sm:$0xff]  }
  0x23   : > { %634 = vmatprep.subr.bf16.mxu1 %v945_v19  ;;  %v954_v42 = vld [vmem:[%s1057_s25 + $0xc4] ss:$8 sps:$4 sm:$0xff]   ;;  %v975_v43 = vld [vmem:[%s1052_s21 + $0x8] ss:$0 sps:$4 sm:$0xff]   ;;  %v960_v45 = vld [vmem:[%s1057_s25 + $0xb4] ss:$8 sps:$4 sm:$0xff]  }
  0x24   : > { %594 = vmatpush1.bf16.msra.mxu0 %v917_v11  ;;  %v956_v44 = vld [vmem:[%s1057_s25 + $0xc0] ss:$8 sps:$4 sm:$0xff]   ;;  %v962_v46 = vld [vmem:[%s1057_s25 + $0xb0] ss:$8 sps:$4 sm:$0xff]   ;;  %v966_v47 = vld [vmem:[%s1057_s25 + $0xa4] ss:$8 sps:$4 sm:$0xff]  }
  0x25   : > { %595 = vmatprep.subr.bf16.mxu0 %v918_v12  ;;  %v968_v48 = vld [vmem:[%s1057_s25 + $0xa0] ss:$8 sps:$4 sm:$0xff]   ;;  %v972_v49 = vld [vmem:[%s1057_s25 + $0x94] ss:$8 sps:$4 sm:$0xff]   ;;  %v974_v50 = vld [vmem:[%s1057_s25 + $0x90] ss:$8 sps:$4 sm:$0xff]  }
  0x26   : > { %635 = vmatpush1.bf16.msra.mxu1 %v947_v22  ;;  %v976_v51 = vld [vmem:[%s1057_s25 + $0x84] ss:$8 sps:$4 sm:$0xff]   ;;  %v978_v52 = vld [vmem:[%s1057_s25 + $0x80] ss:$8 sps:$4 sm:$0xff]   ;;  %p874_p7 = scmp.ne.s32.totalorder %s995_s12, 2 }
  0x27   : > { %636 = vmatprep.subr.bf16.mxu1 %v951_v23  ;;  %v284_v58 = vld [vmem:[#allocation2] sm:$0xff]  ;;  %v285_v61 = vld [vmem:[#allocation2 + $0x8] sm:$0xff] }
  0x28   : > { %596 = vmatpush1.bf16.msra.mxu0 %v920_v15 }
  0x29   : > { %597 = vmatprep.subr.bf16.mxu0 %v921_v17 }
  0x2a   : > { %637 = vmatpush1.bf16.msra.mxu1 %v953_v26 }
  0x2b   : > { %638 = vmatprep.subr.bf16.mxu1 %v957_v27 }
  0x2c   : > { %598 = vmatpush1.bf16.msra.mxu0 %v923_v20 }
  0x2d   : > { %599 = vmatprep.subr.bf16.mxu0 %v924_v21 }
  0x2e   : > { %639 = vmatpush1.bf16.msra.mxu1 %v959_v30 }
  0x2f   : > { %640 = vmatprep.subr.bf16.mxu1 %v963_v31 }
  0x30   : > { %600 = vmatpush1.bf16.msra.mxu0 %v926_v24 }
  0x31   : > { %601 = vmatprep.subr.bf16.mxu0 %v930_v25 }
  0x32   : > { %641 = vmatpush1.bf16.msra.mxu1 %v965_v35 }
  0x33   : > { %642 = vmatprep.subr.bf16.mxu1 %v969_v37 }
  0x34   : > { %602 = vmatpush1.bf16.msra.mxu0 %v932_v28 }
  0x35   : > { %603 = vmatprep.subr.bf16.mxu0 %v936_v29 }
  0x36   : > { %643 = vmatpush1.bf16.msra.mxu1 %v971_v40 }
  0x38   : > { %604 = vmatpush2.bf16.msra.mxu0 %v938_v32 }
  0x39   : > { %605 = vmatprep.subr.bf16.mxu0 %v942_v33  ;;  %661 = vmatmul.mubr.bf16.vlgmr.msra.gmra.mxu1 %v975_v43 }
  0x3c   : > { %606 = vmatpush2.bf16.msra.mxu0 %v944_v38 }
  0x3d   : > { %607 = vmatprep.subr.bf16.mxu0 %v948_v39 }
  0x40   : > { %608 = vmatpush2.bf16.msra.mxu0 %v950_v41 }
  0x41   : > { %609 = vmatprep.subr.bf16.mxu0 %v954_v42 }
  0x44   : > { %610 = vmatpush2.bf16.msra.mxu0 %v956_v44 }
  0x45   : > { %611 = vmatprep.subr.bf16.mxu0 %v960_v45 }
  0x48   : > { %612 = vmatpush2.bf16.msra.mxu0 %v962_v46 }
  0x49   : > { %613 = vmatprep.subr.bf16.mxu0 %v966_v47 }
  0x4c   : > { %614 = vmatpush2.bf16.msra.mxu0 %v968_v48 }
  0x4d   : > { %615 = vmatprep.subr.bf16.mxu0 %v972_v49 }
  0x50   : > { %616 = vmatpush2.bf16.msra.mxu0 %v974_v50 }
  0x51   : > { %617 = vmatprep.subr.bf16.mxu0 %v976_v51 }
  0x54   : > { %618 = vmatpush2.bf16.msra.mxu0 %v978_v52 }
  0x57   : > { %620 = vmatmul.mubr.bf16.vlgmr.msra.gmra.mxu0 %v823_v53 }
  0xf9   : > { %v662_v54 = vpop.f32.mrf.mxu1 }
  0xfb   : > { %v664_v55 = vpop.f32.mrf.mxu1 }
  0xfd   : > { %v666_v56 = vpop.f32.mrf.mxu1 }
  0xff   : > { %v667_v57 = vpop.f32.mrf.mxu1 }
 0x117   : > { %v621_v59 = vpop.f32.mrf.mxu0 }
 0x118   : > { %v663_v60 = vadd.f32 %v662_v54, %v621_v59 }
 0x119   : > { %v623_v62 = vpop.f32.mrf.mxu0 }
 0x11a   : > { %v669_v63 = vadd.f32 %v663_v60, %v284_v58  ;;  %v665_v0 = vadd.f32 %v664_v55, %v623_v62  ;;  %676 = sbr.rel (%p874_p7) target bundleno = 300 (0x12c), region = 40 }
 0x11b   : > { %v625_v1 = vpop.f32.mrf.mxu0 }
 0x11c   : > { %671 = vst [vmem:[#allocation2] sm:$0xff] %v669_v63  ;;  %v670_v2 = vadd.f32 %v665_v0, %v285_v61 }
 0x11d   : > { %v626_v3 = vpop.f32.mrf.mxu0 }
 0x11e   : > { %672 = vst [vmem:[#allocation2 + $0x8] sm:$0xff] %v670_v2 }
 0x11f   : > { %v681_v4 = vlaneseq  ;;  %v679_v6 = vld [vmem:[%s1131_s2] sm:$0x3] }
 0x121   : > { %v682_v5 = vshrl.u32 %v681_v4, 7 }
 0x123   : > { %v683_v7 = vsub.s32 0, %v682_v5  ;;  %v687_v8 = vsub.s32 1, %v682_v5  ;;  %v677_v9 = vld [vmem:[#allocation2] sm:$0xff] }
 0x125   : > { %v678_v10 = vld [vmem:[#allocation2 + $0x8] sm:$0xff]  ;;  %v684_v11 = vrot.slane %v679_v6, %v683_v7  ;;  %v688_v12 = vrot.slane %v679_v6, %v687_v8 }
 0x127   : > { %v691_v13 = vadd.f32 %v684_v11, %v677_v9  ;;  %v692_v14 = vadd.f32 %v688_v12, %v678_v10 }
 0x129   : > { %v693_v15 = vmax.f32 %v691_v13, 0.0  ;;  %v694_v16 = vmax.f32 %v692_v14, 0.0 }
 0x12b   : > { %695 = vst [vmem:[%s1132_s3] sm:$0xff] %v693_v15  ;;  %696 = vst [vmem:[%s1132_s3 + $0x8] sm:$0xff] %v694_v16 }
 0x12c PF: > { %s13_s14 = sadd.s32 1, %s1003_s14   ;;  %s1133_s12 = smov %s999_s13 }
 0x12d   : > { %p10_p8 = scmp.ge.s32.totalorder %s13_s14, 5   ;;  %s1134_s13 = smov %s1136_s15 }
 0x12f   :  { %12 = sbr.rel (!%p10_p8) target bundleno = 2 (0x2), region = 76 }

// kernel: _lambda_.32
= control target key start
LH: loop header
LB: loop body
LE: loop exit
PB: predicated region body
PF: predicated region fallthrough
CT: control target
= control target key end

     0   :  { %v231_v1 = vmov 0   ;;  %v172_v18 = vlaneseq  ;;  %s312_s1 = inlined_call_operand.vmem [shape: bf16[128,256], index: 1, kind: input, shape index: {}]   ;;  %s313_s0 = inlined_call_operand.vmem [shape: bf16[8,128], index: 0, kind: input, shape index: {}]   ;;  %s314_s2 = inlined_call_operand.vmem [shape: f32[1,256], index: 2, kind: input, shape index: {}]   ;;  %s315_s3 = inlined_call_operand.vmem [shape: f32[8,256], index: 3, kind: output, shape index: {}]  }
   0x1   :  { %v207_v0 = vld [vmem:[%s312_s1 + $0x74] ss:$8 sps:$4 sm:$0xff]   ;;  %152 = vmatprep.mubr.bf16.mxu0 %v231_v1  ;;  %v209_v2 = vld [vmem:[%s312_s1 + $0x70] ss:$8 sps:$4 sm:$0xff]   ;;  %v210_v3 = vld [vmem:[%s312_s1 + $0x64] ss:$8 sps:$4 sm:$0xff]  }
   0x2   :  { %120 = vmatprep.subr.bf16.mxu0 %v207_v0  ;;  %v212_v4 = vld [vmem:[%s312_s1 + $0x60] ss:$8 sps:$4 sm:$0xff]   ;;  %v213_v5 = vld [vmem:[%s312_s1 + $0x54] ss:$8 sps:$4 sm:$0xff]   ;;  %v215_v6 = vld [vmem:[%s312_s1 + $0x50] ss:$8 sps:$4 sm:$0xff]  }
   0x3   :  { %121 = vmatpush1.bf16.msra.mxu0 %v209_v2  ;;  %v216_v7 = vld [vmem:[%s312_s1 + $0x44] ss:$8 sps:$4 sm:$0xff]   ;;  %v218_v8 = vld [vmem:[%s312_s1 + $0x40] ss:$8 sps:$4 sm:$0xff]   ;;  %v219_v9 = vld [vmem:[%s312_s1 + $0x34] ss:$8 sps:$4 sm:$0xff]  }
   0x4   :  { %122 = vmatprep.subr.bf16.mxu0 %v210_v3  ;;  %v221_v10 = vld [vmem:[%s312_s1 + $0x30] ss:$8 sps:$4 sm:$0xff]   ;;  %v222_v11 = vld [vmem:[%s312_s1 + $0x24] ss:$8 sps:$4 sm:$0xff]   ;;  %v224_v12 = vld [vmem:[%s312_s1 + $0x20] ss:$8 sps:$4 sm:$0xff]  }
   0x5   :  { %v225_v13 = vld [vmem:[%s312_s1 + $0x14] ss:$8 sps:$4 sm:$0xff]   ;;  %v227_v14 = vld [vmem:[%s312_s1 + $0x10] ss:$8 sps:$4 sm:$0xff]   ;;  %v228_v15 = vld [vmem:[%s312_s1 + $0x4] ss:$8 sps:$4 sm:$0xff]  }
   0x6   :  { %v230_v16 = vld [vmem:[%s312_s1] ss:$8 sps:$4 sm:$0xff]   ;;  %v173_v19 = vshrl.u32 %v172_v18, 7 }
   0x7   :  { %123 = vmatpush1.bf16.msra.mxu0 %v212_v4  ;;  %v23_v17 = vld [vmem:[%s313_s0] sm:$0xf] }
   0x8   :  { %124 = vmatprep.subr.bf16.mxu0 %v213_v5  ;;  %v174_v20 = vsub.s32 0, %v173_v19  ;;  %v170_v21 = vld [vmem:[%s314_s2] sm:$0x3]  ;;  %v178_v22 = vsub.s32 1, %v173_v19 }
   0xa   :  { %v175_v23 = vrot.slane %v170_v21, %v174_v20  ;;  %v179_v24 = vrot.slane %v170_v21, %v178_v22 }
   0xb   :  { %125 = vmatpush1.bf16.msra.mxu0 %v215_v6 }
   0xc   :  { %126 = vmatprep.subr.bf16.mxu0 %v216_v7 }
   0xf   :  { %127 = vmatpush1.bf16.msra.mxu0 %v218_v8 }
  0x10   :  { %128 = vmatprep.subr.bf16.mxu0 %v219_v9 }
  0x13   :  { %129 = vmatpush1.bf16.msra.mxu0 %v221_v10 }
  0x14   :  { %130 = vmatprep.subr.bf16.mxu0 %v222_v11 }
  0x17   :  { %131 = vmatpush1.bf16.msra.mxu0 %v224_v12 }
  0x18   :  { %132 = vmatprep.subr.bf16.mxu0 %v225_v13 }
  0x1b   :  { %133 = vmatpush1.bf16.msra.mxu0 %v227_v14 }
  0x1c   :  { %134 = vmatprep.subr.bf16.mxu0 %v228_v15 }
  0x1f   :  { %135 = vmatpush1.bf16.msra.mxu0 %v230_v16 }
  0x22   :  { %153 = vmatmul.mubr.bf16.vlgmr.msra.gmra.mxu0 %v23_v17 }
  0xe2   :  { %v154_v25 = vpop.f32.mrf.mxu0 }
  0xe3   :  { %v182_v26 = vadd.f32 %v175_v23, %v154_v25 }
  0xe4   :  { %v156_v27 = vpop.f32.mrf.mxu0 }
  0xe5   :  { %184 = vst [vmem:[%s315_s3] sm:$0xff] %v182_v26  ;;  %v183_v28 = vadd.f32 %v179_v24, %v156_v27 }
  0xe6   :  { %v158_v29 = vpop.f32.mrf.mxu0 }
  0xe7   :  { %185 = vst [vmem:[%s315_s3 + $0x8] sm:$0xff] %v183_v28 }
  0xe8   :  { %v159_v30 = vpop.f32.mrf.mxu0 }

// kernel: _lambda_.35
= control target key start
LH: loop header
LB: loop body
LE: loop exit
PB: predicated region body
PF: predicated region fallthrough
CT: control target
= control target key end

     0   :  { %s1027_s12 = smov 0   ;;  %s1029_s13 = smov 0   ;;  %s1129_s0 = inlined_call_operand.vmem [shape: bf16[8,2304], index: 0, kind: input, shape index: {}]   ;;  %s1130_s1 = inlined_call_operand.vmem [shape: bf16[2304,256], index: 1, kind: input, shape index: {}]   ;;  %s1131_s2 = inlined_call_operand.vmem [shape: f32[1,256], index: 2, kind: input, shape index: {}]   ;;  %s1132_s3 = inlined_call_operand.vmem [shape: f32[8,256], index: 3, kind: output, shape index: {}]  }
   0x1   :  { %s1031_s14 = smov 0  }
   0x2 LB: > { %s25_s15 = sadd.s32 1, %s999_s13  ;;  %p818_p0 = scmp.ge.s32.totalorder %s1003_s14, 1  ;;  %s1003_s14 = sphi %s1031_s14, %s13_s14   ;;  %s999_s13 = sphi %s1029_s13, %s1134_s13   ;;  %s995_s12 = sphi %s1027_s12, %s1133_s12  }
   0x3   : > { %p26_p1 = scmp.ge.s32.totalorder %s25_s15, 6  ;;  %p194_p2 = scmp.lt.s32.totalorder %s1003_s14, 7 }
   0x5   : > { %s1136_s15 = smov (%p26_p1, %s25_s15), 0  ;;  %p195_p3 = pnand %p818_p0, %p194_p2 }
   0x6   : > { %s240_s16 = smul.u32 (!%p195_p3), 3, %s995_s12  ;;  %p822_p6 = scmp.ne.s32.totalorder (!%p195_p3), %s995_s12, 0 }
   0x7   : > { %198 = sbr.rel (%p195_p3) target bundleno = 300 (0x12c), region = 32 }
   0x8   : > { %s250_s17 = smul.u32 (!%p195_p3), 48, %s995_s12  ;;  %p243_p4 = scmp.lt.s32.totalorder (!%p195_p3), %s240_s16, 17 }
   0xa   : > { %p252_p5 = scmp.lt.s32.totalorder (!%p195_p3), %s250_s17, 287 }
   0xc   : > { %s1138_s16 = smov (!%p243_p4, %s240_s16), 17  ;;  %s1140_s17 = smov (!%p252_p5, %s250_s17), 287 }
   0xd   : > { %s819_s18 = sshll.u32 %s1138_s16, 2  ;;  %s879_s22 = sshll.u32 %s1140_s17, 3 }
   0xe   : > { %s1052_s21 = scalar_lea.vmem %s1129_s0, %s819_s18  ;;  %s1057_s25 = scalar_lea.vmem %s1130_s1, %s879_s22 }
   0xf   : > { %281 = sbr.rel (%p822_p6) target bundleno = 22 (0x16), region = 36 }
  0x14   : > { %v1005_v0 = vmov 0.0  }
  0x15   : > { %282 = vst [vmem:[#allocation2] sm:$0xff] %v1005_v0  ;;  %283 = vst [vmem:[#allocation2 + $0x8] sm:$0xff] %v1005_v0 }
  0x16 PF: > { %v906_v1 = vld [vmem:[%s1057_s25 + $0x74] ss:$8 sps:$4 sm:$0xff]   ;;  %v908_v2 = vld [vmem:[%s1057_s25 + $0x70] ss:$8 sps:$4 sm:$0xff]   ;;  %v1006_v3 = vmov 0   ;;  %v286_v34 = vld [vmem:[%s1052_s21] sm:$0xff] }
  0x17   : > { %660 = vmatprep.mubr.bf16.mxu1 %v1006_v3  ;;  %587 = vmatprep.subr.bf16.mxu0 %v906_v1  ;;  %v909_v4 = vld [vmem:[%s1057_s25 + $0x64] ss:$8 sps:$4 sm:$0xff]   ;;  %v911_v5 = vld [vmem:[%s1057_s25 + $0x60] ss:$8 sps:$4 sm:$0xff]   ;;  %v912_v6 = vld [vmem:[%s1057_s25 + $0x54] ss:$8 sps:$4 sm:$0xff]   ;;  %v824_v36 = vcombine.high %v286_v34, %v286_v34  ;;  %v823_v53 = vcombine.low %v286_v34, %v286_v34 }
  0x18   : > { %588 = vmatpush1.bf16.msra.mxu0 %v908_v2  ;;  %v914_v7 = vld [vmem:[%s1057_s25 + $0x50] ss:$8 sps:$4 sm:$0xff]   ;;  %v915_v8 = vld [vmem:[%s1057_s25 + $0x44] ss:$8 sps:$4 sm:$0xff]   ;;  %v927_v9 = vld [vmem:[%s1057_s25 + $0x174] ss:$8 sps:$4 sm:$0xff]  }
  0x19   : > { %589 = vmatprep.subr.bf16.mxu0 %v909_v4  ;;  %v929_v10 = vld [vmem:[%s1057_s25 + $0x170] ss:$8 sps:$4 sm:$0xff]   ;;  %v917_v11 = vld [vmem:[%s1057_s25 + $0x40] ss:$8 sps:$4 sm:$0xff]   ;;  %v918_v12 = vld [vmem:[%s1057_s25 + $0x34] ss:$8 sps:$4 sm:$0xff]   ;;  %628 = vmatprep.subr.bf16.mxu1 %v927_v9 }
  0x1a   : > { %v933_v13 = vld [vmem:[%s1057_s25 + $0x164] ss:$8 sps:$4 sm:$0xff]   ;;  %629 = vmatpush1.bf16.msra.mxu1 %v929_v10  ;;  %v935_v14 = vld [vmem:[%s1057_s25 + $0x160] ss:$8 sps:$4 sm:$0xff]   ;;  %v920_v15 = vld [vmem:[%s1057_s25 + $0x30] ss:$8 sps:$4 sm:$0xff]   ;;  %619 = vmatprep.mubr.bf16.mxu0 %v824_v36 }
  0x1b   : > { %630 = vmatprep.subr.bf16.mxu1 %v933_v13  ;;  %v939_v16 = vld [vmem:[%s1057_s25 + $0x154] ss:$8 sps:$4 sm:$0xff]   ;;  %v921_v17 = vld [vmem:[%s1057_s25 + $0x24] ss:$8 sps:$4 sm:$0xff]   ;;  %v941_v18 = vld [vmem:[%s1057_s25 + $0x150] ss:$8 sps:$4 sm:$0xff]  }
  0x1c   : > { %590 = vmatpush1.bf16.msra.mxu0 %v911_v5  ;;  %v945_v19 = vld [vmem:[%s1057_s25 + $0x144] ss:$8 sps:$4 sm:$0xff]   ;;  %v923_v20 = vld [vmem:[%s1057_s25 + $0x20] ss:$8 sps:$4 sm:$0xff]   ;;  %v924_v21 = vld [vmem:[%s1057_s25 + $0x14] ss:$8 sps:$4 sm:$0xff]  }
  0x1d   : > { %591 = vmatprep.subr.bf16.mxu0 %v912_v6  ;;  %v947_v22 = vld [vmem:[%s1057_s25 + $0x140] ss:$8 sps:$4 sm:$0xff]   ;;  %v951_v23 = vld [vmem:[%s1057_s25 + $0x134] ss:$8 sps:$4 sm:$0xff]   ;;  %v926_v24 = vld [vmem:[%s1057_s25 + $0x10] ss:$8 sps:$4 sm:$0xff]  }
  0x1e   : > { %631 = vmatpush1.bf16.msra.mxu1 %v935_v14  ;;  %v930_v25 = vld [vmem:[%s1057_s25 + $0x4] ss:$8 sps:$4 sm:$0xff]   ;;  %v953_v26 = vld [vmem:[%s1057_s25 + $0x130] ss:$8 sps:$4 sm:$0xff]   ;;  %v932_v28 = vld [vmem:[%s1057_s25] ss:$8 sps:$4 sm:$0xff]  }
  0x1f   : > { %632 = vmatprep.subr.bf16.mxu1 %v939_v16  ;;  %v957_v27 = vld [vmem:[%s1057_s25 + $0x124] ss:$8 sps:$4 sm:$0xff]   ;;  %v936_v29 = vld [vmem:[%s1057_s25 + $0xf4] ss:$8 sps:$4 sm:$0xff]   ;;  %v959_v30 = vld [vmem:[%s1057_s25 + $0x120] ss:$8 sps:$4 sm:$0xff]  }
  0x20   : > { %592 = vmatpush1.bf16.msra.mxu0 %v914_v7  ;;  %v963_v31 = vld [vmem:[%s1057_s25 + $0x114] ss:$8 sps:$4 sm:$0xff]   ;;  %v938_v32 = vld [vmem:[%s1057_s25 + $0xf0] ss:$8 sps:$4 sm:$0xff]   ;;  %v942_v33 = vld [vmem:[%s1057_s25 + $0xe4] ss:$8 sps:$4 sm:$0xff]  }
  0x21   : > { %593 = vmatprep.subr.bf16.mxu0 %v915_v8  ;;  %v965_v35 = vld [vmem:[%s1057_s25 + $0x110] ss:$8 sps:$4 sm:$0xff]   ;;  %v969_v37 = vld [vmem:[%s1057_s25 + $0x104] ss:$8 sps:$4 sm:$0xff]   ;;  %v944_v38 = vld [vmem:[%s1057_s25 + $0xe0] ss:$8 sps:$4 sm:$0xff]  }
  0x22   : > { %633 = vmatpush1.bf16.msra.mxu1 %v941_v18  ;;  %v948_v39 = vld [vmem:[%s1057_s25 + $0xd4] ss:$8 sps:$4 sm:$0xff]   ;;  %v971_v40 = vld [vmem:[%s1057_s25 + $0x100] ss:$8 sps:$4 sm:$0xff]   ;;  %v950_v41 = vld [vmem:[%s1057_s25 + $0xd0] ss:$8 sps:$4 sm:$0xff]  }
  0x23   : > { %634 = vmatprep.subr.bf16.mxu1 %v945_v19  ;;  %v954_v42 = vld [vmem:[%s1057_s25 + $0xc4] ss:$8 sps:$4 sm:$0xff]   ;;  %v975_v43 = vld [vmem:[%s1052_s21 + $0x8] ss:$0 sps:$4 sm:$0xff]   ;;  %v960_v45 = vld [vmem:[%s1057_s25 + $0xb4] ss:$8 sps:$4 sm:$0xff]  }
  0x24   : > { %594 = vmatpush1.bf16.msra.mxu0 %v917_v11  ;;  %v956_v44 = vld [vmem:[%s1057_s25 + $0xc0] ss:$8 sps:$4 sm:$0xff]   ;;  %v962_v46 = vld [vmem:[%s1057_s25 + $0xb0] ss:$8 sps:$4 sm:$0xff]   ;;  %v966_v47 = vld [vmem:[%s1057_s25 + $0xa4] ss:$8 sps:$4 sm:$0xff]  }
  0x25   : > { %595 = vmatprep.subr.bf16.mxu0 %v918_v12  ;;  %v968_v48 = vld [vmem:[%s1057_s25 + $0xa0] ss:$8 sps:$4 sm:$0xff]   ;;  %v972_v49 = vld [vmem:[%s1057_s25 + $0x94] ss:$8 sps:$4 sm:$0xff]   ;;  %v974_v50 = vld [vmem:[%s1057_s25 + $0x90] ss:$8 sps:$4 sm:$0xff]  }
  0x26   : > { %635 = vmatpush1.bf16.msra.mxu1 %v947_v22  ;;  %v976_v51 = vld [vmem:[%s1057_s25 + $0x84] ss:$8 sps:$4 sm:$0xff]   ;;  %v978_v52 = vld [vmem:[%s1057_s25 + $0x80] ss:$8 sps:$4 sm:$0xff]   ;;  %p874_p7 = scmp.ne.s32.totalorder %s995_s12, 5 }
  0x27   : > { %636 = vmatprep.subr.bf16.mxu1 %v951_v23  ;;  %v284_v58 = vld [vmem:[#allocation2] sm:$0xff]  ;;  %v285_v61 = vld [vmem:[#allocation2 + $0x8] sm:$0xff] }
  0x28   : > { %596 = vmatpush1.bf16.msra.mxu0 %v920_v15 }
  0x29   : > { %597 = vmatprep.subr.bf16.mxu0 %v921_v17 }
  0x2a   : > { %637 = vmatpush1.bf16.msra.mxu1 %v953_v26 }
  0x2b   : > { %638 = vmatprep.subr.bf16.mxu1 %v957_v27 }
  0x2c   : > { %598 = vmatpush1.bf16.msra.mxu0 %v923_v20 }
  0x2d   : > { %599 = vmatprep.subr.bf16.mxu0 %v924_v21 }
  0x2e   : > { %639 = vmatpush1.bf16.msra.mxu1 %v959_v30 }
  0x2f   : > { %640 = vmatprep.subr.bf16.mxu1 %v963_v31 }
  0x30   : > { %600 = vmatpush1.bf16.msra.mxu0 %v926_v24 }
  0x31   : > { %601 = vmatprep.subr.bf16.mxu0 %v930_v25 }
  0x32   : > { %641 = vmatpush1.bf16.msra.mxu1 %v965_v35 }
  0x33   : > { %642 = vmatprep.subr.bf16.mxu1 %v969_v37 }
  0x34   : > { %602 = vmatpush1.bf16.msra.mxu0 %v932_v28 }
  0x35   : > { %603 = vmatprep.subr.bf16.mxu0 %v936_v29 }
  0x36   : > { %643 = vmatpush1.bf16.msra.mxu1 %v971_v40 }
  0x38   : > { %604 = vmatpush2.bf16.msra.mxu0 %v938_v32 }
  0x39   : > { %605 = vmatprep.subr.bf16.mxu0 %v942_v33  ;;  %661 = vmatmul.mubr.bf16.vlgmr.msra.gmra.mxu1 %v975_v43 }
  0x3c   : > { %606 = vmatpush2.bf16.msra.mxu0 %v944_v38 }
  0x3d   : > { %607 = vmatprep.subr.bf16.mxu0 %v948_v39 }
  0x40   : > { %608 = vmatpush2.bf16.msra.mxu0 %v950_v41 }
  0x41   : > { %609 = vmatprep.subr.bf16.mxu0 %v954_v42 }
  0x44   : > { %610 = vmatpush2.bf16.msra.mxu0 %v956_v44 }
  0x45   : > { %611 = vmatprep.subr.bf16.mxu0 %v960_v45 }
  0x48   : > { %612 = vmatpush2.bf16.msra.mxu0 %v962_v46 }
  0x49   : > { %613 = vmatprep.subr.bf16.mxu0 %v966_v47 }
  0x4c   : > { %614 = vmatpush2.bf16.msra.mxu0 %v968_v48 }
  0x4d   : > { %615 = vmatprep.subr.bf16.mxu0 %v972_v49 }
  0x50   : > { %616 = vmatpush2.bf16.msra.mxu0 %v974_v50 }
  0x51   : > { %617 = vmatprep.subr.bf16.mxu0 %v976_v51 }
  0x54   : > { %618 = vmatpush2.bf16.msra.mxu0 %v978_v52 }
  0x57   : > { %620 = vmatmul.mubr.bf16.vlgmr.msra.gmra.mxu0 %v823_v53 }
  0xf9   : > { %v662_v54 = vpop.f32.mrf.mxu1 }
  0xfb   : > { %v664_v55 = vpop.f32.mrf.mxu1 }
  0xfd   : > { %v666_v56 = vpop.f32.mrf.mxu1 }
  0xff   : > { %v667_v57 = vpop.f32.mrf.mxu1 }
 0x117   : > { %v621_v59 = vpop.f32.mrf.mxu0 }
 0x118   : > { %v663_v60 = vadd.f32 %v662_v54, %v621_v59 }
 0x119   : > { %v623_v62 = vpop.f32.mrf.mxu0 }
 0x11a   : > { %v669_v63 = vadd.f32 %v663_v60, %v284_v58  ;;  %v665_v0 = vadd.f32 %v664_v55, %v623_v62  ;;  %676 = sbr.rel (%p874_p7) target bundleno = 300 (0x12c), region = 40 }
 0x11b   : > { %v625_v1 = vpop.f32.mrf.mxu0 }
 0x11c   : > { %671 = vst [vmem:[#allocation2] sm:$0xff] %v669_v63  ;;  %v670_v2 = vadd.f32 %v665_v0, %v285_v61 }
 0x11d   : > { %v626_v3 = vpop.f32.mrf.mxu0 }
 0x11e   : > { %672 = vst [vmem:[#allocation2 + $0x8] sm:$0xff] %v670_v2 }
 0x11f   : > { %v681_v4 = vlaneseq  ;;  %v679_v6 = vld [vmem:[%s1131_s2] sm:$0x3] }
 0x121   : > { %v682_v5 = vshrl.u32 %v681_v4, 7 }
 0x123   : > { %v683_v7 = vsub.s32 0, %v682_v5  ;;  %v687_v8 = vsub.s32 1, %v682_v5  ;;  %v677_v9 = vld [vmem:[#allocation2] sm:$0xff] }
 0x125   : > { %v678_v10 = vld [vmem:[#allocation2 + $0x8] sm:$0xff]  ;;  %v684_v11 = vrot.slane %v679_v6, %v683_v7  ;;  %v688_v12 = vrot.slane %v679_v6, %v687_v8 }
 0x127   : > { %v691_v13 = vadd.f32 %v684_v11, %v677_v9  ;;  %v692_v14 = vadd.f32 %v688_v12, %v678_v10 }
 0x129   : > { %v693_v15 = vmax.f32 %v691_v13, 0.0  ;;  %v694_v16 = vmax.f32 %v692_v14, 0.0 }
 0x12b   : > { %695 = vst [vmem:[%s1132_s3] sm:$0xff] %v693_v15  ;;  %696 = vst [vmem:[%s1132_s3 + $0x8] sm:$0xff] %v694_v16 }
 0x12c PF: > { %s13_s14 = sadd.s32 1, %s1003_s14   ;;  %s1133_s12 = smov %s999_s13 }
 0x12d   : > { %p10_p8 = scmp.ge.s32.totalorder %s13_s14, 8   ;;  %s1134_s13 = smov %s1136_s15 }
 0x12f   :  { %12 = sbr.rel (!%p10_p8) target bundleno = 2 (0x2), region = 76 }

// kernel: _lambda_.34
= control target key start
LH: loop header
LB: loop body
LE: loop exit
PB: predicated region body
PF: predicated region fallthrough
CT: control target
= control target key end

     0   :  { %s1121_s15 = smov 0   ;;  %s1123_s16 = smov 0   ;;  %s1229_s0 = inlined_call_operand.vmem [shape: bf16[8,2304], index: 0, kind: input, shape index: {}]   ;;  %s1230_s1 = inlined_call_operand.vmem [shape: bf16[2304,256], index: 1, kind: input, shape index: {}]   ;;  %s1231_s2 = inlined_call_operand.vmem [shape: f32[1,256], index: 2, kind: input, shape index: {}]   ;;  %s1232_s3 = inlined_call_operand.vmem [shape: f32[8,256], index: 3, kind: input, shape index: {}]   ;;  %s1233_s4 = inlined_call_operand.vmem [shape: f32[8,256], index: 4, kind: output, shape index: {}]  }
   0x1   :  { %s1125_s17 = smov 0  }
   0x2 LB: > { %s26_s18 = sadd.s32 1, %s1088_s16  ;;  %p907_p0 = scmp.ge.s32.totalorder %s1092_s17, 1  ;;  %s1092_s17 = sphi %s1125_s17, %s14_s17   ;;  %s1088_s16 = sphi %s1123_s16, %s1235_s16   ;;  %s1084_s15 = sphi %s1121_s15, %s1234_s15  }
   0x3   : > { %p27_p1 = scmp.ge.s32.totalorder %s26_s18, 6  ;;  %p236_p2 = scmp.lt.s32.totalorder %s1092_s17, 7 }
   0x5   : > { %s1237_s18 = smov (%p27_p1, %s26_s18), 0  ;;  %p237_p3 = pnand %p907_p0, %p236_p2 }
   0x6   : > { %s293_s19 = smul.u32 (!%p237_p3), 3, %s1084_s15  ;;  %p911_p6 = scmp.ne.s32.totalorder (!%p237_p3), %s1084_s15, 0 }
   0x7   : > { %240 = sbr.rel (%p237_p3) target bundleno = 302 (0x12e), region = 36 }
   0x8   : > { %s303_s20 = smul.u32 (!%p237_p3), 48, %s1084_s15  ;;  %p296_p4 = scmp.lt.s32.totalorder (!%p237_p3), %s293_s19, 17 }
   0xa   : > { %p305_p5 = scmp.lt.s32.totalorder (!%p237_p3), %s303_s20, 287 }
   0xc   : > { %s1239_s19 = smov (!%p296_p4, %s293_s19), 17  ;;  %s1241_s20 = smov (!%p305_p5, %s303_s20), 287 }
   0xd   : > { %s908_s21 = sshll.u32 %s1239_s19, 2  ;;  %s968_s25 = sshll.u32 %s1241_s20, 3 }
   0xe   : > { %s1146_s24 = scalar_lea.vmem %s1229_s0, %s908_s21  ;;  %s1151_s28 = scalar_lea.vmem %s1230_s1, %s968_s25 }
   0xf   : > { %344 = sbr.rel (%p911_p6) target bundleno = 22 (0x16), region = 40 }
  0x14   : > { %v1094_v0 = vmov 0.0  }
  0x15   : > { %345 = vst [vmem:[#allocation2] sm:$0xff] %v1094_v0  ;;  %346 = vst [vmem:[#allocation2 + $0x8] sm:$0xff] %v1094_v0 }
  0x16 PF: > { %v995_v1 = vld [vmem:[%s1151_s28 + $0x74] ss:$8 sps:$4 sm:$0xff]   ;;  %v997_v2 = vld [vmem:[%s1151_s28 + $0x70] ss:$8 sps:$4 sm:$0xff]   ;;  %v1095_v3 = vmov 0   ;;  %v349_v34 = vld [vmem:[%s1146_s24] sm:$0xff] }
  0x17   : > { %723 = vmatprep.mubr.bf16.mxu1 %v1095_v3  ;;  %650 = vmatprep.subr.bf16.mxu0 %v995_v1  ;;  %v998_v4 = vld [vmem:[%s1151_s28 + $0x64] ss:$8 sps:$4 sm:$0xff]   ;;  %v1000_v5 = vld [vmem:[%s1151_s28 + $0x60] ss:$8 sps:$4 sm:$0xff]   ;;  %v1001_v6 = vld [vmem:[%s1151_s28 + $0x54] ss:$8 sps:$4 sm:$0xff]   ;;  %v913_v36 = vcombine.high %v349_v34, %v349_v34  ;;  %v912_v53 = vcombine.low %v349_v34, %v349_v34 }
  0x18   : > { %651 = vmatpush1.bf16.msra.mxu0 %v997_v2  ;;  %v1003_v7 = vld [vmem:[%s1151_s28 + $0x50] ss:$8 sps:$4 sm:$0xff]   ;;  %v1004_v8 = vld [vmem:[%s1151_s28 + $0x44] ss:$8 sps:$4 sm:$0xff]   ;;  %v1016_v9 = vld [vmem:[%s1151_s28 + $0x174] ss:$8 sps:$4 sm:$0xff]  }
  0x19   : > { %652 = vmatprep.subr.bf16.mxu0 %v998_v4  ;;  %v1018_v10 = vld [vmem:[%s1151_s28 + $0x170] ss:$8 sps:$4 sm:$0xff]   ;;  %v1006_v11 = vld [vmem:[%s1151_s28 + $0x40] ss:$8 sps:$4 sm:$0xff]   ;;  %v1007_v12 = vld [vmem:[%s1151_s28 + $0x34] ss:$8 sps:$4 sm:$0xff]   ;;  %691 = vmatprep.subr.bf16.mxu1 %v1016_v9 }
  0x1a   : > { %v1022_v13 = vld [vmem:[%s1151_s28 + $0x164] ss:$8 sps:$4 sm:$0xff]   ;;  %692 = vmatpush1.bf16.msra.mxu1 %v1018_v10  ;;  %v1024_v14 = vld [vmem:[%s1151_s28 + $0x160] ss:$8 sps:$4 sm:$0xff]   ;;  %v1009_v15 = vld [vmem:[%s1151_s28 + $0x30] ss:$8 sps:$4 sm:$0xff]   ;;  %682 = vmatprep.mubr.bf16.mxu0 %v913_v36 }
  0x1b   : > { %693 = vmatprep.subr.bf16.mxu1 %v1022_v13  ;;  %v1028_v16 = vld [vmem:[%s1151_s28 + $0x154] ss:$8 sps:$4 sm:$0xff]   ;;  %v1010_v17 = vld [vmem:[%s1151_s28 + $0x24] ss:$8 sps:$4 sm:$0xff]   ;;  %v1030_v18 = vld [vmem:[%s1151_s28 + $0x150] ss:$8 sps:$4 sm:$0xff]  }
  0x1c   : > { %653 = vmatpush1.bf16.msra.mxu0 %v1000_v5  ;;  %v1034_v19 = vld [vmem:[%s1151_s28 + $0x144] ss:$8 sps:$4 sm:$0xff]   ;;  %v1012_v20 = vld [vmem:[%s1151_s28 + $0x20] ss:$8 sps:$4 sm:$0xff]   ;;  %v1013_v21 = vld [vmem:[%s1151_s28 + $0x14] ss:$8 sps:$4 sm:$0xff]  }
  0x1d   : > { %654 = vmatprep.subr.bf16.mxu0 %v1001_v6  ;;  %v1036_v22 = vld [vmem:[%s1151_s28 + $0x140] ss:$8 sps:$4 sm:$0xff]   ;;  %v1040_v23 = vld [vmem:[%s1151_s28 + $0x134] ss:$8 sps:$4 sm:$0xff]   ;;  %v1015_v24 = vld [vmem:[%s1151_s28 + $0x10] ss:$8 sps:$4 sm:$0xff]  }
  0x1e   : > { %694 = vmatpush1.bf16.msra.mxu1 %v1024_v14  ;;  %v1019_v25 = vld [vmem:[%s1151_s28 + $0x4] ss:$8 sps:$4 sm:$0xff]   ;;  %v1042_v26 = vld [vmem:[%s1151_s28 + $0x130] ss:$8 sps:$4 sm:$0xff]   ;;  %v1021_v28 = vld [vmem:[%s1151_s28] ss:$8 sps:$4 sm:$0xff]  }
  0x1f   : > { %695 = vmatprep.subr.bf16.mxu1 %v1028_v16  ;;  %v1046_v27 = vld [vmem:[%s1151_s28 + $0x124] ss:$8 sps:$4 sm:$0xff]   ;;  %v1025_v29 = vld [vmem:[%s1151_s28 + $0xf4] ss:$8 sps:$4 sm:$0xff]   ;;  %v1048_v30 = vld [vmem:[%s1151_s28 + $0x120] ss:$8 sps:$4 sm:$0xff]  }
  0x20   : > { %655 = vmatpush1.bf16.msra.mxu0 %v1003_v7  ;;  %v1052_v31 = vld [vmem:[%s1151_s28 + $0x114] ss:$8 sps:$4 sm:$0xff]   ;;  %v1027_v32 = vld [vmem:[%s1151_s28 + $0xf0] ss:$8 sps:$4 sm:$0xff]   ;;  %v1031_v33 = vld [vmem:[%s1151_s28 + $0xe4] ss:$8 sps:$4 sm:$0xff]  }
  0x21   : > { %656 = vmatprep.subr.bf16.mxu0 %v1004_v8  ;;  %v1054_v35 = vld [vmem:[%s1151_s28 + $0x110] ss:$8 sps:$4 sm:$0xff]   ;;  %v1058_v37 = vld [vmem:[%s1151_s28 + $0x104] ss:$8 sps:$4 sm:$0xff]   ;;  %v1033_v38 = vld [vmem:[%s1151_s28 + $0xe0] ss:$8 sps:$4 sm:$0xff]  }
  0x22   : > { %696 = vmatpush1.bf16.msra.mxu1 %v1030_v18  ;;  %v1037_v39 = vld [vmem:[%s1151_s28 + $0xd4] ss:$8 sps:$4 sm:$0xff]   ;;  %v1060_v40 = vld [vmem:[%s1151_s28 + $0x100] ss:$8 sps:$4 sm:$0xff]   ;;  %v1039_v41 = vld [vmem:[%s1151_s28 + $0xd0] ss:$8 sps:$4 sm:$0xff]  }
  0x23   : > { %697 = vmatprep.subr.bf16.mxu1 %v1034_v19  ;;  %v1043_v42 = vld [vmem:[%s1151_s28 + $0xc4] ss:$8 sps:$4 sm:$0xff]   ;;  %v1064_v43 = vld [vmem:[%s1146_s24 + $0x8] ss:$0 sps:$4 sm:$0xff]   ;;  %v1049_v45 = vld [vmem:[%s1151_s28 + $0xb4] ss:$8 sps:$4 sm:$0xff]  }
  0x24   : > { %657 = vmatpush1.bf16.msra.mxu0 %v1006_v11  ;;  %v1045_v44 = vld [vmem:[%s1151_s28 + $0xc0] ss:$8 sps:$4 sm:$0xff]   ;;  %v1051_v46 = vld [vmem:[%s1151_s28 + $0xb0] ss:$8 sps:$4 sm:$0xff]   ;;  %v1055_v47 = vld [vmem:[%s1151_s28 + $0xa4] ss:$8 sps:$4 sm:$0xff]  }
  0x25   : > { %658 = vmatprep.subr.bf16.mxu0 %v1007_v12  ;;  %v1057_v48 = vld [vmem:[%s1151_s28 + $0xa0] ss:$8 sps:$4 sm:$0xff]   ;;  %v1061_v49 = vld [vmem:[%s1151_s28 + $0x94] ss:$8 sps:$4 sm:$0xff]   ;;  %v1063_v50 = vld [vmem:[%s1151_s28 + $0x90] ss:$8 sps:$4 sm:$0xff]  }
  0x26   : > { %698 = vmatpush1.bf16.msra.mxu1 %v1036_v22  ;;  %v1065_v51 = vld [vmem:[%s1151_s28 + $0x84] ss:$8 sps:$4 sm:$0xff]   ;;  %v1067_v52 = vld [vmem:[%s1151_s28 + $0x80] ss:$8 sps:$4 sm:$0xff]   ;;  %p963_p7 = scmp.ne.s32.totalorder %s1084_s15, 5 }
  0x27   : > { %699 = vmatprep.subr.bf16.mxu1 %v1040_v23  ;;  %v347_v58 = vld [vmem:[#allocation2] sm:$0xff]  ;;  %v348_v61 = vld [vmem:[#allocation2 + $0x8] sm:$0xff] }
  0x28   : > { %659 = vmatpush1.bf16.msra.mxu0 %v1009_v15 }
  0x29   : > { %660 = vmatprep.subr.bf16.mxu0 %v1010_v17 }
  0x2a   : > { %700 = vmatpush1.bf16.msra.mxu1 %v1042_v26 }
  0x2b   : > { %701 = vmatprep.subr.bf16.mxu1 %v1046_v27 }
  0x2c   : > { %661 = vmatpush1.bf16.msra.mxu0 %v1012_v20 }
  0x2d   : > { %662 = vmatprep.subr.bf16.mxu0 %v1013_v21 }
  0x2e   : > { %702 = vmatpush1.bf16.msra.mxu1 %v1048_v30 }
  0x2f   : > { %703 = vmatprep.subr.bf16.mxu1 %v1052_v31 }
  0x30   : > { %663 = vmatpush1.bf16.msra.mxu0 %v1015_v24 }
  0x31   : > { %664 = vmatprep.subr.bf16.mxu0 %v1019_v25 }
  0x32   : > { %704 = vmatpush1.bf16.msra.mxu1 %v1054_v35 }
  0x33   : > { %705 = vmatprep.subr.bf16.mxu1 %v1058_v37 }
  0x34   : > { %665 = vmatpush1.bf16.msra.mxu0 %v1021_v28 }
  0x35   : > { %666 = vmatprep.subr.bf16.mxu0 %v1025_v29 }
  0x36   : > { %706 = vmatpush1.bf16.msra.mxu1 %v1060_v40 }
  0x38   : > { %667 = vmatpush2.bf16.msra.mxu0 %v1027_v32 }
  0x39   : > { %668 = vmatprep.subr.bf16.mxu0 %v1031_v33  ;;  %724 = vmatmul.mubr.bf16.vlgmr.msra.gmra.mxu1 %v1064_v43 }
  0x3c   : > { %669 = vmatpush2.bf16.msra.mxu0 %v1033_v38 }
  0x3d   : > { %670 = vmatprep.subr.bf16.mxu0 %v1037_v39 }
  0x40   : > { %671 = vmatpush2.bf16.msra.mxu0 %v1039_v41 }
  0x41   : > { %672 = vmatprep.subr.bf16.mxu0 %v1043_v42 }
  0x44   : > { %673 = vmatpush2.bf16.msra.mxu0 %v1045_v44 }
  0x45   : > { %674 = vmatprep.subr.bf16.mxu0 %v1049_v45 }
  0x48   : > { %675 = vmatpush2.bf16.msra.mxu0 %v1051_v46 }
  0x49   : > { %676 = vmatprep.subr.bf16.mxu0 %v1055_v47 }
  0x4c   : > { %677 = vmatpush2.bf16.msra.mxu0 %v1057_v48 }
  0x4d   : > { %678 = vmatprep.subr.bf16.mxu0 %v1061_v49 }
  0x50   : > { %679 = vmatpush2.bf16.msra.mxu0 %v1063_v50 }
  0x51   : > { %680 = vmatprep.subr.bf16.mxu0 %v1065_v51 }
  0x54   : > { %681 = vmatpush2.bf16.msra.mxu0 %v1067_v52 }
  0x57   : > { %683 = vmatmul.mubr.bf16.vlgmr.msra.gmra.mxu0 %v912_v53 }
  0xf9   : > { %v725_v54 = vpop.f32.mrf.mxu1 }
  0xfb   : > { %v727_v55 = vpop.f32.mrf.mxu1 }
  0xfd   : > { %v729_v56 = vpop.f32.mrf.mxu1 }
  0xff   : > { %v730_v57 = vpop.f32.mrf.mxu1 }
 0x117   : > { %v684_v59 = vpop.f32.mrf.mxu0 }
 0x118   : > { %v726_v60 = vadd.f32 %v725_v54, %v684_v59 }
 0x119   : > { %v686_v62 = vpop.f32.mrf.mxu0 }
 0x11a   : > { %v732_v63 = vadd.f32 %v726_v60, %v347_v58  ;;  %v728_v0 = vadd.f32 %v727_v55, %v686_v62  ;;  %739 = sbr.rel (%p963_p7) target bundleno = 302 (0x12e), region = 44 }
 0x11b   : > { %v688_v1 = vpop.f32.mrf.mxu0 }
 0x11c   : > { %734 = vst [vmem:[#allocation2] sm:$0xff] %v732_v63  ;;  %v733_v2 = vadd.f32 %v728_v0, %v348_v61 }
 0x11d   : > { %v689_v3 = vpop.f32.mrf.mxu0 }
 0x11e   : > { %735 = vst [vmem:[#allocation2 + $0x8] sm:$0xff] %v733_v2 }
 0x11f   : > { %v744_v4 = vlaneseq  ;;  %v742_v6 = vld [vmem:[%s1231_s2] sm:$0x3]  ;;  %v757_v14 = vld [vmem:[%s1232_s3 + $0x8] sm:$0xff] }
 0x120   : > { %v756_v13 = vld [vmem:[%s1232_s3] sm:$0xff] }
 0x121   : > { %v745_v5 = vshrl.u32 %v744_v4, 7 }
 0x123   : > { %v746_v7 = vsub.s32 0, %v745_v5  ;;  %v750_v8 = vsub.s32 1, %v745_v5  ;;  %v740_v9 = vld [vmem:[#allocation2] sm:$0xff] }
 0x125   : > { %v741_v10 = vld [vmem:[#allocation2 + $0x8] sm:$0xff]  ;;  %v747_v11 = vrot.slane %v742_v6, %v746_v7  ;;  %v751_v12 = vrot.slane %v742_v6, %v750_v8 }
 0x127   : > { %v754_v15 = vadd.f32 %v747_v11, %v740_v9  ;;  %v755_v16 = vadd.f32 %v751_v12, %v741_v10 }
 0x129   : > { %v758_v17 = vadd.f32 %v756_v13, %v754_v15  ;;  %v759_v18 = vadd.f32 %v757_v14, %v755_v16 }
 0x12b   : > { %v760_v19 = vmax.f32 %v758_v17, 0.0  ;;  %v761_v20 = vmax.f32 %v759_v18, 0.0 }
 0x12d   : > { %762 = vst [vmem:[%s1233_s4] sm:$0xff] %v760_v19  ;;  %763 = vst [vmem:[%s1233_s4 + $0x8] sm:$0xff] %v761_v20 }
 0x12e PF: > { %s14_s17 = sadd.s32 1, %s1092_s17   ;;  %s1234_s15 = smov %s1088_s16 }
 0x12f   : > { %p11_p8 = scmp.ge.s32.totalorder %s14_s17, 8   ;;  %s1235_s16 = smov %s1237_s18 }
 0x131   :  { %13 = sbr.rel (!%p11_p8) target bundleno = 2 (0x2), region = 83 }

// kernel: _lambda_.38
= control target key start
LH: loop header
LB: loop body
LE: loop exit
PB: predicated region body
PF: predicated region fallthrough
CT: control target
= control target key end

     0   :  { %s1311_s12 = smov 0   ;;  %s1313_s13 = smov 0   ;;  %s1575_s0 = inlined_call_operand.vmem [shape: bf16[8,2304], index: 0, kind: input, shape index: {}]   ;;  %s1576_s1 = inlined_call_operand.vmem [shape: bf16[2304,512], index: 1, kind: input, shape index: {}]   ;;  %s1577_s2 = inlined_call_operand.vmem [shape: f32[1,512], index: 2, kind: input, shape index: {}]   ;;  %s1578_s3 = inlined_call_operand.vmem [shape: f32[8,512], index: 3, kind: output, shape index: {}]  }
   0x1   :  { %s1315_s14 = smov 0   ;;  %s1317_s15 = smov 0  }
   0x2   :  { %s1319_s16 = smov 0   ;;  %s1321_s17 = smov 0  }
   0x3   :  { %s1323_s18 = smov 0  }
   0x4 LB: > { %s25_s19 = sadd.s32 1, %s1279_s16  ;;  %s28_s20 = sadd.s32 1, %s1283_s17  ;;  %s1287_s18 = sphi %s1323_s18, %s13_s18   ;;  %s1283_s17 = sphi %s1321_s17, %s1584_s17   ;;  %s1279_s16 = sphi %s1319_s16, %s1583_s16   ;;  %s1275_s15 = sphi %s1317_s15, %s1582_s15   ;;  %s1271_s14 = sphi %s1315_s14, %s1581_s14   ;;  %s1267_s13 = sphi %s1313_s13, %s1580_s13   ;;  %s1263_s12 = sphi %s1311_s12, %s1579_s12  }
   0x5   : > { %p26_p0 = scmp.ge.s32.totalorder %s25_s19, 6  ;;  %p76_p1 = scmp.ne.s32.totalorder %s1267_s13, %s1263_s12 }
   0x6   : > { %p77_p2 = scmp.eq.s32.totalorder %s1287_s18, 0  ;;  %s69_s24 = sadd.s32 1, %s1267_s13 }
   0x7   : > { %s1586_s19 = smov (%p26_p0, %s25_s19), 0  ;;  %s1588_s20 = smov (!%p26_p0, %s28_s20), %s1283_s17 }
   0x8   : > { %p78_p3 = por %p77_p2, %p76_p1  ;;  %p30_p4 = scmp.ge.s32.totalorder %s1588_s20, 2 }
   0x9   : > { %s64_s21 = ssub.s32 %s1279_s16, %s1586_s19  ;;  %p1033_p6 = scmp.ge.s32.totalorder %s1287_s18, 12 }
   0xa   : > { %s1590_s20 = smov (%p30_p4, %s1588_s20), 0 }
   0xb   : > { %s65_s22 = ssub.s32 %s1283_s17, %s1590_s20  ;;  %156 = sbr.rel (%p1033_p6) target bundleno = 48 (0x30), region = 16 }
   0xc   : > { %s66_s23 = sor.u32 %s65_s22, %s64_s21 }
   0xd   : > { %p67_p5 = scmp.eq.s32.totalorder %s66_s23, 0 }
   0xf   : > { %s1362_s25 = scalar_select %p67_p5, %s1267_s13, %s69_s24  }
  0x10   : > { %172 = sbr.rel (!%p78_p3) target bundleno = 48 (0x30), region = 24  ;;  %s174_s26 = sand.u32 (%p78_p3), 1, %s1267_s13  }
  0x11   : > { %s1098_s27 = smul.u32 (%p78_p3), 384, %s174_s26  ;;  %s1034_s28 = sshll.u32 (%p78_p3), %s1283_s17, 1 }
  0x12   : > { %s1097_s29 = smul.u32 (%p78_p3), 192, %s1279_s16 }
  0x13   : > { %s1376_s8 = scalar_lea.vmem (%p78_p3), [#allocation3], %s1098_s27 }
  0x14   : > { %s180_s30 = sadd.s32 (%p78_p3), %s1097_s29, %s1034_s28 }
  0x15   : > { %s1036_s4 = sshll.u32 %s180_s30, 2 }
  0x16   : > { %s1371_s7 = scalar_lea.vmem %s1576_s1, %s1036_s4 }
  0x17   : > { %v305_v0 = vld [vmem:[%s1371_s7] sm:$0xff]  ;;  %v307_v1 = vld [vmem:[%s1371_s7 + $0x10] sm:$0xff] }
  0x18   : > { %v309_v2 = vld [vmem:[%s1371_s7 + $0x20] sm:$0xff]  ;;  %306 = vst [vmem:[%s1376_s8] sm:$0xff] %v305_v0  ;;  %308 = vst [vmem:[%s1376_s8 + $0x8] sm:$0xff] %v307_v1  ;;  %v311_v3 = vld [vmem:[%s1371_s7 + $0x30] sm:$0xff] }
  0x19   : > { %310 = vst [vmem:[%s1376_s8 + $0x10] sm:$0xff] %v309_v2  ;;  %v313_v4 = vld [vmem:[%s1371_s7 + $0x40] sm:$0xff]  ;;  %v315_v5 = vld [vmem:[%s1371_s7 + $0x50] sm:$0xff]  ;;  %312 = vst [vmem:[%s1376_s8 + $0x18] sm:$0xff] %v311_v3 }
  0x1a   : > { %314 = vst [vmem:[%s1376_s8 + $0x20] sm:$0xff] %v313_v4  ;;  %316 = vst [vmem:[%s1376_s8 + $0x28] sm:$0xff] %v315_v5  ;;  %v317_v6 = vld [vmem:[%s1371_s7 + $0x60] sm:$0xff]  ;;  %v319_v7 = vld [vmem:[%s1371_s7 + $0x70] sm:$0xff] }
  0x1b   : > { %v321_v8 = vld [vmem:[%s1371_s7 + $0x80] sm:$0xff]  ;;  %318 = vst [vmem:[%s1376_s8 + $0x30] sm:$0xff] %v317_v6  ;;  %320 = vst [vmem:[%s1376_s8 + $0x38] sm:$0xff] %v319_v7  ;;  %v323_v9 = vld [vmem:[%s1371_s7 + $0x90] sm:$0xff] }
  0x1c   : > { %322 = vst [vmem:[%s1376_s8 + $0x40] sm:$0xff] %v321_v8  ;;  %v325_v10 = vld [vmem:[%s1371_s7 + $0xa0] sm:$0xff]  ;;  %v327_v11 = vld [vmem:[%s1371_s7 + $0xb0] sm:$0xff]  ;;  %324 = vst [vmem:[%s1376_s8 + $0x48] sm:$0xff] %v323_v9 }
  0x1d   : > { %326 = vst [vmem:[%s1376_s8 + $0x50] sm:$0xff] %v325_v10  ;;  %328 = vst [vmem:[%s1376_s8 + $0x58] sm:$0xff] %v327_v11  ;;  %v329_v12 = vld [vmem:[%s1371_s7 + $0xc0] sm:$0xff]  ;;  %v331_v13 = vld [vmem:[%s1371_s7 + $0xd0] sm:$0xff] }
  0x1e   : > { %v333_v14 = vld [vmem:[%s1371_s7 + $0xe0] sm:$0xff]  ;;  %330 = vst [vmem:[%s1376_s8 + $0x60] sm:$0xff] %v329_v12  ;;  %332 = vst [vmem:[%s1376_s8 + $0x68] sm:$0xff] %v331_v13  ;;  %v335_v15 = vld [vmem:[%s1371_s7 + $0xf0] sm:$0xff] }
  0x1f   : > { %334 = vst [vmem:[%s1376_s8 + $0x70] sm:$0xff] %v333_v14  ;;  %v337_v16 = vld [vmem:[%s1371_s7 + $0x100] sm:$0xff]  ;;  %v339_v17 = vld [vmem:[%s1371_s7 + $0x110] sm:$0xff]  ;;  %336 = vst [vmem:[%s1376_s8 + $0x78] sm:$0xff] %v335_v15 }
  0x20   : > { %338 = vst [vmem:[%s1376_s8 + $0x80] sm:$0xff] %v337_v16  ;;  %340 = vst [vmem:[%s1376_s8 + $0x88] sm:$0xff] %v339_v17  ;;  %v341_v18 = vld [vmem:[%s1371_s7 + $0x120] sm:$0xff]  ;;  %v343_v19 = vld [vmem:[%s1371_s7 + $0x130] sm:$0xff] }
  0x21   : > { %v345_v20 = vld [vmem:[%s1371_s7 + $0x140] sm:$0xff]  ;;  %342 = vst [vmem:[%s1376_s8 + $0x90] sm:$0xff] %v341_v18  ;;  %344 = vst [vmem:[%s1376_s8 + $0x98] sm:$0xff] %v343_v19  ;;  %v347_v21 = vld [vmem:[%s1371_s7 + $0x150] sm:$0xff] }
  0x22   : > { %346 = vst [vmem:[%s1376_s8 + $0xa0] sm:$0xff] %v345_v20  ;;  %v349_v22 = vld [vmem:[%s1371_s7 + $0x160] sm:$0xff]  ;;  %v351_v23 = vld [vmem:[%s1371_s7 + $0x170] sm:$0xff]  ;;  %348 = vst [vmem:[%s1376_s8 + $0xa8] sm:$0xff] %v347_v21 }
  0x23   : > { %350 = vst [vmem:[%s1376_s8 + $0xb0] sm:$0xff] %v349_v22  ;;  %352 = vst [vmem:[%s1376_s8 + $0xb8] sm:$0xff] %v351_v23  ;;  %v353_v24 = vld [vmem:[%s1371_s7 + $0x180] sm:$0xff]  ;;  %v355_v25 = vld [vmem:[%s1371_s7 + $0x190] sm:$0xff] }
  0x24   : > { %v357_v26 = vld [vmem:[%s1371_s7 + $0x1a0] sm:$0xff]  ;;  %354 = vst [vmem:[%s1376_s8 + $0xc0] sm:$0xff] %v353_v24  ;;  %356 = vst [vmem:[%s1376_s8 + $0xc8] sm:$0xff] %v355_v25  ;;  %v359_v27 = vld [vmem:[%s1371_s7 + $0x1b0] sm:$0xff] }
  0x25   : > { %358 = vst [vmem:[%s1376_s8 + $0xd0] sm:$0xff] %v357_v26  ;;  %v361_v28 = vld [vmem:[%s1371_s7 + $0x1c0] sm:$0xff]  ;;  %v363_v29 = vld [vmem:[%s1371_s7 + $0x1d0] sm:$0xff]  ;;  %360 = vst [vmem:[%s1376_s8 + $0xd8] sm:$0xff] %v359_v27 }
  0x26   : > { %362 = vst [vmem:[%s1376_s8 + $0xe0] sm:$0xff] %v361_v28  ;;  %364 = vst [vmem:[%s1376_s8 + $0xe8] sm:$0xff] %v363_v29  ;;  %v365_v30 = vld [vmem:[%s1371_s7 + $0x1e0] sm:$0xff]  ;;  %v367_v31 = vld [vmem:[%s1371_s7 + $0x1f0] sm:$0xff] }
  0x27   : > { %v369_v32 = vld [vmem:[%s1371_s7 + $0x200] sm:$0xff]  ;;  %366 = vst [vmem:[%s1376_s8 + $0xf0] sm:$0xff] %v365_v30  ;;  %368 = vst [vmem:[%s1376_s8 + $0xf8] sm:$0xff] %v367_v31  ;;  %v371_v33 = vld [vmem:[%s1371_s7 + $0x210] sm:$0xff] }
  0x28   : > { %370 = vst [vmem:[%s1376_s8 + $0x100] sm:$0xff] %v369_v32  ;;  %v373_v34 = vld [vmem:[%s1371_s7 + $0x220] sm:$0xff]  ;;  %v375_v35 = vld [vmem:[%s1371_s7 + $0x230] sm:$0xff]  ;;  %372 = vst [vmem:[%s1376_s8 + $0x108] sm:$0xff] %v371_v33 }
  0x29   : > { %374 = vst [vmem:[%s1376_s8 + $0x110] sm:$0xff] %v373_v34  ;;  %376 = vst [vmem:[%s1376_s8 + $0x118] sm:$0xff] %v375_v35  ;;  %v377_v36 = vld [vmem:[%s1371_s7 + $0x240] sm:$0xff]  ;;  %v379_v37 = vld [vmem:[%s1371_s7 + $0x250] sm:$0xff] }
  0x2a   : > { %v381_v38 = vld [vmem:[%s1371_s7 + $0x260] sm:$0xff]  ;;  %378 = vst [vmem:[%s1376_s8 + $0x120] sm:$0xff] %v377_v36  ;;  %380 = vst [vmem:[%s1376_s8 + $0x128] sm:$0xff] %v379_v37  ;;  %v383_v39 = vld [vmem:[%s1371_s7 + $0x270] sm:$0xff] }
  0x2b   : > { %382 = vst [vmem:[%s1376_s8 + $0x130] sm:$0xff] %v381_v38  ;;  %v385_v40 = vld [vmem:[%s1371_s7 + $0x280] sm:$0xff]  ;;  %v387_v41 = vld [vmem:[%s1371_s7 + $0x290] sm:$0xff]  ;;  %384 = vst [vmem:[%s1376_s8 + $0x138] sm:$0xff] %v383_v39 }
  0x2c   : > { %386 = vst [vmem:[%s1376_s8 + $0x140] sm:$0xff] %v385_v40  ;;  %388 = vst [vmem:[%s1376_s8 + $0x148] sm:$0xff] %v387_v41  ;;  %v389_v42 = vld [vmem:[%s1371_s7 + $0x2a0] sm:$0xff]  ;;  %v391_v43 = vld [vmem:[%s1371_s7 + $0x2b0] sm:$0xff] }
  0x2d   : > { %v393_v44 = vld [vmem:[%s1371_s7 + $0x2c0] sm:$0xff]  ;;  %390 = vst [vmem:[%s1376_s8 + $0x150] sm:$0xff] %v389_v42  ;;  %392 = vst [vmem:[%s1376_s8 + $0x158] sm:$0xff] %v391_v43  ;;  %v395_v45 = vld [vmem:[%s1371_s7 + $0x2d0] sm:$0xff] }
  0x2e   : > { %394 = vst [vmem:[%s1376_s8 + $0x160] sm:$0xff] %v393_v44  ;;  %v397_v46 = vld [vmem:[%s1371_s7 + $0x2e0] sm:$0xff]  ;;  %v399_v47 = vld [vmem:[%s1371_s7 + $0x2f0] sm:$0xff]  ;;  %396 = vst [vmem:[%s1376_s8 + $0x168] sm:$0xff] %v395_v45 }
  0x2f   : > { %398 = vst [vmem:[%s1376_s8 + $0x170] sm:$0xff] %v397_v46  ;;  %400 = vst [vmem:[%s1376_s8 + $0x178] sm:$0xff] %v399_v47 }
  0x30 PF: > { %p1037_p7 = scmp.ge.s32.totalorder %s1287_s18, 1  ;;  %p413_p8 = scmp.lt.s32.totalorder %s1287_s18, 13 }
  0x32   : > { %p414_p9 = pnand %p1037_p7, %p413_p8 }
  0x33   : > { %s420_s9 = sand.u32 (!%p414_p9), 1, %s1263_s12   ;;  %s460_s10 = smul.u32 (!%p414_p9), 3, %s1271_s14 }
  0x34   : > { %417 = sbr.rel (%p414_p9) target bundleno = 345 (0x159), region = 66  ;;  %s1039_s21 = sshll.u32 (!%p414_p9), %s1275_s15, 1 }
  0x35   : > { %s1099_s11 = smul.u32 (!%p414_p9), 384, %s420_s9  ;;  %p463_p10 = scmp.lt.s32.totalorder (!%p414_p9), %s460_s10, 17 }
  0x36   : > { %p473_p11 = scmp.lt.s32.totalorder (!%p414_p9), %s1039_s21, 3  ;;  %p1042_p12 = scmp.ne.s32.totalorder (!%p414_p9), %s1271_s14, 0 }
  0x37   : > { %s1493_s5 = scalar_lea.vmem (!%p414_p9), [#allocation3], %s1099_s11 }
  0x39   : > { %s1592_s10 = smov (!%p463_p10, %s460_s10), 17  ;;  %s1594_s21 = smov (!%p473_p11, %s1039_s21), 3 }
  0x3a   : > { %s1038_s22 = sshll.u32 %s1592_s10, 2  ;;  %s475_s12 = scalar_lea.vmem %s1577_s2, %s1594_s21 }
  0x3b   : > { %s1481_s26 = scalar_lea.vmem %s1575_s0, %s1038_s22  ;;  %s1041_s29 = sshll.u32 %s1594_s21, 3 }
  0x3c   : > { %s1491_s4 = scalar_lea.vmem %s1578_s3, %s1041_s29  ;;  %491 = sbr.rel (%p1042_p12) target bundleno = 67 (0x43), region = 74 }
  0x41   : > { %v1289_v48 = vmov 0.0  }
  0x42   : > { %492 = vst [vmem:[#allocation2] sm:$0xff] %v1289_v48  ;;  %493 = vst [vmem:[#allocation2 + $0x8] sm:$0xff] %v1289_v48 }
  0x43 PF: > { %v1158_v49 = vld [vmem:[%s1493_s5 + $0x74] ss:$8 sps:$4 sm:$0xff]   ;;  %v1160_v50 = vld [vmem:[%s1493_s5 + $0x70] ss:$8 sps:$4 sm:$0xff]   ;;  %v1290_v51 = vmov 0   ;;  %p1094_p13 = scmp.ne.s32.totalorder %s1271_s14, 5 }
  0x44   : > { %870 = vmatprep.mubr.bf16.mxu1 %v1290_v51  ;;  %797 = vmatprep.subr.bf16.mxu0 %v1158_v49  ;;  %v1161_v52 = vld [vmem:[%s1493_s5 + $0x64] ss:$8 sps:$4 sm:$0xff]   ;;  %v1163_v53 = vld [vmem:[%s1493_s5 + $0x60] ss:$8 sps:$4 sm:$0xff]   ;;  %v1164_v54 = vld [vmem:[%s1493_s5 + $0x54] ss:$8 sps:$4 sm:$0xff]  }
  0x45   : > { %798 = vmatpush1.bf16.msra.mxu0 %v1160_v50  ;;  %v1166_v55 = vld [vmem:[%s1493_s5 + $0x50] ss:$8 sps:$4 sm:$0xff]   ;;  %v1167_v56 = vld [vmem:[%s1493_s5 + $0x44] ss:$8 sps:$4 sm:$0xff]   ;;  %v1179_v57 = vld [vmem:[%s1493_s5 + $0x174] ss:$8 sps:$4 sm:$0xff]  }
  0x46   : > { %799 = vmatprep.subr.bf16.mxu0 %v1161_v52  ;;  %v1181_v58 = vld [vmem:[%s1493_s5 + $0x170] ss:$8 sps:$4 sm:$0xff]   ;;  %v1169_v59 = vld [vmem:[%s1493_s5 + $0x40] ss:$8 sps:$4 sm:$0xff]   ;;  %v1170_v60 = vld [vmem:[%s1493_s5 + $0x34] ss:$8 sps:$4 sm:$0xff]   ;;  %838 = vmatprep.subr.bf16.mxu1 %v1179_v57 }
  0x47   : > { %v1185_v61 = vld [vmem:[%s1493_s5 + $0x164] ss:$8 sps:$4 sm:$0xff]   ;;  %839 = vmatpush1.bf16.msra.mxu1 %v1181_v58  ;;  %v1187_v62 = vld [vmem:[%s1493_s5 + $0x160] ss:$8 sps:$4 sm:$0xff]   ;;  %v1172_v63 = vld [vmem:[%s1493_s5 + $0x30] ss:$8 sps:$4 sm:$0xff]  }
  0x48   : > { %840 = vmatprep.subr.bf16.mxu1 %v1185_v61  ;;  %v1191_v0 = vld [vmem:[%s1493_s5 + $0x154] ss:$8 sps:$4 sm:$0xff]   ;;  %v1173_v1 = vld [vmem:[%s1493_s5 + $0x24] ss:$8 sps:$4 sm:$0xff]   ;;  %v1193_v2 = vld [vmem:[%s1493_s5 + $0x150] ss:$8 sps:$4 sm:$0xff]  }
  0x49   : > { %800 = vmatpush1.bf16.msra.mxu0 %v1163_v53  ;;  %v1197_v3 = vld [vmem:[%s1493_s5 + $0x144] ss:$8 sps:$4 sm:$0xff]   ;;  %v1175_v4 = vld [vmem:[%s1493_s5 + $0x20] ss:$8 sps:$4 sm:$0xff]   ;;  %v1176_v5 = vld [vmem:[%s1493_s5 + $0x14] ss:$8 sps:$4 sm:$0xff]  }
  0x4a   : > { %801 = vmatprep.subr.bf16.mxu0 %v1164_v54  ;;  %v1199_v6 = vld [vmem:[%s1493_s5 + $0x140] ss:$8 sps:$4 sm:$0xff]   ;;  %v1203_v7 = vld [vmem:[%s1493_s5 + $0x134] ss:$8 sps:$4 sm:$0xff]   ;;  %v1178_v8 = vld [vmem:[%s1493_s5 + $0x10] ss:$8 sps:$4 sm:$0xff]  }
  0x4b   : > { %841 = vmatpush1.bf16.msra.mxu1 %v1187_v62  ;;  %v1182_v9 = vld [vmem:[%s1493_s5 + $0x4] ss:$8 sps:$4 sm:$0xff]   ;;  %v1205_v10 = vld [vmem:[%s1493_s5 + $0x130] ss:$8 sps:$4 sm:$0xff]   ;;  %v1184_v12 = vld [vmem:[%s1493_s5] ss:$8 sps:$4 sm:$0xff]  }
  0x4c   : > { %842 = vmatprep.subr.bf16.mxu1 %v1191_v0  ;;  %v1209_v11 = vld [vmem:[%s1493_s5 + $0x124] ss:$8 sps:$4 sm:$0xff]   ;;  %v1188_v13 = vld [vmem:[%s1493_s5 + $0xf4] ss:$8 sps:$4 sm:$0xff]   ;;  %v1211_v14 = vld [vmem:[%s1493_s5 + $0x120] ss:$8 sps:$4 sm:$0xff]  }
  0x4d   : > { %802 = vmatpush1.bf16.msra.mxu0 %v1166_v55  ;;  %v1215_v15 = vld [vmem:[%s1493_s5 + $0x114] ss:$8 sps:$4 sm:$0xff]   ;;  %v1190_v16 = vld [vmem:[%s1493_s5 + $0xf0] ss:$8 sps:$4 sm:$0xff]   ;;  %v1194_v17 = vld [vmem:[%s1493_s5 + $0xe4] ss:$8 sps:$4 sm:$0xff]  }
  0x4e   : > { %803 = vmatprep.subr.bf16.mxu0 %v1167_v56  ;;  %v496_v18 = vld [vmem:[%s1481_s26] sm:$0xff]  ;;  %v1221_v21 = vld [vmem:[%s1493_s5 + $0x104] ss:$8 sps:$4 sm:$0xff]   ;;  %v1196_v22 = vld [vmem:[%s1493_s5 + $0xe0] ss:$8 sps:$4 sm:$0xff]  }
  0x4f   : > { %843 = vmatpush1.bf16.msra.mxu1 %v1193_v2  ;;  %v1217_v19 = vld [vmem:[%s1493_s5 + $0x110] ss:$8 sps:$4 sm:$0xff]   ;;  %v1044_v20 = vcombine.high %v496_v18, %v496_v18  ;;  %v1200_v23 = vld [vmem:[%s1493_s5 + $0xd4] ss:$8 sps:$4 sm:$0xff]   ;;  %v1223_v24 = vld [vmem:[%s1493_s5 + $0x100] ss:$8 sps:$4 sm:$0xff]   ;;  %v1043_v37 = vcombine.low %v496_v18, %v496_v18 }
  0x50   : > { %844 = vmatprep.subr.bf16.mxu1 %v1197_v3  ;;  %v1202_v25 = vld [vmem:[%s1493_s5 + $0xd0] ss:$8 sps:$4 sm:$0xff]   ;;  %v1206_v26 = vld [vmem:[%s1493_s5 + $0xc4] ss:$8 sps:$4 sm:$0xff]   ;;  %v1208_v28 = vld [vmem:[%s1493_s5 + $0xc0] ss:$8 sps:$4 sm:$0xff]  }
  0x51   : > { %804 = vmatpush1.bf16.msra.mxu0 %v1169_v59  ;;  %829 = vmatprep.mubr.bf16.mxu0 %v1044_v20  ;;  %v1227_v27 = vld [vmem:[%s1481_s26 + $0x8] ss:$0 sps:$4 sm:$0xff]   ;;  %v1212_v29 = vld [vmem:[%s1493_s5 + $0xb4] ss:$8 sps:$4 sm:$0xff]   ;;  %v1218_v31 = vld [vmem:[%s1493_s5 + $0xa4] ss:$8 sps:$4 sm:$0xff]  }
  0x52   : > { %805 = vmatprep.subr.bf16.mxu0 %v1170_v60  ;;  %v1214_v30 = vld [vmem:[%s1493_s5 + $0xb0] ss:$8 sps:$4 sm:$0xff]   ;;  %v1220_v32 = vld [vmem:[%s1493_s5 + $0xa0] ss:$8 sps:$4 sm:$0xff]   ;;  %v1224_v33 = vld [vmem:[%s1493_s5 + $0x94] ss:$8 sps:$4 sm:$0xff]  }
  0x53   : > { %845 = vmatpush1.bf16.msra.mxu1 %v1199_v6  ;;  %v1226_v34 = vld [vmem:[%s1493_s5 + $0x90] ss:$8 sps:$4 sm:$0xff]   ;;  %v1228_v35 = vld [vmem:[%s1493_s5 + $0x84] ss:$8 sps:$4 sm:$0xff]   ;;  %v1230_v36 = vld [vmem:[%s1493_s5 + $0x80] ss:$8 sps:$4 sm:$0xff]  }
  0x54   : > { %846 = vmatprep.subr.bf16.mxu1 %v1203_v7  ;;  %v494_v42 = vld [vmem:[#allocation2] sm:$0xff]  ;;  %v495_v45 = vld [vmem:[#allocation2 + $0x8] sm:$0xff] }
  0x55   : > { %806 = vmatpush1.bf16.msra.mxu0 %v1172_v63 }
  0x56   : > { %807 = vmatprep.subr.bf16.mxu0 %v1173_v1 }
  0x57   : > { %847 = vmatpush1.bf16.msra.mxu1 %v1205_v10 }
  0x58   : > { %848 = vmatprep.subr.bf16.mxu1 %v1209_v11 }
  0x59   : > { %808 = vmatpush1.bf16.msra.mxu0 %v1175_v4 }
  0x5a   : > { %809 = vmatprep.subr.bf16.mxu0 %v1176_v5 }
  0x5b   : > { %849 = vmatpush1.bf16.msra.mxu1 %v1211_v14 }
  0x5c   : > { %850 = vmatprep.subr.bf16.mxu1 %v1215_v15 }
  0x5d   : > { %810 = vmatpush1.bf16.msra.mxu0 %v1178_v8 }
  0x5e   : > { %811 = vmatprep.subr.bf16.mxu0 %v1182_v9 }
  0x5f   : > { %851 = vmatpush1.bf16.msra.mxu1 %v1217_v19 }
  0x60   : > { %852 = vmatprep.subr.bf16.mxu1 %v1221_v21 }
  0x61   : > { %812 = vmatpush1.bf16.msra.mxu0 %v1184_v12 }
  0x62   : > { %813 = vmatprep.subr.bf16.mxu0 %v1188_v13 }
  0x63   : > { %853 = vmatpush1.bf16.msra.mxu1 %v1223_v24 }
  0x65   : > { %814 = vmatpush2.bf16.msra.mxu0 %v1190_v16 }
  0x66   : > { %815 = vmatprep.subr.bf16.mxu0 %v1194_v17  ;;  %871 = vmatmul.mubr.bf16.vlgmr.msra.gmra.mxu1 %v1227_v27 }
  0x69   : > { %816 = vmatpush2.bf16.msra.mxu0 %v1196_v22 }
  0x6a   : > { %817 = vmatprep.subr.bf16.mxu0 %v1200_v23 }
  0x6d   : > { %818 = vmatpush2.bf16.msra.mxu0 %v1202_v25 }
  0x6e   : > { %819 = vmatprep.subr.bf16.mxu0 %v1206_v26 }
  0x71   : > { %820 = vmatpush2.bf16.msra.mxu0 %v1208_v28 }
  0x72   : > { %821 = vmatprep.subr.bf16.mxu0 %v1212_v29 }
  0x75   : > { %822 = vmatpush2.bf16.msra.mxu0 %v1214_v30 }
  0x76   : > { %823 = vmatprep.subr.bf16.mxu0 %v1218_v31 }
  0x79   : > { %824 = vmatpush2.bf16.msra.mxu0 %v1220_v32 }
  0x7a   : > { %825 = vmatprep.subr.bf16.mxu0 %v1224_v33 }
  0x7d   : > { %826 = vmatpush2.bf16.msra.mxu0 %v1226_v34 }
  0x7e   : > { %827 = vmatprep.subr.bf16.mxu0 %v1228_v35 }
  0x81   : > { %828 = vmatpush2.bf16.msra.mxu0 %v1230_v36 }
  0x84   : > { %830 = vmatmul.mubr.bf16.vlgmr.msra.gmra.mxu0 %v1043_v37 }
 0x126   : > { %v872_v38 = vpop.f32.mrf.mxu1 }
 0x128   : > { %v874_v39 = vpop.f32.mrf.mxu1 }
 0x12a   : > { %v876_v40 = vpop.f32.mrf.mxu1 }
 0x12c   : > { %v877_v41 = vpop.f32.mrf.mxu1 }
 0x144   : > { %v831_v43 = vpop.f32.mrf.mxu0 }
 0x145   : > { %v873_v44 = vadd.f32 %v872_v38, %v831_v43 }
 0x146   : > { %v833_v46 = vpop.f32.mrf.mxu0 }
 0x147   : > { %v879_v47 = vadd.f32 %v873_v44, %v494_v42  ;;  %v875_v48 = vadd.f32 %v874_v39, %v833_v46  ;;  %886 = sbr.rel (%p1094_p13) target bundleno = 345 (0x159), region = 78 }
 0x148   : > { %v835_v49 = vpop.f32.mrf.mxu0 }
 0x149   : > { %881 = vst [vmem:[#allocation2] sm:$0xff] %v879_v47  ;;  %v880_v50 = vadd.f32 %v875_v48, %v495_v45 }
 0x14a   : > { %v836_v51 = vpop.f32.mrf.mxu0 }
 0x14b   : > { %882 = vst [vmem:[#allocation2 + $0x8] sm:$0xff] %v880_v50 }
 0x14c   : > { %v891_v52 = vlaneseq  ;;  %v889_v54 = vld [vmem:[%s475_s12] sm:$0x3] }
 0x14e   : > { %v892_v53 = vshrl.u32 %v891_v52, 7 }
 0x150   : > { %v893_v55 = vsub.s32 0, %v892_v53  ;;  %v897_v56 = vsub.s32 1, %v892_v53  ;;  %v887_v57 = vld [vmem:[#allocation2] sm:$0xff] }
 0x152   : > { %v888_v58 = vld [vmem:[#allocation2 + $0x8] sm:$0xff]  ;;  %v894_v59 = vrot.slane %v889_v54, %v893_v55  ;;  %v898_v60 = vrot.slane %v889_v54, %v897_v56 }
 0x154   : > { %v901_v61 = vadd.f32 %v894_v59, %v887_v57  ;;  %v902_v62 = vadd.f32 %v898_v60, %v888_v58 }
 0x156   : > { %v903_v63 = vmax.f32 %v901_v61, 0.0  ;;  %v904_v0 = vmax.f32 %v902_v62, 0.0 }
 0x158   : > { %905 = vst [vmem:[%s1491_s4] sm:$0xff] %v903_v63  ;;  %906 = vst [vmem:[%s1491_s4 + $0x8] sm:$0xff] %v904_v0 }
 0x159 PF: > { %s13_s18 = sadd.s32 1, %s1287_s18   ;;  %s1579_s12 = smov %s1267_s13 }
 0x15a   : > { %p10_p0 = scmp.ge.s32.totalorder %s13_s18, 14   ;;  %s1580_s13 = smov %s1362_s25 }
 0x15b   : > { %s1581_s14 = smov %s1279_s16  ;;  %s1582_s15 = smov %s1283_s17 }
 0x15c   : > { %s1583_s16 = smov %s1586_s19  ;;  %s1584_s17 = smov %s1590_s20 }
 0x15d   :  { %12 = sbr.rel (!%p10_p0) target bundleno = 4 (0x4), region = 119 }

// kernel: _lambda_.37
= control target key start
LH: loop header
LB: loop body
LE: loop exit
PB: predicated region body
PF: predicated region fallthrough
CT: control target
= control target key end

     0   :  { %s1020_s12 = smov 0   ;;  %s1022_s13 = smov 0   ;;  %s1199_s0 = inlined_call_operand.vmem [shape: bf16[8,256], index: 0, kind: input, shape index: {}]   ;;  %s1200_s1 = inlined_call_operand.vmem [shape: bf16[256,512], index: 1, kind: input, shape index: {}]   ;;  %s1201_s2 = inlined_call_operand.vmem [shape: f32[1,512], index: 2, kind: input, shape index: {}]   ;;  %s1202_s3 = inlined_call_operand.vmem [shape: f32[8,512], index: 3, kind: output, shape index: {}]  }
   0x1   :  { %s1024_s14 = smov 0   ;;  %s1026_s15 = smov 0  }
   0x2   :  { %s1028_s16 = smov 0  }
   0x3 LB: > { %s28_s17 = sadd.s32 1, %s994_s15  ;;  %p76_p1 = scmp.ne.s32.totalorder %s986_s13, %s982_s12  ;;  %s998_s16 = sphi %s1028_s16, %s13_s16   ;;  %s994_s15 = sphi %s1026_s15, %s1206_s15   ;;  %s990_s14 = sphi %s1024_s14, %s1205_s14   ;;  %s986_s13 = sphi %s1022_s13, %s1204_s13   ;;  %s982_s12 = sphi %s1020_s12, %s1203_s12  }
   0x4   : > { %p30_p0 = scmp.ge.s32.totalorder %s28_s17, 2  ;;  %p77_p2 = scmp.eq.s32.totalorder %s998_s16, 0 }
   0x5   : > { %s69_s19 = sadd.s32 1, %s986_s13  ;;  %p824_p5 = scmp.ge.s32.totalorder %s998_s16, 2 }
   0x6   : > { %s1208_s17 = smov (%p30_p0, %s28_s17), 0  ;;  %p78_p3 = por %p77_p2, %p76_p1 }
   0x7   : > { %s65_s18 = ssub.s32 %s994_s15, %s1208_s17  ;;  %169 = sbr.rel (%p824_p5) target bundleno = 32 (0x20), region = 20 }
   0x8   : > { %p67_p4 = scmp.eq.s32.totalorder %s65_s18, 0 }
   0xa   : > { %s1055_s20 = scalar_select %p67_p4, %s986_s13, %s69_s19  }
   0xc   : > { %172 = sbr.rel (!%p78_p3) target bundleno = 32 (0x20), region = 24  ;;  %s174_s21 = sand.u32 (%p78_p3), 1, %s986_s13  }
   0xd   : > { %s869_s22 = sshll.u32 (%p78_p3), %s994_s15, 3  ;;  %s825_s23 = sshll.u32 (%p78_p3), %s174_s21, 8 }
   0xe   : > { %s1063_s26 = scalar_lea.vmem (%p78_p3), %s1200_s1, %s869_s22  ;;  %s1068_s27 = scalar_lea.vmem (%p78_p3), [#allocation3], %s825_s23 }
   0xf   : > { %v273_v0 = vld [vmem:[%s1063_s26] sm:$0xff] (%p78_p3)  ;;  %v275_v1 = vld [vmem:[%s1063_s26 + $0x10] sm:$0xff] (%p78_p3) }
  0x10   : > { %v277_v2 = vld [vmem:[%s1063_s26 + $0x20] sm:$0xff] (%p78_p3)  ;;  %274 = vst [vmem:[%s1068_s27] sm:$0xff] (%p78_p3), %v273_v0  ;;  %276 = vst [vmem:[%s1068_s27 + $0x8] sm:$0xff] (%p78_p3), %v275_v1  ;;  %v279_v3 = vld [vmem:[%s1063_s26 + $0x30] sm:$0xff] (%p78_p3) }
  0x11   : > { %278 = vst [vmem:[%s1068_s27 + $0x10] sm:$0xff] %v277_v2  ;;  %v281_v4 = vld [vmem:[%s1063_s26 + $0x40] sm:$0xff]  ;;  %v283_v5 = vld [vmem:[%s1063_s26 + $0x50] sm:$0xff]  ;;  %280 = vst [vmem:[%s1068_s27 + $0x18] sm:$0xff] %v279_v3 }
  0x12   : > { %282 = vst [vmem:[%s1068_s27 + $0x20] sm:$0xff] %v281_v4  ;;  %284 = vst [vmem:[%s1068_s27 + $0x28] sm:$0xff] %v283_v5  ;;  %v285_v6 = vld [vmem:[%s1063_s26 + $0x60] sm:$0xff]  ;;  %v287_v7 = vld [vmem:[%s1063_s26 + $0x70] sm:$0xff] }
  0x13   : > { %v289_v8 = vld [vmem:[%s1063_s26 + $0x80] sm:$0xff]  ;;  %286 = vst [vmem:[%s1068_s27 + $0x30] sm:$0xff] %v285_v6  ;;  %288 = vst [vmem:[%s1068_s27 + $0x38] sm:$0xff] %v287_v7  ;;  %v291_v9 = vld [vmem:[%s1063_s26 + $0x90] sm:$0xff] }
  0x14   : > { %290 = vst [vmem:[%s1068_s27 + $0x40] sm:$0xff] %v289_v8  ;;  %v293_v10 = vld [vmem:[%s1063_s26 + $0xa0] sm:$0xff]  ;;  %v295_v11 = vld [vmem:[%s1063_s26 + $0xb0] sm:$0xff]  ;;  %292 = vst [vmem:[%s1068_s27 + $0x48] sm:$0xff] %v291_v9 }
  0x15   : > { %294 = vst [vmem:[%s1068_s27 + $0x50] sm:$0xff] %v293_v10  ;;  %296 = vst [vmem:[%s1068_s27 + $0x58] sm:$0xff] %v295_v11  ;;  %v297_v12 = vld [vmem:[%s1063_s26 + $0xc0] sm:$0xff]  ;;  %v299_v13 = vld [vmem:[%s1063_s26 + $0xd0] sm:$0xff] }
  0x16   : > { %v301_v14 = vld [vmem:[%s1063_s26 + $0xe0] sm:$0xff]  ;;  %298 = vst [vmem:[%s1068_s27 + $0x60] sm:$0xff] %v297_v12  ;;  %300 = vst [vmem:[%s1068_s27 + $0x68] sm:$0xff] %v299_v13  ;;  %v303_v15 = vld [vmem:[%s1063_s26 + $0xf0] sm:$0xff] }
  0x17   : > { %302 = vst [vmem:[%s1068_s27 + $0x70] sm:$0xff] %v301_v14  ;;  %v305_v16 = vld [vmem:[%s1063_s26 + $0x100] sm:$0xff]  ;;  %v307_v17 = vld [vmem:[%s1063_s26 + $0x110] sm:$0xff]  ;;  %304 = vst [vmem:[%s1068_s27 + $0x78] sm:$0xff] %v303_v15 }
  0x18   : > { %306 = vst [vmem:[%s1068_s27 + $0x80] sm:$0xff] %v305_v16  ;;  %308 = vst [vmem:[%s1068_s27 + $0x88] sm:$0xff] %v307_v17  ;;  %v309_v18 = vld [vmem:[%s1063_s26 + $0x120] sm:$0xff]  ;;  %v311_v19 = vld [vmem:[%s1063_s26 + $0x130] sm:$0xff] }
  0x19   : > { %v313_v20 = vld [vmem:[%s1063_s26 + $0x140] sm:$0xff]  ;;  %310 = vst [vmem:[%s1068_s27 + $0x90] sm:$0xff] %v309_v18  ;;  %312 = vst [vmem:[%s1068_s27 + $0x98] sm:$0xff] %v311_v19  ;;  %v315_v21 = vld [vmem:[%s1063_s26 + $0x150] sm:$0xff] }
  0x1a   : > { %314 = vst [vmem:[%s1068_s27 + $0xa0] sm:$0xff] %v313_v20  ;;  %v317_v22 = vld [vmem:[%s1063_s26 + $0x160] sm:$0xff]  ;;  %v319_v23 = vld [vmem:[%s1063_s26 + $0x170] sm:$0xff]  ;;  %316 = vst [vmem:[%s1068_s27 + $0xa8] sm:$0xff] %v315_v21 }
  0x1b   : > { %318 = vst [vmem:[%s1068_s27 + $0xb0] sm:$0xff] %v317_v22  ;;  %320 = vst [vmem:[%s1068_s27 + $0xb8] sm:$0xff] %v319_v23  ;;  %v321_v24 = vld [vmem:[%s1063_s26 + $0x180] sm:$0xff]  ;;  %v323_v25 = vld [vmem:[%s1063_s26 + $0x190] sm:$0xff] }
  0x1c   : > { %v325_v26 = vld [vmem:[%s1063_s26 + $0x1a0] sm:$0xff]  ;;  %322 = vst [vmem:[%s1068_s27 + $0xc0] sm:$0xff] %v321_v24  ;;  %324 = vst [vmem:[%s1068_s27 + $0xc8] sm:$0xff] %v323_v25  ;;  %v327_v27 = vld [vmem:[%s1063_s26 + $0x1b0] sm:$0xff] }
  0x1d   : > { %326 = vst [vmem:[%s1068_s27 + $0xd0] sm:$0xff] %v325_v26  ;;  %v329_v28 = vld [vmem:[%s1063_s26 + $0x1c0] sm:$0xff]  ;;  %v331_v29 = vld [vmem:[%s1063_s26 + $0x1d0] sm:$0xff]  ;;  %328 = vst [vmem:[%s1068_s27 + $0xd8] sm:$0xff] %v327_v27 }
  0x1e   : > { %330 = vst [vmem:[%s1068_s27 + $0xe0] sm:$0xff] %v329_v28  ;;  %332 = vst [vmem:[%s1068_s27 + $0xe8] sm:$0xff] %v331_v29  ;;  %v333_v30 = vld [vmem:[%s1063_s26 + $0x1e0] sm:$0xff]  ;;  %v335_v31 = vld [vmem:[%s1063_s26 + $0x1f0] sm:$0xff] }
  0x1f   : > { %334 = vst [vmem:[%s1068_s27 + $0xf0] sm:$0xff] %v333_v30  ;;  %336 = vst [vmem:[%s1068_s27 + $0xf8] sm:$0xff] %v335_v31 }
  0x20 PF: > { %p828_p6 = scmp.ge.s32.totalorder %s998_s16, 1  ;;  %p349_p7 = scmp.lt.s32.totalorder %s998_s16, 3 }
  0x22   : > { %p350_p8 = pnand %p828_p6, %p349_p7 }
  0x23   : > { %s356_s28 = sand.u32 (!%p350_p8), 1, %s982_s12   ;;  %s830_s6 = sshll.u32 (!%p350_p8), %s990_s14, 1 }
  0x24   : > { %353 = sbr.rel (%p350_p8) target bundleno = 305 (0x131), region = 66  ;;  %s829_s4 = sshll.u32 (!%p350_p8), %s356_s28, 8 }
  0x25   : > { %s1141_s5 = scalar_lea.vmem (!%p350_p8), [#allocation3], %s829_s4  ;;  %p409_p9 = scmp.lt.s32.totalorder (!%p350_p8), %s830_s6, 3 }
  0x29   : > { %v1137_v32 = vld [vmem:[%s1199_s0] sm:$0xff]  ;;  %v910_v34 = vld [vmem:[%s1141_s5 + $0x74] ss:$8 sps:$4 sm:$0xff]   ;;  %v912_v35 = vld [vmem:[%s1141_s5 + $0x70] ss:$8 sps:$4 sm:$0xff]   ;;  %v683_v3 = vlaneseq  ;;  %s1210_s6 = smov (!%p409_p9, %s830_s6), 3 }
  0x2a   : > { %v834_v33 = vcombine.high %v1137_v32, %v1137_v32  ;;  %631 = vmatprep.subr.bf16.mxu0 %v910_v34  ;;  %v913_v36 = vld [vmem:[%s1141_s5 + $0x64] ss:$8 sps:$4 sm:$0xff]   ;;  %v915_v37 = vld [vmem:[%s1141_s5 + $0x60] ss:$8 sps:$4 sm:$0xff]   ;;  %v916_v38 = vld [vmem:[%s1141_s5 + $0x54] ss:$8 sps:$4 sm:$0xff]   ;;  %v833_v2 = vcombine.low %v1137_v32, %v1137_v32  ;;  %s411_s9 = scalar_lea.vmem %s1201_s2, %s1210_s6 }
  0x2b   : > { %632 = vmatpush1.bf16.msra.mxu0 %v912_v35  ;;  %v918_v39 = vld [vmem:[%s1141_s5 + $0x50] ss:$8 sps:$4 sm:$0xff]   ;;  %v919_v40 = vld [vmem:[%s1141_s5 + $0x44] ss:$8 sps:$4 sm:$0xff]   ;;  %v921_v41 = vld [vmem:[%s1141_s5 + $0x40] ss:$8 sps:$4 sm:$0xff]  }
  0x2c   : > { %663 = vmatprep.mubr.bf16.mxu0 %v834_v33  ;;  %633 = vmatprep.subr.bf16.mxu0 %v913_v36  ;;  %v922_v42 = vld [vmem:[%s1141_s5 + $0x34] ss:$8 sps:$4 sm:$0xff]   ;;  %v924_v43 = vld [vmem:[%s1141_s5 + $0x30] ss:$8 sps:$4 sm:$0xff]   ;;  %v925_v44 = vld [vmem:[%s1141_s5 + $0x24] ss:$8 sps:$4 sm:$0xff]  }
  0x2d   : > { %v927_v45 = vld [vmem:[%s1141_s5 + $0x20] ss:$8 sps:$4 sm:$0xff]   ;;  %v928_v46 = vld [vmem:[%s1141_s5 + $0x14] ss:$8 sps:$4 sm:$0xff]   ;;  %v930_v47 = vld [vmem:[%s1141_s5 + $0x10] ss:$8 sps:$4 sm:$0xff]  }
  0x2e   : > { %v931_v48 = vld [vmem:[%s1141_s5 + $0x4] ss:$8 sps:$4 sm:$0xff]   ;;  %v933_v49 = vld [vmem:[%s1141_s5] ss:$8 sps:$4 sm:$0xff]   ;;  %v934_v50 = vld [vmem:[%s1141_s5 + $0xf4] ss:$8 sps:$4 sm:$0xff]  }
  0x2f   : > { %634 = vmatpush1.bf16.msra.mxu0 %v915_v37  ;;  %v936_v51 = vld [vmem:[%s1141_s5 + $0xf0] ss:$8 sps:$4 sm:$0xff]   ;;  %v937_v52 = vld [vmem:[%s1141_s5 + $0xe4] ss:$8 sps:$4 sm:$0xff]   ;;  %v939_v53 = vld [vmem:[%s1141_s5 + $0xe0] ss:$8 sps:$4 sm:$0xff]  }
  0x30   : > { %635 = vmatprep.subr.bf16.mxu0 %v916_v38  ;;  %v940_v54 = vld [vmem:[%s1141_s5 + $0xd4] ss:$8 sps:$4 sm:$0xff]   ;;  %v942_v55 = vld [vmem:[%s1141_s5 + $0xd0] ss:$8 sps:$4 sm:$0xff]   ;;  %v943_v56 = vld [vmem:[%s1141_s5 + $0xc4] ss:$8 sps:$4 sm:$0xff]  }
  0x31   : > { %v945_v57 = vld [vmem:[%s1141_s5 + $0xc0] ss:$8 sps:$4 sm:$0xff]   ;;  %v946_v58 = vld [vmem:[%s1141_s5 + $0xb4] ss:$8 sps:$4 sm:$0xff]   ;;  %v948_v59 = vld [vmem:[%s1141_s5 + $0xb0] ss:$8 sps:$4 sm:$0xff]  }
  0x32   : > { %v949_v60 = vld [vmem:[%s1141_s5 + $0xa4] ss:$8 sps:$4 sm:$0xff]   ;;  %v951_v61 = vld [vmem:[%s1141_s5 + $0xa0] ss:$8 sps:$4 sm:$0xff]   ;;  %v952_v62 = vld [vmem:[%s1141_s5 + $0x94] ss:$8 sps:$4 sm:$0xff]  }
  0x33   : > { %636 = vmatpush1.bf16.msra.mxu0 %v918_v39  ;;  %v954_v63 = vld [vmem:[%s1141_s5 + $0x90] ss:$8 sps:$4 sm:$0xff]   ;;  %v955_v0 = vld [vmem:[%s1141_s5 + $0x84] ss:$8 sps:$4 sm:$0xff]   ;;  %v957_v1 = vld [vmem:[%s1141_s5 + $0x80] ss:$8 sps:$4 sm:$0xff]  }
  0x34   : > { %637 = vmatprep.subr.bf16.mxu0 %v919_v40  ;;  %v684_v4 = vshrl.u32 %v683_v3, 7  ;;  %v681_v6 = vld [vmem:[%s411_s9] sm:$0x3]  ;;  %s832_s10 = sshll.u32 %s1210_s6, 3 }
  0x35   : > { %s421_s18 = scalar_lea.vmem %s1202_s3, %s832_s10 }
  0x36   : > { %v685_v5 = vsub.s32 0, %v684_v4  ;;  %v689_v7 = vsub.s32 1, %v684_v4 }
  0x37   : > { %638 = vmatpush1.bf16.msra.mxu0 %v921_v41 }
  0x38   : > { %639 = vmatprep.subr.bf16.mxu0 %v922_v42  ;;  %v686_v8 = vrot.slane %v681_v6, %v685_v5  ;;  %v690_v9 = vrot.slane %v681_v6, %v689_v7 }
  0x3b   : > { %640 = vmatpush1.bf16.msra.mxu0 %v924_v43 }
  0x3c   : > { %641 = vmatprep.subr.bf16.mxu0 %v925_v44 }
  0x3f   : > { %642 = vmatpush1.bf16.msra.mxu0 %v927_v45 }
  0x40   : > { %643 = vmatprep.subr.bf16.mxu0 %v928_v46 }
  0x43   : > { %644 = vmatpush1.bf16.msra.mxu0 %v930_v47 }
  0x44   : > { %645 = vmatprep.subr.bf16.mxu0 %v931_v48 }
  0x47   : > { %646 = vmatpush1.bf16.msra.mxu0 %v933_v49 }
  0x48   : > { %647 = vmatprep.subr.bf16.mxu0 %v934_v50 }
  0x4b   : > { %648 = vmatpush2.bf16.msra.mxu0 %v936_v51 }
  0x4c   : > { %649 = vmatprep.subr.bf16.mxu0 %v937_v52 }
  0x4f   : > { %650 = vmatpush2.bf16.msra.mxu0 %v939_v53 }
  0x50   : > { %651 = vmatprep.subr.bf16.mxu0 %v940_v54 }
  0x53   : > { %652 = vmatpush2.bf16.msra.mxu0 %v942_v55 }
  0x54   : > { %653 = vmatprep.subr.bf16.mxu0 %v943_v56 }
  0x57   : > { %654 = vmatpush2.bf16.msra.mxu0 %v945_v57 }
  0x58   : > { %655 = vmatprep.subr.bf16.mxu0 %v946_v58 }
  0x5b   : > { %656 = vmatpush2.bf16.msra.mxu0 %v948_v59 }
  0x5c   : > { %657 = vmatprep.subr.bf16.mxu0 %v949_v60 }
  0x5f   : > { %658 = vmatpush2.bf16.msra.mxu0 %v951_v61 }
  0x60   : > { %659 = vmatprep.subr.bf16.mxu0 %v952_v62 }
  0x63   : > { %660 = vmatpush2.bf16.msra.mxu0 %v954_v63 }
  0x64   : > { %661 = vmatprep.subr.bf16.mxu0 %v955_v0 }
  0x67   : > { %662 = vmatpush2.bf16.msra.mxu0 %v957_v1 }
  0x6a   : > { %664 = vmatmul.mubr.bf16.vlgmr.msra.gmra.mxu0 %v833_v2 }
 0x12a   : > { %v665_v10 = vpop.f32.mrf.mxu0 }
 0x12b   : > { %v693_v11 = vadd.f32 %v686_v8, %v665_v10 }
 0x12c   : > { %v667_v12 = vpop.f32.mrf.mxu0 }
 0x12d   : > { %695 = vst [vmem:[%s421_s18] sm:$0xff] %v693_v11  ;;  %v694_v13 = vadd.f32 %v690_v9, %v667_v12 }
 0x12e   : > { %v669_v14 = vpop.f32.mrf.mxu0 }
 0x12f   : > { %696 = vst [vmem:[%s421_s18 + $0x8] sm:$0xff] %v694_v13 }
 0x130   : > { %v670_v15 = vpop.f32.mrf.mxu0 }
 0x131 PF: > { %s13_s16 = sadd.s32 1, %s998_s16   ;;  %s1203_s12 = smov %s986_s13 }
 0x132   : > { %p10_p10 = scmp.ge.s32.totalorder %s13_s16, 4   ;;  %s1204_s13 = smov %s1055_s20 }
 0x133   : > { %s1205_s14 = smov %s994_s15  ;;  %s1206_s15 = smov %s1208_s17 }
 0x134   :  { %12 = sbr.rel (!%p10_p10) target bundleno = 3 (0x3), region = 119 }

// kernel: _lambda_.39
= control target key start
LH: loop header
LB: loop body
LE: loop exit
PB: predicated region body
PF: predicated region fallthrough
CT: control target
= control target key end

     0   :  { %s1607_s15 = smov 0   ;;  %s1609_s16 = smov 0   ;;  %s1926_s0 = inlined_call_operand.vmem [shape: bf16[8,4608], index: 0, kind: input, shape index: {}]   ;;  %s1927_s1 = inlined_call_operand.vmem [shape: bf16[4608,512], index: 1, kind: input, shape index: {}]   ;;  %s1928_s2 = inlined_call_operand.vmem [shape: f32[1,512], index: 2, kind: input, shape index: {}]   ;;  %s1929_s3 = inlined_call_operand.vmem [shape: f32[8,512], index: 3, kind: input, shape index: {}]   ;;  %s1930_s4 = inlined_call_operand.vmem [shape: f32[8,512], index: 4, kind: output, shape index: {}]  }
   0x1   :  { %s1611_s17 = smov 0   ;;  %s1613_s18 = smov 0  }
   0x2   :  { %s1615_s19 = smov 0   ;;  %s1617_s20 = smov 0  }
   0x3   :  { %s1619_s21 = smov 0  }
   0x4 LB: > { %s26_s22 = sadd.s32 1, %s1571_s19  ;;  %s29_s23 = sadd.s32 1, %s1575_s20  ;;  %s1579_s21 = sphi %s1619_s21, %s14_s21   ;;  %s1575_s20 = sphi %s1617_s20, %s1936_s20   ;;  %s1571_s19 = sphi %s1615_s19, %s1935_s19   ;;  %s1567_s18 = sphi %s1613_s18, %s1934_s18   ;;  %s1563_s17 = sphi %s1611_s17, %s1933_s17   ;;  %s1559_s16 = sphi %s1609_s16, %s1932_s16   ;;  %s1555_s15 = sphi %s1607_s15, %s1931_s15  }
   0x5   : > { %p27_p0 = scmp.ge.s32.totalorder %s26_s22, 9  ;;  %p77_p1 = scmp.ne.s32.totalorder %s1559_s16, %s1555_s15 }
   0x6   : > { %p78_p2 = scmp.eq.s32.totalorder %s1579_s21, 0  ;;  %s70_s27 = sadd.s32 1, %s1559_s16 }
   0x7   : > { %s1938_s22 = smov (%p27_p0, %s26_s22), 0  ;;  %s1940_s23 = smov (!%p27_p0, %s29_s23), %s1575_s20 }
   0x8   : > { %p79_p3 = por %p78_p2, %p77_p1  ;;  %p31_p4 = scmp.ge.s32.totalorder %s1940_s23, 2 }
   0x9   : > { %s65_s24 = ssub.s32 %s1571_s19, %s1938_s22  ;;  %p1280_p6 = scmp.ge.s32.totalorder %s1579_s21, 18 }
   0xa   : > { %s1942_s23 = smov (%p31_p4, %s1940_s23), 0 }
   0xb   : > { %s66_s25 = ssub.s32 %s1575_s20, %s1942_s23  ;;  %185 = sbr.rel (%p1280_p6) target bundleno = 55 (0x37), region = 16 }
   0xc   : > { %s67_s26 = sor.u32 %s66_s25, %s65_s24 }
   0xd   : > { %p68_p5 = scmp.eq.s32.totalorder %s67_s26, 0 }
   0xf   : > { %s1658_s28 = scalar_select %p68_p5, %s1559_s16, %s70_s27  }
  0x10   : > { %201 = sbr.rel (!%p79_p3) target bundleno = 55 (0x37), region = 24  ;;  %s203_s29 = sand.u32 (%p79_p3), 1, %s1559_s16  }
  0x11   : > { %s1283_s30 = sshll.u32 (%p79_p3), %s1575_s20, 1  ;;  %s1281_s5 = sshll.u32 (%p79_p3), %s203_s29, 9 }
  0x12   : > { %s1367_s6 = sshll.u32 (%p79_p3), %s1571_s19, 8  ;;  %s1672_s12 = scalar_lea.vmem (%p79_p3), [#allocation3], %s1281_s5 }
  0x13   : > { %s209_s7 = sadd.s32 (%p79_p3), %s1367_s6, %s1283_s30 }
  0x14   : > { %s1285_s8 = sshll.u32 (%p79_p3), %s209_s7, 2 }
  0x15   : > { %s1667_s11 = scalar_lea.vmem %s1927_s1, %s1285_s8 }
  0x16   : > { %v366_v0 = vld [vmem:[%s1667_s11] sm:$0xff]  ;;  %v368_v1 = vld [vmem:[%s1667_s11 + $0x10] sm:$0xff] }
  0x17   : > { %v370_v2 = vld [vmem:[%s1667_s11 + $0x20] sm:$0xff]  ;;  %367 = vst [vmem:[%s1672_s12] sm:$0xff] %v366_v0  ;;  %369 = vst [vmem:[%s1672_s12 + $0x8] sm:$0xff] %v368_v1  ;;  %v372_v3 = vld [vmem:[%s1667_s11 + $0x30] sm:$0xff] }
  0x18   : > { %371 = vst [vmem:[%s1672_s12 + $0x10] sm:$0xff] %v370_v2  ;;  %v374_v4 = vld [vmem:[%s1667_s11 + $0x40] sm:$0xff]  ;;  %v376_v5 = vld [vmem:[%s1667_s11 + $0x50] sm:$0xff]  ;;  %373 = vst [vmem:[%s1672_s12 + $0x18] sm:$0xff] %v372_v3 }
  0x19   : > { %375 = vst [vmem:[%s1672_s12 + $0x20] sm:$0xff] %v374_v4  ;;  %377 = vst [vmem:[%s1672_s12 + $0x28] sm:$0xff] %v376_v5  ;;  %v378_v6 = vld [vmem:[%s1667_s11 + $0x60] sm:$0xff]  ;;  %v380_v7 = vld [vmem:[%s1667_s11 + $0x70] sm:$0xff] }
  0x1a   : > { %v382_v8 = vld [vmem:[%s1667_s11 + $0x80] sm:$0xff]  ;;  %379 = vst [vmem:[%s1672_s12 + $0x30] sm:$0xff] %v378_v6  ;;  %381 = vst [vmem:[%s1672_s12 + $0x38] sm:$0xff] %v380_v7  ;;  %v384_v9 = vld [vmem:[%s1667_s11 + $0x90] sm:$0xff] }
  0x1b   : > { %383 = vst [vmem:[%s1672_s12 + $0x40] sm:$0xff] %v382_v8  ;;  %v386_v10 = vld [vmem:[%s1667_s11 + $0xa0] sm:$0xff]  ;;  %v388_v11 = vld [vmem:[%s1667_s11 + $0xb0] sm:$0xff]  ;;  %385 = vst [vmem:[%s1672_s12 + $0x48] sm:$0xff] %v384_v9 }
  0x1c   : > { %387 = vst [vmem:[%s1672_s12 + $0x50] sm:$0xff] %v386_v10  ;;  %389 = vst [vmem:[%s1672_s12 + $0x58] sm:$0xff] %v388_v11  ;;  %v390_v12 = vld [vmem:[%s1667_s11 + $0xc0] sm:$0xff]  ;;  %v392_v13 = vld [vmem:[%s1667_s11 + $0xd0] sm:$0xff] }
  0x1d   : > { %v394_v14 = vld [vmem:[%s1667_s11 + $0xe0] sm:$0xff]  ;;  %391 = vst [vmem:[%s1672_s12 + $0x60] sm:$0xff] %v390_v12  ;;  %393 = vst [vmem:[%s1672_s12 + $0x68] sm:$0xff] %v392_v13  ;;  %v396_v15 = vld [vmem:[%s1667_s11 + $0xf0] sm:$0xff] }
  0x1e   : > { %395 = vst [vmem:[%s1672_s12 + $0x70] sm:$0xff] %v394_v14  ;;  %v398_v16 = vld [vmem:[%s1667_s11 + $0x100] sm:$0xff]  ;;  %v400_v17 = vld [vmem:[%s1667_s11 + $0x110] sm:$0xff]  ;;  %397 = vst [vmem:[%s1672_s12 + $0x78] sm:$0xff] %v396_v15 }
  0x1f   : > { %399 = vst [vmem:[%s1672_s12 + $0x80] sm:$0xff] %v398_v16  ;;  %401 = vst [vmem:[%s1672_s12 + $0x88] sm:$0xff] %v400_v17  ;;  %v402_v18 = vld [vmem:[%s1667_s11 + $0x120] sm:$0xff]  ;;  %v404_v19 = vld [vmem:[%s1667_s11 + $0x130] sm:$0xff] }
  0x20   : > { %v406_v20 = vld [vmem:[%s1667_s11 + $0x140] sm:$0xff]  ;;  %403 = vst [vmem:[%s1672_s12 + $0x90] sm:$0xff] %v402_v18  ;;  %405 = vst [vmem:[%s1672_s12 + $0x98] sm:$0xff] %v404_v19  ;;  %v408_v21 = vld [vmem:[%s1667_s11 + $0x150] sm:$0xff] }
  0x21   : > { %407 = vst [vmem:[%s1672_s12 + $0xa0] sm:$0xff] %v406_v20  ;;  %v410_v22 = vld [vmem:[%s1667_s11 + $0x160] sm:$0xff]  ;;  %v412_v23 = vld [vmem:[%s1667_s11 + $0x170] sm:$0xff]  ;;  %409 = vst [vmem:[%s1672_s12 + $0xa8] sm:$0xff] %v408_v21 }
  0x22   : > { %411 = vst [vmem:[%s1672_s12 + $0xb0] sm:$0xff] %v410_v22  ;;  %413 = vst [vmem:[%s1672_s12 + $0xb8] sm:$0xff] %v412_v23  ;;  %v414_v24 = vld [vmem:[%s1667_s11 + $0x180] sm:$0xff]  ;;  %v416_v25 = vld [vmem:[%s1667_s11 + $0x190] sm:$0xff] }
  0x23   : > { %v418_v26 = vld [vmem:[%s1667_s11 + $0x1a0] sm:$0xff]  ;;  %415 = vst [vmem:[%s1672_s12 + $0xc0] sm:$0xff] %v414_v24  ;;  %417 = vst [vmem:[%s1672_s12 + $0xc8] sm:$0xff] %v416_v25  ;;  %v420_v27 = vld [vmem:[%s1667_s11 + $0x1b0] sm:$0xff] }
  0x24   : > { %419 = vst [vmem:[%s1672_s12 + $0xd0] sm:$0xff] %v418_v26  ;;  %v422_v28 = vld [vmem:[%s1667_s11 + $0x1c0] sm:$0xff]  ;;  %v424_v29 = vld [vmem:[%s1667_s11 + $0x1d0] sm:$0xff]  ;;  %421 = vst [vmem:[%s1672_s12 + $0xd8] sm:$0xff] %v420_v27 }
  0x25   : > { %423 = vst [vmem:[%s1672_s12 + $0xe0] sm:$0xff] %v422_v28  ;;  %425 = vst [vmem:[%s1672_s12 + $0xe8] sm:$0xff] %v424_v29  ;;  %v426_v30 = vld [vmem:[%s1667_s11 + $0x1e0] sm:$0xff]  ;;  %v428_v31 = vld [vmem:[%s1667_s11 + $0x1f0] sm:$0xff] }
  0x26   : > { %v430_v32 = vld [vmem:[%s1667_s11 + $0x200] sm:$0xff]  ;;  %427 = vst [vmem:[%s1672_s12 + $0xf0] sm:$0xff] %v426_v30  ;;  %429 = vst [vmem:[%s1672_s12 + $0xf8] sm:$0xff] %v428_v31  ;;  %v432_v33 = vld [vmem:[%s1667_s11 + $0x210] sm:$0xff] }
  0x27   : > { %431 = vst [vmem:[%s1672_s12 + $0x100] sm:$0xff] %v430_v32  ;;  %v434_v34 = vld [vmem:[%s1667_s11 + $0x220] sm:$0xff]  ;;  %v436_v35 = vld [vmem:[%s1667_s11 + $0x230] sm:$0xff]  ;;  %433 = vst [vmem:[%s1672_s12 + $0x108] sm:$0xff] %v432_v33 }
  0x28   : > { %435 = vst [vmem:[%s1672_s12 + $0x110] sm:$0xff] %v434_v34  ;;  %437 = vst [vmem:[%s1672_s12 + $0x118] sm:$0xff] %v436_v35  ;;  %v438_v36 = vld [vmem:[%s1667_s11 + $0x240] sm:$0xff]  ;;  %v440_v37 = vld [vmem:[%s1667_s11 + $0x250] sm:$0xff] }
  0x29   : > { %v442_v38 = vld [vmem:[%s1667_s11 + $0x260] sm:$0xff]  ;;  %439 = vst [vmem:[%s1672_s12 + $0x120] sm:$0xff] %v438_v36  ;;  %441 = vst [vmem:[%s1672_s12 + $0x128] sm:$0xff] %v440_v37  ;;  %v444_v39 = vld [vmem:[%s1667_s11 + $0x270] sm:$0xff] }
  0x2a   : > { %443 = vst [vmem:[%s1672_s12 + $0x130] sm:$0xff] %v442_v38  ;;  %v446_v40 = vld [vmem:[%s1667_s11 + $0x280] sm:$0xff]  ;;  %v448_v41 = vld [vmem:[%s1667_s11 + $0x290] sm:$0xff]  ;;  %445 = vst [vmem:[%s1672_s12 + $0x138] sm:$0xff] %v444_v39 }
  0x2b   : > { %447 = vst [vmem:[%s1672_s12 + $0x140] sm:$0xff] %v446_v40  ;;  %449 = vst [vmem:[%s1672_s12 + $0x148] sm:$0xff] %v448_v41  ;;  %v450_v42 = vld [vmem:[%s1667_s11 + $0x2a0] sm:$0xff]  ;;  %v452_v43 = vld [vmem:[%s1667_s11 + $0x2b0] sm:$0xff] }
  0x2c   : > { %v454_v44 = vld [vmem:[%s1667_s11 + $0x2c0] sm:$0xff]  ;;  %451 = vst [vmem:[%s1672_s12 + $0x150] sm:$0xff] %v450_v42  ;;  %453 = vst [vmem:[%s1672_s12 + $0x158] sm:$0xff] %v452_v43  ;;  %v456_v45 = vld [vmem:[%s1667_s11 + $0x2d0] sm:$0xff] }
  0x2d   : > { %455 = vst [vmem:[%s1672_s12 + $0x160] sm:$0xff] %v454_v44  ;;  %v458_v46 = vld [vmem:[%s1667_s11 + $0x2e0] sm:$0xff]  ;;  %v460_v47 = vld [vmem:[%s1667_s11 + $0x2f0] sm:$0xff]  ;;  %457 = vst [vmem:[%s1672_s12 + $0x168] sm:$0xff] %v456_v45 }
  0x2e   : > { %459 = vst [vmem:[%s1672_s12 + $0x170] sm:$0xff] %v458_v46  ;;  %461 = vst [vmem:[%s1672_s12 + $0x178] sm:$0xff] %v460_v47  ;;  %v462_v48 = vld [vmem:[%s1667_s11 + $0x300] sm:$0xff]  ;;  %v464_v49 = vld [vmem:[%s1667_s11 + $0x310] sm:$0xff] }
  0x2f   : > { %v466_v50 = vld [vmem:[%s1667_s11 + $0x320] sm:$0xff]  ;;  %463 = vst [vmem:[%s1672_s12 + $0x180] sm:$0xff] %v462_v48  ;;  %465 = vst [vmem:[%s1672_s12 + $0x188] sm:$0xff] %v464_v49  ;;  %v468_v51 = vld [vmem:[%s1667_s11 + $0x330] sm:$0xff] }
  0x30   : > { %467 = vst [vmem:[%s1672_s12 + $0x190] sm:$0xff] %v466_v50  ;;  %v470_v52 = vld [vmem:[%s1667_s11 + $0x340] sm:$0xff]  ;;  %v472_v53 = vld [vmem:[%s1667_s11 + $0x350] sm:$0xff]  ;;  %469 = vst [vmem:[%s1672_s12 + $0x198] sm:$0xff] %v468_v51 }
  0x31   : > { %471 = vst [vmem:[%s1672_s12 + $0x1a0] sm:$0xff] %v470_v52  ;;  %473 = vst [vmem:[%s1672_s12 + $0x1a8] sm:$0xff] %v472_v53  ;;  %v474_v54 = vld [vmem:[%s1667_s11 + $0x360] sm:$0xff]  ;;  %v476_v55 = vld [vmem:[%s1667_s11 + $0x370] sm:$0xff] }
  0x32   : > { %v478_v56 = vld [vmem:[%s1667_s11 + $0x380] sm:$0xff]  ;;  %475 = vst [vmem:[%s1672_s12 + $0x1b0] sm:$0xff] %v474_v54  ;;  %477 = vst [vmem:[%s1672_s12 + $0x1b8] sm:$0xff] %v476_v55  ;;  %v480_v57 = vld [vmem:[%s1667_s11 + $0x390] sm:$0xff] }
  0x33   : > { %479 = vst [vmem:[%s1672_s12 + $0x1c0] sm:$0xff] %v478_v56  ;;  %v482_v58 = vld [vmem:[%s1667_s11 + $0x3a0] sm:$0xff]  ;;  %v484_v59 = vld [vmem:[%s1667_s11 + $0x3b0] sm:$0xff]  ;;  %481 = vst [vmem:[%s1672_s12 + $0x1c8] sm:$0xff] %v480_v57 }
  0x34   : > { %483 = vst [vmem:[%s1672_s12 + $0x1d0] sm:$0xff] %v482_v58  ;;  %485 = vst [vmem:[%s1672_s12 + $0x1d8] sm:$0xff] %v484_v59  ;;  %v486_v60 = vld [vmem:[%s1667_s11 + $0x3c0] sm:$0xff]  ;;  %v488_v61 = vld [vmem:[%s1667_s11 + $0x3d0] sm:$0xff] }
  0x35   : > { %v490_v62 = vld [vmem:[%s1667_s11 + $0x3e0] sm:$0xff]  ;;  %487 = vst [vmem:[%s1672_s12 + $0x1e0] sm:$0xff] %v486_v60  ;;  %489 = vst [vmem:[%s1672_s12 + $0x1e8] sm:$0xff] %v488_v61  ;;  %v492_v63 = vld [vmem:[%s1667_s11 + $0x3f0] sm:$0xff] }
  0x36   : > { %491 = vst [vmem:[%s1672_s12 + $0x1f0] sm:$0xff] %v490_v62  ;;  %493 = vst [vmem:[%s1672_s12 + $0x1f8] sm:$0xff] %v492_v63 }
  0x37 PF: > { %p1286_p7 = scmp.ge.s32.totalorder %s1579_s21, 1  ;;  %p519_p8 = scmp.lt.s32.totalorder %s1579_s21, 19 }
  0x39   : > { %p520_p9 = pnand %p1286_p7, %p519_p8 }
  0x3a   : > { %s526_s13 = sand.u32 (!%p520_p9), 1, %s1555_s15   ;;  %s1288_s14 = sshll.u32 (!%p520_p9), %s1563_s17, 2 }
  0x3b   : > { %523 = sbr.rel (%p520_p9) target bundleno = 356 (0x164), region = 70  ;;  %s1287_s24 = sshll.u32 (!%p520_p9), %s526_s13, 9 }
  0x3c   : > { %p580_p10 = scmp.lt.s32.totalorder (!%p520_p9), %s1288_s14, 35  ;;  %s1290_s25 = sshll.u32 (!%p520_p9), %s1567_s18, 1 }
  0x3d   : > { %p590_p11 = scmp.lt.s32.totalorder (!%p520_p9), %s1290_s25, 3  ;;  %s1826_s13 = scalar_lea.vmem (!%p520_p9), [#allocation3], %s1287_s24 }
  0x3e   : > { %p1295_p12 = scmp.ne.s32.totalorder (!%p520_p9), %s1563_s17, 0 }
  0x40   : > { %s1944_s14 = smov (!%p580_p10, %s1288_s14), 35  ;;  %s1946_s25 = smov (!%p590_p11, %s1290_s25), 3 }
  0x41   : > { %s1289_s26 = sshll.u32 %s1944_s14, 2  ;;  %s592_s15 = scalar_lea.vmem %s1928_s2, %s1946_s25 }
  0x42   : > { %s1807_s30 = scalar_lea.vmem %s1926_s0, %s1289_s26  ;;  %s1292_s7 = sshll.u32 %s1946_s25, 3 }
  0x43   : > { %s1819_s18 = scalar_lea.vmem %s1929_s3, %s1292_s7  ;;  %s1824_s12 = scalar_lea.vmem %s1930_s4, %s1292_s7 }
  0x44   : > { %617 = sbr.rel (%p1295_p12) target bundleno = 75 (0x4b), region = 78 }
  0x49   : > { %v1581_v0 = vmov 0.0  }
  0x4a   : > { %618 = vst [vmem:[#allocation2] sm:$0xff] %v1581_v0  ;;  %619 = vst [vmem:[#allocation2 + $0x8] sm:$0xff] %v1581_v0 }
  0x4b PF: > { %v1425_v1 = vld [vmem:[%s1826_s13 + $0x74] ss:$8 sps:$4 sm:$0xff]   ;;  %v1429_v3 = vld [vmem:[%s1826_s13 + $0x70] ss:$8 sps:$4 sm:$0xff]   ;;  %v1431_v5 = vld [vmem:[%s1826_s13 + $0x64] ss:$8 sps:$4 sm:$0xff]  }
  0x4c   : > { %v1427_v2 = vld [vmem:[%s1826_s13 + $0x174] ss:$8 sps:$4 sm:$0xff]   ;;  %1022 = vmatprep.subr.bf16.mxu0 %v1425_v1  ;;  %v1430_v4 = vld [vmem:[%s1826_s13 + $0x170] ss:$8 sps:$4 sm:$0xff]   ;;  %v1433_v6 = vld [vmem:[%s1826_s13 + $0x164] ss:$8 sps:$4 sm:$0xff]  }
  0x4d   : > { %1063 = vmatprep.subr.bf16.mxu1 %v1427_v2  ;;  %1023 = vmatpush1.bf16.msra.mxu0 %v1429_v3  ;;  %v1435_v7 = vld [vmem:[%s1826_s13 + $0x60] ss:$8 sps:$4 sm:$0xff]   ;;  %v1437_v9 = vld [vmem:[%s1826_s13 + $0x54] ss:$8 sps:$4 sm:$0xff]   ;;  %v1441_v11 = vld [vmem:[%s1826_s13 + $0x50] ss:$8 sps:$4 sm:$0xff]  }
  0x4e   : > { %1064 = vmatpush1.bf16.msra.mxu1 %v1430_v4  ;;  %1024 = vmatprep.subr.bf16.mxu0 %v1431_v5  ;;  %v1436_v8 = vld [vmem:[%s1826_s13 + $0x160] ss:$8 sps:$4 sm:$0xff]   ;;  %v1439_v10 = vld [vmem:[%s1826_s13 + $0x154] ss:$8 sps:$4 sm:$0xff]   ;;  %v1442_v12 = vld [vmem:[%s1826_s13 + $0x150] ss:$8 sps:$4 sm:$0xff]  }
  0x4f   : > { %1065 = vmatprep.subr.bf16.mxu1 %v1433_v6  ;;  %v1443_v13 = vld [vmem:[%s1826_s13 + $0x44] ss:$8 sps:$4 sm:$0xff]   ;;  %v1447_v15 = vld [vmem:[%s1826_s13 + $0x40] ss:$8 sps:$4 sm:$0xff]   ;;  %v1449_v17 = vld [vmem:[%s1826_s13 + $0x34] ss:$8 sps:$4 sm:$0xff]  }
  0x50   : > { %v1445_v14 = vld [vmem:[%s1826_s13 + $0x144] ss:$8 sps:$4 sm:$0xff]   ;;  %v1448_v16 = vld [vmem:[%s1826_s13 + $0x140] ss:$8 sps:$4 sm:$0xff]   ;;  %v1451_v18 = vld [vmem:[%s1826_s13 + $0x134] ss:$8 sps:$4 sm:$0xff]  }
  0x51   : > { %1025 = vmatpush1.bf16.msra.mxu0 %v1435_v7  ;;  %v1453_v19 = vld [vmem:[%s1826_s13 + $0x30] ss:$8 sps:$4 sm:$0xff]   ;;  %v1455_v21 = vld [vmem:[%s1826_s13 + $0x24] ss:$8 sps:$4 sm:$0xff]   ;;  %v1459_v23 = vld [vmem:[%s1826_s13 + $0x20] ss:$8 sps:$4 sm:$0xff]  }
  0x52   : > { %1066 = vmatpush1.bf16.msra.mxu1 %v1436_v8  ;;  %1026 = vmatprep.subr.bf16.mxu0 %v1437_v9  ;;  %v1454_v20 = vld [vmem:[%s1826_s13 + $0x130] ss:$8 sps:$4 sm:$0xff]   ;;  %v1457_v22 = vld [vmem:[%s1826_s13 + $0x124] ss:$8 sps:$4 sm:$0xff]   ;;  %v1460_v24 = vld [vmem:[%s1826_s13 + $0x120] ss:$8 sps:$4 sm:$0xff]  }
  0x53   : > { %1067 = vmatprep.subr.bf16.mxu1 %v1439_v10  ;;  %v1461_v25 = vld [vmem:[%s1826_s13 + $0x14] ss:$8 sps:$4 sm:$0xff]   ;;  %v1465_v27 = vld [vmem:[%s1826_s13 + $0x10] ss:$8 sps:$4 sm:$0xff]   ;;  %v1467_v29 = vld [vmem:[%s1826_s13 + $0x4] ss:$8 sps:$4 sm:$0xff]  }
  0x54   : > { %v1463_v26 = vld [vmem:[%s1826_s13 + $0x114] ss:$8 sps:$4 sm:$0xff]   ;;  %v1466_v28 = vld [vmem:[%s1826_s13 + $0x110] ss:$8 sps:$4 sm:$0xff]   ;;  %v1469_v30 = vld [vmem:[%s1826_s13 + $0x104] ss:$8 sps:$4 sm:$0xff]  }
  0x55   : > { %1027 = vmatpush1.bf16.msra.mxu0 %v1441_v11  ;;  %v1471_v31 = vld [vmem:[%s1826_s13] ss:$8 sps:$4 sm:$0xff]   ;;  %v1473_v33 = vld [vmem:[%s1826_s13 + $0xf4] ss:$8 sps:$4 sm:$0xff]   ;;  %v1477_v35 = vld [vmem:[%s1826_s13 + $0xf0] ss:$8 sps:$4 sm:$0xff]  }
  0x56   : > { %1068 = vmatpush1.bf16.msra.mxu1 %v1442_v12  ;;  %1028 = vmatprep.subr.bf16.mxu0 %v1443_v13  ;;  %v1472_v32 = vld [vmem:[%s1826_s13 + $0x100] ss:$8 sps:$4 sm:$0xff]   ;;  %v1475_v34 = vld [vmem:[%s1826_s13 + $0x1f4] ss:$8 sps:$4 sm:$0xff]   ;;  %v1478_v36 = vld [vmem:[%s1826_s13 + $0x1f0] ss:$8 sps:$4 sm:$0xff]  }
  0x57   : > { %1069 = vmatprep.subr.bf16.mxu1 %v1445_v14  ;;  %v1479_v37 = vld [vmem:[%s1826_s13 + $0xe4] ss:$8 sps:$4 sm:$0xff]   ;;  %v1483_v39 = vld [vmem:[%s1826_s13 + $0xe0] ss:$8 sps:$4 sm:$0xff]   ;;  %v1485_v41 = vld [vmem:[%s1826_s13 + $0xd4] ss:$8 sps:$4 sm:$0xff]  }
  0x58   : > { %v1481_v38 = vld [vmem:[%s1826_s13 + $0x1e4] ss:$8 sps:$4 sm:$0xff]   ;;  %v1484_v40 = vld [vmem:[%s1826_s13 + $0x1e0] ss:$8 sps:$4 sm:$0xff]   ;;  %v1487_v42 = vld [vmem:[%s1826_s13 + $0x1d4] ss:$8 sps:$4 sm:$0xff]  }
  0x59   : > { %1029 = vmatpush1.bf16.msra.mxu0 %v1447_v15  ;;  %v1489_v43 = vld [vmem:[%s1826_s13 + $0xd0] ss:$8 sps:$4 sm:$0xff]   ;;  %v1491_v45 = vld [vmem:[%s1826_s13 + $0xc4] ss:$8 sps:$4 sm:$0xff]   ;;  %v1495_v50 = vld [vmem:[%s1826_s13 + $0xc0] ss:$8 sps:$4 sm:$0xff]  }
  0x5a   : > { %1070 = vmatpush1.bf16.msra.mxu1 %v1448_v16  ;;  %1030 = vmatprep.subr.bf16.mxu0 %v1449_v17  ;;  %v1490_v44 = vld [vmem:[%s1826_s13 + $0x1d0] ss:$8 sps:$4 sm:$0xff]   ;;  %v1493_v46 = vld [vmem:[%s1826_s13 + $0x1c4] ss:$8 sps:$4 sm:$0xff]   ;;  %v1496_v51 = vld [vmem:[%s1826_s13 + $0x1c0] ss:$8 sps:$4 sm:$0xff]  }
  0x5b   : > { %1071 = vmatprep.subr.bf16.mxu1 %v1451_v18  ;;  %v622_v47 = vld [vmem:[%s1807_s30] sm:$0xff]  ;;  %v623_v49 = vld [vmem:[%s1807_s30 + $0x8] sm:$0xff]  ;;  %v1503_v57 = vld [vmem:[%s1826_s13 + $0xa4] ss:$8 sps:$4 sm:$0xff]   ;;  %p1364_p13 = scmp.ne.s32.totalorder %s1563_s17, 8 }
  0x5c   : > { %v1297_v48 = vcombine.high %v622_v47, %v622_v47  ;;  %v1299_v52 = vcombine.high %v623_v49, %v623_v49  ;;  %v1497_v53 = vld [vmem:[%s1826_s13 + $0xb4] ss:$8 sps:$4 sm:$0xff]   ;;  %v1501_v55 = vld [vmem:[%s1826_s13 + $0xb0] ss:$8 sps:$4 sm:$0xff]   ;;  %v1505_v58 = vld [vmem:[%s1826_s13 + $0x1a4] ss:$8 sps:$4 sm:$0xff]   ;;  %v1296_v5 = vcombine.low %v622_v47, %v622_v47  ;;  %v1298_v6 = vcombine.low %v623_v49, %v623_v49 }
  0x5d   : > { %1031 = vmatpush1.bf16.msra.mxu0 %v1453_v19  ;;  %v1499_v54 = vld [vmem:[%s1826_s13 + $0x1b4] ss:$8 sps:$4 sm:$0xff]   ;;  %v1502_v56 = vld [vmem:[%s1826_s13 + $0x1b0] ss:$8 sps:$4 sm:$0xff]   ;;  %v1507_v59 = vld [vmem:[%s1826_s13 + $0xa0] ss:$8 sps:$4 sm:$0xff]  }
  0x5e   : > { %1072 = vmatpush1.bf16.msra.mxu1 %v1454_v20  ;;  %1032 = vmatprep.subr.bf16.mxu0 %v1455_v21  ;;  %v1508_v60 = vld [vmem:[%s1826_s13 + $0x1a0] ss:$8 sps:$4 sm:$0xff]   ;;  %v1509_v61 = vld [vmem:[%s1826_s13 + $0x94] ss:$8 sps:$4 sm:$0xff]   ;;  %v1513_v63 = vld [vmem:[%s1826_s13 + $0x90] ss:$8 sps:$4 sm:$0xff]  }
  0x5f   : > { %1073 = vmatprep.subr.bf16.mxu1 %v1457_v22  ;;  %1054 = vmatprep.mubr.bf16.mxu0 %v1297_v48  ;;  %v1511_v62 = vld [vmem:[%s1826_s13 + $0x194] ss:$8 sps:$4 sm:$0xff]   ;;  %v1514_v0 = vld [vmem:[%s1826_s13 + $0x190] ss:$8 sps:$4 sm:$0xff]   ;;  %v1515_v1 = vld [vmem:[%s1826_s13 + $0x84] ss:$8 sps:$4 sm:$0xff]  }
  0x60   : > { %1095 = vmatprep.mubr.bf16.mxu1 %v1299_v52  ;;  %v1517_v2 = vld [vmem:[%s1826_s13 + $0x184] ss:$8 sps:$4 sm:$0xff]   ;;  %v1519_v3 = vld [vmem:[%s1826_s13 + $0x80] ss:$8 sps:$4 sm:$0xff]   ;;  %v620_v8 = vld [vmem:[#allocation2] sm:$0xff] }
  0x61   : > { %1033 = vmatpush1.bf16.msra.mxu0 %v1459_v23  ;;  %v1520_v4 = vld [vmem:[%s1826_s13 + $0x180] ss:$8 sps:$4 sm:$0xff]   ;;  %v621_v12 = vld [vmem:[#allocation2 + $0x8] sm:$0xff] }
  0x62   : > { %1074 = vmatpush1.bf16.msra.mxu1 %v1460_v24  ;;  %1034 = vmatprep.subr.bf16.mxu0 %v1461_v25 }
  0x63   : > { %1075 = vmatprep.subr.bf16.mxu1 %v1463_v26 }
  0x65   : > { %1035 = vmatpush1.bf16.msra.mxu0 %v1465_v27 }
  0x66   : > { %1076 = vmatpush1.bf16.msra.mxu1 %v1466_v28  ;;  %1036 = vmatprep.subr.bf16.mxu0 %v1467_v29 }
  0x67   : > { %1077 = vmatprep.subr.bf16.mxu1 %v1469_v30 }
  0x69   : > { %1037 = vmatpush1.bf16.msra.mxu0 %v1471_v31 }
  0x6a   : > { %1078 = vmatpush1.bf16.msra.mxu1 %v1472_v32  ;;  %1038 = vmatprep.subr.bf16.mxu0 %v1473_v33 }
  0x6b   : > { %1079 = vmatprep.subr.bf16.mxu1 %v1475_v34 }
  0x6d   : > { %1039 = vmatpush2.bf16.msra.mxu0 %v1477_v35 }
  0x6e   : > { %1080 = vmatpush2.bf16.msra.mxu1 %v1478_v36  ;;  %1040 = vmatprep.subr.bf16.mxu0 %v1479_v37 }
  0x6f   : > { %1081 = vmatprep.subr.bf16.mxu1 %v1481_v38 }
  0x71   : > { %1041 = vmatpush2.bf16.msra.mxu0 %v1483_v39 }
  0x72   : > { %1082 = vmatpush2.bf16.msra.mxu1 %v1484_v40  ;;  %1042 = vmatprep.subr.bf16.mxu0 %v1485_v41 }
  0x73   : > { %1083 = vmatprep.subr.bf16.mxu1 %v1487_v42 }
  0x75   : > { %1043 = vmatpush2.bf16.msra.mxu0 %v1489_v43 }
  0x76   : > { %1084 = vmatpush2.bf16.msra.mxu1 %v1490_v44  ;;  %1044 = vmatprep.subr.bf16.mxu0 %v1491_v45 }
  0x77   : > { %1085 = vmatprep.subr.bf16.mxu1 %v1493_v46 }
  0x79   : > { %1045 = vmatpush2.bf16.msra.mxu0 %v1495_v50 }
  0x7a   : > { %1086 = vmatpush2.bf16.msra.mxu1 %v1496_v51  ;;  %1046 = vmatprep.subr.bf16.mxu0 %v1497_v53 }
  0x7b   : > { %1087 = vmatprep.subr.bf16.mxu1 %v1499_v54 }
  0x7d   : > { %1047 = vmatpush2.bf16.msra.mxu0 %v1501_v55 }
  0x7e   : > { %1088 = vmatpush2.bf16.msra.mxu1 %v1502_v56  ;;  %1048 = vmatprep.subr.bf16.mxu0 %v1503_v57 }
  0x7f   : > { %1089 = vmatprep.subr.bf16.mxu1 %v1505_v58 }
  0x81   : > { %1049 = vmatpush2.bf16.msra.mxu0 %v1507_v59 }
  0x82   : > { %1090 = vmatpush2.bf16.msra.mxu1 %v1508_v60  ;;  %1050 = vmatprep.subr.bf16.mxu0 %v1509_v61 }
  0x83   : > { %1091 = vmatprep.subr.bf16.mxu1 %v1511_v62 }
  0x85   : > { %1051 = vmatpush2.bf16.msra.mxu0 %v1513_v63 }
  0x86   : > { %1092 = vmatpush2.bf16.msra.mxu1 %v1514_v0  ;;  %1052 = vmatprep.subr.bf16.mxu0 %v1515_v1 }
  0x87   : > { %1093 = vmatprep.subr.bf16.mxu1 %v1517_v2 }
  0x89   : > { %1053 = vmatpush2.bf16.msra.mxu0 %v1519_v3 }
  0x8a   : > { %1094 = vmatpush2.bf16.msra.mxu1 %v1520_v4 }
  0x8c   : > { %1055 = vmatmul.mubr.bf16.vlgmr.msra.gmra.mxu0 %v1296_v5 }
  0x8d   : > { %1096 = vmatmul.mubr.bf16.vlgmr.msra.gmra.mxu1 %v1298_v6 }
 0x14c   : > { %v1056_v7 = vpop.f32.mrf.mxu0 }
 0x14d   : > { %v1097_v9 = vpop.f32.mrf.mxu1 }
 0x14e   : > { %v1098_v10 = vadd.f32 %v1097_v9, %v1056_v7  ;;  %v1058_v11 = vpop.f32.mrf.mxu0 }
 0x14f   : > { %v1099_v13 = vpop.f32.mrf.mxu1 }
 0x150   : > { %v1104_v14 = vadd.f32 %v1098_v10, %v620_v8  ;;  %v1100_v15 = vadd.f32 %v1099_v13, %v1058_v11  ;;  %v1060_v16 = vpop.f32.mrf.mxu0  ;;  %1111 = sbr.rel (%p1364_p13) target bundleno = 356 (0x164), region = 82 }
 0x151   : > { %v1101_v17 = vpop.f32.mrf.mxu1 }
 0x152   : > { %1106 = vst [vmem:[#allocation2] sm:$0xff] %v1104_v14  ;;  %v1105_v18 = vadd.f32 %v1100_v15, %v621_v12  ;;  %v1061_v19 = vpop.f32.mrf.mxu0 }
 0x153   : > { %v1102_v20 = vpop.f32.mrf.mxu1 }
 0x154   : > { %1107 = vst [vmem:[#allocation2 + $0x8] sm:$0xff] %v1105_v18 }
 0x155   : > { %v1116_v21 = vlaneseq  ;;  %v1114_v23 = vld [vmem:[%s592_s15] sm:$0x3]  ;;  %v1129_v31 = vld [vmem:[%s1819_s18 + $0x8] sm:$0xff] }
 0x156   : > { %v1128_v30 = vld [vmem:[%s1819_s18] sm:$0xff] }
 0x157   : > { %v1117_v22 = vshrl.u32 %v1116_v21, 7 }
 0x159   : > { %v1118_v24 = vsub.s32 0, %v1117_v22  ;;  %v1122_v25 = vsub.s32 1, %v1117_v22  ;;  %v1112_v26 = vld [vmem:[#allocation2] sm:$0xff] }
 0x15b   : > { %v1113_v27 = vld [vmem:[#allocation2 + $0x8] sm:$0xff]  ;;  %v1119_v28 = vrot.slane %v1114_v23, %v1118_v24  ;;  %v1123_v29 = vrot.slane %v1114_v23, %v1122_v25 }
 0x15d   : > { %v1126_v32 = vadd.f32 %v1119_v28, %v1112_v26  ;;  %v1127_v33 = vadd.f32 %v1123_v29, %v1113_v27 }
 0x15f   : > { %v1130_v34 = vadd.f32 %v1128_v30, %v1126_v32  ;;  %v1131_v35 = vadd.f32 %v1129_v31, %v1127_v33 }
 0x161   : > { %v1132_v36 = vmax.f32 %v1130_v34, 0.0  ;;  %v1133_v37 = vmax.f32 %v1131_v35, 0.0 }
 0x163   : > { %1134 = vst [vmem:[%s1824_s12] sm:$0xff] %v1132_v36  ;;  %1135 = vst [vmem:[%s1824_s12 + $0x8] sm:$0xff] %v1133_v37 }
 0x164 PF: > { %s14_s21 = sadd.s32 1, %s1579_s21   ;;  %s1931_s15 = smov %s1559_s16 }
 0x165   : > { %p11_p0 = scmp.ge.s32.totalorder %s14_s21, 20   ;;  %s1932_s16 = smov %s1658_s28 }
 0x166   : > { %s1933_s17 = smov %s1571_s19  ;;  %s1934_s18 = smov %s1575_s20 }
 0x167   : > { %s1935_s19 = smov %s1938_s22  ;;  %s1936_s20 = smov %s1942_s23 }
 0x168   :  { %13 = sbr.rel (!%p11_p0) target bundleno = 4 (0x4), region = 126 }

// kernel: _lambda_.40
= control target key start
LH: loop header
LB: loop body
LE: loop exit
PB: predicated region body
PF: predicated region fallthrough
CT: control target
= control target key end

     0   :  { %s1515_s12 = smov 0   ;;  %s1517_s13 = smov 0   ;;  %s1827_s0 = inlined_call_operand.vmem [shape: bf16[8,4608], index: 0, kind: input, shape index: {}]   ;;  %s1828_s1 = inlined_call_operand.vmem [shape: bf16[4608,512], index: 1, kind: input, shape index: {}]   ;;  %s1829_s2 = inlined_call_operand.vmem [shape: f32[1,512], index: 2, kind: input, shape index: {}]   ;;  %s1830_s3 = inlined_call_operand.vmem [shape: f32[8,512], index: 3, kind: output, shape index: {}]  }
   0x1   :  { %s1519_s14 = smov 0   ;;  %s1521_s15 = smov 0  }
   0x2   :  { %s1523_s16 = smov 0   ;;  %s1525_s17 = smov 0  }
   0x3   :  { %s1527_s18 = smov 0  }
   0x4 LB: > { %s25_s19 = sadd.s32 1, %s1484_s16  ;;  %s28_s20 = sadd.s32 1, %s1488_s17  ;;  %s1492_s18 = sphi %s1527_s18, %s13_s18   ;;  %s1488_s17 = sphi %s1525_s17, %s1836_s17   ;;  %s1484_s16 = sphi %s1523_s16, %s1835_s16   ;;  %s1480_s15 = sphi %s1521_s15, %s1834_s15   ;;  %s1476_s14 = sphi %s1519_s14, %s1833_s14   ;;  %s1472_s13 = sphi %s1517_s13, %s1832_s13   ;;  %s1468_s12 = sphi %s1515_s12, %s1831_s12  }
   0x5   : > { %p26_p0 = scmp.ge.s32.totalorder %s25_s19, 9  ;;  %p76_p1 = scmp.ne.s32.totalorder %s1472_s13, %s1468_s12 }
   0x6   : > { %p77_p2 = scmp.eq.s32.totalorder %s1492_s18, 0  ;;  %s69_s24 = sadd.s32 1, %s1472_s13 }
   0x7   : > { %s1838_s19 = smov (%p26_p0, %s25_s19), 0  ;;  %s1840_s20 = smov (!%p26_p0, %s28_s20), %s1488_s17 }
   0x8   : > { %p78_p3 = por %p77_p2, %p76_p1  ;;  %p30_p4 = scmp.ge.s32.totalorder %s1840_s20, 2 }
   0x9   : > { %s64_s21 = ssub.s32 %s1484_s16, %s1838_s19  ;;  %p1195_p6 = scmp.ge.s32.totalorder %s1492_s18, 18 }
   0xa   : > { %s1842_s20 = smov (%p30_p4, %s1840_s20), 0 }
   0xb   : > { %s65_s22 = ssub.s32 %s1488_s17, %s1842_s20  ;;  %156 = sbr.rel (%p1195_p6) target bundleno = 55 (0x37), region = 16 }
   0xc   : > { %s66_s23 = sor.u32 %s65_s22, %s64_s21 }
   0xd   : > { %p67_p5 = scmp.eq.s32.totalorder %s66_s23, 0 }
   0xf   : > { %s1566_s25 = scalar_select %p67_p5, %s1472_s13, %s69_s24  }
  0x10   : > { %172 = sbr.rel (!%p78_p3) target bundleno = 55 (0x37), region = 24  ;;  %s174_s26 = sand.u32 (%p78_p3), 1, %s1472_s13  }
  0x11   : > { %s1198_s27 = sshll.u32 (%p78_p3), %s1488_s17, 1  ;;  %s1196_s28 = sshll.u32 (%p78_p3), %s174_s26, 9 }
  0x12   : > { %s1280_s29 = sshll.u32 (%p78_p3), %s1484_s16, 8  ;;  %s1580_s8 = scalar_lea.vmem (%p78_p3), [#allocation3], %s1196_s28 }
  0x13   : > { %s180_s30 = sadd.s32 (%p78_p3), %s1280_s29, %s1198_s27 }
  0x14   : > { %s1200_s4 = sshll.u32 (%p78_p3), %s180_s30, 2 }
  0x15   : > { %s1575_s7 = scalar_lea.vmem %s1828_s1, %s1200_s4 }
  0x16   : > { %v337_v0 = vld [vmem:[%s1575_s7] sm:$0xff]  ;;  %v339_v1 = vld [vmem:[%s1575_s7 + $0x10] sm:$0xff] }
  0x17   : > { %v341_v2 = vld [vmem:[%s1575_s7 + $0x20] sm:$0xff]  ;;  %338 = vst [vmem:[%s1580_s8] sm:$0xff] %v337_v0  ;;  %340 = vst [vmem:[%s1580_s8 + $0x8] sm:$0xff] %v339_v1  ;;  %v343_v3 = vld [vmem:[%s1575_s7 + $0x30] sm:$0xff] }
  0x18   : > { %342 = vst [vmem:[%s1580_s8 + $0x10] sm:$0xff] %v341_v2  ;;  %v345_v4 = vld [vmem:[%s1575_s7 + $0x40] sm:$0xff]  ;;  %v347_v5 = vld [vmem:[%s1575_s7 + $0x50] sm:$0xff]  ;;  %344 = vst [vmem:[%s1580_s8 + $0x18] sm:$0xff] %v343_v3 }
  0x19   : > { %346 = vst [vmem:[%s1580_s8 + $0x20] sm:$0xff] %v345_v4  ;;  %348 = vst [vmem:[%s1580_s8 + $0x28] sm:$0xff] %v347_v5  ;;  %v349_v6 = vld [vmem:[%s1575_s7 + $0x60] sm:$0xff]  ;;  %v351_v7 = vld [vmem:[%s1575_s7 + $0x70] sm:$0xff] }
  0x1a   : > { %v353_v8 = vld [vmem:[%s1575_s7 + $0x80] sm:$0xff]  ;;  %350 = vst [vmem:[%s1580_s8 + $0x30] sm:$0xff] %v349_v6  ;;  %352 = vst [vmem:[%s1580_s8 + $0x38] sm:$0xff] %v351_v7  ;;  %v355_v9 = vld [vmem:[%s1575_s7 + $0x90] sm:$0xff] }
  0x1b   : > { %354 = vst [vmem:[%s1580_s8 + $0x40] sm:$0xff] %v353_v8  ;;  %v357_v10 = vld [vmem:[%s1575_s7 + $0xa0] sm:$0xff]  ;;  %v359_v11 = vld [vmem:[%s1575_s7 + $0xb0] sm:$0xff]  ;;  %356 = vst [vmem:[%s1580_s8 + $0x48] sm:$0xff] %v355_v9 }
  0x1c   : > { %358 = vst [vmem:[%s1580_s8 + $0x50] sm:$0xff] %v357_v10  ;;  %360 = vst [vmem:[%s1580_s8 + $0x58] sm:$0xff] %v359_v11  ;;  %v361_v12 = vld [vmem:[%s1575_s7 + $0xc0] sm:$0xff]  ;;  %v363_v13 = vld [vmem:[%s1575_s7 + $0xd0] sm:$0xff] }
  0x1d   : > { %v365_v14 = vld [vmem:[%s1575_s7 + $0xe0] sm:$0xff]  ;;  %362 = vst [vmem:[%s1580_s8 + $0x60] sm:$0xff] %v361_v12  ;;  %364 = vst [vmem:[%s1580_s8 + $0x68] sm:$0xff] %v363_v13  ;;  %v367_v15 = vld [vmem:[%s1575_s7 + $0xf0] sm:$0xff] }
  0x1e   : > { %366 = vst [vmem:[%s1580_s8 + $0x70] sm:$0xff] %v365_v14  ;;  %v369_v16 = vld [vmem:[%s1575_s7 + $0x100] sm:$0xff]  ;;  %v371_v17 = vld [vmem:[%s1575_s7 + $0x110] sm:$0xff]  ;;  %368 = vst [vmem:[%s1580_s8 + $0x78] sm:$0xff] %v367_v15 }
  0x1f   : > { %370 = vst [vmem:[%s1580_s8 + $0x80] sm:$0xff] %v369_v16  ;;  %372 = vst [vmem:[%s1580_s8 + $0x88] sm:$0xff] %v371_v17  ;;  %v373_v18 = vld [vmem:[%s1575_s7 + $0x120] sm:$0xff]  ;;  %v375_v19 = vld [vmem:[%s1575_s7 + $0x130] sm:$0xff] }
  0x20   : > { %v377_v20 = vld [vmem:[%s1575_s7 + $0x140] sm:$0xff]  ;;  %374 = vst [vmem:[%s1580_s8 + $0x90] sm:$0xff] %v373_v18  ;;  %376 = vst [vmem:[%s1580_s8 + $0x98] sm:$0xff] %v375_v19  ;;  %v379_v21 = vld [vmem:[%s1575_s7 + $0x150] sm:$0xff] }
  0x21   : > { %378 = vst [vmem:[%s1580_s8 + $0xa0] sm:$0xff] %v377_v20  ;;  %v381_v22 = vld [vmem:[%s1575_s7 + $0x160] sm:$0xff]  ;;  %v383_v23 = vld [vmem:[%s1575_s7 + $0x170] sm:$0xff]  ;;  %380 = vst [vmem:[%s1580_s8 + $0xa8] sm:$0xff] %v379_v21 }
  0x22   : > { %382 = vst [vmem:[%s1580_s8 + $0xb0] sm:$0xff] %v381_v22  ;;  %384 = vst [vmem:[%s1580_s8 + $0xb8] sm:$0xff] %v383_v23  ;;  %v385_v24 = vld [vmem:[%s1575_s7 + $0x180] sm:$0xff]  ;;  %v387_v25 = vld [vmem:[%s1575_s7 + $0x190] sm:$0xff] }
  0x23   : > { %v389_v26 = vld [vmem:[%s1575_s7 + $0x1a0] sm:$0xff]  ;;  %386 = vst [vmem:[%s1580_s8 + $0xc0] sm:$0xff] %v385_v24  ;;  %388 = vst [vmem:[%s1580_s8 + $0xc8] sm:$0xff] %v387_v25  ;;  %v391_v27 = vld [vmem:[%s1575_s7 + $0x1b0] sm:$0xff] }
  0x24   : > { %390 = vst [vmem:[%s1580_s8 + $0xd0] sm:$0xff] %v389_v26  ;;  %v393_v28 = vld [vmem:[%s1575_s7 + $0x1c0] sm:$0xff]  ;;  %v395_v29 = vld [vmem:[%s1575_s7 + $0x1d0] sm:$0xff]  ;;  %392 = vst [vmem:[%s1580_s8 + $0xd8] sm:$0xff] %v391_v27 }
  0x25   : > { %394 = vst [vmem:[%s1580_s8 + $0xe0] sm:$0xff] %v393_v28  ;;  %396 = vst [vmem:[%s1580_s8 + $0xe8] sm:$0xff] %v395_v29  ;;  %v397_v30 = vld [vmem:[%s1575_s7 + $0x1e0] sm:$0xff]  ;;  %v399_v31 = vld [vmem:[%s1575_s7 + $0x1f0] sm:$0xff] }
  0x26   : > { %v401_v32 = vld [vmem:[%s1575_s7 + $0x200] sm:$0xff]  ;;  %398 = vst [vmem:[%s1580_s8 + $0xf0] sm:$0xff] %v397_v30  ;;  %400 = vst [vmem:[%s1580_s8 + $0xf8] sm:$0xff] %v399_v31  ;;  %v403_v33 = vld [vmem:[%s1575_s7 + $0x210] sm:$0xff] }
  0x27   : > { %402 = vst [vmem:[%s1580_s8 + $0x100] sm:$0xff] %v401_v32  ;;  %v405_v34 = vld [vmem:[%s1575_s7 + $0x220] sm:$0xff]  ;;  %v407_v35 = vld [vmem:[%s1575_s7 + $0x230] sm:$0xff]  ;;  %404 = vst [vmem:[%s1580_s8 + $0x108] sm:$0xff] %v403_v33 }
  0x28   : > { %406 = vst [vmem:[%s1580_s8 + $0x110] sm:$0xff] %v405_v34  ;;  %408 = vst [vmem:[%s1580_s8 + $0x118] sm:$0xff] %v407_v35  ;;  %v409_v36 = vld [vmem:[%s1575_s7 + $0x240] sm:$0xff]  ;;  %v411_v37 = vld [vmem:[%s1575_s7 + $0x250] sm:$0xff] }
  0x29   : > { %v413_v38 = vld [vmem:[%s1575_s7 + $0x260] sm:$0xff]  ;;  %410 = vst [vmem:[%s1580_s8 + $0x120] sm:$0xff] %v409_v36  ;;  %412 = vst [vmem:[%s1580_s8 + $0x128] sm:$0xff] %v411_v37  ;;  %v415_v39 = vld [vmem:[%s1575_s7 + $0x270] sm:$0xff] }
  0x2a   : > { %414 = vst [vmem:[%s1580_s8 + $0x130] sm:$0xff] %v413_v38  ;;  %v417_v40 = vld [vmem:[%s1575_s7 + $0x280] sm:$0xff]  ;;  %v419_v41 = vld [vmem:[%s1575_s7 + $0x290] sm:$0xff]  ;;  %416 = vst [vmem:[%s1580_s8 + $0x138] sm:$0xff] %v415_v39 }
  0x2b   : > { %418 = vst [vmem:[%s1580_s8 + $0x140] sm:$0xff] %v417_v40  ;;  %420 = vst [vmem:[%s1580_s8 + $0x148] sm:$0xff] %v419_v41  ;;  %v421_v42 = vld [vmem:[%s1575_s7 + $0x2a0] sm:$0xff]  ;;  %v423_v43 = vld [vmem:[%s1575_s7 + $0x2b0] sm:$0xff] }
  0x2c   : > { %v425_v44 = vld [vmem:[%s1575_s7 + $0x2c0] sm:$0xff]  ;;  %422 = vst [vmem:[%s1580_s8 + $0x150] sm:$0xff] %v421_v42  ;;  %424 = vst [vmem:[%s1580_s8 + $0x158] sm:$0xff] %v423_v43  ;;  %v427_v45 = vld [vmem:[%s1575_s7 + $0x2d0] sm:$0xff] }
  0x2d   : > { %426 = vst [vmem:[%s1580_s8 + $0x160] sm:$0xff] %v425_v44  ;;  %v429_v46 = vld [vmem:[%s1575_s7 + $0x2e0] sm:$0xff]  ;;  %v431_v47 = vld [vmem:[%s1575_s7 + $0x2f0] sm:$0xff]  ;;  %428 = vst [vmem:[%s1580_s8 + $0x168] sm:$0xff] %v427_v45 }
  0x2e   : > { %430 = vst [vmem:[%s1580_s8 + $0x170] sm:$0xff] %v429_v46  ;;  %432 = vst [vmem:[%s1580_s8 + $0x178] sm:$0xff] %v431_v47  ;;  %v433_v48 = vld [vmem:[%s1575_s7 + $0x300] sm:$0xff]  ;;  %v435_v49 = vld [vmem:[%s1575_s7 + $0x310] sm:$0xff] }
  0x2f   : > { %v437_v50 = vld [vmem:[%s1575_s7 + $0x320] sm:$0xff]  ;;  %434 = vst [vmem:[%s1580_s8 + $0x180] sm:$0xff] %v433_v48  ;;  %436 = vst [vmem:[%s1580_s8 + $0x188] sm:$0xff] %v435_v49  ;;  %v439_v51 = vld [vmem:[%s1575_s7 + $0x330] sm:$0xff] }
  0x30   : > { %438 = vst [vmem:[%s1580_s8 + $0x190] sm:$0xff] %v437_v50  ;;  %v441_v52 = vld [vmem:[%s1575_s7 + $0x340] sm:$0xff]  ;;  %v443_v53 = vld [vmem:[%s1575_s7 + $0x350] sm:$0xff]  ;;  %440 = vst [vmem:[%s1580_s8 + $0x198] sm:$0xff] %v439_v51 }
  0x31   : > { %442 = vst [vmem:[%s1580_s8 + $0x1a0] sm:$0xff] %v441_v52  ;;  %444 = vst [vmem:[%s1580_s8 + $0x1a8] sm:$0xff] %v443_v53  ;;  %v445_v54 = vld [vmem:[%s1575_s7 + $0x360] sm:$0xff]  ;;  %v447_v55 = vld [vmem:[%s1575_s7 + $0x370] sm:$0xff] }
  0x32   : > { %v449_v56 = vld [vmem:[%s1575_s7 + $0x380] sm:$0xff]  ;;  %446 = vst [vmem:[%s1580_s8 + $0x1b0] sm:$0xff] %v445_v54  ;;  %448 = vst [vmem:[%s1580_s8 + $0x1b8] sm:$0xff] %v447_v55  ;;  %v451_v57 = vld [vmem:[%s1575_s7 + $0x390] sm:$0xff] }
  0x33   : > { %450 = vst [vmem:[%s1580_s8 + $0x1c0] sm:$0xff] %v449_v56  ;;  %v453_v58 = vld [vmem:[%s1575_s7 + $0x3a0] sm:$0xff]  ;;  %v455_v59 = vld [vmem:[%s1575_s7 + $0x3b0] sm:$0xff]  ;;  %452 = vst [vmem:[%s1580_s8 + $0x1c8] sm:$0xff] %v451_v57 }
  0x34   : > { %454 = vst [vmem:[%s1580_s8 + $0x1d0] sm:$0xff] %v453_v58  ;;  %456 = vst [vmem:[%s1580_s8 + $0x1d8] sm:$0xff] %v455_v59  ;;  %v457_v60 = vld [vmem:[%s1575_s7 + $0x3c0] sm:$0xff]  ;;  %v459_v61 = vld [vmem:[%s1575_s7 + $0x3d0] sm:$0xff] }
  0x35   : > { %v461_v62 = vld [vmem:[%s1575_s7 + $0x3e0] sm:$0xff]  ;;  %458 = vst [vmem:[%s1580_s8 + $0x1e0] sm:$0xff] %v457_v60  ;;  %460 = vst [vmem:[%s1580_s8 + $0x1e8] sm:$0xff] %v459_v61  ;;  %v463_v63 = vld [vmem:[%s1575_s7 + $0x3f0] sm:$0xff] }
  0x36   : > { %462 = vst [vmem:[%s1580_s8 + $0x1f0] sm:$0xff] %v461_v62  ;;  %464 = vst [vmem:[%s1580_s8 + $0x1f8] sm:$0xff] %v463_v63 }
  0x37 PF: > { %p1201_p7 = scmp.ge.s32.totalorder %s1492_s18, 1  ;;  %p477_p8 = scmp.lt.s32.totalorder %s1492_s18, 19 }
  0x39   : > { %p478_p9 = pnand %p1201_p7, %p477_p8 }
  0x3a   : > { %s484_s9 = sand.u32 (!%p478_p9), 1, %s1468_s12   ;;  %s1203_s10 = sshll.u32 (!%p478_p9), %s1476_s14, 2 }
  0x3b   : > { %481 = sbr.rel (%p478_p9) target bundleno = 353 (0x161), region = 66  ;;  %s1202_s11 = sshll.u32 (!%p478_p9), %s484_s9, 9 }
  0x3c   : > { %p527_p10 = scmp.lt.s32.totalorder (!%p478_p9), %s1203_s10, 35  ;;  %s1205_s21 = sshll.u32 (!%p478_p9), %s1480_s15, 1 }
  0x3d   : > { %p537_p11 = scmp.lt.s32.totalorder (!%p478_p9), %s1205_s21, 3  ;;  %s1729_s5 = scalar_lea.vmem (!%p478_p9), [#allocation3], %s1202_s11 }
  0x3e   : > { %p1208_p12 = scmp.ne.s32.totalorder (!%p478_p9), %s1476_s14, 0 }
  0x40   : > { %s1844_s10 = smov (!%p527_p10, %s1203_s10), 35  ;;  %s1846_s21 = smov (!%p537_p11, %s1205_s21), 3 }
  0x41   : > { %s1204_s22 = sshll.u32 %s1844_s10, 2  ;;  %s539_s12 = scalar_lea.vmem %s1829_s2, %s1846_s21 }
  0x42   : > { %s1715_s26 = scalar_lea.vmem %s1827_s0, %s1204_s22  ;;  %s1207_s29 = sshll.u32 %s1846_s21, 3 }
  0x43   : > { %s1727_s15 = scalar_lea.vmem %s1830_s3, %s1207_s29  ;;  %554 = sbr.rel (%p1208_p12) target bundleno = 74 (0x4a), region = 74 }
  0x48   : > { %v1494_v0 = vmov 0.0  }
  0x49   : > { %555 = vst [vmem:[#allocation2] sm:$0xff] %v1494_v0  ;;  %556 = vst [vmem:[#allocation2 + $0x8] sm:$0xff] %v1494_v0 }
  0x4a PF: > { %v1338_v1 = vld [vmem:[%s1729_s5 + $0x74] ss:$8 sps:$4 sm:$0xff]   ;;  %v1342_v3 = vld [vmem:[%s1729_s5 + $0x70] ss:$8 sps:$4 sm:$0xff]   ;;  %v1344_v5 = vld [vmem:[%s1729_s5 + $0x64] ss:$8 sps:$4 sm:$0xff]  }
  0x4b   : > { %v1340_v2 = vld [vmem:[%s1729_s5 + $0x174] ss:$8 sps:$4 sm:$0xff]   ;;  %959 = vmatprep.subr.bf16.mxu0 %v1338_v1  ;;  %v1343_v4 = vld [vmem:[%s1729_s5 + $0x170] ss:$8 sps:$4 sm:$0xff]   ;;  %v1346_v6 = vld [vmem:[%s1729_s5 + $0x164] ss:$8 sps:$4 sm:$0xff]  }
  0x4c   : > { %1000 = vmatprep.subr.bf16.mxu1 %v1340_v2  ;;  %960 = vmatpush1.bf16.msra.mxu0 %v1342_v3  ;;  %v1348_v7 = vld [vmem:[%s1729_s5 + $0x60] ss:$8 sps:$4 sm:$0xff]   ;;  %v1350_v9 = vld [vmem:[%s1729_s5 + $0x54] ss:$8 sps:$4 sm:$0xff]   ;;  %v1354_v11 = vld [vmem:[%s1729_s5 + $0x50] ss:$8 sps:$4 sm:$0xff]  }
  0x4d   : > { %1001 = vmatpush1.bf16.msra.mxu1 %v1343_v4  ;;  %961 = vmatprep.subr.bf16.mxu0 %v1344_v5  ;;  %v1349_v8 = vld [vmem:[%s1729_s5 + $0x160] ss:$8 sps:$4 sm:$0xff]   ;;  %v1352_v10 = vld [vmem:[%s1729_s5 + $0x154] ss:$8 sps:$4 sm:$0xff]   ;;  %v1355_v12 = vld [vmem:[%s1729_s5 + $0x150] ss:$8 sps:$4 sm:$0xff]  }
  0x4e   : > { %1002 = vmatprep.subr.bf16.mxu1 %v1346_v6  ;;  %v1356_v13 = vld [vmem:[%s1729_s5 + $0x44] ss:$8 sps:$4 sm:$0xff]   ;;  %v1360_v15 = vld [vmem:[%s1729_s5 + $0x40] ss:$8 sps:$4 sm:$0xff]   ;;  %v1362_v17 = vld [vmem:[%s1729_s5 + $0x34] ss:$8 sps:$4 sm:$0xff]  }
  0x4f   : > { %v1358_v14 = vld [vmem:[%s1729_s5 + $0x144] ss:$8 sps:$4 sm:$0xff]   ;;  %v1361_v16 = vld [vmem:[%s1729_s5 + $0x140] ss:$8 sps:$4 sm:$0xff]   ;;  %v1364_v18 = vld [vmem:[%s1729_s5 + $0x134] ss:$8 sps:$4 sm:$0xff]  }
  0x50   : > { %962 = vmatpush1.bf16.msra.mxu0 %v1348_v7  ;;  %v1366_v19 = vld [vmem:[%s1729_s5 + $0x30] ss:$8 sps:$4 sm:$0xff]   ;;  %v1368_v21 = vld [vmem:[%s1729_s5 + $0x24] ss:$8 sps:$4 sm:$0xff]   ;;  %v1372_v23 = vld [vmem:[%s1729_s5 + $0x20] ss:$8 sps:$4 sm:$0xff]  }
  0x51   : > { %1003 = vmatpush1.bf16.msra.mxu1 %v1349_v8  ;;  %963 = vmatprep.subr.bf16.mxu0 %v1350_v9  ;;  %v1367_v20 = vld [vmem:[%s1729_s5 + $0x130] ss:$8 sps:$4 sm:$0xff]   ;;  %v1370_v22 = vld [vmem:[%s1729_s5 + $0x124] ss:$8 sps:$4 sm:$0xff]   ;;  %v1373_v24 = vld [vmem:[%s1729_s5 + $0x120] ss:$8 sps:$4 sm:$0xff]  }
  0x52   : > { %1004 = vmatprep.subr.bf16.mxu1 %v1352_v10  ;;  %v1374_v25 = vld [vmem:[%s1729_s5 + $0x14] ss:$8 sps:$4 sm:$0xff]   ;;  %v1378_v27 = vld [vmem:[%s1729_s5 + $0x10] ss:$8 sps:$4 sm:$0xff]   ;;  %v1380_v29 = vld [vmem:[%s1729_s5 + $0x4] ss:$8 sps:$4 sm:$0xff]  }
  0x53   : > { %v1376_v26 = vld [vmem:[%s1729_s5 + $0x114] ss:$8 sps:$4 sm:$0xff]   ;;  %v1379_v28 = vld [vmem:[%s1729_s5 + $0x110] ss:$8 sps:$4 sm:$0xff]   ;;  %v1382_v30 = vld [vmem:[%s1729_s5 + $0x104] ss:$8 sps:$4 sm:$0xff]  }
  0x54   : > { %964 = vmatpush1.bf16.msra.mxu0 %v1354_v11  ;;  %v1384_v31 = vld [vmem:[%s1729_s5] ss:$8 sps:$4 sm:$0xff]   ;;  %v1386_v33 = vld [vmem:[%s1729_s5 + $0xf4] ss:$8 sps:$4 sm:$0xff]   ;;  %v1390_v35 = vld [vmem:[%s1729_s5 + $0xf0] ss:$8 sps:$4 sm:$0xff]  }
  0x55   : > { %1005 = vmatpush1.bf16.msra.mxu1 %v1355_v12  ;;  %965 = vmatprep.subr.bf16.mxu0 %v1356_v13  ;;  %v1385_v32 = vld [vmem:[%s1729_s5 + $0x100] ss:$8 sps:$4 sm:$0xff]   ;;  %v1388_v34 = vld [vmem:[%s1729_s5 + $0x1f4] ss:$8 sps:$4 sm:$0xff]   ;;  %v1391_v36 = vld [vmem:[%s1729_s5 + $0x1f0] ss:$8 sps:$4 sm:$0xff]  }
  0x56   : > { %1006 = vmatprep.subr.bf16.mxu1 %v1358_v14  ;;  %v1392_v37 = vld [vmem:[%s1729_s5 + $0xe4] ss:$8 sps:$4 sm:$0xff]   ;;  %v1396_v39 = vld [vmem:[%s1729_s5 + $0xe0] ss:$8 sps:$4 sm:$0xff]   ;;  %v1398_v41 = vld [vmem:[%s1729_s5 + $0xd4] ss:$8 sps:$4 sm:$0xff]  }
  0x57   : > { %v1394_v38 = vld [vmem:[%s1729_s5 + $0x1e4] ss:$8 sps:$4 sm:$0xff]   ;;  %v1397_v40 = vld [vmem:[%s1729_s5 + $0x1e0] ss:$8 sps:$4 sm:$0xff]   ;;  %v1400_v42 = vld [vmem:[%s1729_s5 + $0x1d4] ss:$8 sps:$4 sm:$0xff]  }
  0x58   : > { %966 = vmatpush1.bf16.msra.mxu0 %v1360_v15  ;;  %v1402_v43 = vld [vmem:[%s1729_s5 + $0xd0] ss:$8 sps:$4 sm:$0xff]   ;;  %v1404_v45 = vld [vmem:[%s1729_s5 + $0xc4] ss:$8 sps:$4 sm:$0xff]   ;;  %v1408_v50 = vld [vmem:[%s1729_s5 + $0xc0] ss:$8 sps:$4 sm:$0xff]  }
  0x59   : > { %1007 = vmatpush1.bf16.msra.mxu1 %v1361_v16  ;;  %967 = vmatprep.subr.bf16.mxu0 %v1362_v17  ;;  %v1403_v44 = vld [vmem:[%s1729_s5 + $0x1d0] ss:$8 sps:$4 sm:$0xff]   ;;  %v1406_v46 = vld [vmem:[%s1729_s5 + $0x1c4] ss:$8 sps:$4 sm:$0xff]   ;;  %v1409_v51 = vld [vmem:[%s1729_s5 + $0x1c0] ss:$8 sps:$4 sm:$0xff]  }
  0x5a   : > { %1008 = vmatprep.subr.bf16.mxu1 %v1364_v18  ;;  %v559_v47 = vld [vmem:[%s1715_s26] sm:$0xff]  ;;  %v560_v49 = vld [vmem:[%s1715_s26 + $0x8] sm:$0xff]  ;;  %v1416_v57 = vld [vmem:[%s1729_s5 + $0xa4] ss:$8 sps:$4 sm:$0xff]   ;;  %p1277_p13 = scmp.ne.s32.totalorder %s1476_s14, 8 }
  0x5b   : > { %v1210_v48 = vcombine.high %v559_v47, %v559_v47  ;;  %v1212_v52 = vcombine.high %v560_v49, %v560_v49  ;;  %v1410_v53 = vld [vmem:[%s1729_s5 + $0xb4] ss:$8 sps:$4 sm:$0xff]   ;;  %v1414_v55 = vld [vmem:[%s1729_s5 + $0xb0] ss:$8 sps:$4 sm:$0xff]   ;;  %v1418_v58 = vld [vmem:[%s1729_s5 + $0x1a4] ss:$8 sps:$4 sm:$0xff]   ;;  %v1209_v5 = vcombine.low %v559_v47, %v559_v47  ;;  %v1211_v6 = vcombine.low %v560_v49, %v560_v49 }
  0x5c   : > { %968 = vmatpush1.bf16.msra.mxu0 %v1366_v19  ;;  %v1412_v54 = vld [vmem:[%s1729_s5 + $0x1b4] ss:$8 sps:$4 sm:$0xff]   ;;  %v1415_v56 = vld [vmem:[%s1729_s5 + $0x1b0] ss:$8 sps:$4 sm:$0xff]   ;;  %v1420_v59 = vld [vmem:[%s1729_s5 + $0xa0] ss:$8 sps:$4 sm:$0xff]  }
  0x5d   : > { %1009 = vmatpush1.bf16.msra.mxu1 %v1367_v20  ;;  %969 = vmatprep.subr.bf16.mxu0 %v1368_v21  ;;  %v1421_v60 = vld [vmem:[%s1729_s5 + $0x1a0] ss:$8 sps:$4 sm:$0xff]   ;;  %v1422_v61 = vld [vmem:[%s1729_s5 + $0x94] ss:$8 sps:$4 sm:$0xff]   ;;  %v1426_v63 = vld [vmem:[%s1729_s5 + $0x90] ss:$8 sps:$4 sm:$0xff]  }
  0x5e   : > { %1010 = vmatprep.subr.bf16.mxu1 %v1370_v22  ;;  %991 = vmatprep.mubr.bf16.mxu0 %v1210_v48  ;;  %v1424_v62 = vld [vmem:[%s1729_s5 + $0x194] ss:$8 sps:$4 sm:$0xff]   ;;  %v1427_v0 = vld [vmem:[%s1729_s5 + $0x190] ss:$8 sps:$4 sm:$0xff]   ;;  %v1428_v1 = vld [vmem:[%s1729_s5 + $0x84] ss:$8 sps:$4 sm:$0xff]  }
  0x5f   : > { %1032 = vmatprep.mubr.bf16.mxu1 %v1212_v52  ;;  %v1430_v2 = vld [vmem:[%s1729_s5 + $0x184] ss:$8 sps:$4 sm:$0xff]   ;;  %v1432_v3 = vld [vmem:[%s1729_s5 + $0x80] ss:$8 sps:$4 sm:$0xff]   ;;  %v557_v8 = vld [vmem:[#allocation2] sm:$0xff] }
  0x60   : > { %970 = vmatpush1.bf16.msra.mxu0 %v1372_v23  ;;  %v1433_v4 = vld [vmem:[%s1729_s5 + $0x180] ss:$8 sps:$4 sm:$0xff]   ;;  %v558_v12 = vld [vmem:[#allocation2 + $0x8] sm:$0xff] }
  0x61   : > { %1011 = vmatpush1.bf16.msra.mxu1 %v1373_v24  ;;  %971 = vmatprep.subr.bf16.mxu0 %v1374_v25 }
  0x62   : > { %1012 = vmatprep.subr.bf16.mxu1 %v1376_v26 }
  0x64   : > { %972 = vmatpush1.bf16.msra.mxu0 %v1378_v27 }
  0x65   : > { %1013 = vmatpush1.bf16.msra.mxu1 %v1379_v28  ;;  %973 = vmatprep.subr.bf16.mxu0 %v1380_v29 }
  0x66   : > { %1014 = vmatprep.subr.bf16.mxu1 %v1382_v30 }
  0x68   : > { %974 = vmatpush1.bf16.msra.mxu0 %v1384_v31 }
  0x69   : > { %1015 = vmatpush1.bf16.msra.mxu1 %v1385_v32  ;;  %975 = vmatprep.subr.bf16.mxu0 %v1386_v33 }
  0x6a   : > { %1016 = vmatprep.subr.bf16.mxu1 %v1388_v34 }
  0x6c   : > { %976 = vmatpush2.bf16.msra.mxu0 %v1390_v35 }
  0x6d   : > { %1017 = vmatpush2.bf16.msra.mxu1 %v1391_v36  ;;  %977 = vmatprep.subr.bf16.mxu0 %v1392_v37 }
  0x6e   : > { %1018 = vmatprep.subr.bf16.mxu1 %v1394_v38 }
  0x70   : > { %978 = vmatpush2.bf16.msra.mxu0 %v1396_v39 }
  0x71   : > { %1019 = vmatpush2.bf16.msra.mxu1 %v1397_v40  ;;  %979 = vmatprep.subr.bf16.mxu0 %v1398_v41 }
  0x72   : > { %1020 = vmatprep.subr.bf16.mxu1 %v1400_v42 }
  0x74   : > { %980 = vmatpush2.bf16.msra.mxu0 %v1402_v43 }
  0x75   : > { %1021 = vmatpush2.bf16.msra.mxu1 %v1403_v44  ;;  %981 = vmatprep.subr.bf16.mxu0 %v1404_v45 }
  0x76   : > { %1022 = vmatprep.subr.bf16.mxu1 %v1406_v46 }
  0x78   : > { %982 = vmatpush2.bf16.msra.mxu0 %v1408_v50 }
  0x79   : > { %1023 = vmatpush2.bf16.msra.mxu1 %v1409_v51  ;;  %983 = vmatprep.subr.bf16.mxu0 %v1410_v53 }
  0x7a   : > { %1024 = vmatprep.subr.bf16.mxu1 %v1412_v54 }
  0x7c   : > { %984 = vmatpush2.bf16.msra.mxu0 %v1414_v55 }
  0x7d   : > { %1025 = vmatpush2.bf16.msra.mxu1 %v1415_v56  ;;  %985 = vmatprep.subr.bf16.mxu0 %v1416_v57 }
  0x7e   : > { %1026 = vmatprep.subr.bf16.mxu1 %v1418_v58 }
  0x80   : > { %986 = vmatpush2.bf16.msra.mxu0 %v1420_v59 }
  0x81   : > { %1027 = vmatpush2.bf16.msra.mxu1 %v1421_v60  ;;  %987 = vmatprep.subr.bf16.mxu0 %v1422_v61 }
  0x82   : > { %1028 = vmatprep.subr.bf16.mxu1 %v1424_v62 }
  0x84   : > { %988 = vmatpush2.bf16.msra.mxu0 %v1426_v63 }
  0x85   : > { %1029 = vmatpush2.bf16.msra.mxu1 %v1427_v0  ;;  %989 = vmatprep.subr.bf16.mxu0 %v1428_v1 }
  0x86   : > { %1030 = vmatprep.subr.bf16.mxu1 %v1430_v2 }
  0x88   : > { %990 = vmatpush2.bf16.msra.mxu0 %v1432_v3 }
  0x89   : > { %1031 = vmatpush2.bf16.msra.mxu1 %v1433_v4 }
  0x8b   : > { %992 = vmatmul.mubr.bf16.vlgmr.msra.gmra.mxu0 %v1209_v5 }
  0x8c   : > { %1033 = vmatmul.mubr.bf16.vlgmr.msra.gmra.mxu1 %v1211_v6 }
 0x14b   : > { %v993_v7 = vpop.f32.mrf.mxu0 }
 0x14c   : > { %v1034_v9 = vpop.f32.mrf.mxu1 }
 0x14d   : > { %v1035_v10 = vadd.f32 %v1034_v9, %v993_v7  ;;  %v995_v11 = vpop.f32.mrf.mxu0 }
 0x14e   : > { %v1036_v13 = vpop.f32.mrf.mxu1 }
 0x14f   : > { %v1041_v14 = vadd.f32 %v1035_v10, %v557_v8  ;;  %v1037_v15 = vadd.f32 %v1036_v13, %v995_v11  ;;  %v997_v16 = vpop.f32.mrf.mxu0  ;;  %1048 = sbr.rel (%p1277_p13) target bundleno = 353 (0x161), region = 78 }
 0x150   : > { %v1038_v17 = vpop.f32.mrf.mxu1 }
 0x151   : > { %1043 = vst [vmem:[#allocation2] sm:$0xff] %v1041_v14  ;;  %v1042_v18 = vadd.f32 %v1037_v15, %v558_v12  ;;  %v998_v19 = vpop.f32.mrf.mxu0 }
 0x152   : > { %v1039_v20 = vpop.f32.mrf.mxu1 }
 0x153   : > { %1044 = vst [vmem:[#allocation2 + $0x8] sm:$0xff] %v1042_v18 }
 0x154   : > { %v1053_v21 = vlaneseq  ;;  %v1051_v23 = vld [vmem:[%s539_s12] sm:$0x3] }
 0x156   : > { %v1054_v22 = vshrl.u32 %v1053_v21, 7 }
 0x158   : > { %v1055_v24 = vsub.s32 0, %v1054_v22  ;;  %v1059_v25 = vsub.s32 1, %v1054_v22  ;;  %v1049_v26 = vld [vmem:[#allocation2] sm:$0xff] }
 0x15a   : > { %v1050_v27 = vld [vmem:[#allocation2 + $0x8] sm:$0xff]  ;;  %v1056_v28 = vrot.slane %v1051_v23, %v1055_v24  ;;  %v1060_v29 = vrot.slane %v1051_v23, %v1059_v25 }
 0x15c   : > { %v1063_v30 = vadd.f32 %v1056_v28, %v1049_v26  ;;  %v1064_v31 = vadd.f32 %v1060_v29, %v1050_v27 }
 0x15e   : > { %v1065_v32 = vmax.f32 %v1063_v30, 0.0  ;;  %v1066_v33 = vmax.f32 %v1064_v31, 0.0 }
 0x160   : > { %1067 = vst [vmem:[%s1727_s15] sm:$0xff] %v1065_v32  ;;  %1068 = vst [vmem:[%s1727_s15 + $0x8] sm:$0xff] %v1066_v33 }
 0x161 PF: > { %s13_s18 = sadd.s32 1, %s1492_s18   ;;  %s1831_s12 = smov %s1472_s13 }
 0x162   : > { %p10_p0 = scmp.ge.s32.totalorder %s13_s18, 20   ;;  %s1832_s13 = smov %s1566_s25 }
 0x163   : > { %s1833_s14 = smov %s1484_s16  ;;  %s1834_s15 = smov %s1488_s17 }
 0x164   : > { %s1835_s16 = smov %s1838_s19  ;;  %s1836_s17 = smov %s1842_s20 }
 0x165   :  { %12 = sbr.rel (!%p10_p0) target bundleno = 4 (0x4), region = 119 }

// kernel: _lambda_.42
= control target key start
LH: loop header
LB: loop body
LE: loop exit
PB: predicated region body
PF: predicated region fallthrough
CT: control target
= control target key end

     0   :  { %s46_s0 = inlined_call_operand.vmem [shape: f32[2,1,512], index: 0, kind: input, shape index: {}]   ;;  %s47_s1 = inlined_call_operand.vmem [shape: f32[2,512], index: 1, kind: output, shape index: {}]  }
   0x1   :  { %v29_v0 = vld [vmem:[%s46_s0] sm:$0xff]  }
   0x2   :  { %28 = vst.sshfl [vmem:[%s47_s1] sm:$0xff pattern:$0x75316420] %v29_v0 }

// kernel: _lambda_.43
= control target key start
LH: loop header
LB: loop body
LE: loop exit
PB: predicated region body
PF: predicated region fallthrough
CT: control target
= control target key end

     0   :  { %s637_s1 = inlined_call_operand.vmem [shape: bf16[512,128], index: 1, kind: input, shape index: {}]   ;;  %s638_s0 = inlined_call_operand.vmem [shape: bf16[8,512], index: 0, kind: input, shape index: {}]   ;;  %s639_s2 = inlined_call_operand.vmem [shape: f32[1,128], index: 2, kind: input, shape index: {}]   ;;  %s640_s3 = inlined_call_operand.vmem [shape: f32[8,128], index: 3, kind: output, shape index: {}]  }
   0x1   :  { %v473_v0 = vld [vmem:[%s637_s1 + $0x78] sm:$0xff]   ;;  %v477_v4 = vld [vmem:[%s637_s1 + $0x70] sm:$0xff]   ;;  %v481_v8 = vld [vmem:[%s637_s1 + $0x68] sm:$0xff]  }
   0x2   :  { %v474_v1 = vld [vmem:[%s637_s1 + $0xf8] sm:$0xff]   ;;  %429 = vmatprep.subr.bf16.mxu0 %v473_v0  ;;  %v478_v5 = vld [vmem:[%s637_s1 + $0xf0] sm:$0xff]   ;;  %v482_v9 = vld [vmem:[%s637_s1 + $0xe8] sm:$0xff]  }
   0x3   :  { %v475_v2 = vld [vmem:[%s637_s1 + $0x38] sm:$0xff]   ;;  %451 = vmatprep.subr.bf16.mxu1 %v474_v1  ;;  %v479_v6 = vld [vmem:[%s637_s1 + $0x30] sm:$0xff]   ;;  %v483_v10 = vld [vmem:[%s637_s1 + $0x28] sm:$0xff]  }
   0x4   :  { %v476_v3 = vld [vmem:[%s637_s1 + $0xb8] sm:$0xff]   ;;  %430 = vmatpush3.bf16.msra.mxu0 %v475_v2  ;;  %v480_v7 = vld [vmem:[%s637_s1 + $0xb0] sm:$0xff]   ;;  %v484_v11 = vld [vmem:[%s637_s1 + $0xa8] sm:$0xff]  }
   0x5   :  { %452 = vmatpush3.bf16.msra.mxu1 %v476_v3  ;;  %431 = vmatprep.subr.bf16.mxu0 %v477_v4  ;;  %v485_v12 = vld [vmem:[%s637_s1 + $0x60] sm:$0xff]   ;;  %v489_v16 = vld [vmem:[%s637_s1 + $0x58] sm:$0xff]   ;;  %v493_v20 = vld [vmem:[%s637_s1 + $0x50] sm:$0xff]  }
   0x6   :  { %453 = vmatprep.subr.bf16.mxu1 %v478_v5  ;;  %v486_v13 = vld [vmem:[%s637_s1 + $0xe0] sm:$0xff]   ;;  %v490_v17 = vld [vmem:[%s637_s1 + $0xd8] sm:$0xff]   ;;  %v494_v21 = vld [vmem:[%s637_s1 + $0xd0] sm:$0xff]  }
   0x7   :  { %v487_v14 = vld [vmem:[%s637_s1 + $0x20] sm:$0xff]   ;;  %v491_v18 = vld [vmem:[%s637_s1 + $0x18] sm:$0xff]   ;;  %v495_v22 = vld [vmem:[%s637_s1 + $0x10] sm:$0xff]  }
   0x8   :  { %432 = vmatpush3.bf16.msra.mxu0 %v479_v6  ;;  %v488_v15 = vld [vmem:[%s637_s1 + $0xa0] sm:$0xff]   ;;  %v492_v19 = vld [vmem:[%s637_s1 + $0x98] sm:$0xff]   ;;  %v496_v23 = vld [vmem:[%s637_s1 + $0x90] sm:$0xff]  }
   0x9   :  { %454 = vmatpush3.bf16.msra.mxu1 %v480_v7  ;;  %433 = vmatprep.subr.bf16.mxu0 %v481_v8  ;;  %v497_v24 = vld [vmem:[%s637_s1 + $0x48] sm:$0xff]   ;;  %v501_v28 = vld [vmem:[%s637_s1 + $0x40] sm:$0xff]  }
   0xa   :  { %455 = vmatprep.subr.bf16.mxu1 %v482_v9  ;;  %v498_v25 = vld [vmem:[%s637_s1 + $0xc8] sm:$0xff]   ;;  %v502_v29 = vld [vmem:[%s637_s1 + $0xc0] sm:$0xff]  }
   0xb   :  { %v499_v26 = vld [vmem:[%s637_s1 + $0x8] sm:$0xff]   ;;  %v503_v30 = vld [vmem:[%s637_s1] sm:$0xff]  }
   0xc   :  { %434 = vmatpush3.bf16.msra.mxu0 %v483_v10  ;;  %v500_v27 = vld [vmem:[%s637_s1 + $0x88] sm:$0xff]   ;;  %v504_v31 = vld [vmem:[%s637_s1 + $0x80] sm:$0xff]  }
   0xd   :  { %456 = vmatpush3.bf16.msra.mxu1 %v484_v11  ;;  %435 = vmatprep.subr.bf16.mxu0 %v485_v12  ;;  %v21_v32 = vld [vmem:[%s638_s0] sm:$0xff]  ;;  %v22_v33 = vld [vmem:[%s638_s0 + $0x8] sm:$0xff] }
   0xe   :  { %457 = vmatprep.subr.bf16.mxu1 %v486_v13  ;;  %v392_v34 = vcombine.low %v21_v32, %v21_v32  ;;  %v393_v35 = vcombine.high %v21_v32, %v21_v32  ;;  %v394_v36 = vcombine.low %v22_v33, %v22_v33  ;;  %v395_v37 = vcombine.high %v22_v33, %v22_v33  ;;  %v428_v44 = vld [vmem:[%s639_s2] ss:$0 sm:$0xff] }
  0x10   :  { %436 = vmatpush3.bf16.msra.mxu0 %v487_v14  ;;  %325 = vmatprep.mubr.bf16.mxu0 %v393_v35 }
  0x11   :  { %458 = vmatpush3.bf16.msra.mxu1 %v488_v15  ;;  %437 = vmatprep.subr.bf16.mxu0 %v489_v16 }
  0x12   :  { %459 = vmatprep.subr.bf16.mxu1 %v490_v17  ;;  %365 = vmatprep.mubr.bf16.mxu1 %v395_v37 }
  0x14   :  { %438 = vmatpush3.bf16.msra.mxu0 %v491_v18 }
  0x15   :  { %460 = vmatpush3.bf16.msra.mxu1 %v492_v19  ;;  %439 = vmatprep.subr.bf16.mxu0 %v493_v20 }
  0x16   :  { %461 = vmatprep.subr.bf16.mxu1 %v494_v21 }
  0x18   :  { %440 = vmatpush3.bf16.msra.mxu0 %v495_v22 }
  0x19   :  { %462 = vmatpush3.bf16.msra.mxu1 %v496_v23  ;;  %441 = vmatprep.subr.bf16.mxu0 %v497_v24 }
  0x1a   :  { %463 = vmatprep.subr.bf16.mxu1 %v498_v25 }
  0x1c   :  { %442 = vmatpush3.bf16.msra.mxu0 %v499_v26 }
  0x1d   :  { %464 = vmatpush3.bf16.msra.mxu1 %v500_v27  ;;  %443 = vmatprep.subr.bf16.mxu0 %v501_v28 }
  0x1e   :  { %465 = vmatprep.subr.bf16.mxu1 %v502_v29 }
  0x20   :  { %444 = vmatpush3.bf16.msra.mxu0 %v503_v30 }
  0x21   :  { %466 = vmatpush3.bf16.msra.mxu1 %v504_v31 }
  0x23   :  { %326 = vmatmul.mubr.bf16.vlgmr.msra.gmra.mxu0 %v392_v34 }
  0x24   :  { %366 = vmatmul.mubr.bf16.vlgmr.msra.gmra.mxu1 %v394_v36 }
  0xe3   :  { %v445_v38 = vpop.f32.mrf.mxu0 }
  0xe4   :  { %v467_v39 = vpop.f32.mrf.mxu1 }
  0xe5   :  { %v446_v40 = vpop.f32.mrf.mxu0 }
  0xe6   :  { %v468_v41 = vpop.f32.mrf.mxu1  ;;  %v447_v42 = vadd.f32 %v446_v40, %v445_v38 }
  0xe7   :  { %v469_v43 = vadd.f32 %v468_v41, %v467_v39  ;;  %v448_v45 = vpop.f32.mrf.mxu0 }
  0xe8   :  { %v470_v46 = vpop.f32.mrf.mxu1 }
  0xe9   :  { %v368_v47 = vadd.f32 %v469_v43, %v447_v42  ;;  %v449_v48 = vpop.f32.mrf.mxu0 }
  0xea   :  { %v471_v49 = vpop.f32.mrf.mxu1 }
  0xeb   :  { %v386_v50 = vadd.f32 %v428_v44, %v368_v47 }
  0xed   :  { %387 = vst [vmem:[%s640_s3] sm:$0xff] %v386_v50 }

</bundles_post_ra>
